<compile_context>
chip_gen: v6e
topology: v6e:2x2x1
jax: 0.10.0
libtpu: 0.0.40
codegen_flags: <defaults>
</compile_context>

<pallas_src>
import functools

import jax
import jax.numpy as jnp
from jax.experimental import pallas as pl
from jax.experimental.pallas import tpu as pltpu

# Layer widths implied by TestNet.__init__:
#   10 -> 50 -> 100 -> 200 -> 100 -> (100 x 10 hidden-to-hidden) -> 50 -> 10
DIMS = [10, 50, 100, 200, 100] + [100] * 10 + [50, 10]
N_LAYERS = len(DIMS) - 1          # 16 Linear layers, 15 ReLUs (none after last)

P = 256                           # uniform padded feature width (>= max dim, mult of 128)
OUT_PAD = 128                     # lane-dense padded output width (real d_out = 10)


def _round_up(n, m):
    return ((n + m - 1) // m) * m


def _mlp_kernel(x_ref, w_ref, b_ref, out_ref):
    """x_ref: (tile_b, P); w_ref: (N_LAYERS, P, P); b_ref: (N_LAYERS, 1, P);
    out_ref: (tile_b, OUT_PAD)."""
    h = x_ref[...].astype(jnp.float32)                       # (tile_b, P)
    for l in range(N_LAYERS):                                # static unroll
        w = w_ref[l].astype(jnp.float32)                     # (P, P)
        b = b_ref[l].astype(jnp.float32)                     # (1, P)
        h = jnp.dot(h, w, preferred_element_type=jnp.float32) + b
        if l < N_LAYERS - 1:
            h = jnp.maximum(h, 0.0)                          # ReLU (VPU)
    # Lane-dense store: first OUT_PAD (=128) lanes; real outputs are [:, :10].
    out_ref[...] = h[:, :OUT_PAD].astype(out_ref.dtype)


@functools.partial(jax.jit, static_argnames=("tile_b",))
def testnet_forward(x, w_slab, b_slab, *, tile_b=256):
    """x: (B, 10) float32. w_slab: (16, P, P). b_slab: (16, 1, P).
    Returns (B, 10) float32."""
    B, d_in = x.shape
    assert d_in == DIMS[0]

    # Pad batch to a multiple of tile_b and features to P; padding is zeros.
    B_pad = _round_up(max(B, 1), tile_b)
    x_pad = jnp.zeros((B_pad, P), jnp.float32).at[:B, :d_in].set(
        x.astype(jnp.float32))

    grid = (B_pad // tile_b,)
    in_specs = [
        pl.BlockSpec((tile_b, P), lambda i: (i, 0)),                 # x tile
        pl.BlockSpec((N_LAYERS, P, P), lambda i: (0, 0, 0)),         # weights (resident)
        pl.BlockSpec((N_LAYERS, 1, P), lambda i: (0, 0, 0)),         # biases  (resident)
    ]
    out_spec = pl.BlockSpec((tile_b, OUT_PAD), lambda i: (i, 0))

    out_pad = pl.pallas_call(
        _mlp_kernel,
        out_shape=jax.ShapeDtypeStruct((B_pad, OUT_PAD), jnp.float32),
        grid=grid,
        in_specs=in_specs,
        out_specs=out_spec,
        compiler_params=pltpu.CompilerParams(
            dimension_semantics=("parallel",),
        ),
    )(x_pad, w_slab, b_slab)

    return out_pad[:B, :DIMS[-1]]


def init_params(key):
    """Per-layer params mimicking nn.Linear default init U(-1/sqrt(fan_in), +).

    Weights stored (in_features, out_features) (transpose of PyTorch layout),
    biases stored (out_features,).
    """
    ws, bs = [], []
    for l in range(N_LAYERS):
        di, do = DIMS[l], DIMS[l + 1]
        key, kw, kb = jax.random.split(key, 3)
        bound = 1.0 / (di ** 0.5)
        ws.append(jax.random.uniform(kw, (di, do), jnp.float32, -bound, bound))
        bs.append(jax.random.uniform(kb, (do,), jnp.float32, -bound, bound))
    return ws, bs


def pack_params(ws, bs, dtype=jnp.float32):
    """Zero-pad each layer to (P, P) / (1, P) and stack into two slabs.

    Use dtype=jnp.bfloat16 on v6e/v7x to halve weight VMEM residency; the
    kernel always accumulates in f32.
    """
    w_slab = jnp.zeros((N_LAYERS, P, P), dtype)
    b_slab = jnp.zeros((N_LAYERS, 1, P), dtype)
    for l in range(N_LAYERS):
        di, do = DIMS[l], DIMS[l + 1]
        w_slab = w_slab.at[l, :di, :do].set(ws[l].astype(dtype))
        b_slab = b_slab.at[l, 0, :do].set(bs[l].astype(dtype))
    return w_slab, b_slab


def reference_forward(x, ws, bs):
    h = x
    for l in range(N_LAYERS):
        h = h @ ws[l] + bs[l]
        if l < N_LAYERS - 1:
            h = jnp.maximum(h, 0.0)
    return h


if __name__ == "__main__":
    key = jax.random.PRNGKey(0)
    key, kx = jax.random.split(key)
    batch = 8
    x = jax.random.normal(kx, (batch, DIMS[0]), jnp.float32)

    ws, bs = init_params(key)
    w_slab, b_slab = pack_params(ws, bs, dtype=jnp.float32)

    out = testnet_forward(x, w_slab, b_slab, tile_b=256)
    out = jax.block_until_ready(out)

    ref = reference_forward(x, ws, bs)
    assert out.shape == (batch, DIMS[-1])
    assert jnp.allclose(out, ref, atol=2e-4, rtol=2e-4), (
        float(jnp.max(jnp.abs(out - ref))))

    print("KERNEL_OK")
</pallas_src>

<mosaic_0001>
module attributes {stable_mosaic.version = 11 : i64} {
  func.func @_mlp_kernel(%arg0: i32, %arg1: memref<256x256xf32, #tpu.memory_space<vmem>>, %arg2: memref<16x256x256xf32, #tpu.memory_space<vmem>>, %arg3: memref<16x1x256xf32, #tpu.memory_space<vmem>>, %arg4: memref<256x128xf32, #tpu.memory_space<vmem>>) attributes {dimension_semantics = [#tpu.dimension_semantics<parallel>], iteration_bounds = array<i64: 1>, scalar_prefetch = 0 : i64, scratch_operands = 0 : i64, tpu.core_type = #tpu.core_type<tc>, window_params = [{transform_indices = @transform_0, window_bounds = array<i64: 256, 256>}, {pipeline_mode = #tpu.pipeline_mode<synchronous>, transform_indices = @transform_1, window_bounds = array<i64: 16, 256, 256>}, {pipeline_mode = #tpu.pipeline_mode<synchronous>, transform_indices = @transform_2, window_bounds = array<i64: 16, 1, 256>}, {transform_indices = @transform_3, window_bounds = array<i64: 256, 128>}]} {
    %c0 = arith.constant 0 : index
    %c0_0 = arith.constant 0 : index
    %0 = vector.load %arg1[%c0, %c0_0] : memref<256x256xf32, #tpu.memory_space<vmem>>, vector<256x256xf32>
    %c0_1 = arith.constant 0 : index
    %c0_2 = arith.constant 0 : index
    %c0_3 = arith.constant 0 : index
    %1 = vector.load %arg2[%c0_1, %c0_2, %c0_3] : memref<16x256x256xf32, #tpu.memory_space<vmem>>, vector<1x256x256xf32>
    %2 = vector.shape_cast %1 : vector<1x256x256xf32> to vector<256x256xf32>
    %c0_4 = arith.constant 0 : index
    %c0_5 = arith.constant 0 : index
    %c0_6 = arith.constant 0 : index
    %3 = vector.load %arg3[%c0_4, %c0_5, %c0_6] : memref<16x1x256xf32, #tpu.memory_space<vmem>>, vector<1x1x256xf32>
    %4 = vector.shape_cast %3 : vector<1x1x256xf32> to vector<1x256xf32>
    %cst = arith.constant dense<0.000000e+00> : vector<256x256xf32>
    %5 = tpu.matmul %0, %2, %cst {dimension_numbers = #tpu.dot_dimension_numbers<[1], [0], [0], [1], [0, 0, 1, 1], [], []>} : vector<256x256xf32>, vector<256x256xf32>, vector<256x256xf32> -> vector<256x256xf32>
    %6 = vector.broadcast %4 : vector<1x256xf32> to vector<256x256xf32>
    %7 = arith.addf %5, %6 : vector<256x256xf32>
    %cst_7 = arith.constant 0.000000e+00 : f32
    %8 = vector.broadcast %cst_7 : f32 to vector<256x256xf32>
    %9 = arith.maximumf %7, %8 : vector<256x256xf32>
    %c1 = arith.constant 1 : index
    %c0_8 = arith.constant 0 : index
    %c0_9 = arith.constant 0 : index
    %10 = vector.load %arg2[%c1, %c0_8, %c0_9] : memref<16x256x256xf32, #tpu.memory_space<vmem>>, vector<1x256x256xf32>
    %11 = vector.shape_cast %10 : vector<1x256x256xf32> to vector<256x256xf32>
    %c1_10 = arith.constant 1 : index
    %c0_11 = arith.constant 0 : index
    %c0_12 = arith.constant 0 : index
    %12 = vector.load %arg3[%c1_10, %c0_11, %c0_12] : memref<16x1x256xf32, #tpu.memory_space<vmem>>, vector<1x1x256xf32>
    %13 = vector.shape_cast %12 : vector<1x1x256xf32> to vector<1x256xf32>
    %cst_13 = arith.constant dense<0.000000e+00> : vector<256x256xf32>
    %14 = tpu.matmul %9, %11, %cst_13 {dimension_numbers = #tpu.dot_dimension_numbers<[1], [0], [0], [1], [0, 0, 1, 1], [], []>} : vector<256x256xf32>, vector<256x256xf32>, vector<256x256xf32> -> vector<256x256xf32>
    %15 = vector.broadcast %13 : vector<1x256xf32> to vector<256x256xf32>
    %16 = arith.addf %14, %15 : vector<256x256xf32>
    %cst_14 = arith.constant 0.000000e+00 : f32
    %17 = vector.broadcast %cst_14 : f32 to vector<256x256xf32>
    %18 = arith.maximumf %16, %17 : vector<256x256xf32>
    %c2 = arith.constant 2 : index
    %c0_15 = arith.constant 0 : index
    %c0_16 = arith.constant 0 : index
    %19 = vector.load %arg2[%c2, %c0_15, %c0_16] : memref<16x256x256xf32, #tpu.memory_space<vmem>>, vector<1x256x256xf32>
    %20 = vector.shape_cast %19 : vector<1x256x256xf32> to vector<256x256xf32>
    %c2_17 = arith.constant 2 : index
    %c0_18 = arith.constant 0 : index
    %c0_19 = arith.constant 0 : index
    %21 = vector.load %arg3[%c2_17, %c0_18, %c0_19] : memref<16x1x256xf32, #tpu.memory_space<vmem>>, vector<1x1x256xf32>
    %22 = vector.shape_cast %21 : vector<1x1x256xf32> to vector<1x256xf32>
    %cst_20 = arith.constant dense<0.000000e+00> : vector<256x256xf32>
    %23 = tpu.matmul %18, %20, %cst_20 {dimension_numbers = #tpu.dot_dimension_numbers<[1], [0], [0], [1], [0, 0, 1, 1], [], []>} : vector<256x256xf32>, vector<256x256xf32>, vector<256x256xf32> -> vector<256x256xf32>
    %24 = vector.broadcast %22 : vector<1x256xf32> to vector<256x256xf32>
    %25 = arith.addf %23, %24 : vector<256x256xf32>
    %cst_21 = arith.constant 0.000000e+00 : f32
    %26 = vector.broadcast %cst_21 : f32 to vector<256x256xf32>
    %27 = arith.maximumf %25, %26 : vector<256x256xf32>
    %c3 = arith.constant 3 : index
    %c0_22 = arith.constant 0 : index
    %c0_23 = arith.constant 0 : index
    %28 = vector.load %arg2[%c3, %c0_22, %c0_23] : memref<16x256x256xf32, #tpu.memory_space<vmem>>, vector<1x256x256xf32>
    %29 = vector.shape_cast %28 : vector<1x256x256xf32> to vector<256x256xf32>
    %c3_24 = arith.constant 3 : index
    %c0_25 = arith.constant 0 : index
    %c0_26 = arith.constant 0 : index
    %30 = vector.load %arg3[%c3_24, %c0_25, %c0_26] : memref<16x1x256xf32, #tpu.memory_space<vmem>>, vector<1x1x256xf32>
    %31 = vector.shape_cast %30 : vector<1x1x256xf32> to vector<1x256xf32>
    %cst_27 = arith.constant dense<0.000000e+00> : vector<256x256xf32>
    %32 = tpu.matmul %27, %29, %cst_27 {dimension_numbers = #tpu.dot_dimension_numbers<[1], [0], [0], [1], [0, 0, 1, 1], [], []>} : vector<256x256xf32>, vector<256x256xf32>, vector<256x256xf32> -> vector<256x256xf32>
    %33 = vector.broadcast %31 : vector<1x256xf32> to vector<256x256xf32>
    %34 = arith.addf %32, %33 : vector<256x256xf32>
    %cst_28 = arith.constant 0.000000e+00 : f32
    %35 = vector.broadcast %cst_28 : f32 to vector<256x256xf32>
    %36 = arith.maximumf %34, %35 : vector<256x256xf32>
    %c4 = arith.constant 4 : index
    %c0_29 = arith.constant 0 : index
    %c0_30 = arith.constant 0 : index
    %37 = vector.load %arg2[%c4, %c0_29, %c0_30] : memref<16x256x256xf32, #tpu.memory_space<vmem>>, vector<1x256x256xf32>
    %38 = vector.shape_cast %37 : vector<1x256x256xf32> to vector<256x256xf32>
    %c4_31 = arith.constant 4 : index
    %c0_32 = arith.constant 0 : index
    %c0_33 = arith.constant 0 : index
    %39 = vector.load %arg3[%c4_31, %c0_32, %c0_33] : memref<16x1x256xf32, #tpu.memory_space<vmem>>, vector<1x1x256xf32>
    %40 = vector.shape_cast %39 : vector<1x1x256xf32> to vector<1x256xf32>
    %cst_34 = arith.constant dense<0.000000e+00> : vector<256x256xf32>
    %41 = tpu.matmul %36, %38, %cst_34 {dimension_numbers = #tpu.dot_dimension_numbers<[1], [0], [0], [1], [0, 0, 1, 1], [], []>} : vector<256x256xf32>, vector<256x256xf32>, vector<256x256xf32> -> vector<256x256xf32>
    %42 = vector.broadcast %40 : vector<1x256xf32> to vector<256x256xf32>
    %43 = arith.addf %41, %42 : vector<256x256xf32>
    %cst_35 = arith.constant 0.000000e+00 : f32
    %44 = vector.broadcast %cst_35 : f32 to vector<256x256xf32>
    %45 = arith.maximumf %43, %44 : vector<256x256xf32>
    %c5 = arith.constant 5 : index
    %c0_36 = arith.constant 0 : index
    %c0_37 = arith.constant 0 : index
    %46 = vector.load %arg2[%c5, %c0_36, %c0_37] : memref<16x256x256xf32, #tpu.memory_space<vmem>>, vector<1x256x256xf32>
    %47 = vector.shape_cast %46 : vector<1x256x256xf32> to vector<256x256xf32>
    %c5_38 = arith.constant 5 : index
    %c0_39 = arith.constant 0 : index
    %c0_40 = arith.constant 0 : index
    %48 = vector.load %arg3[%c5_38, %c0_39, %c0_40] : memref<16x1x256xf32, #tpu.memory_space<vmem>>, vector<1x1x256xf32>
    %49 = vector.shape_cast %48 : vector<1x1x256xf32> to vector<1x256xf32>
    %cst_41 = arith.constant dense<0.000000e+00> : vector<256x256xf32>
    %50 = tpu.matmul %45, %47, %cst_41 {dimension_numbers = #tpu.dot_dimension_numbers<[1], [0], [0], [1], [0, 0, 1, 1], [], []>} : vector<256x256xf32>, vector<256x256xf32>, vector<256x256xf32> -> vector<256x256xf32>
    %51 = vector.broadcast %49 : vector<1x256xf32> to vector<256x256xf32>
    %52 = arith.addf %50, %51 : vector<256x256xf32>
    %cst_42 = arith.constant 0.000000e+00 : f32
    %53 = vector.broadcast %cst_42 : f32 to vector<256x256xf32>
    %54 = arith.maximumf %52, %53 : vector<256x256xf32>
    %c6 = arith.constant 6 : index
    %c0_43 = arith.constant 0 : index
    %c0_44 = arith.constant 0 : index
    %55 = vector.load %arg2[%c6, %c0_43, %c0_44] : memref<16x256x256xf32, #tpu.memory_space<vmem>>, vector<1x256x256xf32>
    %56 = vector.shape_cast %55 : vector<1x256x256xf32> to vector<256x256xf32>
    %c6_45 = arith.constant 6 : index
    %c0_46 = arith.constant 0 : index
    %c0_47 = arith.constant 0 : index
    %57 = vector.load %arg3[%c6_45, %c0_46, %c0_47] : memref<16x1x256xf32, #tpu.memory_space<vmem>>, vector<1x1x256xf32>
    %58 = vector.shape_cast %57 : vector<1x1x256xf32> to vector<1x256xf32>
    %cst_48 = arith.constant dense<0.000000e+00> : vector<256x256xf32>
    %59 = tpu.matmul %54, %56, %cst_48 {dimension_numbers = #tpu.dot_dimension_numbers<[1], [0], [0], [1], [0, 0, 1, 1], [], []>} : vector<256x256xf32>, vector<256x256xf32>, vector<256x256xf32> -> vector<256x256xf32>
    %60 = vector.broadcast %58 : vector<1x256xf32> to vector<256x256xf32>
    %61 = arith.addf %59, %60 : vector<256x256xf32>
    %cst_49 = arith.constant 0.000000e+00 : f32
    %62 = vector.broadcast %cst_49 : f32 to vector<256x256xf32>
    %63 = arith.maximumf %61, %62 : vector<256x256xf32>
    %c7 = arith.constant 7 : index
    %c0_50 = arith.constant 0 : index
    %c0_51 = arith.constant 0 : index
    %64 = vector.load %arg2[%c7, %c0_50, %c0_51] : memref<16x256x256xf32, #tpu.memory_space<vmem>>, vector<1x256x256xf32>
    %65 = vector.shape_cast %64 : vector<1x256x256xf32> to vector<256x256xf32>
    %c7_52 = arith.constant 7 : index
    %c0_53 = arith.constant 0 : index
    %c0_54 = arith.constant 0 : index
    %66 = vector.load %arg3[%c7_52, %c0_53, %c0_54] : memref<16x1x256xf32, #tpu.memory_space<vmem>>, vector<1x1x256xf32>
    %67 = vector.shape_cast %66 : vector<1x1x256xf32> to vector<1x256xf32>
    %cst_55 = arith.constant dense<0.000000e+00> : vector<256x256xf32>
    %68 = tpu.matmul %63, %65, %cst_55 {dimension_numbers = #tpu.dot_dimension_numbers<[1], [0], [0], [1], [0, 0, 1, 1], [], []>} : vector<256x256xf32>, vector<256x256xf32>, vector<256x256xf32> -> vector<256x256xf32>
    %69 = vector.broadcast %67 : vector<1x256xf32> to vector<256x256xf32>
    %70 = arith.addf %68, %69 : vector<256x256xf32>
    %cst_56 = arith.constant 0.000000e+00 : f32
    %71 = vector.broadcast %cst_56 : f32 to vector<256x256xf32>
    %72 = arith.maximumf %70, %71 : vector<256x256xf32>
    %c8 = arith.constant 8 : index
    %c0_57 = arith.constant 0 : index
    %c0_58 = arith.constant 0 : index
    %73 = vector.load %arg2[%c8, %c0_57, %c0_58] : memref<16x256x256xf32, #tpu.memory_space<vmem>>, vector<1x256x256xf32>
    %74 = vector.shape_cast %73 : vector<1x256x256xf32> to vector<256x256xf32>
    %c8_59 = arith.constant 8 : index
    %c0_60 = arith.constant 0 : index
    %c0_61 = arith.constant 0 : index
    %75 = vector.load %arg3[%c8_59, %c0_60, %c0_61] : memref<16x1x256xf32, #tpu.memory_space<vmem>>, vector<1x1x256xf32>
    %76 = vector.shape_cast %75 : vector<1x1x256xf32> to vector<1x256xf32>
    %cst_62 = arith.constant dense<0.000000e+00> : vector<256x256xf32>
    %77 = tpu.matmul %72, %74, %cst_62 {dimension_numbers = #tpu.dot_dimension_numbers<[1], [0], [0], [1], [0, 0, 1, 1], [], []>} : vector<256x256xf32>, vector<256x256xf32>, vector<256x256xf32> -> vector<256x256xf32>
    %78 = vector.broadcast %76 : vector<1x256xf32> to vector<256x256xf32>
    %79 = arith.addf %77, %78 : vector<256x256xf32>
    %cst_63 = arith.constant 0.000000e+00 : f32
    %80 = vector.broadcast %cst_63 : f32 to vector<256x256xf32>
    %81 = arith.maximumf %79, %80 : vector<256x256xf32>
    %c9 = arith.constant 9 : index
    %c0_64 = arith.constant 0 : index
    %c0_65 = arith.constant 0 : index
    %82 = vector.load %arg2[%c9, %c0_64, %c0_65] : memref<16x256x256xf32, #tpu.memory_space<vmem>>, vector<1x256x256xf32>
    %83 = vector.shape_cast %82 : vector<1x256x256xf32> to vector<256x256xf32>
    %c9_66 = arith.constant 9 : index
    %c0_67 = arith.constant 0 : index
    %c0_68 = arith.constant 0 : index
    %84 = vector.load %arg3[%c9_66, %c0_67, %c0_68] : memref<16x1x256xf32, #tpu.memory_space<vmem>>, vector<1x1x256xf32>
    %85 = vector.shape_cast %84 : vector<1x1x256xf32> to vector<1x256xf32>
    %cst_69 = arith.constant dense<0.000000e+00> : vector<256x256xf32>
    %86 = tpu.matmul %81, %83, %cst_69 {dimension_numbers = #tpu.dot_dimension_numbers<[1], [0], [0], [1], [0, 0, 1, 1], [], []>} : vector<256x256xf32>, vector<256x256xf32>, vector<256x256xf32> -> vector<256x256xf32>
    %87 = vector.broadcast %85 : vector<1x256xf32> to vector<256x256xf32>
    %88 = arith.addf %86, %87 : vector<256x256xf32>
    %cst_70 = arith.constant 0.000000e+00 : f32
    %89 = vector.broadcast %cst_70 : f32 to vector<256x256xf32>
    %90 = arith.maximumf %88, %89 : vector<256x256xf32>
    %c10 = arith.constant 10 : index
    %c0_71 = arith.constant 0 : index
    %c0_72 = arith.constant 0 : index
    %91 = vector.load %arg2[%c10, %c0_71, %c0_72] : memref<16x256x256xf32, #tpu.memory_space<vmem>>, vector<1x256x256xf32>
    %92 = vector.shape_cast %91 : vector<1x256x256xf32> to vector<256x256xf32>
    %c10_73 = arith.constant 10 : index
    %c0_74 = arith.constant 0 : index
    %c0_75 = arith.constant 0 : index
    %93 = vector.load %arg3[%c10_73, %c0_74, %c0_75] : memref<16x1x256xf32, #tpu.memory_space<vmem>>, vector<1x1x256xf32>
    %94 = vector.shape_cast %93 : vector<1x1x256xf32> to vector<1x256xf32>
    %cst_76 = arith.constant dense<0.000000e+00> : vector<256x256xf32>
    %95 = tpu.matmul %90, %92, %cst_76 {dimension_numbers = #tpu.dot_dimension_numbers<[1], [0], [0], [1], [0, 0, 1, 1], [], []>} : vector<256x256xf32>, vector<256x256xf32>, vector<256x256xf32> -> vector<256x256xf32>
    %96 = vector.broadcast %94 : vector<1x256xf32> to vector<256x256xf32>
    %97 = arith.addf %95, %96 : vector<256x256xf32>
    %cst_77 = arith.constant 0.000000e+00 : f32
    %98 = vector.broadcast %cst_77 : f32 to vector<256x256xf32>
    %99 = arith.maximumf %97, %98 : vector<256x256xf32>
    %c11 = arith.constant 11 : index
    %c0_78 = arith.constant 0 : index
    %c0_79 = arith.constant 0 : index
    %100 = vector.load %arg2[%c11, %c0_78, %c0_79] : memref<16x256x256xf32, #tpu.memory_space<vmem>>, vector<1x256x256xf32>
    %101 = vector.shape_cast %100 : vector<1x256x256xf32> to vector<256x256xf32>
    %c11_80 = arith.constant 11 : index
    %c0_81 = arith.constant 0 : index
    %c0_82 = arith.constant 0 : index
    %102 = vector.load %arg3[%c11_80, %c0_81, %c0_82] : memref<16x1x256xf32, #tpu.memory_space<vmem>>, vector<1x1x256xf32>
    %103 = vector.shape_cast %102 : vector<1x1x256xf32> to vector<1x256xf32>
    %cst_83 = arith.constant dense<0.000000e+00> : vector<256x256xf32>
    %104 = tpu.matmul %99, %101, %cst_83 {dimension_numbers = #tpu.dot_dimension_numbers<[1], [0], [0], [1], [0, 0, 1, 1], [], []>} : vector<256x256xf32>, vector<256x256xf32>, vector<256x256xf32> -> vector<256x256xf32>
    %105 = vector.broadcast %103 : vector<1x256xf32> to vector<256x256xf32>
    %106 = arith.addf %104, %105 : vector<256x256xf32>
    %cst_84 = arith.constant 0.000000e+00 : f32
    %107 = vector.broadcast %cst_84 : f32 to vector<256x256xf32>
    %108 = arith.maximumf %106, %107 : vector<256x256xf32>
    %c12 = arith.constant 12 : index
    %c0_85 = arith.constant 0 : index
    %c0_86 = arith.constant 0 : index
    %109 = vector.load %arg2[%c12, %c0_85, %c0_86] : memref<16x256x256xf32, #tpu.memory_space<vmem>>, vector<1x256x256xf32>
    %110 = vector.shape_cast %109 : vector<1x256x256xf32> to vector<256x256xf32>
    %c12_87 = arith.constant 12 : index
    %c0_88 = arith.constant 0 : index
    %c0_89 = arith.constant 0 : index
    %111 = vector.load %arg3[%c12_87, %c0_88, %c0_89] : memref<16x1x256xf32, #tpu.memory_space<vmem>>, vector<1x1x256xf32>
    %112 = vector.shape_cast %111 : vector<1x1x256xf32> to vector<1x256xf32>
    %cst_90 = arith.constant dense<0.000000e+00> : vector<256x256xf32>
    %113 = tpu.matmul %108, %110, %cst_90 {dimension_numbers = #tpu.dot_dimension_numbers<[1], [0], [0], [1], [0, 0, 1, 1], [], []>} : vector<256x256xf32>, vector<256x256xf32>, vector<256x256xf32> -> vector<256x256xf32>
    %114 = vector.broadcast %112 : vector<1x256xf32> to vector<256x256xf32>
    %115 = arith.addf %113, %114 : vector<256x256xf32>
    %cst_91 = arith.constant 0.000000e+00 : f32
    %116 = vector.broadcast %cst_91 : f32 to vector<256x256xf32>
    %117 = arith.maximumf %115, %116 : vector<256x256xf32>
    %c13 = arith.constant 13 : index
    %c0_92 = arith.constant 0 : index
    %c0_93 = arith.constant 0 : index
    %118 = vector.load %arg2[%c13, %c0_92, %c0_93] : memref<16x256x256xf32, #tpu.memory_space<vmem>>, vector<1x256x256xf32>
    %119 = vector.shape_cast %118 : vector<1x256x256xf32> to vector<256x256xf32>
    %c13_94 = arith.constant 13 : index
    %c0_95 = arith.constant 0 : index
    %c0_96 = arith.constant 0 : index
    %120 = vector.load %arg3[%c13_94, %c0_95, %c0_96] : memref<16x1x256xf32, #tpu.memory_space<vmem>>, vector<1x1x256xf32>
    %121 = vector.shape_cast %120 : vector<1x1x256xf32> to vector<1x256xf32>
    %cst_97 = arith.constant dense<0.000000e+00> : vector<256x256xf32>
    %122 = tpu.matmul %117, %119, %cst_97 {dimension_numbers = #tpu.dot_dimension_numbers<[1], [0], [0], [1], [0, 0, 1, 1], [], []>} : vector<256x256xf32>, vector<256x256xf32>, vector<256x256xf32> -> vector<256x256xf32>
    %123 = vector.broadcast %121 : vector<1x256xf32> to vector<256x256xf32>
    %124 = arith.addf %122, %123 : vector<256x256xf32>
    %cst_98 = arith.constant 0.000000e+00 : f32
    %125 = vector.broadcast %cst_98 : f32 to vector<256x256xf32>
    %126 = arith.maximumf %124, %125 : vector<256x256xf32>
    %c14 = arith.constant 14 : index
    %c0_99 = arith.constant 0 : index
    %c0_100 = arith.constant 0 : index
    %127 = vector.load %arg2[%c14, %c0_99, %c0_100] : memref<16x256x256xf32, #tpu.memory_space<vmem>>, vector<1x256x256xf32>
    %128 = vector.shape_cast %127 : vector<1x256x256xf32> to vector<256x256xf32>
    %c14_101 = arith.constant 14 : index
    %c0_102 = arith.constant 0 : index
    %c0_103 = arith.constant 0 : index
    %129 = vector.load %arg3[%c14_101, %c0_102, %c0_103] : memref<16x1x256xf32, #tpu.memory_space<vmem>>, vector<1x1x256xf32>
    %130 = vector.shape_cast %129 : vector<1x1x256xf32> to vector<1x256xf32>
    %cst_104 = arith.constant dense<0.000000e+00> : vector<256x256xf32>
    %131 = tpu.matmul %126, %128, %cst_104 {dimension_numbers = #tpu.dot_dimension_numbers<[1], [0], [0], [1], [0, 0, 1, 1], [], []>} : vector<256x256xf32>, vector<256x256xf32>, vector<256x256xf32> -> vector<256x256xf32>
    %132 = vector.broadcast %130 : vector<1x256xf32> to vector<256x256xf32>
    %133 = arith.addf %131, %132 : vector<256x256xf32>
    %cst_105 = arith.constant 0.000000e+00 : f32
    %134 = vector.broadcast %cst_105 : f32 to vector<256x256xf32>
    %135 = arith.maximumf %133, %134 : vector<256x256xf32>
    %c15 = arith.constant 15 : index
    %c0_106 = arith.constant 0 : index
    %c0_107 = arith.constant 0 : index
    %136 = vector.load %arg2[%c15, %c0_106, %c0_107] : memref<16x256x256xf32, #tpu.memory_space<vmem>>, vector<1x256x256xf32>
    %137 = vector.shape_cast %136 : vector<1x256x256xf32> to vector<256x256xf32>
    %c15_108 = arith.constant 15 : index
    %c0_109 = arith.constant 0 : index
    %c0_110 = arith.constant 0 : index
    %138 = vector.load %arg3[%c15_108, %c0_109, %c0_110] : memref<16x1x256xf32, #tpu.memory_space<vmem>>, vector<1x1x256xf32>
    %139 = vector.shape_cast %138 : vector<1x1x256xf32> to vector<1x256xf32>
    %cst_111 = arith.constant dense<0.000000e+00> : vector<256x256xf32>
    %140 = tpu.matmul %135, %137, %cst_111 {dimension_numbers = #tpu.dot_dimension_numbers<[1], [0], [0], [1], [0, 0, 1, 1], [], []>} : vector<256x256xf32>, vector<256x256xf32>, vector<256x256xf32> -> vector<256x256xf32>
    %141 = vector.broadcast %139 : vector<1x256xf32> to vector<256x256xf32>
    %142 = arith.addf %140, %141 : vector<256x256xf32>
    %143 = vector.extract_strided_slice %142 {offsets = [0, 0], sizes = [256, 128], strides = [1, 1]} : vector<256x256xf32> to vector<256x128xf32>
    %c0_112 = arith.constant 0 : index
    %c0_113 = arith.constant 0 : index
    %144 = vector.load %arg4[%c0_112, %c0_113] : memref<256x128xf32, #tpu.memory_space<vmem>>, vector<256x128xf32>
    tpu.vector_store %arg4[%c0_112, %c0_113], %143 {strides = array<i32>} : memref<256x128xf32, #tpu.memory_space<vmem>>, vector<256x128xf32>,
    return
  }
  func.func @transform_0(%arg0: i32) -> (i32, i32) {
    %c0_i32 = arith.constant 0 : i32
    %c0_i32_0 = arith.constant 0 : i32
    return %arg0, %c0_i32 : i32, i32
  }
  func.func @transform_1(%arg0: i32) -> (i32, i32, i32) {
    %c0_i32 = arith.constant 0 : i32
    %c0_i32_0 = arith.constant 0 : i32
    %c0_i32_1 = arith.constant 0 : i32
    %c0_i32_2 = arith.constant 0 : i32
    return %c0_i32, %c0_i32_0, %c0_i32_1 : i32, i32, i32
  }
  func.func @transform_2(%arg0: i32) -> (i32, i32, i32) {
    %c0_i32 = arith.constant 0 : i32
    %c0_i32_0 = arith.constant 0 : i32
    %c0_i32_1 = arith.constant 0 : i32
    %c0_i32_2 = arith.constant 0 : i32
    return %c0_i32, %c0_i32_0, %c0_i32_1 : i32, i32, i32
  }
  func.func @transform_3(%arg0: i32) -> (i32, i32) {
    %c0_i32 = arith.constant 0 : i32
    %c0_i32_0 = arith.constant 0 : i32
    return %arg0, %c0_i32 : i32, i32
  }
}

</mosaic_0001>

<bundles_post_ra>
// kernel: testnet_forward.1
= control target key start
LH: loop header
LB: loop body
LE: loop exit
PB: predicated region body
PF: predicated region fallthrough
CT: control target
= control target key end

     0   :  { %8 = vsyncpa [#allocation3], 0  ;;  %s7884_s0 = inlined_call_operand.vmem [shape: f32[256,256], index: 0, kind: input, shape index: {}]   ;;  %s7885_s1 = inlined_call_operand.hbm [shape: f32[16,256,256], index: 1, kind: input, shape index: {}]   ;;  %s7886_s2 = inlined_call_operand.hbm [shape: f32[16,1,256], index: 2, kind: input, shape index: {}]   ;;  %s7887_s3 = inlined_call_operand.vmem [shape: f32[256,128], index: 3, kind: output, shape index: {}]  }
   0x1   :  { %9 = vsyncpa [#allocation5], 0  ;;  %s6475_s12 = smov [#allocation2]  }
   0x2   :  { %s17_s13 = sshll.u32 %s6475_s12, 4  ;;  %s18_s13 = int_to_ptr.vmem [resolvable:$true] %s17_s13 }
   0x3   :  { %s6439_s14 = scalar_lea.vmem %s18_s13, 131072  ;;  %p6444_p1 = scmp.lt.s32.totalorder %s18_s13, %s18_s13 }
   0x4   :  { %p6440_p0 = scmp.ne.s32.totalorder %s18_s13, %s6439_s14  ;;  %p6445_p2 = scmp.lt.s32.totalorder %s6439_s14, %s6439_s14 }
   0x6   :  { %p6446_p3 = por %p6445_p2, %p6444_p1 }
   0x8   :  { %p6447_p4 = pnand %p6446_p3, %p6440_p0 }
   0xa   :  { %6450 = shalt.err (!%p6447_p4)
}
   0xb   :  { %s6476_s15 = smov 256   ;;  %s6477_s16 = smov 16  }
   0xc   :  { %23 = dma.hbm_to_vmem [thread:$0]  %s7885_s1, 131072, %s18_s13, [#allocation3], %s6476_s15, %s6476_s15, %s6477_s16  }
   0xd   :  { %s6478_s19 = smov [#allocation4]  }
   0xe   :  { %s29_s20 = sshll.u32 %s6478_s19, 4  ;;  %s30_s20 = int_to_ptr.vmem [resolvable:$true] %s29_s20 }
   0xf   :  { %s6459_s21 = scalar_lea.vmem %s30_s20, 512  ;;  %p6464_p6 = scmp.lt.s32.totalorder %s30_s20, %s30_s20 }
  0x10   :  { %p6460_p5 = scmp.ne.s32.totalorder %s30_s20, %s6459_s21  ;;  %p6465_p7 = scmp.lt.s32.totalorder %s6459_s21, %s6459_s21 }
  0x12   :  { %p6466_p8 = por %p6465_p7, %p6464_p6 }
  0x14   :  { %p6467_p9 = pnand %p6466_p8, %p6460_p5 }
  0x16   :  { %6470 = shalt.err (!%p6467_p9)
}
  0x17   :  { %s6479_s22 = smov 32   ;;  %s6480_s23 = smov 2  }
  0x18   :  { %35 = dma.hbm_to_vmem [thread:$0]  %s7886_s2, 512, %s30_s20, [#allocation5], %s6479_s22, %s6479_s22, %s6480_s23  }
  0x19   :  { %6471 = dma.done.wait [#allocation3], 131072  }
  0x1a   :  { %6472 = vsyncadd [#allocation3], 4294836224 }
  0x1b   :  { %6473 = dma.done.wait [#allocation5], 512  }
  0x1c   :  { %6474 = vsyncadd [#allocation5], 4294966784  ;;  %v137_v0 = vld [vmem:[#allocation2 + $0xf8] sm:$0xff]  ;;  %v136_v1 = vld [vmem:[#allocation2 + $0xf0] sm:$0xff] }
  0x1d   :  { %v135_v2 = vld [vmem:[#allocation2 + $0xe8] sm:$0xff]  ;;  %182 = vmatprep.subr.mxu0 %v137_v0  ;;  %v134_v3 = vld [vmem:[#allocation2 + $0xe0] sm:$0xff]  ;;  %v133_v4 = vld [vmem:[#allocation2 + $0xd8] sm:$0xff] }
  0x1e   :  { %183 = vmatpush1.msra.mxu0 %v136_v1  ;;  %v132_v5 = vld [vmem:[#allocation2 + $0xd0] sm:$0xff]  ;;  %v131_v6 = vld [vmem:[#allocation2 + $0xc8] sm:$0xff]  ;;  %v130_v7 = vld [vmem:[#allocation2 + $0xc0] sm:$0xff] }
  0x1f   :  { %184 = vmatprep.subr.mxu0 %v135_v2  ;;  %v129_v8 = vld [vmem:[#allocation2 + $0xb8] sm:$0xff]  ;;  %v128_v9 = vld [vmem:[#allocation2 + $0xb0] sm:$0xff]  ;;  %v127_v10 = vld [vmem:[#allocation2 + $0xa8] sm:$0xff] }
  0x20   :  { %185 = vmatpush1.msra.mxu0 %v134_v3  ;;  %v126_v11 = vld [vmem:[#allocation2 + $0xa0] sm:$0xff]  ;;  %v125_v12 = vld [vmem:[#allocation2 + $0x98] sm:$0xff]  ;;  %v124_v13 = vld [vmem:[#allocation2 + $0x90] sm:$0xff] }
  0x21   :  { %186 = vmatprep.subr.mxu0 %v133_v4  ;;  %v123_v14 = vld [vmem:[#allocation2 + $0x88] sm:$0xff]  ;;  %v122_v15 = vld [vmem:[#allocation2 + $0x80] sm:$0xff]  ;;  %v121_v16 = vld [vmem:[#allocation2 + $0x78] sm:$0xff] }
  0x22   :  { %187 = vmatpush1.msra.mxu0 %v132_v5  ;;  %v120_v17 = vld [vmem:[#allocation2 + $0x70] sm:$0xff]  ;;  %v119_v18 = vld [vmem:[#allocation2 + $0x68] sm:$0xff]  ;;  %v118_v19 = vld [vmem:[#allocation2 + $0x60] sm:$0xff] }
  0x23   :  { %188 = vmatprep.subr.mxu0 %v131_v6  ;;  %v117_v20 = vld [vmem:[#allocation2 + $0x58] sm:$0xff]  ;;  %v116_v21 = vld [vmem:[#allocation2 + $0x50] sm:$0xff]  ;;  %v115_v22 = vld [vmem:[#allocation2 + $0x48] sm:$0xff] }
  0x24   :  { %189 = vmatpush1.msra.mxu0 %v130_v7  ;;  %v114_v23 = vld [vmem:[#allocation2 + $0x40] sm:$0xff]  ;;  %v43_v24 = vld [vmem:[%s7884_s0 + $0x8] sm:$0xff]  ;;  %v113_v25 = vld [vmem:[#allocation2 + $0x38] sm:$0xff] }
  0x25   :  { %190 = vmatprep.subr.mxu0 %v129_v8  ;;  %246 = vmatprep.mubr.f32.mxu0 %v43_v24  ;;  %v112_v26 = vld [vmem:[#allocation2 + $0x30] sm:$0xff]  ;;  %v111_v27 = vld [vmem:[#allocation2 + $0x28] sm:$0xff]  ;;  %v110_v28 = vld [vmem:[#allocation2 + $0x20] sm:$0xff] }
  0x26   :  { %191 = vmatpush1.msra.mxu0 %v128_v9  ;;  %v109_v29 = vld [vmem:[#allocation2 + $0x18] sm:$0xff]  ;;  %v108_v30 = vld [vmem:[#allocation2 + $0x10] sm:$0xff]  ;;  %v107_v31 = vld [vmem:[#allocation2 + $0x8] sm:$0xff] }
  0x27   :  { %192 = vmatprep.subr.mxu0 %v127_v10  ;;  %v106_v32 = vld [vmem:[#allocation2] sm:$0xff]  ;;  %v169_v33 = vld [vmem:[#allocation2 + $0x1f8] sm:$0xff]  ;;  %v168_v34 = vld [vmem:[#allocation2 + $0x1f0] sm:$0xff] }
  0x28   :  { %193 = vmatpush1.msra.mxu0 %v126_v11  ;;  %v167_v35 = vld [vmem:[#allocation2 + $0x1e8] sm:$0xff]  ;;  %v166_v36 = vld [vmem:[#allocation2 + $0x1e0] sm:$0xff]  ;;  %v165_v37 = vld [vmem:[#allocation2 + $0x1d8] sm:$0xff] }
  0x29   :  { %194 = vmatprep.subr.mxu0 %v125_v12  ;;  %v164_v38 = vld [vmem:[#allocation2 + $0x1d0] sm:$0xff]  ;;  %v163_v39 = vld [vmem:[#allocation2 + $0x1c8] sm:$0xff]  ;;  %v162_v40 = vld [vmem:[#allocation2 + $0x1c0] sm:$0xff] }
  0x2a   :  { %195 = vmatpush1.msra.mxu0 %v124_v13  ;;  %v161_v41 = vld [vmem:[#allocation2 + $0x1b8] sm:$0xff]  ;;  %v160_v42 = vld [vmem:[#allocation2 + $0x1b0] sm:$0xff]  ;;  %v159_v43 = vld [vmem:[#allocation2 + $0x1a8] sm:$0xff] }
  0x2b   :  { %196 = vmatprep.subr.mxu0 %v123_v14  ;;  %v158_v44 = vld [vmem:[#allocation2 + $0x1a0] sm:$0xff]  ;;  %v157_v45 = vld [vmem:[#allocation2 + $0x198] sm:$0xff]  ;;  %v156_v46 = vld [vmem:[#allocation2 + $0x190] sm:$0xff] }
  0x2c   :  { %197 = vmatpush1.msra.mxu0 %v122_v15  ;;  %v155_v47 = vld [vmem:[#allocation2 + $0x188] sm:$0xff]  ;;  %v154_v48 = vld [vmem:[#allocation2 + $0x180] sm:$0xff]  ;;  %v153_v49 = vld [vmem:[#allocation2 + $0x178] sm:$0xff] }
  0x2d   :  { %198 = vmatprep.subr.mxu0 %v121_v16  ;;  %v152_v50 = vld [vmem:[#allocation2 + $0x170] sm:$0xff]  ;;  %v151_v51 = vld [vmem:[#allocation2 + $0x168] sm:$0xff]  ;;  %v150_v52 = vld [vmem:[#allocation2 + $0x160] sm:$0xff] }
  0x2e   :  { %199 = vmatpush1.msra.mxu0 %v120_v17  ;;  %v149_v53 = vld [vmem:[#allocation2 + $0x158] sm:$0xff]  ;;  %v148_v54 = vld [vmem:[#allocation2 + $0x150] sm:$0xff]  ;;  %v147_v55 = vld [vmem:[#allocation2 + $0x148] sm:$0xff] }
  0x2f   :  { %200 = vmatprep.subr.mxu0 %v119_v18  ;;  %v146_v56 = vld [vmem:[#allocation2 + $0x140] sm:$0xff]  ;;  %v145_v57 = vld [vmem:[#allocation2 + $0x138] sm:$0xff]  ;;  %v144_v58 = vld [vmem:[#allocation2 + $0x130] sm:$0xff] }
  0x30   :  { %201 = vmatpush1.msra.mxu0 %v118_v19  ;;  %v143_v59 = vld [vmem:[#allocation2 + $0x128] sm:$0xff]  ;;  %v142_v60 = vld [vmem:[#allocation2 + $0x120] sm:$0xff]  ;;  %v141_v61 = vld [vmem:[#allocation2 + $0x118] sm:$0xff] }
  0x31   :  { %202 = vmatprep.subr.mxu0 %v117_v20  ;;  %v140_v62 = vld [vmem:[#allocation2 + $0x110] sm:$0xff]  ;;  %v139_v63 = vld [vmem:[#allocation2 + $0x108] sm:$0xff]  ;;  %v138_v0 = vld [vmem:[#allocation2 + $0x100] sm:$0xff] }
  0x32   :  { %203 = vmatpush1.msra.mxu0 %v116_v21  ;;  %v535_v1 = vld [vmem:[#allocation2 + $0x2f8] sm:$0xff]  ;;  %v534_v2 = vld [vmem:[#allocation2 + $0x2f0] sm:$0xff]  ;;  %v533_v3 = vld [vmem:[#allocation2 + $0x2e8] sm:$0xff] }
  0x33   :  { %204 = vmatprep.subr.mxu0 %v115_v22  ;;  %v42_v4 = vld [vmem:[%s7884_s0] sm:$0xff]  ;;  %581 = vmatprep.subr.mxu1 %v535_v1  ;;  %v45_v6 = vld [vmem:[%s7884_s0 + $0x18] sm:$0xff]  ;;  %v530_v8 = vld [vmem:[#allocation2 + $0x2d0] sm:$0xff] }
  0x34   :  { %205 = vmatpush1.msra.mxu0 %v114_v23  ;;  %v532_v5 = vld [vmem:[#allocation2 + $0x2e0] sm:$0xff]  ;;  %582 = vmatpush1.msra.mxu1 %v534_v2  ;;  %v531_v7 = vld [vmem:[#allocation2 + $0x2d8] sm:$0xff]  ;;  %v529_v9 = vld [vmem:[#allocation2 + $0x2c8] sm:$0xff] }
  0x35   :  { %206 = vmatprep.subr.mxu0 %v113_v25  ;;  %583 = vmatprep.subr.mxu1 %v533_v3  ;;  %v44_v10 = vld [vmem:[%s7884_s0 + $0x10] sm:$0xff]  ;;  %v528_v11 = vld [vmem:[#allocation2 + $0x2c0] sm:$0xff]  ;;  %v47_v12 = vld [vmem:[%s7884_s0 + $0x28] sm:$0xff] }
  0x36   :  { %207 = vmatpush1.msra.mxu0 %v112_v26  ;;  %584 = vmatpush1.msra.mxu1 %v532_v5  ;;  %v527_v13 = vld [vmem:[#allocation2 + $0x2b8] sm:$0xff]  ;;  %v526_v14 = vld [vmem:[#allocation2 + $0x2b0] sm:$0xff]  ;;  %v525_v15 = vld [vmem:[#allocation2 + $0x2a8] sm:$0xff] }
  0x37   :  { %208 = vmatprep.subr.mxu0 %v111_v27  ;;  %585 = vmatprep.subr.mxu1 %v531_v7  ;;  %v46_v16 = vld [vmem:[%s7884_s0 + $0x20] sm:$0xff]  ;;  %v49_v18 = vld [vmem:[%s7884_s0 + $0x38] sm:$0xff]  ;;  %v522_v20 = vld [vmem:[#allocation2 + $0x290] sm:$0xff] }
  0x38   :  { %209 = vmatpush1.msra.mxu0 %v110_v28  ;;  %586 = vmatpush1.msra.mxu1 %v530_v8  ;;  %v524_v17 = vld [vmem:[#allocation2 + $0x2a0] sm:$0xff]  ;;  %v523_v19 = vld [vmem:[#allocation2 + $0x298] sm:$0xff]  ;;  %v521_v21 = vld [vmem:[#allocation2 + $0x288] sm:$0xff] }
  0x39   :  { %210 = vmatprep.subr.mxu0 %v109_v29  ;;  %587 = vmatprep.subr.mxu1 %v529_v9  ;;  %v48_v22 = vld [vmem:[%s7884_s0 + $0x30] sm:$0xff]  ;;  %v520_v23 = vld [vmem:[#allocation2 + $0x280] sm:$0xff]  ;;  %v51_v24 = vld [vmem:[%s7884_s0 + $0x48] sm:$0xff] }
  0x3a   :  { %211 = vmatpush1.msra.mxu0 %v108_v30  ;;  %588 = vmatpush1.msra.mxu1 %v528_v11  ;;  %v519_v25 = vld [vmem:[#allocation2 + $0x278] sm:$0xff]  ;;  %v518_v26 = vld [vmem:[#allocation2 + $0x270] sm:$0xff]  ;;  %v517_v27 = vld [vmem:[#allocation2 + $0x268] sm:$0xff] }
  0x3b   :  { %212 = vmatprep.subr.mxu0 %v107_v31  ;;  %589 = vmatprep.subr.mxu1 %v527_v13  ;;  %v50_v28 = vld [vmem:[%s7884_s0 + $0x40] sm:$0xff]  ;;  %v53_v30 = vld [vmem:[%s7884_s0 + $0x58] sm:$0xff]  ;;  %v553_v5 = vld [vmem:[#allocation2 + $0x388] sm:$0xff] }
  0x3c   :  { %213 = vmatpush1.msra.mxu0 %v106_v32  ;;  %590 = vmatpush1.msra.mxu1 %v526_v14  ;;  %v516_v29 = vld [vmem:[#allocation2 + $0x260] sm:$0xff]  ;;  %v515_v31 = vld [vmem:[#allocation2 + $0x258] sm:$0xff]  ;;  %v514_v32 = vld [vmem:[#allocation2 + $0x250] sm:$0xff] }
  0x3d   :  { %214 = vmatprep.subr.mxu0 %v169_v33  ;;  %591 = vmatprep.subr.mxu1 %v525_v15  ;;  %v513_v33 = vld [vmem:[#allocation2 + $0x248] sm:$0xff]  ;;  %v556_v1 = vld [vmem:[#allocation2 + $0x3a0] sm:$0xff]  ;;  %v65_v2 = vld [vmem:[%s7884_s0 + $0xb8] sm:$0xff] }
  0x3e   :  { %215 = vmatpush2.msra.mxu0 %v168_v34  ;;  %592 = vmatpush1.msra.mxu1 %v524_v17  ;;  %v52_v34 = vld [vmem:[%s7884_s0 + $0x50] sm:$0xff]  ;;  %v555_v3 = vld [vmem:[#allocation2 + $0x398] sm:$0xff]  ;;  %v552_v7 = vld [vmem:[#allocation2 + $0x380] sm:$0xff] }
  0x3f   :  { %216 = vmatprep.subr.mxu0 %v167_v35  ;;  %593 = vmatprep.subr.mxu1 %v523_v19  ;;  %v512_v35 = vld [vmem:[#allocation2 + $0x240] sm:$0xff]  ;;  %v67_v8 = vld [vmem:[%s7884_s0 + $0xc8] sm:$0xff]  ;;  %v551_v9 = vld [vmem:[#allocation2 + $0x378] sm:$0xff] }
  0x40   :  { %217 = vmatpush2.msra.mxu0 %v166_v36  ;;  %594 = vmatpush1.msra.mxu1 %v522_v20  ;;  %v55_v36 = vld [vmem:[%s7884_s0 + $0x68] sm:$0xff]  ;;  %v548_v13 = vld [vmem:[#allocation2 + $0x360] sm:$0xff]  ;;  %v69_v14 = vld [vmem:[%s7884_s0 + $0xd8] sm:$0xff] }
  0x41   :  { %218 = vmatprep.subr.mxu0 %v165_v37  ;;  %595 = vmatprep.subr.mxu1 %v521_v21  ;;  %v511_v37 = vld [vmem:[#allocation2 + $0x238] sm:$0xff]  ;;  %v549_v11 = vld [vmem:[#allocation2 + $0x368] sm:$0xff]  ;;  %v544_v19 = vld [vmem:[#allocation2 + $0x340] sm:$0xff] }
  0x42   :  { %219 = vmatpush2.msra.mxu0 %v164_v38  ;;  %596 = vmatpush1.msra.mxu1 %v520_v23  ;;  %v510_v38 = vld [vmem:[#allocation2 + $0x230] sm:$0xff]  ;;  %v547_v15 = vld [vmem:[#allocation2 + $0x358] sm:$0xff]  ;;  %v545_v17 = vld [vmem:[#allocation2 + $0x348] sm:$0xff] }
  0x43   :  { %220 = vmatprep.subr.mxu0 %v163_v39  ;;  %597 = vmatprep.subr.mxu1 %v519_v25  ;;  %v509_v39 = vld [vmem:[#allocation2 + $0x228] sm:$0xff]  ;;  %v70_v21 = vld [vmem:[%s7884_s0 + $0xe0] sm:$0xff]  ;;  %v72_v23 = vld [vmem:[%s7884_s0 + $0xf0] sm:$0xff] }
  0x44   :  { %221 = vmatpush2.msra.mxu0 %v162_v40  ;;  %598 = vmatpush1.msra.mxu1 %v518_v26  ;;  %v54_v40 = vld [vmem:[%s7884_s0 + $0x60] sm:$0xff]  ;;  %v71_v20 = vld [vmem:[%s7884_s0 + $0xe8] sm:$0xff]  ;;  %v77_v26 = vld [vmem:[%s7884_s0 + $0x118] sm:$0xff] }
  0x45   :  { %222 = vmatprep.subr.mxu0 %v161_v41  ;;  %599 = vmatprep.subr.mxu1 %v517_v27  ;;  %v508_v41 = vld [vmem:[#allocation2 + $0x220] sm:$0xff]  ;;  %v543_v27 = vld [vmem:[#allocation2 + $0x338] sm:$0xff] }
  0x46   :  { %223 = vmatpush2.msra.mxu0 %v160_v42  ;;  %600 = vmatpush1.msra.mxu1 %v516_v29  ;;  %v57_v42 = vld [vmem:[%s7884_s0 + $0x78] sm:$0xff]  ;;  %v74_v25 = vld [vmem:[%s7884_s0 + $0x100] sm:$0xff]  ;;  %v76_v29 = vld [vmem:[%s7884_s0 + $0x110] sm:$0xff] }
  0x47   :  { %224 = vmatprep.subr.mxu0 %v159_v43  ;;  %601 = vmatprep.subr.mxu1 %v515_v31  ;;  %v507_v43 = vld [vmem:[#allocation2 + $0x218] sm:$0xff]  ;;  %v79_v31 = vld [vmem:[%s7884_s0 + $0x128] sm:$0xff] }
  0x48   :  { %225 = vmatpush2.msra.mxu0 %v158_v44  ;;  %602 = vmatpush1.msra.mxu1 %v514_v32  ;;  %v506_v44 = vld [vmem:[#allocation2 + $0x210] sm:$0xff]  ;;  %v540_v32 = vld [vmem:[#allocation2 + $0x320] sm:$0xff] }
  0x49   :  { %226 = vmatprep.subr.mxu0 %v157_v45  ;;  %603 = vmatprep.subr.mxu1 %v513_v33  ;;  %v505_v45 = vld [vmem:[#allocation2 + $0x208] sm:$0xff]  ;;  %v539_v33 = vld [vmem:[#allocation2 + $0x318] sm:$0xff] }
  0x4a   :  { %227 = vmatpush2.msra.mxu0 %v156_v46  ;;  %604 = vmatpush1.msra.mxu1 %v512_v35  ;;  %v56_v46 = vld [vmem:[%s7884_s0 + $0x70] sm:$0xff]  ;;  %v78_v35 = vld [vmem:[%s7884_s0 + $0x120] sm:$0xff] }
  0x4b   :  { %228 = vmatprep.subr.mxu0 %v155_v47  ;;  %605 = vmatprep.subr.mxu1 %v511_v37  ;;  %v504_v47 = vld [vmem:[#allocation2 + $0x200] sm:$0xff]  ;;  %v81_v37 = vld [vmem:[%s7884_s0 + $0x138] sm:$0xff] }
  0x4c   :  { %229 = vmatpush2.msra.mxu0 %v154_v48  ;;  %606 = vmatpush1.msra.mxu1 %v510_v38  ;;  %v59_v48 = vld [vmem:[%s7884_s0 + $0x88] sm:$0xff]  ;;  %v536_v38 = vld [vmem:[#allocation2 + $0x300] sm:$0xff] }
  0x4d   :  { %230 = vmatprep.subr.mxu0 %v153_v49  ;;  %607 = vmatprep.subr.mxu1 %v509_v39  ;;  %v567_v49 = vld [vmem:[#allocation2 + $0x3f8] sm:$0xff]  ;;  %v80_v39 = vld [vmem:[%s7884_s0 + $0x130] sm:$0xff] }
  0x4e   :  { %231 = vmatpush2.msra.mxu0 %v152_v50  ;;  %608 = vmatpush1.msra.mxu1 %v508_v41  ;;  %v566_v50 = vld [vmem:[#allocation2 + $0x3f0] sm:$0xff]  ;;  %v82_v41 = vld [vmem:[%s7884_s0 + $0x140] sm:$0xff] }
  0x4f   :  { %232 = vmatprep.subr.mxu0 %v151_v51  ;;  %609 = vmatprep.subr.mxu1 %v507_v43  ;;  %v565_v51 = vld [vmem:[#allocation2 + $0x3e8] sm:$0xff]  ;;  %v84_v43 = vld [vmem:[%s7884_s0 + $0x150] sm:$0xff] }
  0x50   :  { %233 = vmatpush2.msra.mxu0 %v150_v52  ;;  %610 = vmatpush1.msra.mxu1 %v506_v44  ;;  %v58_v52 = vld [vmem:[%s7884_s0 + $0x80] sm:$0xff]  ;;  %v87_v44 = vld [vmem:[%s7884_s0 + $0x168] sm:$0xff] }
  0x51   :  { %234 = vmatprep.subr.mxu0 %v149_v53  ;;  %611 = vmatprep.subr.mxu1 %v505_v45  ;;  %v564_v53 = vld [vmem:[#allocation2 + $0x3e0] sm:$0xff] }
  0x52   :  { %235 = vmatpush2.msra.mxu0 %v148_v54  ;;  %612 = vmatpush1.msra.mxu1 %v504_v47  ;;  %v61_v54 = vld [vmem:[%s7884_s0 + $0x98] sm:$0xff]  ;;  %v86_v45 = vld [vmem:[%s7884_s0 + $0x160] sm:$0xff]  ;;  %v88_v47 = vld [vmem:[%s7884_s0 + $0x170] sm:$0xff] }
  0x53   :  { %236 = vmatprep.subr.mxu0 %v147_v55  ;;  %613 = vmatprep.subr.mxu1 %v567_v49  ;;  %v563_v55 = vld [vmem:[#allocation2 + $0x3d8] sm:$0xff]  ;;  %v90_v49 = vld [vmem:[%s7884_s0 + $0x180] sm:$0xff] }
  0x54   :  { %237 = vmatpush2.msra.mxu0 %v146_v56  ;;  %614 = vmatpush2.msra.mxu1 %v566_v50  ;;  %v562_v56 = vld [vmem:[#allocation2 + $0x3d0] sm:$0xff]  ;;  %v93_v50 = vld [vmem:[%s7884_s0 + $0x198] sm:$0xff] }
  0x55   :  { %238 = vmatprep.subr.mxu0 %v145_v57  ;;  %615 = vmatprep.subr.mxu1 %v565_v51  ;;  %v561_v57 = vld [vmem:[#allocation2 + $0x3c8] sm:$0xff]  ;;  %v92_v51 = vld [vmem:[%s7884_s0 + $0x190] sm:$0xff] }
  0x56   :  { %239 = vmatpush2.msra.mxu0 %v144_v58  ;;  %616 = vmatpush2.msra.mxu1 %v564_v53  ;;  %v60_v58 = vld [vmem:[%s7884_s0 + $0x90] sm:$0xff]  ;;  %v94_v53 = vld [vmem:[%s7884_s0 + $0x1a0] sm:$0xff] }
  0x57   :  { %240 = vmatprep.subr.mxu0 %v143_v59  ;;  %617 = vmatprep.subr.mxu1 %v563_v55  ;;  %v560_v59 = vld [vmem:[#allocation2 + $0x3c0] sm:$0xff]  ;;  %v96_v55 = vld [vmem:[%s7884_s0 + $0x1b0] sm:$0xff] }
  0x58   :  { %241 = vmatpush2.msra.mxu0 %v142_v60  ;;  %v63_v60 = vld [vmem:[%s7884_s0 + $0xa8] sm:$0xff]  ;;  %618 = vmatpush2.msra.mxu1 %v562_v56 }
  0x59   :  { %242 = vmatprep.subr.mxu0 %v141_v61  ;;  %v559_v61 = vld [vmem:[#allocation2 + $0x3b8] sm:$0xff]  ;;  %619 = vmatprep.subr.mxu1 %v561_v57  ;;  %v99_v56 = vld [vmem:[%s7884_s0 + $0x1c8] sm:$0xff]  ;;  %v98_v57 = vld [vmem:[%s7884_s0 + $0x1c0] sm:$0xff] }
  0x5a   :  { %243 = vmatpush2.msra.mxu0 %v140_v62  ;;  %v558_v62 = vld [vmem:[#allocation2 + $0x3b0] sm:$0xff]  ;;  %620 = vmatpush2.msra.mxu1 %v560_v59 }
  0x5b   :  { %244 = vmatprep.subr.mxu0 %v139_v63  ;;  %v557_v63 = vld [vmem:[#allocation2 + $0x3a8] sm:$0xff]  ;;  %621 = vmatprep.subr.mxu1 %v559_v61  ;;  %v100_v59 = vld [vmem:[%s7884_s0 + $0x1d0] sm:$0xff]  ;;  %v102_v61 = vld [vmem:[%s7884_s0 + $0x1e0] sm:$0xff] }
  0x5c   :  { %245 = vmatpush2.msra.mxu0 %v138_v0  ;;  %v62_v0 = vld [vmem:[%s7884_s0 + $0xa0] sm:$0xff]  ;;  %622 = vmatpush2.msra.mxu1 %v558_v62  ;;  %v105_v62 = vld [vmem:[%s7884_s0 + $0x1f8] sm:$0xff] }
  0x5d   :  { %247 = vmatmul.mubr.f32.vlgmr.msra.gmra.mxu0 %v42_v4  ;;  %623 = vmatprep.subr.mxu1 %v557_v63  ;;  %v554_v4 = vld [vmem:[#allocation2 + $0x390] sm:$0xff] }
  0x5e   :  { %252 = vmatprep.mubr.f32.mxu0 %v45_v6  ;;  %624 = vmatpush2.msra.mxu1 %v556_v1  ;;  %v64_v6 = vld [vmem:[%s7884_s0 + $0xb0] sm:$0xff] }
  0x5f   :  { %625 = vmatprep.subr.mxu1 %v555_v3  ;;  %v104_v63 = vld [vmem:[%s7884_s0 + $0x1f0] sm:$0xff]  ;;  %v931_v3 = vld [vmem:[#allocation2 + $0x4e0] sm:$0xff] }
  0x60   :  { %626 = vmatpush2.msra.mxu1 %v554_v4  ;;  %v933_v1 = vld [vmem:[#allocation2 + $0x4f0] sm:$0xff]  ;;  %v930_v4 = vld [vmem:[#allocation2 + $0x4d8] sm:$0xff] }
  0x61   :  { %253 = vmatmul.mubr.f32.gmra.mxu0 %v44_v10  ;;  %627 = vmatprep.subr.mxu1 %v553_v5  ;;  %v550_v10 = vld [vmem:[#allocation2 + $0x370] sm:$0xff] }
  0x62   :  { %258 = vmatprep.mubr.f32.mxu0 %v47_v12  ;;  %628 = vmatpush2.msra.mxu1 %v552_v7  ;;  %v66_v12 = vld [vmem:[%s7884_s0 + $0xc0] sm:$0xff]  ;;  %v929_v5 = vld [vmem:[#allocation2 + $0x4d0] sm:$0xff] }
  0x63   :  { %629 = vmatprep.subr.mxu1 %v551_v9  ;;  %v927_v7 = vld [vmem:[#allocation2 + $0x4c0] sm:$0xff]  ;;  %v925_v9 = vld [vmem:[#allocation2 + $0x4b0] sm:$0xff] }
  0x64   :  { %630 = vmatpush2.msra.mxu1 %v550_v10  ;;  %v924_v10 = vld [vmem:[#allocation2 + $0x4a8] sm:$0xff] }
  0x65   :  { %259 = vmatmul.mubr.f32.gmra.mxu0 %v46_v16  ;;  %631 = vmatprep.subr.mxu1 %v549_v11  ;;  %v546_v16 = vld [vmem:[#allocation2 + $0x350] sm:$0xff]  ;;  %v923_v11 = vld [vmem:[#allocation2 + $0x4a0] sm:$0xff] }
  0x66   :  { %264 = vmatprep.mubr.f32.mxu0 %v49_v18  ;;  %632 = vmatpush2.msra.mxu1 %v548_v13  ;;  %v68_v18 = vld [vmem:[%s7884_s0 + $0xd0] sm:$0xff] }
  0x67   :  { %633 = vmatprep.subr.mxu1 %v547_v15  ;;  %v921_v13 = vld [vmem:[#allocation2 + $0x490] sm:$0xff]  ;;  %v919_v15 = vld [vmem:[#allocation2 + $0x480] sm:$0xff] }
  0x68   :  { %634 = vmatpush2.msra.mxu1 %v546_v16  ;;  %v918_v16 = vld [vmem:[#allocation2 + $0x478] sm:$0xff] }
  0x69   :  { %265 = vmatmul.mubr.f32.gmra.mxu0 %v48_v22  ;;  %635 = vmatprep.subr.mxu1 %v545_v17  ;;  %v73_v22 = vld [vmem:[%s7884_s0 + $0xf8] sm:$0xff]  ;;  %v172_v17 = vlaneseq }
  0x6a   :  { %270 = vmatprep.mubr.f32.mxu0 %v51_v24  ;;  %636 = vmatpush2.msra.mxu1 %v544_v19  ;;  %v75_v24 = vld [vmem:[%s7884_s0 + $0x108] sm:$0xff] }
  0x6b   :  { %637 = vmatprep.subr.mxu1 %v543_v27  ;;  %v916_v19 = vld [vmem:[#allocation2 + $0x468] sm:$0xff] }
  0x6c   :  { %v912_v27 = vld [vmem:[#allocation2 + $0x448] sm:$0xff] }
  0x6d   :  { %271 = vmatmul.mubr.f32.gmra.mxu0 %v50_v28  ;;  %v542_v28 = vld [vmem:[#allocation2 + $0x330] sm:$0xff] }
  0x6e   :  { %276 = vmatprep.mubr.f32.mxu0 %v53_v30  ;;  %638 = vmatpush2.msra.mxu1 %v542_v28  ;;  %v541_v30 = vld [vmem:[#allocation2 + $0x328] sm:$0xff] }
  0x6f   :  { %639 = vmatprep.subr.mxu1 %v541_v30  ;;  %v911_v30 = vld [vmem:[#allocation2 + $0x440] sm:$0xff] }
  0x70   :  { %640 = vmatpush2.msra.mxu1 %v540_v32  ;;  %v910_v32 = vld [vmem:[#allocation2 + $0x438] sm:$0xff] }
  0x71   :  { %277 = vmatmul.mubr.f32.gmra.mxu0 %v52_v34  ;;  %641 = vmatprep.subr.mxu1 %v539_v33  ;;  %v538_v34 = vld [vmem:[#allocation2 + $0x310] sm:$0xff] }
  0x72   :  { %282 = vmatprep.mubr.f32.mxu0 %v55_v36  ;;  %642 = vmatpush2.msra.mxu1 %v538_v34  ;;  %v537_v36 = vld [vmem:[#allocation2 + $0x308] sm:$0xff]  ;;  %v909_v33 = vld [vmem:[#allocation2 + $0x430] sm:$0xff] }
  0x73   :  { %643 = vmatprep.subr.mxu1 %v537_v36 }
  0x74   :  { %644 = vmatpush2.msra.mxu1 %v536_v38 }
  0x75   :  { %283 = vmatmul.mubr.f32.gmra.mxu0 %v54_v40  ;;  %v83_v40 = vld [vmem:[%s7884_s0 + $0x148] sm:$0xff] }
  0x76   :  { %288 = vmatprep.mubr.f32.mxu0 %v57_v42  ;;  %v85_v42 = vld [vmem:[%s7884_s0 + $0x158] sm:$0xff] }
  0x79   :  { %289 = vmatmul.mubr.f32.gmra.mxu0 %v56_v46  ;;  %v89_v46 = vld [vmem:[%s7884_s0 + $0x178] sm:$0xff] }
  0x7a   :  { %294 = vmatprep.mubr.f32.mxu0 %v59_v48  ;;  %v91_v48 = vld [vmem:[%s7884_s0 + $0x188] sm:$0xff] }
  0x7d   :  { %295 = vmatmul.mubr.f32.gmra.mxu0 %v58_v52  ;;  %v95_v52 = vld [vmem:[%s7884_s0 + $0x1a8] sm:$0xff] }
  0x7e   :  { %300 = vmatprep.mubr.f32.mxu0 %v61_v54  ;;  %v97_v54 = vld [vmem:[%s7884_s0 + $0x1b8] sm:$0xff] }
  0x81   :  { %301 = vmatmul.mubr.f32.gmra.mxu0 %v60_v58  ;;  %v101_v58 = vld [vmem:[%s7884_s0 + $0x1d8] sm:$0xff] }
  0x82   :  { %306 = vmatprep.mubr.f32.mxu0 %v63_v60  ;;  %v103_v60 = vld [vmem:[%s7884_s0 + $0x1e8] sm:$0xff] }
  0x85   :  { %307 = vmatmul.mubr.f32.gmra.mxu0 %v62_v0  ;;  %v934_v0 = vld [vmem:[#allocation2 + $0x4f8] sm:$0xff] }
  0x86   :  { %312 = vmatprep.mubr.f32.mxu0 %v65_v2  ;;  %980 = vmatprep.subr.mxu0 %v934_v0  ;;  %v932_v2 = vld [vmem:[#allocation2 + $0x4e8] sm:$0xff] }
  0x87   :  { %981 = vmatpush1.msra.mxu0 %v933_v1 }
  0x88   :  { %982 = vmatprep.subr.mxu0 %v932_v2 }
  0x89   :  { %313 = vmatmul.mubr.f32.gmra.mxu0 %v64_v6  ;;  %v928_v6 = vld [vmem:[#allocation2 + $0x4c8] sm:$0xff] }
  0x8a   :  { %318 = vmatprep.mubr.f32.mxu0 %v67_v8  ;;  %983 = vmatpush1.msra.mxu0 %v931_v3  ;;  %v926_v8 = vld [vmem:[#allocation2 + $0x4b8] sm:$0xff]  ;;  %v959_v3 = vld [vmem:[#allocation2 + $0x5c0] sm:$0xff] }
  0x8b   :  { %984 = vmatprep.subr.mxu0 %v930_v4 }
  0x8c   :  { %985 = vmatpush1.msra.mxu0 %v929_v5  ;;  %v958_v5 = vld [vmem:[#allocation2 + $0x5b8] sm:$0xff] }
  0x8d   :  { %319 = vmatmul.mubr.f32.gmra.mxu0 %v66_v12  ;;  %986 = vmatprep.subr.mxu0 %v928_v6  ;;  %v922_v12 = vld [vmem:[#allocation2 + $0x498] sm:$0xff] }
  0x8e   :  { %324 = vmatprep.mubr.f32.mxu0 %v69_v14  ;;  %987 = vmatpush1.msra.mxu0 %v927_v7  ;;  %v920_v14 = vld [vmem:[#allocation2 + $0x488] sm:$0xff]  ;;  %v957_v7 = vld [vmem:[#allocation2 + $0x5b0] sm:$0xff] }
  0x8f   :  { %988 = vmatprep.subr.mxu0 %v926_v8 }
  0x90   :  { %989 = vmatpush1.msra.mxu0 %v925_v9  ;;  %v956_v9 = vld [vmem:[#allocation2 + $0x5a8] sm:$0xff] }
  0x91   :  { %325 = vmatmul.mubr.f32.gmra.mxu0 %v68_v18  ;;  %990 = vmatprep.subr.mxu0 %v924_v10  ;;  %v917_v18 = vld [vmem:[#allocation2 + $0x470] sm:$0xff] }
  0x92   :  { %330 = vmatprep.mubr.f32.mxu0 %v71_v20  ;;  %991 = vmatpush1.msra.mxu0 %v923_v11  ;;  %v173_v20 = vshrl.u32 %v172_v17, 7  ;;  %v953_v17 = vld [vmem:[#allocation2 + $0x590] sm:$0xff] }
  0x93   :  { %992 = vmatprep.subr.mxu0 %v922_v12 }
  0x94   :  { %993 = vmatpush1.msra.mxu0 %v921_v13  ;;  %v955_v13 = vld [vmem:[#allocation2 + $0x5a0] sm:$0xff] }
  0x95   :  { %331 = vmatmul.mubr.f32.gmra.mxu0 %v70_v21  ;;  %994 = vmatprep.subr.mxu0 %v920_v14  ;;  %v915_v21 = vld [vmem:[#allocation2 + $0x460] sm:$0xff] }
  0x96   :  { %336 = vmatprep.mubr.f32.mxu0 %v73_v22  ;;  %995 = vmatpush1.msra.mxu0 %v919_v15  ;;  %v914_v22 = vld [vmem:[#allocation2 + $0x458] sm:$0xff] }
  0x97   :  { %996 = vmatprep.subr.mxu0 %v918_v16  ;;  %v954_v15 = vld [vmem:[#allocation2 + $0x598] sm:$0xff] }
  0x98   :  { %997 = vmatpush1.msra.mxu0 %v917_v18 }
  0x99   :  { %337 = vmatmul.mubr.f32.gmra.mxu0 %v72_v23  ;;  %998 = vmatprep.subr.mxu0 %v916_v19  ;;  %v6699_v23 = vsub.s32 0, %v173_v20  ;;  %v952_v19 = vld [vmem:[#allocation2 + $0x588] sm:$0xff] }
  0x9a   :  { %342 = vmatprep.mubr.f32.mxu0 %v75_v24  ;;  %999 = vmatpush1.msra.mxu0 %v915_v21  ;;  %v170_v24 = vld [vmem:[#allocation4] sm:$0x3] }
  0x9b   :  { %1000 = vmatprep.subr.mxu0 %v914_v22  ;;  %v6704_v28 = vrot.slane %v170_v24, %v6699_v23 }
  0x9d   :  { %343 = vmatmul.mubr.f32.gmra.mxu0 %v74_v25  ;;  %v6701_v25 = vsub.s32 1, %v173_v20 }
  0x9e   :  { %348 = vmatprep.mubr.f32.mxu0 %v77_v26  ;;  %v913_v26 = vld [vmem:[#allocation2 + $0x450] sm:$0xff] }
  0x9f   :  { %1001 = vmatpush1.msra.mxu0 %v913_v26 }
  0xa0   :  { %1002 = vmatprep.subr.mxu0 %v912_v27  ;;  %v950_v27 = vld [vmem:[#allocation2 + $0x578] sm:$0xff] }
  0xa1   :  { %349 = vmatmul.mubr.f32.gmra.mxu0 %v76_v29  ;;  %v6707_v29 = vrot.slane %v170_v24, %v6701_v25  ;;  %v951_v24 = vld [vmem:[#allocation2 + $0x580] sm:$0xff] }
  0xa2   :  { %354 = vmatprep.mubr.f32.mxu0 %v79_v31  ;;  %1003 = vmatpush1.msra.mxu0 %v911_v30 }
  0xa3   :  { %1004 = vmatprep.subr.mxu0 %v910_v32 }
  0xa4   :  { %1005 = vmatpush1.msra.mxu0 %v909_v33  ;;  %v948_v33 = vld [vmem:[#allocation2 + $0x568] sm:$0xff] }
  0xa5   :  { %355 = vmatmul.mubr.f32.gmra.mxu0 %v78_v35 }
  0xa6   :  { %360 = vmatprep.mubr.f32.mxu0 %v81_v37  ;;  %v908_v37 = vld [vmem:[#allocation2 + $0x428] sm:$0xff] }
  0xa7   :  { %1006 = vmatprep.subr.mxu0 %v908_v37  ;;  %v947_v37 = vld [vmem:[#allocation2 + $0x560] sm:$0xff] }
  0xa9   :  { %361 = vmatmul.mubr.f32.gmra.mxu0 %v80_v39  ;;  %v907_v39 = vld [vmem:[#allocation2 + $0x420] sm:$0xff] }
  0xaa   :  { %366 = vmatprep.mubr.f32.mxu0 %v83_v40  ;;  %v906_v40 = vld [vmem:[#allocation2 + $0x418] sm:$0xff]  ;;  %1007 = vmatpush1.msra.mxu0 %v907_v39 }
  0xab   :  { %1008 = vmatprep.subr.mxu0 %v906_v40  ;;  %v946_v39 = vld [vmem:[#allocation2 + $0x558] sm:$0xff] }
  0xad   :  { %367 = vmatmul.mubr.f32.gmra.mxu0 %v82_v41  ;;  %v905_v41 = vld [vmem:[#allocation2 + $0x410] sm:$0xff] }
  0xae   :  { %372 = vmatprep.mubr.f32.mxu0 %v85_v42  ;;  %1009 = vmatpush1.msra.mxu0 %v905_v41  ;;  %v945_v41 = vld [vmem:[#allocation2 + $0x550] sm:$0xff] }
  0xb1   :  { %373 = vmatmul.mubr.f32.gmra.mxu0 %v84_v43  ;;  %v904_v43 = vld [vmem:[#allocation2 + $0x408] sm:$0xff] }
  0xb2   :  { %378 = vmatprep.mubr.f32.mxu0 %v87_v44  ;;  %1010 = vmatprep.subr.mxu0 %v904_v43  ;;  %v944_v43 = vld [vmem:[#allocation2 + $0x548] sm:$0xff] }
  0xb5   :  { %379 = vmatmul.mubr.f32.gmra.mxu0 %v86_v45 }
  0xb6   :  { %384 = vmatprep.mubr.f32.mxu0 %v89_v46 }
  0xb9   :  { %385 = vmatmul.mubr.f32.gmra.mxu0 %v88_v47  ;;  %v903_v47 = vld [vmem:[#allocation2 + $0x400] sm:$0xff] }
  0xba   :  { %390 = vmatprep.mubr.f32.mxu0 %v91_v48  ;;  %1011 = vmatpush1.msra.mxu0 %v903_v47  ;;  %v943_v47 = vld [vmem:[#allocation2 + $0x540] sm:$0xff] }
  0xbd   :  { %391 = vmatmul.mubr.f32.gmra.mxu0 %v90_v49  ;;  %v966_v49 = vld [vmem:[#allocation2 + $0x5f8] sm:$0xff] }
  0xbe   :  { %396 = vmatprep.mubr.f32.mxu0 %v93_v50  ;;  %1012 = vmatprep.subr.mxu0 %v966_v49  ;;  %v942_v49 = vld [vmem:[#allocation2 + $0x538] sm:$0xff] }
  0xc1   :  { %397 = vmatmul.mubr.f32.gmra.mxu0 %v92_v51  ;;  %v965_v51 = vld [vmem:[#allocation2 + $0x5f0] sm:$0xff] }
  0xc2   :  { %402 = vmatprep.mubr.f32.mxu0 %v95_v52  ;;  %1013 = vmatpush2.msra.mxu0 %v965_v51  ;;  %v941_v51 = vld [vmem:[#allocation2 + $0x530] sm:$0xff] }
  0xc5   :  { %403 = vmatmul.mubr.f32.gmra.mxu0 %v94_v53  ;;  %v964_v53 = vld [vmem:[#allocation2 + $0x5e8] sm:$0xff] }
  0xc6   :  { %408 = vmatprep.mubr.f32.mxu0 %v97_v54  ;;  %1014 = vmatprep.subr.mxu0 %v964_v53  ;;  %v940_v53 = vld [vmem:[#allocation2 + $0x528] sm:$0xff] }
  0xc9   :  { %409 = vmatmul.mubr.f32.gmra.mxu0 %v96_v55 }
  0xca   :  { %414 = vmatprep.mubr.f32.mxu0 %v99_v56 }
  0xcd   :  { %415 = vmatmul.mubr.f32.gmra.mxu0 %v98_v57  ;;  %v963_v57 = vld [vmem:[#allocation2 + $0x5e0] sm:$0xff] }
  0xce   :  { %420 = vmatprep.mubr.f32.mxu0 %v101_v58  ;;  %1015 = vmatpush2.msra.mxu0 %v963_v57  ;;  %v939_v57 = vld [vmem:[#allocation2 + $0x520] sm:$0xff] }
  0xd1   :  { %421 = vmatmul.mubr.f32.gmra.mxu0 %v100_v59  ;;  %v962_v59 = vld [vmem:[#allocation2 + $0x5d8] sm:$0xff] }
  0xd2   :  { %426 = vmatprep.mubr.f32.mxu0 %v103_v60  ;;  %1016 = vmatprep.subr.mxu0 %v962_v59  ;;  %v938_v59 = vld [vmem:[#allocation2 + $0x518] sm:$0xff] }
  0xd5   :  { %427 = vmatmul.mubr.f32.gmra.mxu0 %v102_v61  ;;  %v961_v61 = vld [vmem:[#allocation2 + $0x5d0] sm:$0xff] }
  0xd6   :  { %432 = vmatprep.mubr.f32.mxu0 %v105_v62  ;;  %1017 = vmatpush2.msra.mxu0 %v961_v61 }
  0xd9   :  { %433 = vmatmul.mubr.f32.gmra.mxu0 %v104_v63  ;;  %v960_v63 = vld [vmem:[#allocation2 + $0x5c8] sm:$0xff] }
  0xda   :  { %1018 = vmatprep.subr.mxu0 %v960_v63 }
  0xdb   :  { %1019 = vmatpush2.msra.mxu0 %v959_v3 }
  0xdc   :  { %1020 = vmatprep.subr.mxu0 %v958_v5 }
  0xdd   :  { %1021 = vmatpush2.msra.mxu0 %v957_v7 }
  0xde   :  { %1022 = vmatprep.subr.mxu0 %v956_v9 }
  0xdf   :  { %1023 = vmatpush2.msra.mxu0 %v955_v13 }
  0xe0   :  { %1024 = vmatprep.subr.mxu0 %v954_v15 }
  0xe1   :  { %1025 = vmatpush2.msra.mxu0 %v953_v17 }
  0xe2   :  { %1026 = vmatprep.subr.mxu0 %v952_v19 }
  0xe3   :  { %1027 = vmatpush2.msra.mxu0 %v951_v24 }
  0xe4   :  { %1028 = vmatprep.subr.mxu0 %v950_v27 }
 0x11d   :  { %v248_v31 = vpop.f32.mrf.mxu0 }
 0x11e   :  { %v249_v34 = vadd.f32 %v248_v31, %v6704_v28  ;;  %v949_v31 = vld [vmem:[#allocation2 + $0x570] sm:$0xff] }
 0x11f   :  { %v250_v35 = vpop.f32.mrf.mxu0  ;;  %1029 = vmatpush2.msra.mxu0 %v949_v31 }
 0x120   :  { %v251_v36 = vadd.f32 %v250_v35, %v6707_v29  ;;  %v439_v44 = vmax.f32 %v249_v34, 0.0  ;;  %1030 = vmatprep.subr.mxu0 %v948_v33 }
 0x121   :  { %v254_v38 = vpop.f32.mrf.mxu0  ;;  %1031 = vmatpush2.msra.mxu0 %v947_v37 }
 0x122   :  { %v440_v42 = vmax.f32 %v251_v36, 0.0  ;;  %v255_v45 = vadd.f32 %v254_v38, %v6704_v28  ;;  %1032 = vmatprep.subr.mxu0 %v946_v39 }
 0x123   :  { %v256_v46 = vpop.f32.mrf.mxu0  ;;  %1033 = vmatpush2.msra.mxu0 %v945_v41 }
 0x124   :  { %v257_v48 = vadd.f32 %v256_v46, %v6707_v29  ;;  %645 = vmatprep.mubr.f32.mxu1 %v440_v42  ;;  %v441_v54 = vmax.f32 %v255_v45, 0.0  ;;  %1034 = vmatprep.subr.mxu0 %v944_v43 }
 0x125   :  { %v260_v50 = vpop.f32.mrf.mxu0  ;;  %646 = vmatmul.mubr.f32.vlgmr.msra.gmra.mxu1 %v439_v44  ;;  %1035 = vmatpush2.msra.mxu0 %v943_v47 }
 0x126   :  { %v442_v52 = vmax.f32 %v257_v48, 0.0  ;;  %v261_v55 = vadd.f32 %v260_v50, %v6704_v28  ;;  %1036 = vmatprep.subr.mxu0 %v942_v49 }
 0x127   :  { %v262_v56 = vpop.f32.mrf.mxu0  ;;  %1037 = vmatpush2.msra.mxu0 %v941_v51 }
 0x128   :  { %v263_v58 = vadd.f32 %v262_v56, %v6707_v29  ;;  %651 = vmatprep.mubr.f32.mxu1 %v442_v52  ;;  %v443_v0 = vmax.f32 %v261_v55, 0.0  ;;  %1038 = vmatprep.subr.mxu0 %v940_v53 }
 0x129   :  { %v266_v60 = vpop.f32.mrf.mxu0  ;;  %652 = vmatmul.mubr.f32.gmra.mxu1 %v441_v54  ;;  %1039 = vmatpush2.msra.mxu0 %v939_v57 }
 0x12a   :  { %v444_v62 = vmax.f32 %v263_v58, 0.0  ;;  %v267_v1 = vadd.f32 %v266_v60, %v6704_v28  ;;  %1040 = vmatprep.subr.mxu0 %v938_v59 }
 0x12b   :  { %v268_v2 = vpop.f32.mrf.mxu0 }
 0x12c   :  { %v269_v4 = vadd.f32 %v268_v2, %v6707_v29  ;;  %657 = vmatprep.mubr.f32.mxu1 %v444_v62  ;;  %v445_v10 = vmax.f32 %v267_v1, 0.0 }
 0x12d   :  { %v272_v6 = vpop.f32.mrf.mxu0  ;;  %658 = vmatmul.mubr.f32.gmra.mxu1 %v443_v0 }
 0x12e   :  { %v446_v8 = vmax.f32 %v269_v4, 0.0  ;;  %v273_v11 = vadd.f32 %v272_v6, %v6704_v28 }
 0x12f   :  { %v274_v12 = vpop.f32.mrf.mxu0 }
 0x130   :  { %v275_v14 = vadd.f32 %v274_v12, %v6707_v29  ;;  %663 = vmatprep.mubr.f32.mxu1 %v446_v8  ;;  %v447_v20 = vmax.f32 %v273_v11, 0.0 }
 0x131   :  { %v278_v16 = vpop.f32.mrf.mxu0  ;;  %664 = vmatmul.mubr.f32.gmra.mxu1 %v445_v10 }
 0x132   :  { %v448_v18 = vmax.f32 %v275_v14, 0.0  ;;  %v279_v21 = vadd.f32 %v278_v16, %v6704_v28 }
 0x133   :  { %v280_v22 = vpop.f32.mrf.mxu0 }
 0x134   :  { %v281_v26 = vadd.f32 %v280_v22, %v6707_v29  ;;  %669 = vmatprep.mubr.f32.mxu1 %v448_v18  ;;  %v449_v34 = vmax.f32 %v279_v21, 0.0 }
 0x135   :  { %v284_v30 = vpop.f32.mrf.mxu0  ;;  %670 = vmatmul.mubr.f32.gmra.mxu1 %v447_v20 }
 0x136   :  { %v450_v32 = vmax.f32 %v281_v26, 0.0  ;;  %v285_v35 = vadd.f32 %v284_v30, %v6704_v28 }
 0x137   :  { %v286_v36 = vpop.f32.mrf.mxu0 }
 0x138   :  { %v287_v38 = vadd.f32 %v286_v36, %v6707_v29  ;;  %675 = vmatprep.mubr.f32.mxu1 %v450_v32  ;;  %v451_v44 = vmax.f32 %v285_v35, 0.0 }
 0x139   :  { %v290_v40 = vpop.f32.mrf.mxu0  ;;  %676 = vmatmul.mubr.f32.gmra.mxu1 %v449_v34 }
 0x13a   :  { %v452_v42 = vmax.f32 %v287_v38, 0.0  ;;  %v291_v45 = vadd.f32 %v290_v40, %v6704_v28 }
 0x13b   :  { %v292_v46 = vpop.f32.mrf.mxu0 }
 0x13c   :  { %v293_v48 = vadd.f32 %v292_v46, %v6707_v29  ;;  %681 = vmatprep.mubr.f32.mxu1 %v452_v42  ;;  %v453_v54 = vmax.f32 %v291_v45, 0.0 }
 0x13d   :  { %v296_v50 = vpop.f32.mrf.mxu0  ;;  %682 = vmatmul.mubr.f32.gmra.mxu1 %v451_v44 }
 0x13e   :  { %v454_v52 = vmax.f32 %v293_v48, 0.0  ;;  %v297_v55 = vadd.f32 %v296_v50, %v6704_v28 }
 0x13f   :  { %v298_v56 = vpop.f32.mrf.mxu0 }
 0x140   :  { %v299_v58 = vadd.f32 %v298_v56, %v6707_v29  ;;  %687 = vmatprep.mubr.f32.mxu1 %v454_v52  ;;  %v455_v62 = vmax.f32 %v297_v55, 0.0 }
 0x141   :  { %v302_v60 = vpop.f32.mrf.mxu0  ;;  %688 = vmatmul.mubr.f32.gmra.mxu1 %v453_v54 }
 0x142   :  { %v456_v61 = vmax.f32 %v299_v58, 0.0  ;;  %v303_v63 = vadd.f32 %v302_v60, %v6704_v28  ;;  %v937_v60 = vld [vmem:[#allocation2 + $0x510] sm:$0xff] }
 0x143   :  { %v304_v0 = vpop.f32.mrf.mxu0  ;;  %1041 = vmatpush2.msra.mxu0 %v937_v60 }
 0x144   :  { %v305_v1 = vadd.f32 %v304_v0, %v6707_v29  ;;  %693 = vmatprep.mubr.f32.mxu1 %v456_v61  ;;  %v457_v4 = vmax.f32 %v303_v63, 0.0  ;;  %v936_v63 = vld [vmem:[#allocation2 + $0x508] sm:$0xff] }
 0x145   :  { %v308_v2 = vpop.f32.mrf.mxu0  ;;  %694 = vmatmul.mubr.f32.gmra.mxu1 %v455_v62  ;;  %1042 = vmatprep.subr.mxu0 %v936_v63 }
 0x146   :  { %v458_v3 = vmax.f32 %v305_v1, 0.0  ;;  %v309_v5 = vadd.f32 %v308_v2, %v6704_v28 }
 0x147   :  { %v310_v6 = vpop.f32.mrf.mxu0 }
 0x148   :  { %v311_v7 = vadd.f32 %v310_v6, %v6707_v29  ;;  %699 = vmatprep.mubr.f32.mxu1 %v458_v3  ;;  %v459_v10 = vmax.f32 %v309_v5, 0.0  ;;  %v935_v3 = vld [vmem:[#allocation2 + $0x500] sm:$0xff] }
 0x149   :  { %v314_v8 = vpop.f32.mrf.mxu0  ;;  %700 = vmatmul.mubr.f32.gmra.mxu1 %v457_v4  ;;  %1043 = vmatpush2.msra.mxu0 %v935_v3 }
 0x14a   :  { %v460_v9 = vmax.f32 %v311_v7, 0.0  ;;  %v315_v11 = vadd.f32 %v314_v8, %v6704_v28 }
 0x14b   :  { %v316_v12 = vpop.f32.mrf.mxu0 }
 0x14c   :  { %v317_v13 = vadd.f32 %v316_v12, %v6707_v29  ;;  %705 = vmatprep.mubr.f32.mxu1 %v460_v9  ;;  %v461_v16 = vmax.f32 %v315_v11, 0.0 }
 0x14d   :  { %v320_v14 = vpop.f32.mrf.mxu0  ;;  %706 = vmatmul.mubr.f32.gmra.mxu1 %v459_v10 }
 0x14e   :  { %v462_v15 = vmax.f32 %v317_v13, 0.0  ;;  %v321_v17 = vadd.f32 %v320_v14, %v6704_v28 }
 0x14f   :  { %v322_v18 = vpop.f32.mrf.mxu0 }
 0x150   :  { %v323_v19 = vadd.f32 %v322_v18, %v6707_v29  ;;  %711 = vmatprep.mubr.f32.mxu1 %v462_v15  ;;  %v463_v22 = vmax.f32 %v321_v17, 0.0 }
 0x151   :  { %v326_v20 = vpop.f32.mrf.mxu0  ;;  %712 = vmatmul.mubr.f32.gmra.mxu1 %v461_v16 }
 0x152   :  { %v464_v21 = vmax.f32 %v323_v19, 0.0  ;;  %v327_v24 = vadd.f32 %v326_v20, %v6704_v28 }
 0x153   :  { %v328_v26 = vpop.f32.mrf.mxu0 }
 0x154   :  { %v329_v27 = vadd.f32 %v328_v26, %v6707_v29  ;;  %717 = vmatprep.mubr.f32.mxu1 %v464_v21  ;;  %v465_v32 = vmax.f32 %v327_v24, 0.0 }
 0x155   :  { %v332_v30 = vpop.f32.mrf.mxu0  ;;  %718 = vmatmul.mubr.f32.gmra.mxu1 %v463_v22 }
 0x156   :  { %v466_v31 = vmax.f32 %v329_v27, 0.0  ;;  %v333_v33 = vadd.f32 %v332_v30, %v6704_v28 }
 0x157   :  { %v334_v34 = vpop.f32.mrf.mxu0 }
 0x158   :  { %v335_v35 = vadd.f32 %v334_v34, %v6707_v29  ;;  %723 = vmatprep.mubr.f32.mxu1 %v466_v31  ;;  %v467_v38 = vmax.f32 %v333_v33, 0.0 }
 0x159   :  { %v338_v36 = vpop.f32.mrf.mxu0  ;;  %724 = vmatmul.mubr.f32.gmra.mxu1 %v465_v32 }
 0x15a   :  { %v468_v37 = vmax.f32 %v335_v35, 0.0  ;;  %v339_v39 = vadd.f32 %v338_v36, %v6704_v28 }
 0x15b   :  { %v340_v40 = vpop.f32.mrf.mxu0 }
 0x15c   :  { %v341_v41 = vadd.f32 %v340_v40, %v6707_v29  ;;  %729 = vmatprep.mubr.f32.mxu1 %v468_v37  ;;  %v469_v44 = vmax.f32 %v339_v39, 0.0 }
 0x15d   :  { %v344_v42 = vpop.f32.mrf.mxu0  ;;  %730 = vmatmul.mubr.f32.gmra.mxu1 %v467_v38 }
 0x15e   :  { %v470_v43 = vmax.f32 %v341_v41, 0.0  ;;  %v345_v45 = vadd.f32 %v344_v42, %v6704_v28 }
 0x15f   :  { %v346_v46 = vpop.f32.mrf.mxu0 }
 0x160   :  { %v347_v47 = vadd.f32 %v346_v46, %v6707_v29  ;;  %735 = vmatprep.mubr.f32.mxu1 %v470_v43  ;;  %v471_v50 = vmax.f32 %v345_v45, 0.0 }
 0x161   :  { %v350_v48 = vpop.f32.mrf.mxu0  ;;  %736 = vmatmul.mubr.f32.gmra.mxu1 %v469_v44 }
 0x162   :  { %v472_v49 = vmax.f32 %v347_v47, 0.0  ;;  %v351_v51 = vadd.f32 %v350_v48, %v6704_v28 }
 0x163   :  { %v352_v52 = vpop.f32.mrf.mxu0 }
 0x164   :  { %v353_v53 = vadd.f32 %v352_v52, %v6707_v29  ;;  %741 = vmatprep.mubr.f32.mxu1 %v472_v49  ;;  %v473_v56 = vmax.f32 %v351_v51, 0.0 }
 0x165   :  { %v356_v54 = vpop.f32.mrf.mxu0  ;;  %742 = vmatmul.mubr.f32.gmra.mxu1 %v471_v50 }
 0x166   :  { %v474_v55 = vmax.f32 %v353_v53, 0.0  ;;  %v357_v57 = vadd.f32 %v356_v54, %v6704_v28 }
 0x167   :  { %v358_v58 = vpop.f32.mrf.mxu0 }
 0x168   :  { %v359_v59 = vadd.f32 %v358_v58, %v6707_v29  ;;  %747 = vmatprep.mubr.f32.mxu1 %v474_v55  ;;  %v475_v0 = vmax.f32 %v357_v57, 0.0 }
 0x169   :  { %v362_v61 = vpop.f32.mrf.mxu0  ;;  %748 = vmatmul.mubr.f32.gmra.mxu1 %v473_v56 }
 0x16a   :  { %v476_v62 = vmax.f32 %v359_v59, 0.0  ;;  %v363_v1 = vadd.f32 %v362_v61, %v6704_v28 }
 0x16b   :  { %v364_v2 = vpop.f32.mrf.mxu0 }
 0x16c   :  { %v365_v4 = vadd.f32 %v364_v2, %v6707_v29  ;;  %753 = vmatprep.mubr.f32.mxu1 %v476_v62  ;;  %v477_v7 = vmax.f32 %v363_v1, 0.0 }
 0x16d   :  { %v368_v5 = vpop.f32.mrf.mxu0  ;;  %754 = vmatmul.mubr.f32.gmra.mxu1 %v475_v0 }
 0x16e   :  { %v478_v6 = vmax.f32 %v365_v4, 0.0  ;;  %v369_v8 = vadd.f32 %v368_v5, %v6704_v28 }
 0x16f   :  { %v370_v9 = vpop.f32.mrf.mxu0 }
 0x170   :  { %v371_v10 = vadd.f32 %v370_v9, %v6707_v29  ;;  %759 = vmatprep.mubr.f32.mxu1 %v478_v6  ;;  %v479_v13 = vmax.f32 %v369_v8, 0.0 }
 0x171   :  { %v374_v11 = vpop.f32.mrf.mxu0  ;;  %760 = vmatmul.mubr.f32.gmra.mxu1 %v477_v7 }
 0x172   :  { %v480_v12 = vmax.f32 %v371_v10, 0.0  ;;  %v375_v14 = vadd.f32 %v374_v11, %v6704_v28 }
 0x173   :  { %v376_v15 = vpop.f32.mrf.mxu0 }
 0x174   :  { %v377_v16 = vadd.f32 %v376_v15, %v6707_v29  ;;  %765 = vmatprep.mubr.f32.mxu1 %v480_v12  ;;  %v481_v19 = vmax.f32 %v375_v14, 0.0 }
 0x175   :  { %v380_v17 = vpop.f32.mrf.mxu0  ;;  %766 = vmatmul.mubr.f32.gmra.mxu1 %v479_v13 }
 0x176   :  { %v482_v18 = vmax.f32 %v377_v16, 0.0  ;;  %v381_v20 = vadd.f32 %v380_v17, %v6704_v28 }
 0x177   :  { %v382_v21 = vpop.f32.mrf.mxu0 }
 0x178   :  { %v383_v22 = vadd.f32 %v382_v21, %v6707_v29  ;;  %771 = vmatprep.mubr.f32.mxu1 %v482_v18  ;;  %v483_v27 = vmax.f32 %v381_v20, 0.0  ;;  %v1332_v20 = vld [vmem:[#allocation2 + $0x6f0] sm:$0xff]  ;;  %v1331_v21 = vld [vmem:[#allocation2 + $0x6e8] sm:$0xff] }
 0x179   :  { %v386_v24 = vpop.f32.mrf.mxu0  ;;  %772 = vmatmul.mubr.f32.gmra.mxu1 %v481_v19  ;;  %v1333_v19 = vld [vmem:[#allocation2 + $0x6f8] sm:$0xff] }
 0x17a   :  { %v484_v26 = vmax.f32 %v383_v22, 0.0  ;;  %v387_v30 = vadd.f32 %v386_v24, %v6704_v28  ;;  %1379 = vmatprep.subr.mxu1 %v1333_v19  ;;  %v1330_v22 = vld [vmem:[#allocation2 + $0x6e0] sm:$0xff]  ;;  %v1329_v24 = vld [vmem:[#allocation2 + $0x6d8] sm:$0xff] }
 0x17b   :  { %v388_v31 = vpop.f32.mrf.mxu0  ;;  %1380 = vmatpush1.msra.mxu1 %v1332_v20  ;;  %v1358_v20 = vld [vmem:[#allocation2 + $0x7c0] sm:$0xff] }
 0x17c   :  { %v389_v32 = vadd.f32 %v388_v31, %v6707_v29  ;;  %777 = vmatprep.mubr.f32.mxu1 %v484_v26  ;;  %v485_v35 = vmax.f32 %v387_v30, 0.0  ;;  %1381 = vmatprep.subr.mxu1 %v1331_v21  ;;  %v1327_v26 = vld [vmem:[#allocation2 + $0x6c8] sm:$0xff]  ;;  %v1324_v30 = vld [vmem:[#allocation2 + $0x6b0] sm:$0xff] }
 0x17d   :  { %v392_v33 = vpop.f32.mrf.mxu0  ;;  %778 = vmatmul.mubr.f32.gmra.mxu1 %v483_v27  ;;  %v1325_v27 = vld [vmem:[#allocation2 + $0x6b8] sm:$0xff]  ;;  %v1323_v31 = vld [vmem:[#allocation2 + $0x6a8] sm:$0xff] }
 0x17e   :  { %v486_v34 = vmax.f32 %v389_v32, 0.0  ;;  %v393_v36 = vadd.f32 %v392_v33, %v6704_v28  ;;  %1382 = vmatpush1.msra.mxu1 %v1330_v22  ;;  %v1322_v32 = vld [vmem:[#allocation2 + $0x6a0] sm:$0xff]  ;;  %v1321_v33 = vld [vmem:[#allocation2 + $0x698] sm:$0xff] }
 0x17f   :  { %v394_v37 = vpop.f32.mrf.mxu0  ;;  %1383 = vmatprep.subr.mxu1 %v1329_v24  ;;  %v1357_v22 = vld [vmem:[#allocation2 + $0x7b8] sm:$0xff] }
 0x180   :  { %v395_v38 = vadd.f32 %v394_v37, %v6707_v29  ;;  %783 = vmatprep.mubr.f32.mxu1 %v486_v34  ;;  %v487_v41 = vmax.f32 %v393_v36, 0.0  ;;  %v1320_v34 = vld [vmem:[#allocation2 + $0x690] sm:$0xff]  ;;  %v1318_v36 = vld [vmem:[#allocation2 + $0x680] sm:$0xff]  ;;  %v1317_v37 = vld [vmem:[#allocation2 + $0x678] sm:$0xff] }
 0x181   :  { %v398_v39 = vpop.f32.mrf.mxu0  ;;  %784 = vmatmul.mubr.f32.gmra.mxu1 %v485_v35  ;;  %v1319_v35 = vld [vmem:[#allocation2 + $0x688] sm:$0xff] }
 0x182   :  { %v488_v40 = vmax.f32 %v395_v38, 0.0  ;;  %v399_v42 = vadd.f32 %v398_v39, %v6704_v28  ;;  %v1316_v38 = vld [vmem:[#allocation2 + $0x670] sm:$0xff]  ;;  %v1315_v39 = vld [vmem:[#allocation2 + $0x668] sm:$0xff] }
 0x183   :  { %v400_v43 = vpop.f32.mrf.mxu0 }
 0x184   :  { %v401_v44 = vadd.f32 %v400_v43, %v6707_v29  ;;  %789 = vmatprep.mubr.f32.mxu1 %v488_v40  ;;  %v489_v47 = vmax.f32 %v399_v42, 0.0  ;;  %v1314_v40 = vld [vmem:[#allocation2 + $0x660] sm:$0xff]  ;;  %v1312_v43 = vld [vmem:[#allocation2 + $0x650] sm:$0xff] }
 0x185   :  { %v404_v45 = vpop.f32.mrf.mxu0  ;;  %790 = vmatmul.mubr.f32.gmra.mxu1 %v487_v41  ;;  %v1313_v41 = vld [vmem:[#allocation2 + $0x658] sm:$0xff]  ;;  %v569_v42 = vld [vmem:[#allocation4 + $0x2] sm:$0x3] }
 0x186   :  { %v490_v46 = vmax.f32 %v401_v44, 0.0  ;;  %v405_v48 = vadd.f32 %v404_v45, %v6704_v28  ;;  %v1311_v44 = vld [vmem:[#allocation2 + $0x648] sm:$0xff]  ;;  %v6774_v45 = vrot.slane %v569_v42, %v6699_v23 }
 0x187   :  { %v406_v49 = vpop.f32.mrf.mxu0 }
 0x188   :  { %v407_v50 = vadd.f32 %v406_v49, %v6707_v29  ;;  %795 = vmatprep.mubr.f32.mxu1 %v490_v46  ;;  %v491_v53 = vmax.f32 %v405_v48, 0.0  ;;  %v6777_v46 = vrot.slane %v569_v42, %v6701_v25  ;;  %v1309_v49 = vld [vmem:[#allocation2 + $0x638] sm:$0xff]  ;;  %v1350_v42 = vld [vmem:[#allocation2 + $0x780] sm:$0xff] }
 0x189   :  { %v410_v51 = vpop.f32.mrf.mxu0  ;;  %796 = vmatmul.mubr.f32.gmra.mxu1 %v489_v47  ;;  %v1310_v47 = vld [vmem:[#allocation2 + $0x640] sm:$0xff] }
 0x18a   :  { %v492_v52 = vmax.f32 %v407_v50, 0.0  ;;  %v411_v54 = vadd.f32 %v410_v51, %v6704_v28  ;;  %v1308_v50 = vld [vmem:[#allocation2 + $0x630] sm:$0xff] }
 0x18b   :  { %v412_v55 = vpop.f32.mrf.mxu0 }
 0x18c   :  { %v413_v56 = vadd.f32 %v412_v55, %v6707_v29  ;;  %801 = vmatprep.mubr.f32.mxu1 %v492_v52  ;;  %v493_v59 = vmax.f32 %v411_v54, 0.0  ;;  %v1307_v54 = vld [vmem:[#allocation2 + $0x628] sm:$0xff] }
 0x18d   :  { %v416_v57 = vpop.f32.mrf.mxu0  ;;  %802 = vmatmul.mubr.f32.gmra.mxu1 %v491_v53 }
 0x18e   :  { %v494_v58 = vmax.f32 %v413_v56, 0.0  ;;  %v417_v60 = vadd.f32 %v416_v57, %v6704_v28  ;;  %v1306_v56 = vld [vmem:[#allocation2 + $0x620] sm:$0xff]  ;;  %v1305_v57 = vld [vmem:[#allocation2 + $0x618] sm:$0xff] }
 0x18f   :  { %v418_v61 = vpop.f32.mrf.mxu0 }
 0x190   :  { %v419_v62 = vadd.f32 %v418_v61, %v6707_v29  ;;  %807 = vmatprep.mubr.f32.mxu1 %v494_v58  ;;  %v495_v1 = vmax.f32 %v417_v60, 0.0  ;;  %v1304_v58 = vld [vmem:[#allocation2 + $0x610] sm:$0xff]  ;;  %v1303_v60 = vld [vmem:[#allocation2 + $0x608] sm:$0xff] }
 0x191   :  { %v422_v63 = vpop.f32.mrf.mxu0  ;;  %808 = vmatmul.mubr.f32.gmra.mxu1 %v493_v59 }
 0x192   :  { %v496_v0 = vmax.f32 %v419_v62, 0.0  ;;  %v423_v2 = vadd.f32 %v422_v63, %v6704_v28 }
 0x193   :  { %v424_v3 = vpop.f32.mrf.mxu0 }
 0x194   :  { %v425_v4 = vadd.f32 %v424_v3, %v6707_v29  ;;  %813 = vmatprep.mubr.f32.mxu1 %v496_v0  ;;  %v497_v7 = vmax.f32 %v423_v2, 0.0  ;;  %v1302_v0 = vld [vmem:[#allocation2 + $0x600] sm:$0xff]  ;;  %v1365_v2 = vld [vmem:[#allocation2 + $0x7f8] sm:$0xff] }
 0x195   :  { %v428_v5 = vpop.f32.mrf.mxu0  ;;  %814 = vmatmul.mubr.f32.gmra.mxu1 %v495_v1 }
 0x196   :  { %v498_v6 = vmax.f32 %v425_v4, 0.0  ;;  %v429_v8 = vadd.f32 %v428_v5, %v6704_v28  ;;  %v1364_v4 = vld [vmem:[#allocation2 + $0x7f0] sm:$0xff] }
 0x197   :  { %v430_v9 = vpop.f32.mrf.mxu0 }
 0x198   :  { %v431_v10 = vadd.f32 %v430_v9, %v6707_v29  ;;  %819 = vmatprep.mubr.f32.mxu1 %v498_v6  ;;  %v499_v13 = vmax.f32 %v429_v8, 0.0  ;;  %v1363_v6 = vld [vmem:[#allocation2 + $0x7e8] sm:$0xff] }
 0x199   :  { %v434_v11 = vpop.f32.mrf.mxu0  ;;  %820 = vmatmul.mubr.f32.gmra.mxu1 %v497_v7 }
 0x19a   :  { %v500_v12 = vmax.f32 %v431_v10, 0.0  ;;  %v435_v14 = vadd.f32 %v434_v11, %v6704_v28  ;;  %v1328_v28 = vld [vmem:[#allocation2 + $0x6d0] sm:$0xff]  ;;  %v1362_v10 = vld [vmem:[#allocation2 + $0x7e0] sm:$0xff] }
 0x19b   :  { %v436_v15 = vpop.f32.mrf.mxu0  ;;  %1384 = vmatpush1.msra.mxu1 %v1328_v28  ;;  %v1356_v28 = vld [vmem:[#allocation2 + $0x7b0] sm:$0xff] }
 0x19c   :  { %v437_v16 = vadd.f32 %v436_v15, %v6707_v29  ;;  %825 = vmatprep.mubr.f32.mxu1 %v500_v12  ;;  %v501_v18 = vmax.f32 %v435_v14, 0.0  ;;  %1385 = vmatprep.subr.mxu1 %v1327_v26  ;;  %v1326_v29 = vld [vmem:[#allocation2 + $0x6c0] sm:$0xff]  ;;  %v1361_v12 = vld [vmem:[#allocation2 + $0x7d8] sm:$0xff]  ;;  %v1360_v14 = vld [vmem:[#allocation2 + $0x7d0] sm:$0xff] }
 0x19d   :  { %826 = vmatmul.mubr.f32.gmra.mxu1 %v499_v13 }
 0x19e   :  { %v502_v17 = vmax.f32 %v437_v16, 0.0  ;;  %1386 = vmatpush1.msra.mxu1 %v1326_v29  ;;  %v1359_v16 = vld [vmem:[#allocation2 + $0x7c8] sm:$0xff] }
 0x19f   :  { %1387 = vmatprep.subr.mxu1 %v1325_v27  ;;  %v1355_v29 = vld [vmem:[#allocation2 + $0x7a8] sm:$0xff] }
 0x1a0   :  { %831 = vmatprep.mubr.f32.mxu1 %v502_v17  ;;  %1388 = vmatpush1.msra.mxu1 %v1324_v30 }
 0x1a1   :  { %832 = vmatmul.mubr.f32.gmra.mxu1 %v501_v18  ;;  %1389 = vmatprep.subr.mxu1 %v1323_v31 }
 0x1a2   :  { %1390 = vmatpush1.msra.mxu1 %v1322_v32  ;;  %v1354_v32 = vld [vmem:[#allocation2 + $0x7a0] sm:$0xff] }
 0x1a3   :  { %1391 = vmatprep.subr.mxu1 %v1321_v33 }
 0x1a4   :  { %1392 = vmatpush1.msra.mxu1 %v1320_v34  ;;  %v1353_v34 = vld [vmem:[#allocation2 + $0x798] sm:$0xff] }
 0x1a5   :  { %1393 = vmatprep.subr.mxu1 %v1319_v35 }
 0x1a6   :  { %1394 = vmatpush1.msra.mxu1 %v1318_v36  ;;  %v1352_v36 = vld [vmem:[#allocation2 + $0x790] sm:$0xff] }
 0x1a7   :  { %1395 = vmatprep.subr.mxu1 %v1317_v37 }
 0x1a8   :  { %1396 = vmatpush1.msra.mxu1 %v1316_v38  ;;  %v1351_v38 = vld [vmem:[#allocation2 + $0x788] sm:$0xff] }
 0x1a9   :  { %1397 = vmatprep.subr.mxu1 %v1315_v39 }
 0x1aa   :  { %1398 = vmatpush1.msra.mxu1 %v1314_v40 }
 0x1ab   :  { %1399 = vmatprep.subr.mxu1 %v1313_v41 }
 0x1ac   :  { %1400 = vmatpush1.msra.mxu1 %v1312_v43 }
 0x1ad   :  { %1401 = vmatprep.subr.mxu1 %v1311_v44  ;;  %v1349_v44 = vld [vmem:[#allocation2 + $0x778] sm:$0xff] }
 0x1ae   :  { %1402 = vmatpush1.msra.mxu1 %v1310_v47 }
 0x1af   :  { %1403 = vmatprep.subr.mxu1 %v1309_v49 }
 0x1b0   :  { %1404 = vmatpush1.msra.mxu1 %v1308_v50  ;;  %v1347_v50 = vld [vmem:[#allocation2 + $0x768] sm:$0xff] }
 0x1b1   :  { %1405 = vmatprep.subr.mxu1 %v1307_v54  ;;  %v1346_v54 = vld [vmem:[#allocation2 + $0x760] sm:$0xff] }
 0x1b2   :  { %1406 = vmatpush1.msra.mxu1 %v1306_v56  ;;  %v1345_v56 = vld [vmem:[#allocation2 + $0x758] sm:$0xff] }
 0x1b3   :  { %1407 = vmatprep.subr.mxu1 %v1305_v57 }
 0x1b4   :  { %1408 = vmatpush1.msra.mxu1 %v1304_v58  ;;  %v1344_v58 = vld [vmem:[#allocation2 + $0x750] sm:$0xff] }
 0x1b5   :  { %1409 = vmatprep.subr.mxu1 %v1303_v60  ;;  %v1343_v60 = vld [vmem:[#allocation2 + $0x748] sm:$0xff] }
 0x1b6   :  { %1410 = vmatpush1.msra.mxu1 %v1302_v0  ;;  %v1342_v0 = vld [vmem:[#allocation2 + $0x740] sm:$0xff] }
 0x1b7   :  { %1411 = vmatprep.subr.mxu1 %v1365_v2  ;;  %v1341_v2 = vld [vmem:[#allocation2 + $0x738] sm:$0xff] }
 0x1b8   :  { %1412 = vmatpush2.msra.mxu1 %v1364_v4  ;;  %v1340_v4 = vld [vmem:[#allocation2 + $0x730] sm:$0xff] }
 0x1b9   :  { %1413 = vmatprep.subr.mxu1 %v1363_v6  ;;  %v1339_v6 = vld [vmem:[#allocation2 + $0x728] sm:$0xff] }
 0x1ba   :  { %1414 = vmatpush2.msra.mxu1 %v1362_v10  ;;  %v1338_v10 = vld [vmem:[#allocation2 + $0x720] sm:$0xff] }
 0x1bb   :  { %1415 = vmatprep.subr.mxu1 %v1361_v12  ;;  %v1337_v12 = vld [vmem:[#allocation2 + $0x718] sm:$0xff] }
 0x1bc   :  { %1416 = vmatpush2.msra.mxu1 %v1360_v14 }
 0x1bd   :  { %1417 = vmatprep.subr.mxu1 %v1359_v16 }
 0x1be   :  { %1418 = vmatpush2.msra.mxu1 %v1358_v20 }
 0x1bf   :  { %1419 = vmatprep.subr.mxu1 %v1357_v22 }
 0x1c0   :  { %1420 = vmatpush2.msra.mxu1 %v1356_v28 }
 0x1c1   :  { %1421 = vmatprep.subr.mxu1 %v1355_v29 }
 0x1c2   :  { %1422 = vmatpush2.msra.mxu1 %v1354_v32 }
 0x1c3   :  { %1423 = vmatprep.subr.mxu1 %v1353_v34 }
 0x1c4   :  { %1424 = vmatpush2.msra.mxu1 %v1352_v36 }
 0x1c5   :  { %1425 = vmatprep.subr.mxu1 %v1351_v38 }
 0x1c6   :  { %1426 = vmatpush2.msra.mxu1 %v1350_v42 }
 0x1c7   :  { %1427 = vmatprep.subr.mxu1 %v1349_v44 }
 0x1e5   :  { %v647_v48 = vpop.f32.mrf.mxu1 }
 0x1e6   :  { %v648_v51 = vadd.f32 %v647_v48, %v6774_v45  ;;  %v1348_v48 = vld [vmem:[#allocation2 + $0x770] sm:$0xff] }
 0x1e7   :  { %v649_v52 = vpop.f32.mrf.mxu1  ;;  %1428 = vmatpush2.msra.mxu1 %v1348_v48 }
 0x1e8   :  { %v650_v53 = vadd.f32 %v649_v52, %v6777_v46  ;;  %v838_v61 = vmax.f32 %v648_v51, 0.0  ;;  %1429 = vmatprep.subr.mxu1 %v1347_v50 }
 0x1e9   :  { %v653_v55 = vpop.f32.mrf.mxu1  ;;  %1430 = vmatpush2.msra.mxu1 %v1346_v54 }
 0x1ea   :  { %v839_v59 = vmax.f32 %v650_v53, 0.0  ;;  %v654_v62 = vadd.f32 %v653_v55, %v6774_v45  ;;  %1431 = vmatprep.subr.mxu1 %v1345_v56 }
 0x1eb   :  { %v655_v63 = vpop.f32.mrf.mxu1  ;;  %1432 = vmatpush2.msra.mxu1 %v1344_v58 }
 0x1ec   :  { %v656_v1 = vadd.f32 %v655_v63, %v6777_v46  ;;  %1044 = vmatprep.mubr.f32.mxu0 %v839_v59  ;;  %v840_v7 = vmax.f32 %v654_v62, 0.0  ;;  %1433 = vmatprep.subr.mxu1 %v1343_v60 }
 0x1ed   :  { %v659_v3 = vpop.f32.mrf.mxu1  ;;  %1045 = vmatmul.mubr.f32.vlgmr.msra.gmra.mxu0 %v838_v61  ;;  %1434 = vmatpush2.msra.mxu1 %v1342_v0 }
 0x1ee   :  { %v841_v5 = vmax.f32 %v656_v1, 0.0  ;;  %v660_v8 = vadd.f32 %v659_v3, %v6774_v45  ;;  %1435 = vmatprep.subr.mxu1 %v1341_v2 }
 0x1ef   :  { %v661_v9 = vpop.f32.mrf.mxu1  ;;  %1436 = vmatpush2.msra.mxu1 %v1340_v4 }
 0x1f0   :  { %v662_v11 = vadd.f32 %v661_v9, %v6777_v46  ;;  %1050 = vmatprep.mubr.f32.mxu0 %v841_v5  ;;  %v842_v17 = vmax.f32 %v660_v8, 0.0  ;;  %1437 = vmatprep.subr.mxu1 %v1339_v6 }
 0x1f1   :  { %v665_v13 = vpop.f32.mrf.mxu1  ;;  %1051 = vmatmul.mubr.f32.gmra.mxu0 %v840_v7  ;;  %1438 = vmatpush2.msra.mxu1 %v1338_v10 }
 0x1f2   :  { %v843_v15 = vmax.f32 %v662_v11, 0.0  ;;  %v666_v18 = vadd.f32 %v665_v13, %v6774_v45  ;;  %1439 = vmatprep.subr.mxu1 %v1337_v12 }
 0x1f3   :  { %v667_v19 = vpop.f32.mrf.mxu1 }
 0x1f4   :  { %v668_v21 = vadd.f32 %v667_v19, %v6777_v46  ;;  %1056 = vmatprep.mubr.f32.mxu0 %v843_v15  ;;  %v844_v27 = vmax.f32 %v666_v18, 0.0 }
 0x1f5   :  { %v671_v24 = vpop.f32.mrf.mxu1  ;;  %1057 = vmatmul.mubr.f32.gmra.mxu0 %v842_v17 }
 0x1f6   :  { %v845_v26 = vmax.f32 %v668_v21, 0.0  ;;  %v672_v30 = vadd.f32 %v671_v24, %v6774_v45 }
 0x1f7   :  { %v673_v31 = vpop.f32.mrf.mxu1 }
 0x1f8   :  { %v674_v33 = vadd.f32 %v673_v31, %v6777_v46  ;;  %1062 = vmatprep.mubr.f32.mxu0 %v845_v26  ;;  %v846_v39 = vmax.f32 %v672_v30, 0.0 }
 0x1f9   :  { %v677_v35 = vpop.f32.mrf.mxu1  ;;  %1063 = vmatmul.mubr.f32.gmra.mxu0 %v844_v27 }
 0x1fa   :  { %v847_v37 = vmax.f32 %v674_v33, 0.0  ;;  %v678_v40 = vadd.f32 %v677_v35, %v6774_v45 }
 0x1fb   :  { %v679_v41 = vpop.f32.mrf.mxu1 }
 0x1fc   :  { %v680_v43 = vadd.f32 %v679_v41, %v6777_v46  ;;  %1068 = vmatprep.mubr.f32.mxu0 %v847_v37  ;;  %v848_v51 = vmax.f32 %v678_v40, 0.0 }
 0x1fd   :  { %v683_v47 = vpop.f32.mrf.mxu1  ;;  %1069 = vmatmul.mubr.f32.gmra.mxu0 %v846_v39 }
 0x1fe   :  { %v849_v49 = vmax.f32 %v680_v43, 0.0  ;;  %v684_v52 = vadd.f32 %v683_v47, %v6774_v45 }
 0x1ff   :  { %v685_v53 = vpop.f32.mrf.mxu1 }
 0x200   :  { %v686_v55 = vadd.f32 %v685_v53, %v6777_v46  ;;  %1074 = vmatprep.mubr.f32.mxu0 %v849_v49  ;;  %v850_v61 = vmax.f32 %v684_v52, 0.0 }
 0x201   :  { %v689_v57 = vpop.f32.mrf.mxu1  ;;  %1075 = vmatmul.mubr.f32.gmra.mxu0 %v848_v51 }
 0x202   :  { %v851_v59 = vmax.f32 %v686_v55, 0.0  ;;  %v690_v62 = vadd.f32 %v689_v57, %v6774_v45 }
 0x203   :  { %v691_v63 = vpop.f32.mrf.mxu1 }
 0x204   :  { %v692_v1 = vadd.f32 %v691_v63, %v6777_v46  ;;  %1080 = vmatprep.mubr.f32.mxu0 %v851_v59  ;;  %v852_v7 = vmax.f32 %v690_v62, 0.0 }
 0x205   :  { %v695_v3 = vpop.f32.mrf.mxu1  ;;  %1081 = vmatmul.mubr.f32.gmra.mxu0 %v850_v61 }
 0x206   :  { %v853_v5 = vmax.f32 %v692_v1, 0.0  ;;  %v696_v8 = vadd.f32 %v695_v3, %v6774_v45 }
 0x207   :  { %v697_v9 = vpop.f32.mrf.mxu1 }
 0x208   :  { %v698_v11 = vadd.f32 %v697_v9, %v6777_v46  ;;  %1086 = vmatprep.mubr.f32.mxu0 %v853_v5  ;;  %v854_v15 = vmax.f32 %v696_v8, 0.0 }
 0x209   :  { %v701_v13 = vpop.f32.mrf.mxu1  ;;  %1087 = vmatmul.mubr.f32.gmra.mxu0 %v852_v7 }
 0x20a   :  { %v855_v14 = vmax.f32 %v698_v11, 0.0  ;;  %v702_v16 = vadd.f32 %v701_v13, %v6774_v45  ;;  %v1336_v13 = vld [vmem:[#allocation2 + $0x710] sm:$0xff] }
 0x20b   :  { %v703_v17 = vpop.f32.mrf.mxu1  ;;  %1440 = vmatpush2.msra.mxu1 %v1336_v13 }
 0x20c   :  { %v704_v18 = vadd.f32 %v703_v17, %v6777_v46  ;;  %1092 = vmatprep.mubr.f32.mxu0 %v855_v14  ;;  %v856_v21 = vmax.f32 %v702_v16, 0.0  ;;  %v1335_v16 = vld [vmem:[#allocation2 + $0x708] sm:$0xff] }
 0x20d   :  { %v707_v19 = vpop.f32.mrf.mxu1  ;;  %1093 = vmatmul.mubr.f32.gmra.mxu0 %v854_v15  ;;  %1441 = vmatprep.subr.mxu1 %v1335_v16 }
 0x20e   :  { %v857_v20 = vmax.f32 %v704_v18, 0.0  ;;  %v708_v22 = vadd.f32 %v707_v19, %v6774_v45 }
 0x20f   :  { %v709_v24 = vpop.f32.mrf.mxu1 }
 0x210   :  { %v710_v28 = vadd.f32 %v709_v24, %v6777_v46  ;;  %1098 = vmatprep.mubr.f32.mxu0 %v857_v20  ;;  %v858_v27 = vmax.f32 %v708_v22, 0.0  ;;  %v1334_v20 = vld [vmem:[#allocation2 + $0x700] sm:$0xff] }
 0x211   :  { %v713_v26 = vpop.f32.mrf.mxu1  ;;  %1099 = vmatmul.mubr.f32.gmra.mxu0 %v856_v21  ;;  %1442 = vmatpush2.msra.mxu1 %v1334_v20 }
 0x212   :  { %v859_v29 = vmax.f32 %v710_v28, 0.0  ;;  %v714_v30 = vadd.f32 %v713_v26, %v6774_v45 }
 0x213   :  { %v715_v31 = vpop.f32.mrf.mxu1 }
 0x214   :  { %v716_v32 = vadd.f32 %v715_v31, %v6777_v46  ;;  %1104 = vmatprep.mubr.f32.mxu0 %v859_v29  ;;  %v860_v35 = vmax.f32 %v714_v30, 0.0 }
 0x215   :  { %v719_v33 = vpop.f32.mrf.mxu1  ;;  %1105 = vmatmul.mubr.f32.gmra.mxu0 %v858_v27 }
 0x216   :  { %v861_v34 = vmax.f32 %v716_v32, 0.0  ;;  %v720_v36 = vadd.f32 %v719_v33, %v6774_v45 }
 0x217   :  { %v721_v37 = vpop.f32.mrf.mxu1 }
 0x218   :  { %v722_v38 = vadd.f32 %v721_v37, %v6777_v46  ;;  %1110 = vmatprep.mubr.f32.mxu0 %v861_v34  ;;  %v862_v41 = vmax.f32 %v720_v36, 0.0 }
 0x219   :  { %v725_v39 = vpop.f32.mrf.mxu1  ;;  %1111 = vmatmul.mubr.f32.gmra.mxu0 %v860_v35 }
 0x21a   :  { %v863_v40 = vmax.f32 %v722_v38, 0.0  ;;  %v726_v42 = vadd.f32 %v725_v39, %v6774_v45 }
 0x21b   :  { %v727_v43 = vpop.f32.mrf.mxu1 }
 0x21c   :  { %v728_v44 = vadd.f32 %v727_v43, %v6777_v46  ;;  %1116 = vmatprep.mubr.f32.mxu0 %v863_v40  ;;  %v864_v49 = vmax.f32 %v726_v42, 0.0 }
 0x21d   :  { %v731_v47 = vpop.f32.mrf.mxu1  ;;  %1117 = vmatmul.mubr.f32.gmra.mxu0 %v862_v41 }
 0x21e   :  { %v865_v48 = vmax.f32 %v728_v44, 0.0  ;;  %v732_v50 = vadd.f32 %v731_v47, %v6774_v45 }
 0x21f   :  { %v733_v51 = vpop.f32.mrf.mxu1 }
 0x220   :  { %v734_v52 = vadd.f32 %v733_v51, %v6777_v46  ;;  %1122 = vmatprep.mubr.f32.mxu0 %v865_v48  ;;  %v866_v55 = vmax.f32 %v732_v50, 0.0 }
 0x221   :  { %v737_v53 = vpop.f32.mrf.mxu1  ;;  %1123 = vmatmul.mubr.f32.gmra.mxu0 %v864_v49 }
 0x222   :  { %v867_v54 = vmax.f32 %v734_v52, 0.0  ;;  %v738_v56 = vadd.f32 %v737_v53, %v6774_v45 }
 0x223   :  { %v739_v57 = vpop.f32.mrf.mxu1 }
 0x224   :  { %v740_v58 = vadd.f32 %v739_v57, %v6777_v46  ;;  %1128 = vmatprep.mubr.f32.mxu0 %v867_v54  ;;  %v868_v61 = vmax.f32 %v738_v56, 0.0 }
 0x225   :  { %v743_v59 = vpop.f32.mrf.mxu1  ;;  %1129 = vmatmul.mubr.f32.gmra.mxu0 %v866_v55 }
 0x226   :  { %v869_v60 = vmax.f32 %v740_v58, 0.0  ;;  %v744_v62 = vadd.f32 %v743_v59, %v6774_v45 }
 0x227   :  { %v745_v63 = vpop.f32.mrf.mxu1 }
 0x228   :  { %v746_v0 = vadd.f32 %v745_v63, %v6777_v46  ;;  %1134 = vmatprep.mubr.f32.mxu0 %v869_v60  ;;  %v870_v3 = vmax.f32 %v744_v62, 0.0 }
 0x229   :  { %v749_v1 = vpop.f32.mrf.mxu1  ;;  %1135 = vmatmul.mubr.f32.gmra.mxu0 %v868_v61 }
 0x22a   :  { %v871_v2 = vmax.f32 %v746_v0, 0.0  ;;  %v750_v4 = vadd.f32 %v749_v1, %v6774_v45 }
 0x22b   :  { %v751_v5 = vpop.f32.mrf.mxu1 }
 0x22c   :  { %v752_v6 = vadd.f32 %v751_v5, %v6777_v46  ;;  %1140 = vmatprep.mubr.f32.mxu0 %v871_v2  ;;  %v872_v9 = vmax.f32 %v750_v4, 0.0 }
 0x22d   :  { %v755_v7 = vpop.f32.mrf.mxu1  ;;  %1141 = vmatmul.mubr.f32.gmra.mxu0 %v870_v3 }
 0x22e   :  { %v873_v8 = vmax.f32 %v752_v6, 0.0  ;;  %v756_v10 = vadd.f32 %v755_v7, %v6774_v45 }
 0x22f   :  { %v757_v11 = vpop.f32.mrf.mxu1 }
 0x230   :  { %v758_v12 = vadd.f32 %v757_v11, %v6777_v46  ;;  %1146 = vmatprep.mubr.f32.mxu0 %v873_v8  ;;  %v874_v17 = vmax.f32 %v756_v10, 0.0 }
 0x231   :  { %v761_v14 = vpop.f32.mrf.mxu1  ;;  %1147 = vmatmul.mubr.f32.gmra.mxu0 %v872_v9 }
 0x232   :  { %v875_v15 = vmax.f32 %v758_v12, 0.0  ;;  %v762_v18 = vadd.f32 %v761_v14, %v6774_v45 }
 0x233   :  { %v763_v19 = vpop.f32.mrf.mxu1 }
 0x234   :  { %v764_v21 = vadd.f32 %v763_v19, %v6777_v46  ;;  %1152 = vmatprep.mubr.f32.mxu0 %v875_v15  ;;  %v876_v28 = vmax.f32 %v762_v18, 0.0 }
 0x235   :  { %v767_v22 = vpop.f32.mrf.mxu1  ;;  %1153 = vmatmul.mubr.f32.gmra.mxu0 %v874_v17 }
 0x236   :  { %v877_v24 = vmax.f32 %v764_v21, 0.0  ;;  %v768_v26 = vadd.f32 %v767_v22, %v6774_v45 }
 0x237   :  { %v769_v29 = vpop.f32.mrf.mxu1 }
 0x238   :  { %v770_v27 = vadd.f32 %v769_v29, %v6777_v46  ;;  %1158 = vmatprep.mubr.f32.mxu0 %v877_v24  ;;  %v878_v32 = vmax.f32 %v768_v26, 0.0 }
 0x239   :  { %v773_v30 = vpop.f32.mrf.mxu1  ;;  %1159 = vmatmul.mubr.f32.gmra.mxu0 %v876_v28 }
 0x23a   :  { %v879_v31 = vmax.f32 %v770_v27, 0.0  ;;  %v774_v33 = vadd.f32 %v773_v30, %v6774_v45 }
 0x23b   :  { %v775_v34 = vpop.f32.mrf.mxu1 }
 0x23c   :  { %v776_v35 = vadd.f32 %v775_v34, %v6777_v46  ;;  %1164 = vmatprep.mubr.f32.mxu0 %v879_v31  ;;  %v880_v38 = vmax.f32 %v774_v33, 0.0 }
 0x23d   :  { %v779_v36 = vpop.f32.mrf.mxu1  ;;  %1165 = vmatmul.mubr.f32.gmra.mxu0 %v878_v32 }
 0x23e   :  { %v881_v37 = vmax.f32 %v776_v35, 0.0  ;;  %v780_v39 = vadd.f32 %v779_v36, %v6774_v45 }
 0x23f   :  { %v781_v40 = vpop.f32.mrf.mxu1 }
 0x240   :  { %v782_v41 = vadd.f32 %v781_v40, %v6777_v46  ;;  %1170 = vmatprep.mubr.f32.mxu0 %v881_v37  ;;  %v882_v44 = vmax.f32 %v780_v39, 0.0  ;;  %v1731_v39 = vld [vmem:[#allocation2 + $0x8f0] sm:$0xff]  ;;  %v1730_v40 = vld [vmem:[#allocation2 + $0x8e8] sm:$0xff] }
 0x241   :  { %v785_v42 = vpop.f32.mrf.mxu1  ;;  %1171 = vmatmul.mubr.f32.gmra.mxu0 %v880_v38  ;;  %v1732_v38 = vld [vmem:[#allocation2 + $0x8f8] sm:$0xff] }
 0x242   :  { %v883_v43 = vmax.f32 %v782_v41, 0.0  ;;  %v786_v47 = vadd.f32 %v785_v42, %v6774_v45  ;;  %1778 = vmatprep.subr.mxu0 %v1732_v38  ;;  %v1729_v41 = vld [vmem:[#allocation2 + $0x8e0] sm:$0xff]  ;;  %v1728_v42 = vld [vmem:[#allocation2 + $0x8d8] sm:$0xff] }
 0x243   :  { %v787_v48 = vpop.f32.mrf.mxu1  ;;  %1779 = vmatpush1.msra.mxu0 %v1731_v39  ;;  %v1757_v39 = vld [vmem:[#allocation2 + $0x9c0] sm:$0xff] }
 0x244   :  { %v788_v49 = vadd.f32 %v787_v48, %v6777_v46  ;;  %1176 = vmatprep.mubr.f32.mxu0 %v883_v43  ;;  %v884_v52 = vmax.f32 %v786_v47, 0.0  ;;  %1780 = vmatprep.subr.mxu0 %v1730_v40  ;;  %v1726_v43 = vld [vmem:[#allocation2 + $0x8c8] sm:$0xff]  ;;  %v1723_v47 = vld [vmem:[#allocation2 + $0x8b0] sm:$0xff] }
 0x245   :  { %v791_v50 = vpop.f32.mrf.mxu1  ;;  %1177 = vmatmul.mubr.f32.gmra.mxu0 %v882_v44  ;;  %v1724_v44 = vld [vmem:[#allocation2 + $0x8b8] sm:$0xff]  ;;  %v1722_v48 = vld [vmem:[#allocation2 + $0x8a8] sm:$0xff] }
 0x246   :  { %v885_v51 = vmax.f32 %v788_v49, 0.0  ;;  %v792_v53 = vadd.f32 %v791_v50, %v6774_v45  ;;  %1781 = vmatpush1.msra.mxu0 %v1729_v41  ;;  %v1721_v49 = vld [vmem:[#allocation2 + $0x8a0] sm:$0xff]  ;;  %v1720_v50 = vld [vmem:[#allocation2 + $0x898] sm:$0xff] }
 0x247   :  { %v793_v54 = vpop.f32.mrf.mxu1  ;;  %1782 = vmatprep.subr.mxu0 %v1728_v42  ;;  %v1756_v41 = vld [vmem:[#allocation2 + $0x9b8] sm:$0xff] }
 0x248   :  { %v794_v55 = vadd.f32 %v793_v54, %v6777_v46  ;;  %1182 = vmatprep.mubr.f32.mxu0 %v885_v51  ;;  %v886_v58 = vmax.f32 %v792_v53, 0.0  ;;  %v1719_v51 = vld [vmem:[#allocation2 + $0x890] sm:$0xff]  ;;  %v1717_v53 = vld [vmem:[#allocation2 + $0x880] sm:$0xff]  ;;  %v1716_v54 = vld [vmem:[#allocation2 + $0x878] sm:$0xff] }
 0x249   :  { %v797_v56 = vpop.f32.mrf.mxu1  ;;  %1183 = vmatmul.mubr.f32.gmra.mxu0 %v884_v52  ;;  %v1718_v52 = vld [vmem:[#allocation2 + $0x888] sm:$0xff] }
 0x24a   :  { %v887_v57 = vmax.f32 %v794_v55, 0.0  ;;  %v798_v59 = vadd.f32 %v797_v56, %v6774_v45  ;;  %v1715_v55 = vld [vmem:[#allocation2 + $0x870] sm:$0xff]  ;;  %v1714_v56 = vld [vmem:[#allocation2 + $0x868] sm:$0xff] }
 0x24b   :  { %v799_v60 = vpop.f32.mrf.mxu1 }
 0x24c   :  { %v800_v61 = vadd.f32 %v799_v60, %v6777_v46  ;;  %1188 = vmatprep.mubr.f32.mxu0 %v887_v57  ;;  %v888_v0 = vmax.f32 %v798_v59, 0.0  ;;  %v1713_v57 = vld [vmem:[#allocation2 + $0x860] sm:$0xff]  ;;  %v1711_v60 = vld [vmem:[#allocation2 + $0x850] sm:$0xff] }
 0x24d   :  { %v803_v62 = vpop.f32.mrf.mxu1  ;;  %1189 = vmatmul.mubr.f32.gmra.mxu0 %v886_v58  ;;  %v1712_v58 = vld [vmem:[#allocation2 + $0x858] sm:$0xff]  ;;  %v968_v59 = vld [vmem:[#allocation4 + $0x4] sm:$0x3] }
 0x24e   :  { %v889_v63 = vmax.f32 %v800_v61, 0.0  ;;  %v804_v1 = vadd.f32 %v803_v62, %v6774_v45  ;;  %v1710_v61 = vld [vmem:[#allocation2 + $0x848] sm:$0xff]  ;;  %v6844_v62 = vrot.slane %v968_v59, %v6699_v23 }
 0x24f   :  { %v805_v2 = vpop.f32.mrf.mxu1 }
 0x250   :  { %v806_v3 = vadd.f32 %v805_v2, %v6777_v46  ;;  %1194 = vmatprep.mubr.f32.mxu0 %v889_v63  ;;  %v890_v6 = vmax.f32 %v804_v1, 0.0  ;;  %v6847_v63 = vrot.slane %v968_v59, %v6701_v25  ;;  %v1708_v2 = vld [vmem:[#allocation2 + $0x838] sm:$0xff]  ;;  %v1749_v59 = vld [vmem:[#allocation2 + $0x980] sm:$0xff] }
 0x251   :  { %v809_v4 = vpop.f32.mrf.mxu1  ;;  %1195 = vmatmul.mubr.f32.gmra.mxu0 %v888_v0  ;;  %v1709_v0 = vld [vmem:[#allocation2 + $0x840] sm:$0xff] }
 0x252   :  { %v891_v5 = vmax.f32 %v806_v3, 0.0  ;;  %v810_v7 = vadd.f32 %v809_v4, %v6774_v45  ;;  %v1707_v3 = vld [vmem:[#allocation2 + $0x830] sm:$0xff] }
 0x253   :  { %v811_v8 = vpop.f32.mrf.mxu1 }
 0x254   :  { %v812_v9 = vadd.f32 %v811_v8, %v6777_v46  ;;  %1200 = vmatprep.mubr.f32.mxu0 %v891_v5  ;;  %v892_v12 = vmax.f32 %v810_v7, 0.0  ;;  %v1706_v7 = vld [vmem:[#allocation2 + $0x828] sm:$0xff] }
 0x255   :  { %v815_v10 = vpop.f32.mrf.mxu1  ;;  %1201 = vmatmul.mubr.f32.gmra.mxu0 %v890_v6 }
 0x256   :  { %v893_v11 = vmax.f32 %v812_v9, 0.0  ;;  %v816_v13 = vadd.f32 %v815_v10, %v6774_v45  ;;  %v1705_v9 = vld [vmem:[#allocation2 + $0x820] sm:$0xff]  ;;  %v1704_v10 = vld [vmem:[#allocation2 + $0x818] sm:$0xff] }
 0x257   :  { %v817_v14 = vpop.f32.mrf.mxu1 }
 0x258   :  { %v818_v15 = vadd.f32 %v817_v14, %v6777_v46  ;;  %1206 = vmatprep.mubr.f32.mxu0 %v893_v11  ;;  %v894_v18 = vmax.f32 %v816_v13, 0.0  ;;  %v1703_v11 = vld [vmem:[#allocation2 + $0x810] sm:$0xff]  ;;  %v1702_v13 = vld [vmem:[#allocation2 + $0x808] sm:$0xff] }
 0x259   :  { %v821_v16 = vpop.f32.mrf.mxu1  ;;  %1207 = vmatmul.mubr.f32.gmra.mxu0 %v892_v12 }
 0x25a   :  { %v895_v17 = vmax.f32 %v818_v15, 0.0  ;;  %v822_v19 = vadd.f32 %v821_v16, %v6774_v45 }
 0x25b   :  { %v823_v20 = vpop.f32.mrf.mxu1 }
 0x25c   :  { %v824_v21 = vadd.f32 %v823_v20, %v6777_v46  ;;  %1212 = vmatprep.mubr.f32.mxu0 %v895_v17  ;;  %v896_v28 = vmax.f32 %v822_v19, 0.0  ;;  %v1701_v17 = vld [vmem:[#allocation2 + $0x800] sm:$0xff]  ;;  %v1764_v19 = vld [vmem:[#allocation2 + $0x9f8] sm:$0xff] }
 0x25d   :  { %v827_v22 = vpop.f32.mrf.mxu1  ;;  %1213 = vmatmul.mubr.f32.gmra.mxu0 %v894_v18 }
 0x25e   :  { %v897_v24 = vmax.f32 %v824_v21, 0.0  ;;  %v828_v26 = vadd.f32 %v827_v22, %v6774_v45  ;;  %v1763_v21 = vld [vmem:[#allocation2 + $0x9f0] sm:$0xff] }
 0x25f   :  { %v829_v29 = vpop.f32.mrf.mxu1 }
 0x260   :  { %v830_v27 = vadd.f32 %v829_v29, %v6777_v46  ;;  %1218 = vmatprep.mubr.f32.mxu0 %v897_v24  ;;  %v898_v32 = vmax.f32 %v828_v26, 0.0  ;;  %v1762_v24 = vld [vmem:[#allocation2 + $0x9e8] sm:$0xff] }
 0x261   :  { %v833_v30 = vpop.f32.mrf.mxu1  ;;  %1219 = vmatmul.mubr.f32.gmra.mxu0 %v896_v28 }
 0x262   :  { %v899_v31 = vmax.f32 %v830_v27, 0.0  ;;  %v834_v33 = vadd.f32 %v833_v30, %v6774_v45  ;;  %v1727_v45 = vld [vmem:[#allocation2 + $0x8d0] sm:$0xff]  ;;  %v1761_v27 = vld [vmem:[#allocation2 + $0x9e0] sm:$0xff] }
 0x263   :  { %v835_v34 = vpop.f32.mrf.mxu1  ;;  %1783 = vmatpush1.msra.mxu0 %v1727_v45  ;;  %v1755_v45 = vld [vmem:[#allocation2 + $0x9b0] sm:$0xff] }
 0x264   :  { %v836_v35 = vadd.f32 %v835_v34, %v6777_v46  ;;  %1224 = vmatprep.mubr.f32.mxu0 %v899_v31  ;;  %v900_v37 = vmax.f32 %v834_v33, 0.0  ;;  %1784 = vmatprep.subr.mxu0 %v1726_v43  ;;  %v1725_v46 = vld [vmem:[#allocation2 + $0x8c0] sm:$0xff]  ;;  %v1760_v31 = vld [vmem:[#allocation2 + $0x9d8] sm:$0xff]  ;;  %v1759_v33 = vld [vmem:[#allocation2 + $0x9d0] sm:$0xff] }
 0x265   :  { %1225 = vmatmul.mubr.f32.gmra.mxu0 %v898_v32 }
 0x266   :  { %v901_v36 = vmax.f32 %v836_v35, 0.0  ;;  %1785 = vmatpush1.msra.mxu0 %v1725_v46  ;;  %v1758_v35 = vld [vmem:[#allocation2 + $0x9c8] sm:$0xff] }
 0x267   :  { %1786 = vmatprep.subr.mxu0 %v1724_v44  ;;  %v1754_v46 = vld [vmem:[#allocation2 + $0x9a8] sm:$0xff] }
 0x268   :  { %1230 = vmatprep.mubr.f32.mxu0 %v901_v36  ;;  %1787 = vmatpush1.msra.mxu0 %v1723_v47 }
 0x269   :  { %1231 = vmatmul.mubr.f32.gmra.mxu0 %v900_v37  ;;  %1788 = vmatprep.subr.mxu0 %v1722_v48 }
 0x26a   :  { %1789 = vmatpush1.msra.mxu0 %v1721_v49  ;;  %v1753_v49 = vld [vmem:[#allocation2 + $0x9a0] sm:$0xff] }
 0x26b   :  { %1790 = vmatprep.subr.mxu0 %v1720_v50 }
 0x26c   :  { %1791 = vmatpush1.msra.mxu0 %v1719_v51  ;;  %v1752_v51 = vld [vmem:[#allocation2 + $0x998] sm:$0xff] }
 0x26d   :  { %1792 = vmatprep.subr.mxu0 %v1718_v52 }
 0x26e   :  { %1793 = vmatpush1.msra.mxu0 %v1717_v53  ;;  %v1751_v53 = vld [vmem:[#allocation2 + $0x990] sm:$0xff] }
 0x26f   :  { %1794 = vmatprep.subr.mxu0 %v1716_v54 }
 0x270   :  { %1795 = vmatpush1.msra.mxu0 %v1715_v55  ;;  %v1750_v55 = vld [vmem:[#allocation2 + $0x988] sm:$0xff] }
 0x271   :  { %1796 = vmatprep.subr.mxu0 %v1714_v56 }
 0x272   :  { %1797 = vmatpush1.msra.mxu0 %v1713_v57 }
 0x273   :  { %1798 = vmatprep.subr.mxu0 %v1712_v58 }
 0x274   :  { %1799 = vmatpush1.msra.mxu0 %v1711_v60 }
 0x275   :  { %1800 = vmatprep.subr.mxu0 %v1710_v61  ;;  %v1748_v61 = vld [vmem:[#allocation2 + $0x978] sm:$0xff] }
 0x276   :  { %1801 = vmatpush1.msra.mxu0 %v1709_v0 }
 0x277   :  { %1802 = vmatprep.subr.mxu0 %v1708_v2 }
 0x278   :  { %1803 = vmatpush1.msra.mxu0 %v1707_v3  ;;  %v1746_v3 = vld [vmem:[#allocation2 + $0x968] sm:$0xff] }
 0x279   :  { %1804 = vmatprep.subr.mxu0 %v1706_v7  ;;  %v1745_v7 = vld [vmem:[#allocation2 + $0x960] sm:$0xff] }
 0x27a   :  { %1805 = vmatpush1.msra.mxu0 %v1705_v9  ;;  %v1744_v9 = vld [vmem:[#allocation2 + $0x958] sm:$0xff] }
 0x27b   :  { %1806 = vmatprep.subr.mxu0 %v1704_v10 }
 0x27c   :  { %1807 = vmatpush1.msra.mxu0 %v1703_v11  ;;  %v1743_v11 = vld [vmem:[#allocation2 + $0x950] sm:$0xff] }
 0x27d   :  { %1808 = vmatprep.subr.mxu0 %v1702_v13  ;;  %v1742_v13 = vld [vmem:[#allocation2 + $0x948] sm:$0xff] }
 0x27e   :  { %1809 = vmatpush1.msra.mxu0 %v1701_v17  ;;  %v1741_v17 = vld [vmem:[#allocation2 + $0x940] sm:$0xff] }
 0x27f   :  { %1810 = vmatprep.subr.mxu0 %v1764_v19  ;;  %v1740_v19 = vld [vmem:[#allocation2 + $0x938] sm:$0xff] }
 0x280   :  { %1811 = vmatpush2.msra.mxu0 %v1763_v21  ;;  %v1739_v21 = vld [vmem:[#allocation2 + $0x930] sm:$0xff] }
 0x281   :  { %1812 = vmatprep.subr.mxu0 %v1762_v24  ;;  %v1738_v24 = vld [vmem:[#allocation2 + $0x928] sm:$0xff] }
 0x282   :  { %1813 = vmatpush2.msra.mxu0 %v1761_v27  ;;  %v1737_v27 = vld [vmem:[#allocation2 + $0x920] sm:$0xff] }
 0x283   :  { %1814 = vmatprep.subr.mxu0 %v1760_v31  ;;  %v1736_v31 = vld [vmem:[#allocation2 + $0x918] sm:$0xff] }
 0x284   :  { %1815 = vmatpush2.msra.mxu0 %v1759_v33 }
 0x285   :  { %1816 = vmatprep.subr.mxu0 %v1758_v35 }
 0x286   :  { %1817 = vmatpush2.msra.mxu0 %v1757_v39 }
 0x287   :  { %1818 = vmatprep.subr.mxu0 %v1756_v41 }
 0x288   :  { %1819 = vmatpush2.msra.mxu0 %v1755_v45 }
 0x289   :  { %1820 = vmatprep.subr.mxu0 %v1754_v46 }
 0x28a   :  { %1821 = vmatpush2.msra.mxu0 %v1753_v49 }
 0x28b   :  { %1822 = vmatprep.subr.mxu0 %v1752_v51 }
 0x28c   :  { %1823 = vmatpush2.msra.mxu0 %v1751_v53 }
 0x28d   :  { %1824 = vmatprep.subr.mxu0 %v1750_v55 }
 0x28e   :  { %1825 = vmatpush2.msra.mxu0 %v1749_v59 }
 0x28f   :  { %1826 = vmatprep.subr.mxu0 %v1748_v61 }
 0x2ad   :  { %v1046_v1 = vpop.f32.mrf.mxu0 }
 0x2ae   :  { %v1047_v4 = vadd.f32 %v1046_v1, %v6844_v62  ;;  %v1747_v1 = vld [vmem:[#allocation2 + $0x970] sm:$0xff] }
 0x2af   :  { %v1048_v5 = vpop.f32.mrf.mxu0  ;;  %1827 = vmatpush2.msra.mxu0 %v1747_v1 }
 0x2b0   :  { %v1049_v6 = vadd.f32 %v1048_v5, %v6847_v63  ;;  %v1237_v14 = vmax.f32 %v1047_v4, 0.0  ;;  %1828 = vmatprep.subr.mxu0 %v1746_v3 }
 0x2b1   :  { %v1052_v8 = vpop.f32.mrf.mxu0  ;;  %1829 = vmatpush2.msra.mxu0 %v1745_v7 }
 0x2b2   :  { %v1238_v12 = vmax.f32 %v1049_v6, 0.0  ;;  %v1053_v15 = vadd.f32 %v1052_v8, %v6844_v62  ;;  %1830 = vmatprep.subr.mxu0 %v1744_v9 }
 0x2b3   :  { %v1054_v16 = vpop.f32.mrf.mxu0  ;;  %1831 = vmatpush2.msra.mxu0 %v1743_v11 }
 0x2b4   :  { %v1055_v18 = vadd.f32 %v1054_v16, %v6847_v63  ;;  %1443 = vmatprep.mubr.f32.mxu1 %v1238_v12  ;;  %v1239_v28 = vmax.f32 %v1053_v15, 0.0  ;;  %1832 = vmatprep.subr.mxu0 %v1742_v13 }
 0x2b5   :  { %v1058_v20 = vpop.f32.mrf.mxu0  ;;  %1444 = vmatmul.mubr.f32.vlgmr.msra.gmra.mxu1 %v1237_v14  ;;  %1833 = vmatpush2.msra.mxu0 %v1741_v17 }
 0x2b6   :  { %v1240_v22 = vmax.f32 %v1055_v18, 0.0  ;;  %v1059_v26 = vadd.f32 %v1058_v20, %v6844_v62  ;;  %1834 = vmatprep.subr.mxu0 %v1740_v19 }
 0x2b7   :  { %v1060_v29 = vpop.f32.mrf.mxu0  ;;  %1835 = vmatpush2.msra.mxu0 %v1739_v21 }
 0x2b8   :  { %v1061_v30 = vadd.f32 %v1060_v29, %v6847_v63  ;;  %1449 = vmatprep.mubr.f32.mxu1 %v1240_v22  ;;  %v1241_v36 = vmax.f32 %v1059_v26, 0.0  ;;  %1836 = vmatprep.subr.mxu0 %v1738_v24 }
 0x2b9   :  { %v1064_v32 = vpop.f32.mrf.mxu0  ;;  %1450 = vmatmul.mubr.f32.gmra.mxu1 %v1239_v28  ;;  %1837 = vmatpush2.msra.mxu0 %v1737_v27 }
 0x2ba   :  { %v1242_v34 = vmax.f32 %v1061_v30, 0.0  ;;  %v1065_v37 = vadd.f32 %v1064_v32, %v6844_v62  ;;  %1838 = vmatprep.subr.mxu0 %v1736_v31 }
 0x2bb   :  { %v1066_v38 = vpop.f32.mrf.mxu0 }
 0x2bc   :  { %v1067_v40 = vadd.f32 %v1066_v38, %v6847_v63  ;;  %1455 = vmatprep.mubr.f32.mxu1 %v1242_v34  ;;  %v1243_v44 = vmax.f32 %v1065_v37, 0.0 }
 0x2bd   :  { %v1070_v42 = vpop.f32.mrf.mxu0  ;;  %1456 = vmatmul.mubr.f32.gmra.mxu1 %v1241_v36 }
 0x2be   :  { %v1244_v43 = vmax.f32 %v1067_v40, 0.0  ;;  %v1071_v47 = vadd.f32 %v1070_v42, %v6844_v62 }
 0x2bf   :  { %v1072_v48 = vpop.f32.mrf.mxu0 }
 0x2c0   :  { %v1073_v50 = vadd.f32 %v1072_v48, %v6847_v63  ;;  %1461 = vmatprep.mubr.f32.mxu1 %v1244_v43  ;;  %v1245_v56 = vmax.f32 %v1071_v47, 0.0 }
 0x2c1   :  { %v1076_v52 = vpop.f32.mrf.mxu0  ;;  %1462 = vmatmul.mubr.f32.gmra.mxu1 %v1243_v44 }
 0x2c2   :  { %v1246_v54 = vmax.f32 %v1073_v50, 0.0  ;;  %v1077_v57 = vadd.f32 %v1076_v52, %v6844_v62 }
 0x2c3   :  { %v1078_v58 = vpop.f32.mrf.mxu0 }
 0x2c4   :  { %v1079_v60 = vadd.f32 %v1078_v58, %v6847_v63  ;;  %1467 = vmatprep.mubr.f32.mxu1 %v1246_v54  ;;  %v1247_v4 = vmax.f32 %v1077_v57, 0.0 }
 0x2c5   :  { %v1082_v0 = vpop.f32.mrf.mxu0  ;;  %1468 = vmatmul.mubr.f32.gmra.mxu1 %v1245_v56 }
 0x2c6   :  { %v1248_v2 = vmax.f32 %v1079_v60, 0.0  ;;  %v1083_v5 = vadd.f32 %v1082_v0, %v6844_v62 }
 0x2c7   :  { %v1084_v6 = vpop.f32.mrf.mxu0 }
 0x2c8   :  { %v1085_v8 = vadd.f32 %v1084_v6, %v6847_v63  ;;  %1473 = vmatprep.mubr.f32.mxu1 %v1248_v2  ;;  %v1249_v14 = vmax.f32 %v1083_v5, 0.0 }
 0x2c9   :  { %v1088_v10 = vpop.f32.mrf.mxu0  ;;  %1474 = vmatmul.mubr.f32.gmra.mxu1 %v1247_v4 }
 0x2ca   :  { %v1250_v12 = vmax.f32 %v1085_v8, 0.0  ;;  %v1089_v15 = vadd.f32 %v1088_v10, %v6844_v62 }
 0x2cb   :  { %v1090_v16 = vpop.f32.mrf.mxu0 }
 0x2cc   :  { %v1091_v18 = vadd.f32 %v1090_v16, %v6847_v63  ;;  %1479 = vmatprep.mubr.f32.mxu1 %v1250_v12  ;;  %v1251_v28 = vmax.f32 %v1089_v15, 0.0 }
 0x2cd   :  { %v1094_v20 = vpop.f32.mrf.mxu0  ;;  %1480 = vmatmul.mubr.f32.gmra.mxu1 %v1249_v14 }
 0x2ce   :  { %v1252_v22 = vmax.f32 %v1091_v18, 0.0  ;;  %v1095_v26 = vadd.f32 %v1094_v20, %v6844_v62 }
 0x2cf   :  { %v1096_v29 = vpop.f32.mrf.mxu0 }
 0x2d0   :  { %v1097_v30 = vadd.f32 %v1096_v29, %v6847_v63  ;;  %1485 = vmatprep.mubr.f32.mxu1 %v1252_v22  ;;  %v1253_v34 = vmax.f32 %v1095_v26, 0.0 }
 0x2d1   :  { %v1100_v32 = vpop.f32.mrf.mxu0  ;;  %1486 = vmatmul.mubr.f32.gmra.mxu1 %v1251_v28 }
 0x2d2   :  { %v1254_v33 = vmax.f32 %v1097_v30, 0.0  ;;  %v1101_v35 = vadd.f32 %v1100_v32, %v6844_v62  ;;  %v1735_v32 = vld [vmem:[#allocation2 + $0x910] sm:$0xff] }
 0x2d3   :  { %v1102_v36 = vpop.f32.mrf.mxu0  ;;  %1839 = vmatpush2.msra.mxu0 %v1735_v32 }
 0x2d4   :  { %v1103_v37 = vadd.f32 %v1102_v36, %v6847_v63  ;;  %1491 = vmatprep.mubr.f32.mxu1 %v1254_v33  ;;  %v1255_v40 = vmax.f32 %v1101_v35, 0.0  ;;  %v1734_v35 = vld [vmem:[#allocation2 + $0x908] sm:$0xff] }
 0x2d5   :  { %v1106_v38 = vpop.f32.mrf.mxu0  ;;  %1492 = vmatmul.mubr.f32.gmra.mxu1 %v1253_v34  ;;  %1840 = vmatprep.subr.mxu0 %v1734_v35 }
 0x2d6   :  { %v1256_v39 = vmax.f32 %v1103_v37, 0.0  ;;  %v1107_v41 = vadd.f32 %v1106_v38, %v6844_v62 }
 0x2d7   :  { %v1108_v42 = vpop.f32.mrf.mxu0 }
 0x2d8   :  { %v1109_v45 = vadd.f32 %v1108_v42, %v6847_v63  ;;  %1497 = vmatprep.mubr.f32.mxu1 %v1256_v39  ;;  %v1257_v44 = vmax.f32 %v1107_v41, 0.0  ;;  %v1733_v39 = vld [vmem:[#allocation2 + $0x900] sm:$0xff] }
 0x2d9   :  { %v1112_v43 = vpop.f32.mrf.mxu0  ;;  %1498 = vmatmul.mubr.f32.gmra.mxu1 %v1255_v40  ;;  %1841 = vmatpush2.msra.mxu0 %v1733_v39 }
 0x2da   :  { %v1258_v46 = vmax.f32 %v1109_v45, 0.0  ;;  %v1113_v47 = vadd.f32 %v1112_v43, %v6844_v62 }
 0x2db   :  { %v1114_v48 = vpop.f32.mrf.mxu0 }
 0x2dc   :  { %v1115_v49 = vadd.f32 %v1114_v48, %v6847_v63  ;;  %1503 = vmatprep.mubr.f32.mxu1 %v1258_v46  ;;  %v1259_v52 = vmax.f32 %v1113_v47, 0.0 }
 0x2dd   :  { %v1118_v50 = vpop.f32.mrf.mxu0  ;;  %1504 = vmatmul.mubr.f32.gmra.mxu1 %v1257_v44 }
 0x2de   :  { %v1260_v51 = vmax.f32 %v1115_v49, 0.0  ;;  %v1119_v53 = vadd.f32 %v1118_v50, %v6844_v62 }
 0x2df   :  { %v1120_v54 = vpop.f32.mrf.mxu0 }
 0x2e0   :  { %v1121_v55 = vadd.f32 %v1120_v54, %v6847_v63  ;;  %1509 = vmatprep.mubr.f32.mxu1 %v1260_v51  ;;  %v1261_v58 = vmax.f32 %v1119_v53, 0.0 }
 0x2e1   :  { %v1124_v56 = vpop.f32.mrf.mxu0  ;;  %1510 = vmatmul.mubr.f32.gmra.mxu1 %v1259_v52 }
 0x2e2   :  { %v1262_v57 = vmax.f32 %v1121_v55, 0.0  ;;  %v1125_v59 = vadd.f32 %v1124_v56, %v6844_v62 }
 0x2e3   :  { %v1126_v60 = vpop.f32.mrf.mxu0 }
 0x2e4   :  { %v1127_v61 = vadd.f32 %v1126_v60, %v6847_v63  ;;  %1515 = vmatprep.mubr.f32.mxu1 %v1262_v57  ;;  %v1263_v2 = vmax.f32 %v1125_v59, 0.0 }
 0x2e5   :  { %v1130_v0 = vpop.f32.mrf.mxu0  ;;  %1516 = vmatmul.mubr.f32.gmra.mxu1 %v1261_v58 }
 0x2e6   :  { %v1264_v1 = vmax.f32 %v1127_v61, 0.0  ;;  %v1131_v3 = vadd.f32 %v1130_v0, %v6844_v62 }
 0x2e7   :  { %v1132_v4 = vpop.f32.mrf.mxu0 }
 0x2e8   :  { %v1133_v5 = vadd.f32 %v1132_v4, %v6847_v63  ;;  %1521 = vmatprep.mubr.f32.mxu1 %v1264_v1  ;;  %v1265_v8 = vmax.f32 %v1131_v3, 0.0 }
 0x2e9   :  { %v1136_v6 = vpop.f32.mrf.mxu0  ;;  %1522 = vmatmul.mubr.f32.gmra.mxu1 %v1263_v2 }
 0x2ea   :  { %v1266_v7 = vmax.f32 %v1133_v5, 0.0  ;;  %v1137_v9 = vadd.f32 %v1136_v6, %v6844_v62 }
 0x2eb   :  { %v1138_v10 = vpop.f32.mrf.mxu0 }
 0x2ec   :  { %v1139_v11 = vadd.f32 %v1138_v10, %v6847_v63  ;;  %1527 = vmatprep.mubr.f32.mxu1 %v1266_v7  ;;  %v1267_v14 = vmax.f32 %v1137_v9, 0.0 }
 0x2ed   :  { %v1142_v12 = vpop.f32.mrf.mxu0  ;;  %1528 = vmatmul.mubr.f32.gmra.mxu1 %v1265_v8 }
 0x2ee   :  { %v1268_v13 = vmax.f32 %v1139_v11, 0.0  ;;  %v1143_v15 = vadd.f32 %v1142_v12, %v6844_v62 }
 0x2ef   :  { %v1144_v16 = vpop.f32.mrf.mxu0 }
 0x2f0   :  { %v1145_v17 = vadd.f32 %v1144_v16, %v6847_v63  ;;  %1533 = vmatprep.mubr.f32.mxu1 %v1268_v13  ;;  %v1269_v20 = vmax.f32 %v1143_v15, 0.0 }
 0x2f1   :  { %v1148_v18 = vpop.f32.mrf.mxu0  ;;  %1534 = vmatmul.mubr.f32.gmra.mxu1 %v1267_v14 }
 0x2f2   :  { %v1270_v19 = vmax.f32 %v1145_v17, 0.0  ;;  %v1149_v21 = vadd.f32 %v1148_v18, %v6844_v62 }
 0x2f3   :  { %v1150_v22 = vpop.f32.mrf.mxu0 }
 0x2f4   :  { %v1151_v24 = vadd.f32 %v1150_v22, %v6847_v63  ;;  %1539 = vmatprep.mubr.f32.mxu1 %v1270_v19  ;;  %v1271_v29 = vmax.f32 %v1149_v21, 0.0 }
 0x2f5   :  { %v1154_v28 = vpop.f32.mrf.mxu0  ;;  %1540 = vmatmul.mubr.f32.gmra.mxu1 %v1269_v20 }
 0x2f6   :  { %v1272_v26 = vmax.f32 %v1151_v24, 0.0  ;;  %v1155_v27 = vadd.f32 %v1154_v28, %v6844_v62 }
 0x2f7   :  { %v1156_v30 = vpop.f32.mrf.mxu0 }
 0x2f8   :  { %v1157_v31 = vadd.f32 %v1156_v30, %v6847_v63  ;;  %1545 = vmatprep.mubr.f32.mxu1 %v1272_v26  ;;  %v1273_v36 = vmax.f32 %v1155_v27, 0.0 }
 0x2f9   :  { %v1160_v33 = vpop.f32.mrf.mxu0  ;;  %1546 = vmatmul.mubr.f32.gmra.mxu1 %v1271_v29 }
 0x2fa   :  { %v1274_v34 = vmax.f32 %v1157_v31, 0.0  ;;  %v1161_v37 = vadd.f32 %v1160_v33, %v6844_v62 }
 0x2fb   :  { %v1162_v38 = vpop.f32.mrf.mxu0 }
 0x2fc   :  { %v1163_v40 = vadd.f32 %v1162_v38, %v6847_v63  ;;  %1551 = vmatprep.mubr.f32.mxu1 %v1274_v34  ;;  %v1275_v45 = vmax.f32 %v1161_v37, 0.0 }
 0x2fd   :  { %v1166_v41 = vpop.f32.mrf.mxu0  ;;  %1552 = vmatmul.mubr.f32.gmra.mxu1 %v1273_v36 }
 0x2fe   :  { %v1276_v42 = vmax.f32 %v1163_v40, 0.0  ;;  %v1167_v43 = vadd.f32 %v1166_v41, %v6844_v62 }
 0x2ff   :  { %v1168_v46 = vpop.f32.mrf.mxu0 }
 0x300   :  { %v1169_v44 = vadd.f32 %v1168_v46, %v6847_v63  ;;  %1557 = vmatprep.mubr.f32.mxu1 %v1276_v42  ;;  %v1277_v49 = vmax.f32 %v1167_v43, 0.0 }
 0x301   :  { %v1172_v47 = vpop.f32.mrf.mxu0  ;;  %1558 = vmatmul.mubr.f32.gmra.mxu1 %v1275_v45 }
 0x302   :  { %v1278_v48 = vmax.f32 %v1169_v44, 0.0  ;;  %v1173_v50 = vadd.f32 %v1172_v47, %v6844_v62 }
 0x303   :  { %v1174_v51 = vpop.f32.mrf.mxu0 }
 0x304   :  { %v1175_v52 = vadd.f32 %v1174_v51, %v6847_v63  ;;  %1563 = vmatprep.mubr.f32.mxu1 %v1278_v48  ;;  %v1279_v55 = vmax.f32 %v1173_v50, 0.0 }
 0x305   :  { %v1178_v53 = vpop.f32.mrf.mxu0  ;;  %1564 = vmatmul.mubr.f32.gmra.mxu1 %v1277_v49 }
 0x306   :  { %v1280_v54 = vmax.f32 %v1175_v52, 0.0  ;;  %v1179_v56 = vadd.f32 %v1178_v53, %v6844_v62 }
 0x307   :  { %v1180_v57 = vpop.f32.mrf.mxu0 }
 0x308   :  { %v1181_v58 = vadd.f32 %v1180_v57, %v6847_v63  ;;  %1569 = vmatprep.mubr.f32.mxu1 %v1280_v54  ;;  %v1281_v61 = vmax.f32 %v1179_v56, 0.0  ;;  %v2130_v56 = vld [vmem:[#allocation2 + $0xaf0] sm:$0xff]  ;;  %v2129_v57 = vld [vmem:[#allocation2 + $0xae8] sm:$0xff] }
 0x309   :  { %v1184_v59 = vpop.f32.mrf.mxu0  ;;  %1570 = vmatmul.mubr.f32.gmra.mxu1 %v1279_v55  ;;  %v2131_v55 = vld [vmem:[#allocation2 + $0xaf8] sm:$0xff] }
 0x30a   :  { %v1282_v60 = vmax.f32 %v1181_v58, 0.0  ;;  %v1185_v0 = vadd.f32 %v1184_v59, %v6844_v62  ;;  %2177 = vmatprep.subr.mxu1 %v2131_v55  ;;  %v2128_v58 = vld [vmem:[#allocation2 + $0xae0] sm:$0xff]  ;;  %v2127_v59 = vld [vmem:[#allocation2 + $0xad8] sm:$0xff] }
 0x30b   :  { %v1186_v1 = vpop.f32.mrf.mxu0  ;;  %2178 = vmatpush1.msra.mxu1 %v2130_v56  ;;  %v2156_v56 = vld [vmem:[#allocation2 + $0xbc0] sm:$0xff] }
 0x30c   :  { %v1187_v2 = vadd.f32 %v1186_v1, %v6847_v63  ;;  %1575 = vmatprep.mubr.f32.mxu1 %v1282_v60  ;;  %v1283_v5 = vmax.f32 %v1185_v0, 0.0  ;;  %2179 = vmatprep.subr.mxu1 %v2129_v57  ;;  %v2125_v60 = vld [vmem:[#allocation2 + $0xac8] sm:$0xff]  ;;  %v2122_v0 = vld [vmem:[#allocation2 + $0xab0] sm:$0xff] }
 0x30d   :  { %v1190_v3 = vpop.f32.mrf.mxu0  ;;  %1576 = vmatmul.mubr.f32.gmra.mxu1 %v1281_v61  ;;  %v2123_v61 = vld [vmem:[#allocation2 + $0xab8] sm:$0xff]  ;;  %v2121_v1 = vld [vmem:[#allocation2 + $0xaa8] sm:$0xff] }
 0x30e   :  { %v1284_v4 = vmax.f32 %v1187_v2, 0.0  ;;  %v1191_v6 = vadd.f32 %v1190_v3, %v6844_v62  ;;  %2180 = vmatpush1.msra.mxu1 %v2128_v58  ;;  %v2120_v2 = vld [vmem:[#allocation2 + $0xaa0] sm:$0xff]  ;;  %v2119_v3 = vld [vmem:[#allocation2 + $0xa98] sm:$0xff] }
 0x30f   :  { %v1192_v7 = vpop.f32.mrf.mxu0  ;;  %2181 = vmatprep.subr.mxu1 %v2127_v59  ;;  %v2155_v58 = vld [vmem:[#allocation2 + $0xbb8] sm:$0xff] }
 0x310   :  { %v1193_v8 = vadd.f32 %v1192_v7, %v6847_v63  ;;  %1581 = vmatprep.mubr.f32.mxu1 %v1284_v4  ;;  %v1285_v11 = vmax.f32 %v1191_v6, 0.0  ;;  %v2118_v4 = vld [vmem:[#allocation2 + $0xa90] sm:$0xff]  ;;  %v2116_v6 = vld [vmem:[#allocation2 + $0xa80] sm:$0xff]  ;;  %v2115_v7 = vld [vmem:[#allocation2 + $0xa78] sm:$0xff] }
 0x311   :  { %v1196_v9 = vpop.f32.mrf.mxu0  ;;  %1582 = vmatmul.mubr.f32.gmra.mxu1 %v1283_v5  ;;  %v2117_v5 = vld [vmem:[#allocation2 + $0xa88] sm:$0xff] }
 0x312   :  { %v1286_v10 = vmax.f32 %v1193_v8, 0.0  ;;  %v1197_v12 = vadd.f32 %v1196_v9, %v6844_v62  ;;  %v2114_v8 = vld [vmem:[#allocation2 + $0xa70] sm:$0xff]  ;;  %v2113_v9 = vld [vmem:[#allocation2 + $0xa68] sm:$0xff] }
 0x313   :  { %v1198_v13 = vpop.f32.mrf.mxu0 }
 0x314   :  { %v1199_v14 = vadd.f32 %v1198_v13, %v6847_v63  ;;  %1587 = vmatprep.mubr.f32.mxu1 %v1286_v10  ;;  %v1287_v17 = vmax.f32 %v1197_v12, 0.0  ;;  %v2112_v10 = vld [vmem:[#allocation2 + $0xa60] sm:$0xff]  ;;  %v2110_v13 = vld [vmem:[#allocation2 + $0xa50] sm:$0xff] }
 0x315   :  { %v1202_v15 = vpop.f32.mrf.mxu0  ;;  %1588 = vmatmul.mubr.f32.gmra.mxu1 %v1285_v11  ;;  %v2111_v11 = vld [vmem:[#allocation2 + $0xa58] sm:$0xff]  ;;  %v1367_v12 = vld [vmem:[#allocation4 + $0x6] sm:$0x3] }
 0x316   :  { %v1288_v16 = vmax.f32 %v1199_v14, 0.0  ;;  %v1203_v18 = vadd.f32 %v1202_v15, %v6844_v62  ;;  %v2109_v14 = vld [vmem:[#allocation2 + $0xa48] sm:$0xff]  ;;  %v6914_v15 = vrot.slane %v1367_v12, %v6699_v23 }
 0x317   :  { %v1204_v19 = vpop.f32.mrf.mxu0 }
 0x318   :  { %v1205_v20 = vadd.f32 %v1204_v19, %v6847_v63  ;;  %1593 = vmatprep.mubr.f32.mxu1 %v1288_v16  ;;  %v1289_v24 = vmax.f32 %v1203_v18, 0.0  ;;  %v6917_v16 = vrot.slane %v1367_v12, %v6701_v25  ;;  %v2107_v19 = vld [vmem:[#allocation2 + $0xa38] sm:$0xff]  ;;  %v2148_v12 = vld [vmem:[#allocation2 + $0xb80] sm:$0xff] }
 0x319   :  { %v1208_v21 = vpop.f32.mrf.mxu0  ;;  %1594 = vmatmul.mubr.f32.gmra.mxu1 %v1287_v17  ;;  %v2108_v17 = vld [vmem:[#allocation2 + $0xa40] sm:$0xff] }
 0x31a   :  { %v1290_v22 = vmax.f32 %v1205_v20, 0.0  ;;  %v1209_v28 = vadd.f32 %v1208_v21, %v6844_v62  ;;  %v2106_v20 = vld [vmem:[#allocation2 + $0xa30] sm:$0xff] }
 0x31b   :  { %v1210_v26 = vpop.f32.mrf.mxu0 }
 0x31c   :  { %v1211_v29 = vadd.f32 %v1210_v26, %v6847_v63  ;;  %1599 = vmatprep.mubr.f32.mxu1 %v1290_v22  ;;  %v1291_v31 = vmax.f32 %v1209_v28, 0.0  ;;  %v2105_v28 = vld [vmem:[#allocation2 + $0xa28] sm:$0xff] }
 0x31d   :  { %v1214_v27 = vpop.f32.mrf.mxu0  ;;  %1600 = vmatmul.mubr.f32.gmra.mxu1 %v1289_v24 }
 0x31e   :  { %v1292_v30 = vmax.f32 %v1211_v29, 0.0  ;;  %v1215_v32 = vadd.f32 %v1214_v27, %v6844_v62  ;;  %v2104_v29 = vld [vmem:[#allocation2 + $0xa20] sm:$0xff]  ;;  %v2103_v27 = vld [vmem:[#allocation2 + $0xa18] sm:$0xff] }
 0x31f   :  { %v1216_v33 = vpop.f32.mrf.mxu0 }
 0x320   :  { %v1217_v34 = vadd.f32 %v1216_v33, %v6847_v63  ;;  %1605 = vmatprep.mubr.f32.mxu1 %v1292_v30  ;;  %v1293_v37 = vmax.f32 %v1215_v32, 0.0  ;;  %v2102_v30 = vld [vmem:[#allocation2 + $0xa10] sm:$0xff]  ;;  %v2101_v32 = vld [vmem:[#allocation2 + $0xa08] sm:$0xff] }
 0x321   :  { %v1220_v35 = vpop.f32.mrf.mxu0  ;;  %1606 = vmatmul.mubr.f32.gmra.mxu1 %v1291_v31 }
 0x322   :  { %v1294_v36 = vmax.f32 %v1217_v34, 0.0  ;;  %v1221_v38 = vadd.f32 %v1220_v35, %v6844_v62 }
 0x323   :  { %v1222_v39 = vpop.f32.mrf.mxu0 }
 0x324   :  { %v1223_v40 = vadd.f32 %v1222_v39, %v6847_v63  ;;  %1611 = vmatprep.mubr.f32.mxu1 %v1294_v36  ;;  %v1295_v45 = vmax.f32 %v1221_v38, 0.0  ;;  %v2100_v36 = vld [vmem:[#allocation2 + $0xa00] sm:$0xff]  ;;  %v2163_v38 = vld [vmem:[#allocation2 + $0xbf8] sm:$0xff] }
 0x325   :  { %v1226_v41 = vpop.f32.mrf.mxu0  ;;  %1612 = vmatmul.mubr.f32.gmra.mxu1 %v1293_v37 }
 0x326   :  { %v1296_v42 = vmax.f32 %v1223_v40, 0.0  ;;  %v1227_v43 = vadd.f32 %v1226_v41, %v6844_v62  ;;  %v2162_v40 = vld [vmem:[#allocation2 + $0xbf0] sm:$0xff] }
 0x327   :  { %v1228_v46 = vpop.f32.mrf.mxu0 }
 0x328   :  { %v1229_v44 = vadd.f32 %v1228_v46, %v6847_v63  ;;  %1617 = vmatprep.mubr.f32.mxu1 %v1296_v42  ;;  %v1297_v49 = vmax.f32 %v1227_v43, 0.0  ;;  %v2161_v42 = vld [vmem:[#allocation2 + $0xbe8] sm:$0xff] }
 0x329   :  { %v1232_v47 = vpop.f32.mrf.mxu0  ;;  %1618 = vmatmul.mubr.f32.gmra.mxu1 %v1295_v45 }
 0x32a   :  { %v1298_v48 = vmax.f32 %v1229_v44, 0.0  ;;  %v1233_v50 = vadd.f32 %v1232_v47, %v6844_v62  ;;  %v2126_v62 = vld [vmem:[#allocation2 + $0xad0] sm:$0xff]  ;;  %v2160_v44 = vld [vmem:[#allocation2 + $0xbe0] sm:$0xff] }
 0x32b   :  { %v1234_v51 = vpop.f32.mrf.mxu0  ;;  %2182 = vmatpush1.msra.mxu1 %v2126_v62  ;;  %v2154_v62 = vld [vmem:[#allocation2 + $0xbb0] sm:$0xff] }
 0x32c   :  { %v1235_v52 = vadd.f32 %v1234_v51, %v6847_v63  ;;  %1623 = vmatprep.mubr.f32.mxu1 %v1298_v48  ;;  %v1299_v54 = vmax.f32 %v1233_v50, 0.0  ;;  %2183 = vmatprep.subr.mxu1 %v2125_v60  ;;  %v2124_v63 = vld [vmem:[#allocation2 + $0xac0] sm:$0xff]  ;;  %v2159_v48 = vld [vmem:[#allocation2 + $0xbd8] sm:$0xff]  ;;  %v2158_v50 = vld [vmem:[#allocation2 + $0xbd0] sm:$0xff] }
 0x32d   :  { %1624 = vmatmul.mubr.f32.gmra.mxu1 %v1297_v49 }
 0x32e   :  { %v1300_v53 = vmax.f32 %v1235_v52, 0.0  ;;  %2184 = vmatpush1.msra.mxu1 %v2124_v63  ;;  %v2157_v52 = vld [vmem:[#allocation2 + $0xbc8] sm:$0xff] }
 0x32f   :  { %2185 = vmatprep.subr.mxu1 %v2123_v61  ;;  %v2153_v63 = vld [vmem:[#allocation2 + $0xba8] sm:$0xff] }
 0x330   :  { %1629 = vmatprep.mubr.f32.mxu1 %v1300_v53  ;;  %2186 = vmatpush1.msra.mxu1 %v2122_v0 }
 0x331   :  { %1630 = vmatmul.mubr.f32.gmra.mxu1 %v1299_v54  ;;  %2187 = vmatprep.subr.mxu1 %v2121_v1 }
 0x332   :  { %2188 = vmatpush1.msra.mxu1 %v2120_v2  ;;  %v2152_v2 = vld [vmem:[#allocation2 + $0xba0] sm:$0xff] }
 0x333   :  { %2189 = vmatprep.subr.mxu1 %v2119_v3 }
 0x334   :  { %2190 = vmatpush1.msra.mxu1 %v2118_v4  ;;  %v2151_v4 = vld [vmem:[#allocation2 + $0xb98] sm:$0xff] }
 0x335   :  { %2191 = vmatprep.subr.mxu1 %v2117_v5 }
 0x336   :  { %2192 = vmatpush1.msra.mxu1 %v2116_v6  ;;  %v2150_v6 = vld [vmem:[#allocation2 + $0xb90] sm:$0xff] }
 0x337   :  { %2193 = vmatprep.subr.mxu1 %v2115_v7 }
 0x338   :  { %2194 = vmatpush1.msra.mxu1 %v2114_v8  ;;  %v2149_v8 = vld [vmem:[#allocation2 + $0xb88] sm:$0xff] }
 0x339   :  { %2195 = vmatprep.subr.mxu1 %v2113_v9 }
 0x33a   :  { %2196 = vmatpush1.msra.mxu1 %v2112_v10 }
 0x33b   :  { %2197 = vmatprep.subr.mxu1 %v2111_v11 }
 0x33c   :  { %2198 = vmatpush1.msra.mxu1 %v2110_v13 }
 0x33d   :  { %2199 = vmatprep.subr.mxu1 %v2109_v14  ;;  %v2147_v14 = vld [vmem:[#allocation2 + $0xb78] sm:$0xff] }
 0x33e   :  { %2200 = vmatpush1.msra.mxu1 %v2108_v17 }
 0x33f   :  { %2201 = vmatprep.subr.mxu1 %v2107_v19 }
 0x340   :  { %2202 = vmatpush1.msra.mxu1 %v2106_v20  ;;  %v2145_v20 = vld [vmem:[#allocation2 + $0xb68] sm:$0xff] }
 0x341   :  { %2203 = vmatprep.subr.mxu1 %v2105_v28  ;;  %v2144_v28 = vld [vmem:[#allocation2 + $0xb60] sm:$0xff] }
 0x342   :  { %2204 = vmatpush1.msra.mxu1 %v2104_v29  ;;  %v2143_v29 = vld [vmem:[#allocation2 + $0xb58] sm:$0xff] }
 0x343   :  { %2205 = vmatprep.subr.mxu1 %v2103_v27 }
 0x344   :  { %2206 = vmatpush1.msra.mxu1 %v2102_v30  ;;  %v2142_v30 = vld [vmem:[#allocation2 + $0xb50] sm:$0xff] }
 0x345   :  { %2207 = vmatprep.subr.mxu1 %v2101_v32  ;;  %v2141_v32 = vld [vmem:[#allocation2 + $0xb48] sm:$0xff] }
 0x346   :  { %2208 = vmatpush1.msra.mxu1 %v2100_v36  ;;  %v2140_v36 = vld [vmem:[#allocation2 + $0xb40] sm:$0xff] }
 0x347   :  { %2209 = vmatprep.subr.mxu1 %v2163_v38  ;;  %v2139_v38 = vld [vmem:[#allocation2 + $0xb38] sm:$0xff] }
 0x348   :  { %2210 = vmatpush2.msra.mxu1 %v2162_v40  ;;  %v2138_v40 = vld [vmem:[#allocation2 + $0xb30] sm:$0xff] }
 0x349   :  { %2211 = vmatprep.subr.mxu1 %v2161_v42  ;;  %v2137_v42 = vld [vmem:[#allocation2 + $0xb28] sm:$0xff] }
 0x34a   :  { %2212 = vmatpush2.msra.mxu1 %v2160_v44  ;;  %v2136_v44 = vld [vmem:[#allocation2 + $0xb20] sm:$0xff] }
 0x34b   :  { %2213 = vmatprep.subr.mxu1 %v2159_v48  ;;  %v2135_v48 = vld [vmem:[#allocation2 + $0xb18] sm:$0xff] }
 0x34c   :  { %2214 = vmatpush2.msra.mxu1 %v2158_v50 }
 0x34d   :  { %2215 = vmatprep.subr.mxu1 %v2157_v52 }
 0x34e   :  { %2216 = vmatpush2.msra.mxu1 %v2156_v56 }
 0x34f   :  { %2217 = vmatprep.subr.mxu1 %v2155_v58 }
 0x350   :  { %2218 = vmatpush2.msra.mxu1 %v2154_v62 }
 0x351   :  { %2219 = vmatprep.subr.mxu1 %v2153_v63 }
 0x352   :  { %2220 = vmatpush2.msra.mxu1 %v2152_v2 }
 0x353   :  { %2221 = vmatprep.subr.mxu1 %v2151_v4 }
 0x354   :  { %2222 = vmatpush2.msra.mxu1 %v2150_v6 }
 0x355   :  { %2223 = vmatprep.subr.mxu1 %v2149_v8 }
 0x356   :  { %2224 = vmatpush2.msra.mxu1 %v2148_v12 }
 0x357   :  { %2225 = vmatprep.subr.mxu1 %v2147_v14 }
 0x375   :  { %v1445_v18 = vpop.f32.mrf.mxu1 }
 0x376   :  { %v1446_v21 = vadd.f32 %v1445_v18, %v6914_v15  ;;  %v2146_v18 = vld [vmem:[#allocation2 + $0xb70] sm:$0xff] }
 0x377   :  { %v1447_v22 = vpop.f32.mrf.mxu1  ;;  %2226 = vmatpush2.msra.mxu1 %v2146_v18 }
 0x378   :  { %v1448_v24 = vadd.f32 %v1447_v22, %v6917_v16  ;;  %v1636_v33 = vmax.f32 %v1446_v21, 0.0  ;;  %2227 = vmatprep.subr.mxu1 %v2145_v20 }
 0x379   :  { %v1451_v26 = vpop.f32.mrf.mxu1  ;;  %2228 = vmatpush2.msra.mxu1 %v2144_v28 }
 0x37a   :  { %v1637_v31 = vmax.f32 %v1448_v24, 0.0  ;;  %v1452_v34 = vadd.f32 %v1451_v26, %v6914_v15  ;;  %2229 = vmatprep.subr.mxu1 %v2143_v29 }
 0x37b   :  { %v1453_v35 = vpop.f32.mrf.mxu1  ;;  %2230 = vmatpush2.msra.mxu1 %v2142_v30 }
 0x37c   :  { %v1454_v37 = vadd.f32 %v1453_v35, %v6917_v16  ;;  %1842 = vmatprep.mubr.f32.mxu0 %v1637_v31  ;;  %v1638_v45 = vmax.f32 %v1452_v34, 0.0  ;;  %2231 = vmatprep.subr.mxu1 %v2141_v32 }
 0x37d   :  { %v1457_v39 = vpop.f32.mrf.mxu1  ;;  %1843 = vmatmul.mubr.f32.vlgmr.msra.gmra.mxu0 %v1636_v33  ;;  %2232 = vmatpush2.msra.mxu1 %v2140_v36 }
 0x37e   :  { %v1639_v41 = vmax.f32 %v1454_v37, 0.0  ;;  %v1458_v43 = vadd.f32 %v1457_v39, %v6914_v15  ;;  %2233 = vmatprep.subr.mxu1 %v2139_v38 }
 0x37f   :  { %v1459_v46 = vpop.f32.mrf.mxu1  ;;  %2234 = vmatpush2.msra.mxu1 %v2138_v40 }
 0x380   :  { %v1460_v47 = vadd.f32 %v1459_v46, %v6917_v16  ;;  %1848 = vmatprep.mubr.f32.mxu0 %v1639_v41  ;;  %v1640_v53 = vmax.f32 %v1458_v43, 0.0  ;;  %2235 = vmatprep.subr.mxu1 %v2137_v42 }
 0x381   :  { %v1463_v49 = vpop.f32.mrf.mxu1  ;;  %1849 = vmatmul.mubr.f32.gmra.mxu0 %v1638_v45  ;;  %2236 = vmatpush2.msra.mxu1 %v2136_v44 }
 0x382   :  { %v1641_v51 = vmax.f32 %v1460_v47, 0.0  ;;  %v1464_v54 = vadd.f32 %v1463_v49, %v6914_v15  ;;  %2237 = vmatprep.subr.mxu1 %v2135_v48 }
 0x383   :  { %v1465_v55 = vpop.f32.mrf.mxu1 }
 0x384   :  { %v1466_v57 = vadd.f32 %v1465_v55, %v6917_v16  ;;  %1854 = vmatprep.mubr.f32.mxu0 %v1641_v51  ;;  %v1642_v61 = vmax.f32 %v1464_v54, 0.0 }
 0x385   :  { %v1469_v59 = vpop.f32.mrf.mxu1  ;;  %1855 = vmatmul.mubr.f32.gmra.mxu0 %v1640_v53 }
 0x386   :  { %v1643_v60 = vmax.f32 %v1466_v57, 0.0  ;;  %v1470_v0 = vadd.f32 %v1469_v59, %v6914_v15 }
 0x387   :  { %v1471_v1 = vpop.f32.mrf.mxu1 }
 0x388   :  { %v1472_v3 = vadd.f32 %v1471_v1, %v6917_v16  ;;  %1860 = vmatprep.mubr.f32.mxu0 %v1643_v60  ;;  %v1644_v9 = vmax.f32 %v1470_v0, 0.0 }
 0x389   :  { %v1475_v5 = vpop.f32.mrf.mxu1  ;;  %1861 = vmatmul.mubr.f32.gmra.mxu0 %v1642_v61 }
 0x38a   :  { %v1645_v7 = vmax.f32 %v1472_v3, 0.0  ;;  %v1476_v10 = vadd.f32 %v1475_v5, %v6914_v15 }
 0x38b   :  { %v1477_v11 = vpop.f32.mrf.mxu1 }
 0x38c   :  { %v1478_v13 = vadd.f32 %v1477_v11, %v6917_v16  ;;  %1866 = vmatprep.mubr.f32.mxu0 %v1645_v7  ;;  %v1646_v21 = vmax.f32 %v1476_v10, 0.0 }
 0x38d   :  { %v1481_v17 = vpop.f32.mrf.mxu1  ;;  %1867 = vmatmul.mubr.f32.gmra.mxu0 %v1644_v9 }
 0x38e   :  { %v1647_v19 = vmax.f32 %v1478_v13, 0.0  ;;  %v1482_v22 = vadd.f32 %v1481_v17, %v6914_v15 }
 0x38f   :  { %v1483_v24 = vpop.f32.mrf.mxu1 }
 0x390   :  { %v1484_v26 = vadd.f32 %v1483_v24, %v6917_v16  ;;  %1872 = vmatprep.mubr.f32.mxu0 %v1647_v19  ;;  %v1648_v33 = vmax.f32 %v1482_v22, 0.0 }
 0x391   :  { %v1487_v27 = vpop.f32.mrf.mxu1  ;;  %1873 = vmatmul.mubr.f32.gmra.mxu0 %v1646_v21 }
 0x392   :  { %v1649_v31 = vmax.f32 %v1484_v26, 0.0  ;;  %v1488_v34 = vadd.f32 %v1487_v27, %v6914_v15 }
 0x393   :  { %v1489_v35 = vpop.f32.mrf.mxu1 }
 0x394   :  { %v1490_v37 = vadd.f32 %v1489_v35, %v6917_v16  ;;  %1878 = vmatprep.mubr.f32.mxu0 %v1649_v31  ;;  %v1650_v45 = vmax.f32 %v1488_v34, 0.0 }
 0x395   :  { %v1493_v39 = vpop.f32.mrf.mxu1  ;;  %1879 = vmatmul.mubr.f32.gmra.mxu0 %v1648_v33 }
 0x396   :  { %v1651_v41 = vmax.f32 %v1490_v37, 0.0  ;;  %v1494_v43 = vadd.f32 %v1493_v39, %v6914_v15 }
 0x397   :  { %v1495_v46 = vpop.f32.mrf.mxu1 }
 0x398   :  { %v1496_v47 = vadd.f32 %v1495_v46, %v6917_v16  ;;  %1884 = vmatprep.mubr.f32.mxu0 %v1651_v41  ;;  %v1652_v51 = vmax.f32 %v1494_v43, 0.0 }
 0x399   :  { %v1499_v49 = vpop.f32.mrf.mxu1  ;;  %1885 = vmatmul.mubr.f32.gmra.mxu0 %v1650_v45 }
 0x39a   :  { %v1653_v50 = vmax.f32 %v1496_v47, 0.0  ;;  %v1500_v52 = vadd.f32 %v1499_v49, %v6914_v15  ;;  %v2134_v49 = vld [vmem:[#allocation2 + $0xb10] sm:$0xff] }
 0x39b   :  { %v1501_v53 = vpop.f32.mrf.mxu1  ;;  %2238 = vmatpush2.msra.mxu1 %v2134_v49 }
 0x39c   :  { %v1502_v54 = vadd.f32 %v1501_v53, %v6917_v16  ;;  %1890 = vmatprep.mubr.f32.mxu0 %v1653_v50  ;;  %v1654_v57 = vmax.f32 %v1500_v52, 0.0  ;;  %v2133_v52 = vld [vmem:[#allocation2 + $0xb08] sm:$0xff] }
 0x39d   :  { %v1505_v55 = vpop.f32.mrf.mxu1  ;;  %1891 = vmatmul.mubr.f32.gmra.mxu0 %v1652_v51  ;;  %2239 = vmatprep.subr.mxu1 %v2133_v52 }
 0x39e   :  { %v1655_v56 = vmax.f32 %v1502_v54, 0.0  ;;  %v1506_v58 = vadd.f32 %v1505_v55, %v6914_v15 }
 0x39f   :  { %v1507_v59 = vpop.f32.mrf.mxu1 }
 0x3a0   :  { %v1508_v62 = vadd.f32 %v1507_v59, %v6917_v16  ;;  %1896 = vmatprep.mubr.f32.mxu0 %v1655_v56  ;;  %v1656_v61 = vmax.f32 %v1506_v58, 0.0  ;;  %v2132_v56 = vld [vmem:[#allocation2 + $0xb00] sm:$0xff] }
 0x3a1   :  { %v1511_v60 = vpop.f32.mrf.mxu1  ;;  %1897 = vmatmul.mubr.f32.gmra.mxu0 %v1654_v57  ;;  %2240 = vmatpush2.msra.mxu1 %v2132_v56 }
 0x3a2   :  { %v1657_v63 = vmax.f32 %v1508_v62, 0.0  ;;  %v1512_v0 = vadd.f32 %v1511_v60, %v6914_v15 }
 0x3a3   :  { %v1513_v1 = vpop.f32.mrf.mxu1 }
 0x3a4   :  { %v1514_v2 = vadd.f32 %v1513_v1, %v6917_v16  ;;  %1902 = vmatprep.mubr.f32.mxu0 %v1657_v63  ;;  %v1658_v5 = vmax.f32 %v1512_v0, 0.0 }
 0x3a5   :  { %v1517_v3 = vpop.f32.mrf.mxu1  ;;  %1903 = vmatmul.mubr.f32.gmra.mxu0 %v1656_v61 }
 0x3a6   :  { %v1659_v4 = vmax.f32 %v1514_v2, 0.0  ;;  %v1518_v6 = vadd.f32 %v1517_v3, %v6914_v15 }
 0x3a7   :  { %v1519_v7 = vpop.f32.mrf.mxu1 }
 0x3a8   :  { %v1520_v8 = vadd.f32 %v1519_v7, %v6917_v16  ;;  %1908 = vmatprep.mubr.f32.mxu0 %v1659_v4  ;;  %v1660_v11 = vmax.f32 %v1518_v6, 0.0 }
 0x3a9   :  { %v1523_v9 = vpop.f32.mrf.mxu1  ;;  %1909 = vmatmul.mubr.f32.gmra.mxu0 %v1658_v5 }
 0x3aa   :  { %v1661_v10 = vmax.f32 %v1520_v8, 0.0  ;;  %v1524_v12 = vadd.f32 %v1523_v9, %v6914_v15 }
 0x3ab   :  { %v1525_v13 = vpop.f32.mrf.mxu1 }
 0x3ac   :  { %v1526_v14 = vadd.f32 %v1525_v13, %v6917_v16  ;;  %1914 = vmatprep.mubr.f32.mxu0 %v1661_v10  ;;  %v1662_v19 = vmax.f32 %v1524_v12, 0.0 }
 0x3ad   :  { %v1529_v17 = vpop.f32.mrf.mxu1  ;;  %1915 = vmatmul.mubr.f32.gmra.mxu0 %v1660_v11 }
 0x3ae   :  { %v1663_v18 = vmax.f32 %v1526_v14, 0.0  ;;  %v1530_v20 = vadd.f32 %v1529_v17, %v6914_v15 }
 0x3af   :  { %v1531_v21 = vpop.f32.mrf.mxu1 }
 0x3b0   :  { %v1532_v22 = vadd.f32 %v1531_v21, %v6917_v16  ;;  %1920 = vmatprep.mubr.f32.mxu0 %v1663_v18  ;;  %v1664_v26 = vmax.f32 %v1530_v20, 0.0 }
 0x3b1   :  { %v1535_v24 = vpop.f32.mrf.mxu1  ;;  %1921 = vmatmul.mubr.f32.gmra.mxu0 %v1662_v19 }
 0x3b2   :  { %v1665_v28 = vmax.f32 %v1532_v22, 0.0  ;;  %v1536_v29 = vadd.f32 %v1535_v24, %v6914_v15 }
 0x3b3   :  { %v1537_v27 = vpop.f32.mrf.mxu1 }
 0x3b4   :  { %v1538_v30 = vadd.f32 %v1537_v27, %v6917_v16  ;;  %1926 = vmatprep.mubr.f32.mxu0 %v1665_v28  ;;  %v1666_v33 = vmax.f32 %v1536_v29, 0.0 }
 0x3b5   :  { %v1541_v31 = vpop.f32.mrf.mxu1  ;;  %1927 = vmatmul.mubr.f32.gmra.mxu0 %v1664_v26 }
 0x3b6   :  { %v1667_v32 = vmax.f32 %v1538_v30, 0.0  ;;  %v1542_v34 = vadd.f32 %v1541_v31, %v6914_v15 }
 0x3b7   :  { %v1543_v35 = vpop.f32.mrf.mxu1 }
 0x3b8   :  { %v1544_v36 = vadd.f32 %v1543_v35, %v6917_v16  ;;  %1932 = vmatprep.mubr.f32.mxu0 %v1667_v32  ;;  %v1668_v39 = vmax.f32 %v1542_v34, 0.0 }
 0x3b9   :  { %v1547_v37 = vpop.f32.mrf.mxu1  ;;  %1933 = vmatmul.mubr.f32.gmra.mxu0 %v1666_v33 }
 0x3ba   :  { %v1669_v38 = vmax.f32 %v1544_v36, 0.0  ;;  %v1548_v40 = vadd.f32 %v1547_v37, %v6914_v15 }
 0x3bb   :  { %v1549_v41 = vpop.f32.mrf.mxu1 }
 0x3bc   :  { %v1550_v42 = vadd.f32 %v1549_v41, %v6917_v16  ;;  %1938 = vmatprep.mubr.f32.mxu0 %v1669_v38  ;;  %v1670_v46 = vmax.f32 %v1548_v40, 0.0 }
 0x3bd   :  { %v1553_v45 = vpop.f32.mrf.mxu1  ;;  %1939 = vmatmul.mubr.f32.gmra.mxu0 %v1668_v39 }
 0x3be   :  { %v1671_v43 = vmax.f32 %v1550_v42, 0.0  ;;  %v1554_v44 = vadd.f32 %v1553_v45, %v6914_v15 }
 0x3bf   :  { %v1555_v47 = vpop.f32.mrf.mxu1 }
 0x3c0   :  { %v1556_v48 = vadd.f32 %v1555_v47, %v6917_v16  ;;  %1944 = vmatprep.mubr.f32.mxu0 %v1671_v43  ;;  %v1672_v53 = vmax.f32 %v1554_v44, 0.0 }
 0x3c1   :  { %v1559_v50 = vpop.f32.mrf.mxu1  ;;  %1945 = vmatmul.mubr.f32.gmra.mxu0 %v1670_v46 }
 0x3c2   :  { %v1673_v51 = vmax.f32 %v1556_v48, 0.0  ;;  %v1560_v54 = vadd.f32 %v1559_v50, %v6914_v15 }
 0x3c3   :  { %v1561_v55 = vpop.f32.mrf.mxu1 }
 0x3c4   :  { %v1562_v57 = vadd.f32 %v1561_v55, %v6917_v16  ;;  %1950 = vmatprep.mubr.f32.mxu0 %v1673_v51  ;;  %v1674_v62 = vmax.f32 %v1560_v54, 0.0 }
 0x3c5   :  { %v1565_v58 = vpop.f32.mrf.mxu1  ;;  %1951 = vmatmul.mubr.f32.gmra.mxu0 %v1672_v53 }
 0x3c6   :  { %v1675_v59 = vmax.f32 %v1562_v57, 0.0  ;;  %v1566_v60 = vadd.f32 %v1565_v58, %v6914_v15 }
 0x3c7   :  { %v1567_v63 = vpop.f32.mrf.mxu1 }
 0x3c8   :  { %v1568_v61 = vadd.f32 %v1567_v63, %v6917_v16  ;;  %1956 = vmatprep.mubr.f32.mxu0 %v1675_v59  ;;  %v1676_v2 = vmax.f32 %v1566_v60, 0.0 }
 0x3c9   :  { %v1571_v0 = vpop.f32.mrf.mxu1  ;;  %1957 = vmatmul.mubr.f32.gmra.mxu0 %v1674_v62 }
 0x3ca   :  { %v1677_v1 = vmax.f32 %v1568_v61, 0.0  ;;  %v1572_v3 = vadd.f32 %v1571_v0, %v6914_v15 }
 0x3cb   :  { %v1573_v4 = vpop.f32.mrf.mxu1 }
 0x3cc   :  { %v1574_v5 = vadd.f32 %v1573_v4, %v6917_v16  ;;  %1962 = vmatprep.mubr.f32.mxu0 %v1677_v1  ;;  %v1678_v8 = vmax.f32 %v1572_v3, 0.0 }
 0x3cd   :  { %v1577_v6 = vpop.f32.mrf.mxu1  ;;  %1963 = vmatmul.mubr.f32.gmra.mxu0 %v1676_v2 }
 0x3ce   :  { %v1679_v7 = vmax.f32 %v1574_v5, 0.0  ;;  %v1578_v9 = vadd.f32 %v1577_v6, %v6914_v15 }
 0x3cf   :  { %v1579_v10 = vpop.f32.mrf.mxu1 }
 0x3d0   :  { %v1580_v11 = vadd.f32 %v1579_v10, %v6917_v16  ;;  %1968 = vmatprep.mubr.f32.mxu0 %v1679_v7  ;;  %v1680_v14 = vmax.f32 %v1578_v9, 0.0  ;;  %v2529_v9 = vld [vmem:[#allocation2 + $0xcf0] sm:$0xff]  ;;  %v2528_v10 = vld [vmem:[#allocation2 + $0xce8] sm:$0xff] }
 0x3d1   :  { %v1583_v12 = vpop.f32.mrf.mxu1  ;;  %1969 = vmatmul.mubr.f32.gmra.mxu0 %v1678_v8  ;;  %v2530_v8 = vld [vmem:[#allocation2 + $0xcf8] sm:$0xff] }
 0x3d2   :  { %v1681_v13 = vmax.f32 %v1580_v11, 0.0  ;;  %v1584_v17 = vadd.f32 %v1583_v12, %v6914_v15  ;;  %2576 = vmatprep.subr.mxu0 %v2530_v8  ;;  %v2527_v11 = vld [vmem:[#allocation2 + $0xce0] sm:$0xff]  ;;  %v2526_v12 = vld [vmem:[#allocation2 + $0xcd8] sm:$0xff] }
 0x3d3   :  { %v1585_v18 = vpop.f32.mrf.mxu1  ;;  %2577 = vmatpush1.msra.mxu0 %v2529_v9  ;;  %v2555_v9 = vld [vmem:[#allocation2 + $0xdc0] sm:$0xff] }
 0x3d4   :  { %v1586_v19 = vadd.f32 %v1585_v18, %v6917_v16  ;;  %1974 = vmatprep.mubr.f32.mxu0 %v1681_v13  ;;  %v1682_v22 = vmax.f32 %v1584_v17, 0.0  ;;  %2578 = vmatprep.subr.mxu0 %v2528_v10  ;;  %v2524_v13 = vld [vmem:[#allocation2 + $0xcc8] sm:$0xff]  ;;  %v2521_v17 = vld [vmem:[#allocation2 + $0xcb0] sm:$0xff] }
 0x3d5   :  { %v1589_v20 = vpop.f32.mrf.mxu1  ;;  %1975 = vmatmul.mubr.f32.gmra.mxu0 %v1680_v14  ;;  %v2522_v14 = vld [vmem:[#allocation2 + $0xcb8] sm:$0xff]  ;;  %v2520_v18 = vld [vmem:[#allocation2 + $0xca8] sm:$0xff] }
 0x3d6   :  { %v1683_v21 = vmax.f32 %v1586_v19, 0.0  ;;  %v1590_v24 = vadd.f32 %v1589_v20, %v6914_v15  ;;  %2579 = vmatpush1.msra.mxu0 %v2527_v11  ;;  %v2519_v19 = vld [vmem:[#allocation2 + $0xca0] sm:$0xff]  ;;  %v2518_v20 = vld [vmem:[#allocation2 + $0xc98] sm:$0xff] }
 0x3d7   :  { %v1591_v28 = vpop.f32.mrf.mxu1  ;;  %2580 = vmatprep.subr.mxu0 %v2526_v12  ;;  %v2554_v11 = vld [vmem:[#allocation2 + $0xdb8] sm:$0xff] }
 0x3d8   :  { %v1592_v26 = vadd.f32 %v1591_v28, %v6917_v16  ;;  %1980 = vmatprep.mubr.f32.mxu0 %v1683_v21  ;;  %v1684_v30 = vmax.f32 %v1590_v24, 0.0  ;;  %v2517_v21 = vld [vmem:[#allocation2 + $0xc90] sm:$0xff]  ;;  %v2515_v24 = vld [vmem:[#allocation2 + $0xc80] sm:$0xff]  ;;  %v2514_v28 = vld [vmem:[#allocation2 + $0xc78] sm:$0xff] }
 0x3d9   :  { %v1595_v29 = vpop.f32.mrf.mxu1  ;;  %1981 = vmatmul.mubr.f32.gmra.mxu0 %v1682_v22  ;;  %v2516_v22 = vld [vmem:[#allocation2 + $0xc88] sm:$0xff] }
 0x3da   :  { %v1685_v27 = vmax.f32 %v1592_v26, 0.0  ;;  %v1596_v31 = vadd.f32 %v1595_v29, %v6914_v15  ;;  %v2513_v26 = vld [vmem:[#allocation2 + $0xc70] sm:$0xff]  ;;  %v2512_v29 = vld [vmem:[#allocation2 + $0xc68] sm:$0xff] }
 0x3db   :  { %v1597_v32 = vpop.f32.mrf.mxu1 }
 0x3dc   :  { %v1598_v33 = vadd.f32 %v1597_v32, %v6917_v16  ;;  %1986 = vmatprep.mubr.f32.mxu0 %v1685_v27  ;;  %v1686_v36 = vmax.f32 %v1596_v31, 0.0  ;;  %v2511_v27 = vld [vmem:[#allocation2 + $0xc60] sm:$0xff]  ;;  %v1766_v31 = vld [vmem:[#allocation4 + $0x8] sm:$0x3]  ;;  %v2509_v32 = vld [vmem:[#allocation2 + $0xc50] sm:$0xff] }
 0x3dd   :  { %v1601_v34 = vpop.f32.mrf.mxu1  ;;  %1987 = vmatmul.mubr.f32.gmra.mxu0 %v1684_v30  ;;  %v2510_v30 = vld [vmem:[#allocation2 + $0xc58] sm:$0xff] }
 0x3de   :  { %v1687_v35 = vmax.f32 %v1598_v33, 0.0  ;;  %v1602_v37 = vadd.f32 %v1601_v34, %v6914_v15  ;;  %v2508_v33 = vld [vmem:[#allocation2 + $0xc48] sm:$0xff]  ;;  %v6984_v34 = vrot.slane %v1766_v31, %v6699_v23 }
 0x3df   :  { %v1603_v38 = vpop.f32.mrf.mxu1 }
 0x3e0   :  { %v1604_v39 = vadd.f32 %v1603_v38, %v6917_v16  ;;  %1992 = vmatprep.mubr.f32.mxu0 %v1687_v35  ;;  %v1688_v42 = vmax.f32 %v1602_v37, 0.0  ;;  %v6987_v35 = vrot.slane %v1766_v31, %v6701_v25  ;;  %v2506_v38 = vld [vmem:[#allocation2 + $0xc38] sm:$0xff]  ;;  %v2547_v31 = vld [vmem:[#allocation2 + $0xd80] sm:$0xff] }
 0x3e1   :  { %v1607_v40 = vpop.f32.mrf.mxu1  ;;  %1993 = vmatmul.mubr.f32.gmra.mxu0 %v1686_v36  ;;  %v2507_v36 = vld [vmem:[#allocation2 + $0xc40] sm:$0xff] }
 0x3e2   :  { %v1689_v41 = vmax.f32 %v1604_v39, 0.0  ;;  %v1608_v45 = vadd.f32 %v1607_v40, %v6914_v15  ;;  %v2505_v39 = vld [vmem:[#allocation2 + $0xc30] sm:$0xff] }
 0x3e3   :  { %v1609_v43 = vpop.f32.mrf.mxu1 }
 0x3e4   :  { %v1610_v46 = vadd.f32 %v1609_v43, %v6917_v16  ;;  %1998 = vmatprep.mubr.f32.mxu0 %v1689_v41  ;;  %v1690_v48 = vmax.f32 %v1608_v45, 0.0  ;;  %v2504_v45 = vld [vmem:[#allocation2 + $0xc28] sm:$0xff] }
 0x3e5   :  { %v1613_v44 = vpop.f32.mrf.mxu1  ;;  %1999 = vmatmul.mubr.f32.gmra.mxu0 %v1688_v42 }
 0x3e6   :  { %v1691_v47 = vmax.f32 %v1610_v46, 0.0  ;;  %v1614_v49 = vadd.f32 %v1613_v44, %v6914_v15  ;;  %v2503_v46 = vld [vmem:[#allocation2 + $0xc20] sm:$0xff]  ;;  %v2502_v44 = vld [vmem:[#allocation2 + $0xc18] sm:$0xff] }
 0x3e7   :  { %v1615_v50 = vpop.f32.mrf.mxu1 }
 0x3e8   :  { %v1616_v51 = vadd.f32 %v1615_v50, %v6917_v16  ;;  %2004 = vmatprep.mubr.f32.mxu0 %v1691_v47  ;;  %v1692_v54 = vmax.f32 %v1614_v49, 0.0  ;;  %v2501_v47 = vld [vmem:[#allocation2 + $0xc10] sm:$0xff]  ;;  %v2500_v49 = vld [vmem:[#allocation2 + $0xc08] sm:$0xff] }
 0x3e9   :  { %v1619_v52 = vpop.f32.mrf.mxu1  ;;  %2005 = vmatmul.mubr.f32.gmra.mxu0 %v1690_v48 }
 0x3ea   :  { %v1693_v53 = vmax.f32 %v1616_v51, 0.0  ;;  %v1620_v55 = vadd.f32 %v1619_v52, %v6914_v15 }
 0x3eb   :  { %v1621_v56 = vpop.f32.mrf.mxu1 }
 0x3ec   :  { %v1622_v57 = vadd.f32 %v1621_v56, %v6917_v16  ;;  %2010 = vmatprep.mubr.f32.mxu0 %v1693_v53  ;;  %v1694_v62 = vmax.f32 %v1620_v55, 0.0  ;;  %v2499_v53 = vld [vmem:[#allocation2 + $0xc00] sm:$0xff]  ;;  %v2562_v55 = vld [vmem:[#allocation2 + $0xdf8] sm:$0xff] }
 0x3ed   :  { %v1625_v58 = vpop.f32.mrf.mxu1  ;;  %2011 = vmatmul.mubr.f32.gmra.mxu0 %v1692_v54 }
 0x3ee   :  { %v1695_v59 = vmax.f32 %v1622_v57, 0.0  ;;  %v1626_v60 = vadd.f32 %v1625_v58, %v6914_v15  ;;  %v2561_v57 = vld [vmem:[#allocation2 + $0xdf0] sm:$0xff] }
 0x3ef   :  { %v1627_v63 = vpop.f32.mrf.mxu1 }
 0x3f0   :  { %v1628_v61 = vadd.f32 %v1627_v63, %v6917_v16  ;;  %2016 = vmatprep.mubr.f32.mxu0 %v1695_v59  ;;  %v1696_v2 = vmax.f32 %v1626_v60, 0.0  ;;  %v2560_v59 = vld [vmem:[#allocation2 + $0xde8] sm:$0xff] }
 0x3f1   :  { %v1631_v0 = vpop.f32.mrf.mxu1  ;;  %2017 = vmatmul.mubr.f32.gmra.mxu0 %v1694_v62 }
 0x3f2   :  { %v1697_v1 = vmax.f32 %v1628_v61, 0.0  ;;  %v1632_v3 = vadd.f32 %v1631_v0, %v6914_v15  ;;  %v2525_v15 = vld [vmem:[#allocation2 + $0xcd0] sm:$0xff]  ;;  %v2559_v61 = vld [vmem:[#allocation2 + $0xde0] sm:$0xff] }
 0x3f3   :  { %v1633_v4 = vpop.f32.mrf.mxu1  ;;  %2581 = vmatpush1.msra.mxu0 %v2525_v15  ;;  %v2553_v15 = vld [vmem:[#allocation2 + $0xdb0] sm:$0xff] }
 0x3f4   :  { %v1634_v5 = vadd.f32 %v1633_v4, %v6917_v16  ;;  %2022 = vmatprep.mubr.f32.mxu0 %v1697_v1  ;;  %v1698_v7 = vmax.f32 %v1632_v3, 0.0  ;;  %2582 = vmatprep.subr.mxu0 %v2524_v13  ;;  %v2523_v16 = vld [vmem:[#allocation2 + $0xcc0] sm:$0xff]  ;;  %v2558_v1 = vld [vmem:[#allocation2 + $0xdd8] sm:$0xff]  ;;  %v2557_v3 = vld [vmem:[#allocation2 + $0xdd0] sm:$0xff] }
 0x3f5   :  { %2023 = vmatmul.mubr.f32.gmra.mxu0 %v1696_v2 }
 0x3f6   :  { %v1699_v6 = vmax.f32 %v1634_v5, 0.0  ;;  %2583 = vmatpush1.msra.mxu0 %v2523_v16  ;;  %v2556_v5 = vld [vmem:[#allocation2 + $0xdc8] sm:$0xff] }
 0x3f7   :  { %2584 = vmatprep.subr.mxu0 %v2522_v14  ;;  %v2552_v16 = vld [vmem:[#allocation2 + $0xda8] sm:$0xff] }
 0x3f8   :  { %2028 = vmatprep.mubr.f32.mxu0 %v1699_v6  ;;  %2585 = vmatpush1.msra.mxu0 %v2521_v17 }
 0x3f9   :  { %2029 = vmatmul.mubr.f32.gmra.mxu0 %v1698_v7  ;;  %2586 = vmatprep.subr.mxu0 %v2520_v18 }
 0x3fa   :  { %2587 = vmatpush1.msra.mxu0 %v2519_v19  ;;  %v2551_v19 = vld [vmem:[#allocation2 + $0xda0] sm:$0xff] }
 0x3fb   :  { %2588 = vmatprep.subr.mxu0 %v2518_v20 }
 0x3fc   :  { %2589 = vmatpush1.msra.mxu0 %v2517_v21  ;;  %v2550_v21 = vld [vmem:[#allocation2 + $0xd98] sm:$0xff] }
 0x3fd   :  { %2590 = vmatprep.subr.mxu0 %v2516_v22 }
 0x3fe   :  { %2591 = vmatpush1.msra.mxu0 %v2515_v24  ;;  %v2549_v24 = vld [vmem:[#allocation2 + $0xd90] sm:$0xff] }
 0x3ff   :  { %2592 = vmatprep.subr.mxu0 %v2514_v28 }
 0x400   :  { %2593 = vmatpush1.msra.mxu0 %v2513_v26  ;;  %v2548_v26 = vld [vmem:[#allocation2 + $0xd88] sm:$0xff] }
 0x401   :  { %2594 = vmatprep.subr.mxu0 %v2512_v29 }
 0x402   :  { %2595 = vmatpush1.msra.mxu0 %v2511_v27 }
 0x403   :  { %2596 = vmatprep.subr.mxu0 %v2510_v30 }
 0x404   :  { %2597 = vmatpush1.msra.mxu0 %v2509_v32 }
 0x405   :  { %2598 = vmatprep.subr.mxu0 %v2508_v33  ;;  %v2546_v33 = vld [vmem:[#allocation2 + $0xd78] sm:$0xff] }
 0x406   :  { %2599 = vmatpush1.msra.mxu0 %v2507_v36 }
 0x407   :  { %2600 = vmatprep.subr.mxu0 %v2506_v38 }
 0x408   :  { %2601 = vmatpush1.msra.mxu0 %v2505_v39  ;;  %v2544_v39 = vld [vmem:[#allocation2 + $0xd68] sm:$0xff] }
 0x409   :  { %2602 = vmatprep.subr.mxu0 %v2504_v45  ;;  %v2543_v45 = vld [vmem:[#allocation2 + $0xd60] sm:$0xff] }
 0x40a   :  { %2603 = vmatpush1.msra.mxu0 %v2503_v46  ;;  %v2542_v46 = vld [vmem:[#allocation2 + $0xd58] sm:$0xff] }
 0x40b   :  { %2604 = vmatprep.subr.mxu0 %v2502_v44 }
 0x40c   :  { %2605 = vmatpush1.msra.mxu0 %v2501_v47  ;;  %v2541_v47 = vld [vmem:[#allocation2 + $0xd50] sm:$0xff] }
 0x40d   :  { %2606 = vmatprep.subr.mxu0 %v2500_v49  ;;  %v2540_v49 = vld [vmem:[#allocation2 + $0xd48] sm:$0xff] }
 0x40e   :  { %2607 = vmatpush1.msra.mxu0 %v2499_v53  ;;  %v2539_v53 = vld [vmem:[#allocation2 + $0xd40] sm:$0xff] }
 0x40f   :  { %2608 = vmatprep.subr.mxu0 %v2562_v55  ;;  %v2538_v55 = vld [vmem:[#allocation2 + $0xd38] sm:$0xff] }
 0x410   :  { %2609 = vmatpush2.msra.mxu0 %v2561_v57  ;;  %v2537_v57 = vld [vmem:[#allocation2 + $0xd30] sm:$0xff] }
 0x411   :  { %2610 = vmatprep.subr.mxu0 %v2560_v59  ;;  %v2536_v59 = vld [vmem:[#allocation2 + $0xd28] sm:$0xff] }
 0x412   :  { %2611 = vmatpush2.msra.mxu0 %v2559_v61  ;;  %v2535_v61 = vld [vmem:[#allocation2 + $0xd20] sm:$0xff] }
 0x413   :  { %2612 = vmatprep.subr.mxu0 %v2558_v1  ;;  %v2534_v1 = vld [vmem:[#allocation2 + $0xd18] sm:$0xff] }
 0x414   :  { %2613 = vmatpush2.msra.mxu0 %v2557_v3 }
 0x415   :  { %2614 = vmatprep.subr.mxu0 %v2556_v5 }
 0x416   :  { %2615 = vmatpush2.msra.mxu0 %v2555_v9 }
 0x417   :  { %2616 = vmatprep.subr.mxu0 %v2554_v11 }
 0x418   :  { %2617 = vmatpush2.msra.mxu0 %v2553_v15 }
 0x419   :  { %2618 = vmatprep.subr.mxu0 %v2552_v16 }
 0x41a   :  { %2619 = vmatpush2.msra.mxu0 %v2551_v19 }
 0x41b   :  { %2620 = vmatprep.subr.mxu0 %v2550_v21 }
 0x41c   :  { %2621 = vmatpush2.msra.mxu0 %v2549_v24 }
 0x41d   :  { %2622 = vmatprep.subr.mxu0 %v2548_v26 }
 0x41e   :  { %2623 = vmatpush2.msra.mxu0 %v2547_v31 }
 0x41f   :  { %2624 = vmatprep.subr.mxu0 %v2546_v33 }
 0x43d   :  { %v1844_v37 = vpop.f32.mrf.mxu0 }
 0x43e   :  { %v1845_v40 = vadd.f32 %v1844_v37, %v6984_v34  ;;  %v2545_v37 = vld [vmem:[#allocation2 + $0xd70] sm:$0xff] }
 0x43f   :  { %v1846_v41 = vpop.f32.mrf.mxu0  ;;  %2625 = vmatpush2.msra.mxu0 %v2545_v37 }
 0x440   :  { %v1847_v42 = vadd.f32 %v1846_v41, %v6987_v35  ;;  %v2035_v50 = vmax.f32 %v1845_v40, 0.0  ;;  %2626 = vmatprep.subr.mxu0 %v2544_v39 }
 0x441   :  { %v1850_v43 = vpop.f32.mrf.mxu0  ;;  %2627 = vmatpush2.msra.mxu0 %v2543_v45 }
 0x442   :  { %v2036_v48 = vmax.f32 %v1847_v42, 0.0  ;;  %v1851_v51 = vadd.f32 %v1850_v43, %v6984_v34  ;;  %2628 = vmatprep.subr.mxu0 %v2542_v46 }
 0x443   :  { %v1852_v52 = vpop.f32.mrf.mxu0  ;;  %2629 = vmatpush2.msra.mxu0 %v2541_v47 }
 0x444   :  { %v1853_v54 = vadd.f32 %v1852_v52, %v6987_v35  ;;  %2241 = vmatprep.mubr.f32.mxu1 %v2036_v48  ;;  %v2037_v62 = vmax.f32 %v1851_v51, 0.0  ;;  %2630 = vmatprep.subr.mxu0 %v2540_v49 }
 0x445   :  { %v1856_v56 = vpop.f32.mrf.mxu0  ;;  %2242 = vmatmul.mubr.f32.vlgmr.msra.gmra.mxu1 %v2035_v50  ;;  %2631 = vmatpush2.msra.mxu0 %v2539_v53 }
 0x446   :  { %v2038_v58 = vmax.f32 %v1853_v54, 0.0  ;;  %v1857_v60 = vadd.f32 %v1856_v56, %v6984_v34  ;;  %2632 = vmatprep.subr.mxu0 %v2538_v55 }
 0x447   :  { %v1858_v63 = vpop.f32.mrf.mxu0  ;;  %2633 = vmatpush2.msra.mxu0 %v2537_v57 }
 0x448   :  { %v1859_v0 = vadd.f32 %v1858_v63, %v6987_v35  ;;  %2247 = vmatprep.mubr.f32.mxu1 %v2038_v58  ;;  %v2039_v6 = vmax.f32 %v1857_v60, 0.0  ;;  %2634 = vmatprep.subr.mxu0 %v2536_v59 }
 0x449   :  { %v1862_v2 = vpop.f32.mrf.mxu0  ;;  %2248 = vmatmul.mubr.f32.gmra.mxu1 %v2037_v62  ;;  %2635 = vmatpush2.msra.mxu0 %v2535_v61 }
 0x44a   :  { %v2040_v4 = vmax.f32 %v1859_v0, 0.0  ;;  %v1863_v7 = vadd.f32 %v1862_v2, %v6984_v34  ;;  %2636 = vmatprep.subr.mxu0 %v2534_v1 }
 0x44b   :  { %v1864_v8 = vpop.f32.mrf.mxu0 }
 0x44c   :  { %v1865_v10 = vadd.f32 %v1864_v8, %v6987_v35  ;;  %2253 = vmatprep.mubr.f32.mxu1 %v2040_v4  ;;  %v2041_v14 = vmax.f32 %v1863_v7, 0.0 }
 0x44d   :  { %v1868_v12 = vpop.f32.mrf.mxu0  ;;  %2254 = vmatmul.mubr.f32.gmra.mxu1 %v2039_v6 }
 0x44e   :  { %v2042_v13 = vmax.f32 %v1865_v10, 0.0  ;;  %v1869_v17 = vadd.f32 %v1868_v12, %v6984_v34 }
 0x44f   :  { %v1870_v18 = vpop.f32.mrf.mxu0 }
 0x450   :  { %v1871_v20 = vadd.f32 %v1870_v18, %v6987_v35  ;;  %2259 = vmatprep.mubr.f32.mxu1 %v2042_v13  ;;  %v2043_v29 = vmax.f32 %v1869_v17, 0.0 }
 0x451   :  { %v1874_v22 = vpop.f32.mrf.mxu0  ;;  %2260 = vmatmul.mubr.f32.gmra.mxu1 %v2041_v14 }
 0x452   :  { %v2044_v28 = vmax.f32 %v1871_v20, 0.0  ;;  %v1875_v27 = vadd.f32 %v1874_v22, %v6984_v34 }
 0x453   :  { %v1876_v30 = vpop.f32.mrf.mxu0 }
 0x454   :  { %v1877_v32 = vadd.f32 %v1876_v30, %v6987_v35  ;;  %2265 = vmatprep.mubr.f32.mxu1 %v2044_v28  ;;  %v2045_v40 = vmax.f32 %v1875_v27, 0.0 }
 0x455   :  { %v1880_v36 = vpop.f32.mrf.mxu0  ;;  %2266 = vmatmul.mubr.f32.gmra.mxu1 %v2043_v29 }
 0x456   :  { %v2046_v38 = vmax.f32 %v1877_v32, 0.0  ;;  %v1881_v41 = vadd.f32 %v1880_v36, %v6984_v34 }
 0x457   :  { %v1882_v42 = vpop.f32.mrf.mxu0 }
 0x458   :  { %v1883_v43 = vadd.f32 %v1882_v42, %v6987_v35  ;;  %2271 = vmatprep.mubr.f32.mxu1 %v2046_v38  ;;  %v2047_v50 = vmax.f32 %v1881_v41, 0.0 }
 0x459   :  { %v1886_v44 = vpop.f32.mrf.mxu0  ;;  %2272 = vmatmul.mubr.f32.gmra.mxu1 %v2045_v40 }
 0x45a   :  { %v2048_v48 = vmax.f32 %v1883_v43, 0.0  ;;  %v1887_v51 = vadd.f32 %v1886_v44, %v6984_v34 }
 0x45b   :  { %v1888_v52 = vpop.f32.mrf.mxu0 }
 0x45c   :  { %v1889_v54 = vadd.f32 %v1888_v52, %v6987_v35  ;;  %2277 = vmatprep.mubr.f32.mxu1 %v2048_v48  ;;  %v2049_v62 = vmax.f32 %v1887_v51, 0.0 }
 0x45d   :  { %v1892_v56 = vpop.f32.mrf.mxu0  ;;  %2278 = vmatmul.mubr.f32.gmra.mxu1 %v2047_v50 }
 0x45e   :  { %v2050_v58 = vmax.f32 %v1889_v54, 0.0  ;;  %v1893_v60 = vadd.f32 %v1892_v56, %v6984_v34 }
 0x45f   :  { %v1894_v63 = vpop.f32.mrf.mxu0 }
 0x460   :  { %v1895_v0 = vadd.f32 %v1894_v63, %v6987_v35  ;;  %2283 = vmatprep.mubr.f32.mxu1 %v2050_v58  ;;  %v2051_v4 = vmax.f32 %v1893_v60, 0.0 }
 0x461   :  { %v1898_v2 = vpop.f32.mrf.mxu0  ;;  %2284 = vmatmul.mubr.f32.gmra.mxu1 %v2049_v62 }
 0x462   :  { %v2052_v3 = vmax.f32 %v1895_v0, 0.0  ;;  %v1899_v5 = vadd.f32 %v1898_v2, %v6984_v34  ;;  %v2533_v2 = vld [vmem:[#allocation2 + $0xd10] sm:$0xff] }
 0x463   :  { %v1900_v6 = vpop.f32.mrf.mxu0  ;;  %2637 = vmatpush2.msra.mxu0 %v2533_v2 }
 0x464   :  { %v1901_v7 = vadd.f32 %v1900_v6, %v6987_v35  ;;  %2289 = vmatprep.mubr.f32.mxu1 %v2052_v3  ;;  %v2053_v10 = vmax.f32 %v1899_v5, 0.0  ;;  %v2532_v5 = vld [vmem:[#allocation2 + $0xd08] sm:$0xff] }
 0x465   :  { %v1904_v8 = vpop.f32.mrf.mxu0  ;;  %2290 = vmatmul.mubr.f32.gmra.mxu1 %v2051_v4  ;;  %2638 = vmatprep.subr.mxu0 %v2532_v5 }
 0x466   :  { %v2054_v9 = vmax.f32 %v1901_v7, 0.0  ;;  %v1905_v11 = vadd.f32 %v1904_v8, %v6984_v34 }
 0x467   :  { %v1906_v12 = vpop.f32.mrf.mxu0 }
 0x468   :  { %v1907_v15 = vadd.f32 %v1906_v12, %v6987_v35  ;;  %2295 = vmatprep.mubr.f32.mxu1 %v2054_v9  ;;  %v2055_v14 = vmax.f32 %v1905_v11, 0.0  ;;  %v2531_v9 = vld [vmem:[#allocation2 + $0xd00] sm:$0xff] }
 0x469   :  { %v1910_v13 = vpop.f32.mrf.mxu0  ;;  %2296 = vmatmul.mubr.f32.gmra.mxu1 %v2053_v10  ;;  %2639 = vmatpush2.msra.mxu0 %v2531_v9 }
 0x46a   :  { %v2056_v16 = vmax.f32 %v1907_v15, 0.0  ;;  %v1911_v17 = vadd.f32 %v1910_v13, %v6984_v34 }
 0x46b   :  { %v1912_v18 = vpop.f32.mrf.mxu0 }
 0x46c   :  { %v1913_v19 = vadd.f32 %v1912_v18, %v6987_v35  ;;  %2301 = vmatprep.mubr.f32.mxu1 %v2056_v16  ;;  %v2057_v22 = vmax.f32 %v1911_v17, 0.0 }
 0x46d   :  { %v1916_v20 = vpop.f32.mrf.mxu0  ;;  %2302 = vmatmul.mubr.f32.gmra.mxu1 %v2055_v14 }
 0x46e   :  { %v2058_v21 = vmax.f32 %v1913_v19, 0.0  ;;  %v1917_v24 = vadd.f32 %v1916_v20, %v6984_v34 }
 0x46f   :  { %v1918_v28 = vpop.f32.mrf.mxu0 }
 0x470   :  { %v1919_v26 = vadd.f32 %v1918_v28, %v6987_v35  ;;  %2307 = vmatprep.mubr.f32.mxu1 %v2058_v21  ;;  %v2059_v30 = vmax.f32 %v1917_v24, 0.0 }
 0x471   :  { %v1922_v29 = vpop.f32.mrf.mxu0  ;;  %2308 = vmatmul.mubr.f32.gmra.mxu1 %v2057_v22 }
 0x472   :  { %v2060_v27 = vmax.f32 %v1919_v26, 0.0  ;;  %v1923_v31 = vadd.f32 %v1922_v29, %v6984_v34 }
 0x473   :  { %v1924_v32 = vpop.f32.mrf.mxu0 }
 0x474   :  { %v1925_v33 = vadd.f32 %v1924_v32, %v6987_v35  ;;  %2313 = vmatprep.mubr.f32.mxu1 %v2060_v27  ;;  %v2061_v38 = vmax.f32 %v1923_v31, 0.0 }
 0x475   :  { %v1928_v36 = vpop.f32.mrf.mxu0  ;;  %2314 = vmatmul.mubr.f32.gmra.mxu1 %v2059_v30 }
 0x476   :  { %v2062_v37 = vmax.f32 %v1925_v33, 0.0  ;;  %v1929_v39 = vadd.f32 %v1928_v36, %v6984_v34 }
 0x477   :  { %v1930_v40 = vpop.f32.mrf.mxu0 }
 0x478   :  { %v1931_v41 = vadd.f32 %v1930_v40, %v6987_v35  ;;  %2319 = vmatprep.mubr.f32.mxu1 %v2062_v37  ;;  %v2063_v43 = vmax.f32 %v1929_v39, 0.0 }
 0x479   :  { %v1934_v42 = vpop.f32.mrf.mxu0  ;;  %2320 = vmatmul.mubr.f32.gmra.mxu1 %v2061_v38 }
 0x47a   :  { %v2064_v45 = vmax.f32 %v1931_v41, 0.0  ;;  %v1935_v46 = vadd.f32 %v1934_v42, %v6984_v34 }
 0x47b   :  { %v1936_v44 = vpop.f32.mrf.mxu0 }
 0x47c   :  { %v1937_v47 = vadd.f32 %v1936_v44, %v6987_v35  ;;  %2325 = vmatprep.mubr.f32.mxu1 %v2064_v45  ;;  %v2065_v50 = vmax.f32 %v1935_v46, 0.0 }
 0x47d   :  { %v1940_v48 = vpop.f32.mrf.mxu0  ;;  %2326 = vmatmul.mubr.f32.gmra.mxu1 %v2063_v43 }
 0x47e   :  { %v2066_v49 = vmax.f32 %v1937_v47, 0.0  ;;  %v1941_v51 = vadd.f32 %v1940_v48, %v6984_v34 }
 0x47f   :  { %v1942_v52 = vpop.f32.mrf.mxu0 }
 0x480   :  { %v1943_v53 = vadd.f32 %v1942_v52, %v6987_v35  ;;  %2331 = vmatprep.mubr.f32.mxu1 %v2066_v49  ;;  %v2067_v56 = vmax.f32 %v1941_v51, 0.0 }
 0x481   :  { %v1946_v54 = vpop.f32.mrf.mxu0  ;;  %2332 = vmatmul.mubr.f32.gmra.mxu1 %v2065_v50 }
 0x482   :  { %v2068_v55 = vmax.f32 %v1943_v53, 0.0  ;;  %v1947_v57 = vadd.f32 %v1946_v54, %v6984_v34 }
 0x483   :  { %v1948_v58 = vpop.f32.mrf.mxu0 }
 0x484   :  { %v1949_v59 = vadd.f32 %v1948_v58, %v6987_v35  ;;  %2337 = vmatprep.mubr.f32.mxu1 %v2068_v55  ;;  %v2069_v63 = vmax.f32 %v1947_v57, 0.0 }
 0x485   :  { %v1952_v62 = vpop.f32.mrf.mxu0  ;;  %2338 = vmatmul.mubr.f32.gmra.mxu1 %v2067_v56 }
 0x486   :  { %v2070_v60 = vmax.f32 %v1949_v59, 0.0  ;;  %v1953_v61 = vadd.f32 %v1952_v62, %v6984_v34 }
 0x487   :  { %v1954_v0 = vpop.f32.mrf.mxu0 }
 0x488   :  { %v1955_v1 = vadd.f32 %v1954_v0, %v6987_v35  ;;  %2343 = vmatprep.mubr.f32.mxu1 %v2070_v60  ;;  %v2071_v6 = vmax.f32 %v1953_v61, 0.0 }
 0x489   :  { %v1958_v3 = vpop.f32.mrf.mxu0  ;;  %2344 = vmatmul.mubr.f32.gmra.mxu1 %v2069_v63 }
 0x48a   :  { %v2072_v4 = vmax.f32 %v1955_v1, 0.0  ;;  %v1959_v7 = vadd.f32 %v1958_v3, %v6984_v34 }
 0x48b   :  { %v1960_v8 = vpop.f32.mrf.mxu0 }
 0x48c   :  { %v1961_v10 = vadd.f32 %v1960_v8, %v6987_v35  ;;  %2349 = vmatprep.mubr.f32.mxu1 %v2072_v4  ;;  %v2073_v15 = vmax.f32 %v1959_v7, 0.0 }
 0x48d   :  { %v1964_v11 = vpop.f32.mrf.mxu0  ;;  %2350 = vmatmul.mubr.f32.gmra.mxu1 %v2071_v6 }
 0x48e   :  { %v2074_v12 = vmax.f32 %v1961_v10, 0.0  ;;  %v1965_v13 = vadd.f32 %v1964_v11, %v6984_v34 }
 0x48f   :  { %v1966_v16 = vpop.f32.mrf.mxu0 }
 0x490   :  { %v1967_v14 = vadd.f32 %v1966_v16, %v6987_v35  ;;  %2355 = vmatprep.mubr.f32.mxu1 %v2074_v12  ;;  %v2075_v19 = vmax.f32 %v1965_v13, 0.0 }
 0x491   :  { %v1970_v17 = vpop.f32.mrf.mxu0  ;;  %2356 = vmatmul.mubr.f32.gmra.mxu1 %v2073_v15 }
 0x492   :  { %v2076_v18 = vmax.f32 %v1967_v14, 0.0  ;;  %v1971_v20 = vadd.f32 %v1970_v17, %v6984_v34 }
 0x493   :  { %v1972_v21 = vpop.f32.mrf.mxu0 }
 0x494   :  { %v1973_v22 = vadd.f32 %v1972_v21, %v6987_v35  ;;  %2361 = vmatprep.mubr.f32.mxu1 %v2076_v18  ;;  %v2077_v26 = vmax.f32 %v1971_v20, 0.0 }
 0x495   :  { %v1976_v24 = vpop.f32.mrf.mxu0  ;;  %2362 = vmatmul.mubr.f32.gmra.mxu1 %v2075_v19 }
 0x496   :  { %v2078_v28 = vmax.f32 %v1973_v22, 0.0  ;;  %v1977_v29 = vadd.f32 %v1976_v24, %v6984_v34 }
 0x497   :  { %v1978_v27 = vpop.f32.mrf.mxu0 }
 0x498   :  { %v1979_v30 = vadd.f32 %v1978_v27, %v6987_v35  ;;  %2367 = vmatprep.mubr.f32.mxu1 %v2078_v28  ;;  %v2079_v33 = vmax.f32 %v1977_v29, 0.0  ;;  %v2928_v29 = vld [vmem:[#allocation2 + $0xef0] sm:$0xff]  ;;  %v2927_v27 = vld [vmem:[#allocation2 + $0xee8] sm:$0xff] }
 0x499   :  { %v1982_v31 = vpop.f32.mrf.mxu0  ;;  %2368 = vmatmul.mubr.f32.gmra.mxu1 %v2077_v26  ;;  %v2929_v26 = vld [vmem:[#allocation2 + $0xef8] sm:$0xff] }
 0x49a   :  { %v2080_v32 = vmax.f32 %v1979_v30, 0.0  ;;  %v1983_v36 = vadd.f32 %v1982_v31, %v6984_v34  ;;  %2975 = vmatprep.subr.mxu1 %v2929_v26  ;;  %v2926_v30 = vld [vmem:[#allocation2 + $0xee0] sm:$0xff]  ;;  %v2925_v31 = vld [vmem:[#allocation2 + $0xed8] sm:$0xff] }
 0x49b   :  { %v1984_v37 = vpop.f32.mrf.mxu0  ;;  %2976 = vmatpush1.msra.mxu1 %v2928_v29  ;;  %v2954_v29 = vld [vmem:[#allocation2 + $0xfc0] sm:$0xff] }
 0x49c   :  { %v1985_v38 = vadd.f32 %v1984_v37, %v6987_v35  ;;  %2373 = vmatprep.mubr.f32.mxu1 %v2080_v32  ;;  %v2081_v41 = vmax.f32 %v1983_v36, 0.0  ;;  %2977 = vmatprep.subr.mxu1 %v2927_v27  ;;  %v2923_v32 = vld [vmem:[#allocation2 + $0xec8] sm:$0xff]  ;;  %v2920_v36 = vld [vmem:[#allocation2 + $0xeb0] sm:$0xff] }
 0x49d   :  { %v1988_v39 = vpop.f32.mrf.mxu0  ;;  %2374 = vmatmul.mubr.f32.gmra.mxu1 %v2079_v33  ;;  %v2921_v33 = vld [vmem:[#allocation2 + $0xeb8] sm:$0xff]  ;;  %v2919_v37 = vld [vmem:[#allocation2 + $0xea8] sm:$0xff] }
 0x49e   :  { %v2082_v40 = vmax.f32 %v1985_v38, 0.0  ;;  %v1989_v42 = vadd.f32 %v1988_v39, %v6984_v34  ;;  %2978 = vmatpush1.msra.mxu1 %v2926_v30  ;;  %v2918_v38 = vld [vmem:[#allocation2 + $0xea0] sm:$0xff]  ;;  %v2917_v39 = vld [vmem:[#allocation2 + $0xe98] sm:$0xff] }
 0x49f   :  { %v1990_v45 = vpop.f32.mrf.mxu0  ;;  %2979 = vmatprep.subr.mxu1 %v2925_v31  ;;  %v2953_v30 = vld [vmem:[#allocation2 + $0xfb8] sm:$0xff] }
 0x4a0   :  { %v1991_v43 = vadd.f32 %v1990_v45, %v6987_v35  ;;  %2379 = vmatprep.mubr.f32.mxu1 %v2082_v40  ;;  %v2083_v47 = vmax.f32 %v1989_v42, 0.0  ;;  %v2916_v40 = vld [vmem:[#allocation2 + $0xe90] sm:$0xff]  ;;  %v2914_v42 = vld [vmem:[#allocation2 + $0xe80] sm:$0xff]  ;;  %v2913_v45 = vld [vmem:[#allocation2 + $0xe78] sm:$0xff] }
 0x4a1   :  { %v1994_v46 = vpop.f32.mrf.mxu0  ;;  %2380 = vmatmul.mubr.f32.gmra.mxu1 %v2081_v41  ;;  %v2915_v41 = vld [vmem:[#allocation2 + $0xe88] sm:$0xff] }
 0x4a2   :  { %v2084_v44 = vmax.f32 %v1991_v43, 0.0  ;;  %v1995_v48 = vadd.f32 %v1994_v46, %v6984_v34  ;;  %v2912_v43 = vld [vmem:[#allocation2 + $0xe70] sm:$0xff]  ;;  %v2911_v46 = vld [vmem:[#allocation2 + $0xe68] sm:$0xff] }
 0x4a3   :  { %v1996_v49 = vpop.f32.mrf.mxu0 }
 0x4a4   :  { %v1997_v50 = vadd.f32 %v1996_v49, %v6987_v35  ;;  %2385 = vmatprep.mubr.f32.mxu1 %v2084_v44  ;;  %v2085_v53 = vmax.f32 %v1995_v48, 0.0  ;;  %v2910_v44 = vld [vmem:[#allocation2 + $0xe60] sm:$0xff]  ;;  %v2165_v48 = vld [vmem:[#allocation4 + $0xa] sm:$0x3]  ;;  %v2908_v49 = vld [vmem:[#allocation2 + $0xe50] sm:$0xff] }
 0x4a5   :  { %v2000_v51 = vpop.f32.mrf.mxu0  ;;  %2386 = vmatmul.mubr.f32.gmra.mxu1 %v2083_v47  ;;  %v2909_v47 = vld [vmem:[#allocation2 + $0xe58] sm:$0xff] }
 0x4a6   :  { %v2086_v52 = vmax.f32 %v1997_v50, 0.0  ;;  %v2001_v54 = vadd.f32 %v2000_v51, %v6984_v34  ;;  %v2907_v50 = vld [vmem:[#allocation2 + $0xe48] sm:$0xff]  ;;  %v7054_v51 = vrot.slane %v2165_v48, %v6699_v23 }
 0x4a7   :  { %v2002_v55 = vpop.f32.mrf.mxu0 }
 0x4a8   :  { %v2003_v56 = vadd.f32 %v2002_v55, %v6987_v35  ;;  %2391 = vmatprep.mubr.f32.mxu1 %v2086_v52  ;;  %v2087_v59 = vmax.f32 %v2001_v54, 0.0  ;;  %v7057_v52 = vrot.slane %v2165_v48, %v6701_v25  ;;  %v2905_v55 = vld [vmem:[#allocation2 + $0xe38] sm:$0xff]  ;;  %v2946_v48 = vld [vmem:[#allocation2 + $0xf80] sm:$0xff] }
 0x4a9   :  { %v2006_v57 = vpop.f32.mrf.mxu0  ;;  %2392 = vmatmul.mubr.f32.gmra.mxu1 %v2085_v53  ;;  %v2906_v53 = vld [vmem:[#allocation2 + $0xe40] sm:$0xff] }
 0x4aa   :  { %v2088_v58 = vmax.f32 %v2003_v56, 0.0  ;;  %v2007_v62 = vadd.f32 %v2006_v57, %v6984_v34  ;;  %v2904_v56 = vld [vmem:[#allocation2 + $0xe30] sm:$0xff] }
 0x4ab   :  { %v2008_v60 = vpop.f32.mrf.mxu0 }
 0x4ac   :  { %v2009_v63 = vadd.f32 %v2008_v60, %v6987_v35  ;;  %2397 = vmatprep.mubr.f32.mxu1 %v2088_v58  ;;  %v2089_v1 = vmax.f32 %v2007_v62, 0.0  ;;  %v2903_v62 = vld [vmem:[#allocation2 + $0xe28] sm:$0xff] }
 0x4ad   :  { %v2012_v61 = vpop.f32.mrf.mxu0  ;;  %2398 = vmatmul.mubr.f32.gmra.mxu1 %v2087_v59 }
 0x4ae   :  { %v2090_v0 = vmax.f32 %v2009_v63, 0.0  ;;  %v2013_v2 = vadd.f32 %v2012_v61, %v6984_v34  ;;  %v2902_v63 = vld [vmem:[#allocation2 + $0xe20] sm:$0xff]  ;;  %v2901_v61 = vld [vmem:[#allocation2 + $0xe18] sm:$0xff] }
 0x4af   :  { %v2014_v3 = vpop.f32.mrf.mxu0 }
 0x4b0   :  { %v2015_v4 = vadd.f32 %v2014_v3, %v6987_v35  ;;  %2403 = vmatprep.mubr.f32.mxu1 %v2090_v0  ;;  %v2091_v7 = vmax.f32 %v2013_v2, 0.0  ;;  %v2900_v0 = vld [vmem:[#allocation2 + $0xe10] sm:$0xff]  ;;  %v2899_v2 = vld [vmem:[#allocation2 + $0xe08] sm:$0xff] }
 0x4b1   :  { %v2018_v5 = vpop.f32.mrf.mxu0  ;;  %2404 = vmatmul.mubr.f32.gmra.mxu1 %v2089_v1 }
 0x4b2   :  { %v2092_v6 = vmax.f32 %v2015_v4, 0.0  ;;  %v2019_v8 = vadd.f32 %v2018_v5, %v6984_v34 }
 0x4b3   :  { %v2020_v9 = vpop.f32.mrf.mxu0 }
 0x4b4   :  { %v2021_v10 = vadd.f32 %v2020_v9, %v6987_v35  ;;  %2409 = vmatprep.mubr.f32.mxu1 %v2092_v6  ;;  %v2093_v15 = vmax.f32 %v2019_v8, 0.0  ;;  %v2898_v6 = vld [vmem:[#allocation2 + $0xe00] sm:$0xff]  ;;  %v2961_v8 = vld [vmem:[#allocation2 + $0xff8] sm:$0xff] }
 0x4b5   :  { %v2024_v11 = vpop.f32.mrf.mxu0  ;;  %2410 = vmatmul.mubr.f32.gmra.mxu1 %v2091_v7 }
 0x4b6   :  { %v2094_v12 = vmax.f32 %v2021_v10, 0.0  ;;  %v2025_v13 = vadd.f32 %v2024_v11, %v6984_v34  ;;  %v2960_v10 = vld [vmem:[#allocation2 + $0xff0] sm:$0xff] }
 0x4b7   :  { %v2026_v16 = vpop.f32.mrf.mxu0 }
 0x4b8   :  { %v2027_v14 = vadd.f32 %v2026_v16, %v6987_v35  ;;  %2415 = vmatprep.mubr.f32.mxu1 %v2094_v12  ;;  %v2095_v19 = vmax.f32 %v2025_v13, 0.0  ;;  %v2959_v12 = vld [vmem:[#allocation2 + $0xfe8] sm:$0xff] }
 0x4b9   :  { %v2030_v17 = vpop.f32.mrf.mxu0  ;;  %2416 = vmatmul.mubr.f32.gmra.mxu1 %v2093_v15 }
 0x4ba   :  { %v2096_v18 = vmax.f32 %v2027_v14, 0.0  ;;  %v2031_v20 = vadd.f32 %v2030_v17, %v6984_v34  ;;  %v2924_v34 = vld [vmem:[#allocation2 + $0xed0] sm:$0xff]  ;;  %v2958_v14 = vld [vmem:[#allocation2 + $0xfe0] sm:$0xff] }
 0x4bb   :  { %v2032_v21 = vpop.f32.mrf.mxu0  ;;  %2980 = vmatpush1.msra.mxu1 %v2924_v34  ;;  %v2952_v34 = vld [vmem:[#allocation2 + $0xfb0] sm:$0xff] }
 0x4bc   :  { %v2033_v22 = vadd.f32 %v2032_v21, %v6987_v35  ;;  %2421 = vmatprep.mubr.f32.mxu1 %v2096_v18  ;;  %v2097_v28 = vmax.f32 %v2031_v20, 0.0  ;;  %2981 = vmatprep.subr.mxu1 %v2923_v32  ;;  %v2922_v35 = vld [vmem:[#allocation2 + $0xec0] sm:$0xff]  ;;  %v2957_v18 = vld [vmem:[#allocation2 + $0xfd8] sm:$0xff]  ;;  %v2956_v20 = vld [vmem:[#allocation2 + $0xfd0] sm:$0xff] }
 0x4bd   :  { %2422 = vmatmul.mubr.f32.gmra.mxu1 %v2095_v19 }
 0x4be   :  { %v2098_v24 = vmax.f32 %v2033_v22, 0.0  ;;  %2982 = vmatpush1.msra.mxu1 %v2922_v35  ;;  %v2955_v22 = vld [vmem:[#allocation2 + $0xfc8] sm:$0xff] }
 0x4bf   :  { %2983 = vmatprep.subr.mxu1 %v2921_v33  ;;  %v2951_v35 = vld [vmem:[#allocation2 + $0xfa8] sm:$0xff] }
 0x4c0   :  { %2427 = vmatprep.mubr.f32.mxu1 %v2098_v24  ;;  %2984 = vmatpush1.msra.mxu1 %v2920_v36 }
 0x4c1   :  { %2428 = vmatmul.mubr.f32.gmra.mxu1 %v2097_v28  ;;  %2985 = vmatprep.subr.mxu1 %v2919_v37 }
 0x4c2   :  { %2986 = vmatpush1.msra.mxu1 %v2918_v38  ;;  %v2950_v38 = vld [vmem:[#allocation2 + $0xfa0] sm:$0xff] }
 0x4c3   :  { %2987 = vmatprep.subr.mxu1 %v2917_v39 }
 0x4c4   :  { %2988 = vmatpush1.msra.mxu1 %v2916_v40  ;;  %v2949_v40 = vld [vmem:[#allocation2 + $0xf98] sm:$0xff] }
 0x4c5   :  { %2989 = vmatprep.subr.mxu1 %v2915_v41 }
 0x4c6   :  { %2990 = vmatpush1.msra.mxu1 %v2914_v42  ;;  %v2948_v42 = vld [vmem:[#allocation2 + $0xf90] sm:$0xff] }
 0x4c7   :  { %2991 = vmatprep.subr.mxu1 %v2913_v45 }
 0x4c8   :  { %2992 = vmatpush1.msra.mxu1 %v2912_v43  ;;  %v2947_v43 = vld [vmem:[#allocation2 + $0xf88] sm:$0xff] }
 0x4c9   :  { %2993 = vmatprep.subr.mxu1 %v2911_v46 }
 0x4ca   :  { %2994 = vmatpush1.msra.mxu1 %v2910_v44 }
 0x4cb   :  { %2995 = vmatprep.subr.mxu1 %v2909_v47 }
 0x4cc   :  { %2996 = vmatpush1.msra.mxu1 %v2908_v49 }
 0x4cd   :  { %2997 = vmatprep.subr.mxu1 %v2907_v50  ;;  %v2945_v50 = vld [vmem:[#allocation2 + $0xf78] sm:$0xff] }
 0x4ce   :  { %2998 = vmatpush1.msra.mxu1 %v2906_v53 }
 0x4cf   :  { %2999 = vmatprep.subr.mxu1 %v2905_v55 }
 0x4d0   :  { %3000 = vmatpush1.msra.mxu1 %v2904_v56  ;;  %v2943_v56 = vld [vmem:[#allocation2 + $0xf68] sm:$0xff] }
 0x4d1   :  { %3001 = vmatprep.subr.mxu1 %v2903_v62  ;;  %v2942_v62 = vld [vmem:[#allocation2 + $0xf60] sm:$0xff] }
 0x4d2   :  { %3002 = vmatpush1.msra.mxu1 %v2902_v63  ;;  %v2941_v63 = vld [vmem:[#allocation2 + $0xf58] sm:$0xff] }
 0x4d3   :  { %3003 = vmatprep.subr.mxu1 %v2901_v61 }
 0x4d4   :  { %3004 = vmatpush1.msra.mxu1 %v2900_v0  ;;  %v2940_v0 = vld [vmem:[#allocation2 + $0xf50] sm:$0xff] }
 0x4d5   :  { %3005 = vmatprep.subr.mxu1 %v2899_v2  ;;  %v2939_v2 = vld [vmem:[#allocation2 + $0xf48] sm:$0xff] }
 0x4d6   :  { %3006 = vmatpush1.msra.mxu1 %v2898_v6  ;;  %v2938_v6 = vld [vmem:[#allocation2 + $0xf40] sm:$0xff] }
 0x4d7   :  { %3007 = vmatprep.subr.mxu1 %v2961_v8  ;;  %v2937_v8 = vld [vmem:[#allocation2 + $0xf38] sm:$0xff] }
 0x4d8   :  { %3008 = vmatpush2.msra.mxu1 %v2960_v10  ;;  %v2936_v10 = vld [vmem:[#allocation2 + $0xf30] sm:$0xff] }
 0x4d9   :  { %3009 = vmatprep.subr.mxu1 %v2959_v12  ;;  %v2935_v12 = vld [vmem:[#allocation2 + $0xf28] sm:$0xff] }
 0x4da   :  { %3010 = vmatpush2.msra.mxu1 %v2958_v14  ;;  %v2934_v14 = vld [vmem:[#allocation2 + $0xf20] sm:$0xff] }
 0x4db   :  { %3011 = vmatprep.subr.mxu1 %v2957_v18  ;;  %v2933_v18 = vld [vmem:[#allocation2 + $0xf18] sm:$0xff] }
 0x4dc   :  { %3012 = vmatpush2.msra.mxu1 %v2956_v20 }
 0x4dd   :  { %3013 = vmatprep.subr.mxu1 %v2955_v22 }
 0x4de   :  { %3014 = vmatpush2.msra.mxu1 %v2954_v29 }
 0x4df   :  { %3015 = vmatprep.subr.mxu1 %v2953_v30 }
 0x4e0   :  { %3016 = vmatpush2.msra.mxu1 %v2952_v34 }
 0x4e1   :  { %3017 = vmatprep.subr.mxu1 %v2951_v35 }
 0x4e2   :  { %3018 = vmatpush2.msra.mxu1 %v2950_v38 }
 0x4e3   :  { %3019 = vmatprep.subr.mxu1 %v2949_v40 }
 0x4e4   :  { %3020 = vmatpush2.msra.mxu1 %v2948_v42 }
 0x4e5   :  { %3021 = vmatprep.subr.mxu1 %v2947_v43 }
 0x4e6   :  { %3022 = vmatpush2.msra.mxu1 %v2946_v48 }
 0x4e7   :  { %3023 = vmatprep.subr.mxu1 %v2945_v50 }
 0x505   :  { %v2243_v54 = vpop.f32.mrf.mxu1 }
 0x506   :  { %v2244_v57 = vadd.f32 %v2243_v54, %v7054_v51  ;;  %v2944_v54 = vld [vmem:[#allocation2 + $0xf70] sm:$0xff] }
 0x507   :  { %v2245_v58 = vpop.f32.mrf.mxu1  ;;  %3024 = vmatpush2.msra.mxu1 %v2944_v54 }
 0x508   :  { %v2246_v59 = vadd.f32 %v2245_v58, %v7057_v52  ;;  %v2434_v3 = vmax.f32 %v2244_v57, 0.0  ;;  %3025 = vmatprep.subr.mxu1 %v2943_v56 }
 0x509   :  { %v2249_v60 = vpop.f32.mrf.mxu1  ;;  %3026 = vmatpush2.msra.mxu1 %v2942_v62 }
 0x50a   :  { %v2435_v1 = vmax.f32 %v2246_v59, 0.0  ;;  %v2250_v4 = vadd.f32 %v2249_v60, %v7054_v51  ;;  %3027 = vmatprep.subr.mxu1 %v2941_v63 }
 0x50b   :  { %v2251_v5 = vpop.f32.mrf.mxu1  ;;  %3028 = vmatpush2.msra.mxu1 %v2940_v0 }
 0x50c   :  { %v2252_v7 = vadd.f32 %v2251_v5, %v7057_v52  ;;  %2640 = vmatprep.mubr.f32.mxu0 %v2435_v1  ;;  %v2436_v15 = vmax.f32 %v2250_v4, 0.0  ;;  %3029 = vmatprep.subr.mxu1 %v2939_v2 }
 0x50d   :  { %v2255_v9 = vpop.f32.mrf.mxu1  ;;  %2641 = vmatmul.mubr.f32.vlgmr.msra.gmra.mxu0 %v2434_v3  ;;  %3030 = vmatpush2.msra.mxu1 %v2938_v6 }
 0x50e   :  { %v2437_v11 = vmax.f32 %v2252_v7, 0.0  ;;  %v2256_v13 = vadd.f32 %v2255_v9, %v7054_v51  ;;  %3031 = vmatprep.subr.mxu1 %v2937_v8 }
 0x50f   :  { %v2257_v16 = vpop.f32.mrf.mxu1  ;;  %3032 = vmatpush2.msra.mxu1 %v2936_v10 }
 0x510   :  { %v2258_v17 = vadd.f32 %v2257_v16, %v7057_v52  ;;  %2646 = vmatprep.mubr.f32.mxu0 %v2437_v11  ;;  %v2438_v24 = vmax.f32 %v2256_v13, 0.0  ;;  %3033 = vmatprep.subr.mxu1 %v2935_v12 }
 0x511   :  { %v2261_v19 = vpop.f32.mrf.mxu1  ;;  %2647 = vmatmul.mubr.f32.gmra.mxu0 %v2436_v15  ;;  %3034 = vmatpush2.msra.mxu1 %v2934_v14 }
 0x512   :  { %v2439_v21 = vmax.f32 %v2258_v17, 0.0  ;;  %v2262_v28 = vadd.f32 %v2261_v19, %v7054_v51  ;;  %3035 = vmatprep.subr.mxu1 %v2933_v18 }
 0x513   :  { %v2263_v26 = vpop.f32.mrf.mxu1 }
 0x514   :  { %v2264_v27 = vadd.f32 %v2263_v26, %v7057_v52  ;;  %2652 = vmatprep.mubr.f32.mxu0 %v2439_v21  ;;  %v2440_v33 = vmax.f32 %v2262_v28, 0.0 }
 0x515   :  { %v2267_v31 = vpop.f32.mrf.mxu1  ;;  %2653 = vmatmul.mubr.f32.gmra.mxu0 %v2438_v24 }
 0x516   :  { %v2441_v32 = vmax.f32 %v2264_v27, 0.0  ;;  %v2268_v36 = vadd.f32 %v2267_v31, %v7054_v51 }
 0x517   :  { %v2269_v37 = vpop.f32.mrf.mxu1 }
 0x518   :  { %v2270_v39 = vadd.f32 %v2269_v37, %v7057_v52  ;;  %2658 = vmatprep.mubr.f32.mxu0 %v2441_v32  ;;  %v2442_v46 = vmax.f32 %v2268_v36, 0.0 }
 0x519   :  { %v2273_v41 = vpop.f32.mrf.mxu1  ;;  %2659 = vmatmul.mubr.f32.gmra.mxu0 %v2440_v33 }
 0x51a   :  { %v2443_v45 = vmax.f32 %v2270_v39, 0.0  ;;  %v2274_v44 = vadd.f32 %v2273_v41, %v7054_v51 }
 0x51b   :  { %v2275_v47 = vpop.f32.mrf.mxu1 }
 0x51c   :  { %v2276_v49 = vadd.f32 %v2275_v47, %v7057_v52  ;;  %2664 = vmatprep.mubr.f32.mxu0 %v2443_v45  ;;  %v2444_v57 = vmax.f32 %v2274_v44, 0.0 }
 0x51d   :  { %v2279_v53 = vpop.f32.mrf.mxu1  ;;  %2665 = vmatmul.mubr.f32.gmra.mxu0 %v2442_v46 }
 0x51e   :  { %v2445_v55 = vmax.f32 %v2276_v49, 0.0  ;;  %v2280_v58 = vadd.f32 %v2279_v53, %v7054_v51 }
 0x51f   :  { %v2281_v59 = vpop.f32.mrf.mxu1 }
 0x520   :  { %v2282_v60 = vadd.f32 %v2281_v59, %v7057_v52  ;;  %2670 = vmatprep.mubr.f32.mxu0 %v2445_v55  ;;  %v2446_v3 = vmax.f32 %v2280_v58, 0.0 }
 0x521   :  { %v2285_v61 = vpop.f32.mrf.mxu1  ;;  %2671 = vmatmul.mubr.f32.gmra.mxu0 %v2444_v57 }
 0x522   :  { %v2447_v1 = vmax.f32 %v2282_v60, 0.0  ;;  %v2286_v4 = vadd.f32 %v2285_v61, %v7054_v51 }
 0x523   :  { %v2287_v5 = vpop.f32.mrf.mxu1 }
 0x524   :  { %v2288_v7 = vadd.f32 %v2287_v5, %v7057_v52  ;;  %2676 = vmatprep.mubr.f32.mxu0 %v2447_v1  ;;  %v2448_v15 = vmax.f32 %v2286_v4, 0.0 }
 0x525   :  { %v2291_v9 = vpop.f32.mrf.mxu1  ;;  %2677 = vmatmul.mubr.f32.gmra.mxu0 %v2446_v3 }
 0x526   :  { %v2449_v11 = vmax.f32 %v2288_v7, 0.0  ;;  %v2292_v13 = vadd.f32 %v2291_v9, %v7054_v51 }
 0x527   :  { %v2293_v16 = vpop.f32.mrf.mxu1 }
 0x528   :  { %v2294_v17 = vadd.f32 %v2293_v16, %v7057_v52  ;;  %2682 = vmatprep.mubr.f32.mxu0 %v2449_v11  ;;  %v2450_v21 = vmax.f32 %v2292_v13, 0.0 }
 0x529   :  { %v2297_v19 = vpop.f32.mrf.mxu1  ;;  %2683 = vmatmul.mubr.f32.gmra.mxu0 %v2448_v15 }
 0x52a   :  { %v2451_v20 = vmax.f32 %v2294_v17, 0.0  ;;  %v2298_v22 = vadd.f32 %v2297_v19, %v7054_v51  ;;  %v2932_v19 = vld [vmem:[#allocation2 + $0xf10] sm:$0xff] }
 0x52b   :  { %v2299_v24 = vpop.f32.mrf.mxu1  ;;  %3036 = vmatpush2.msra.mxu1 %v2932_v19 }
 0x52c   :  { %v2300_v28 = vadd.f32 %v2299_v24, %v7057_v52  ;;  %2688 = vmatprep.mubr.f32.mxu0 %v2451_v20  ;;  %v2452_v27 = vmax.f32 %v2298_v22, 0.0  ;;  %v2931_v22 = vld [vmem:[#allocation2 + $0xf08] sm:$0xff] }
 0x52d   :  { %v2303_v26 = vpop.f32.mrf.mxu1  ;;  %2689 = vmatmul.mubr.f32.gmra.mxu0 %v2450_v21  ;;  %3037 = vmatprep.subr.mxu1 %v2931_v22 }
 0x52e   :  { %v2453_v29 = vmax.f32 %v2300_v28, 0.0  ;;  %v2304_v30 = vadd.f32 %v2303_v26, %v7054_v51 }
 0x52f   :  { %v2305_v31 = vpop.f32.mrf.mxu1 }
 0x530   :  { %v2306_v34 = vadd.f32 %v2305_v31, %v7057_v52  ;;  %2694 = vmatprep.mubr.f32.mxu0 %v2453_v29  ;;  %v2454_v33 = vmax.f32 %v2304_v30, 0.0  ;;  %v2930_v29 = vld [vmem:[#allocation2 + $0xf00] sm:$0xff] }
 0x531   :  { %v2309_v32 = vpop.f32.mrf.mxu1  ;;  %2695 = vmatmul.mubr.f32.gmra.mxu0 %v2452_v27  ;;  %3038 = vmatpush2.msra.mxu1 %v2930_v29 }
 0x532   :  { %v2455_v35 = vmax.f32 %v2306_v34, 0.0  ;;  %v2310_v36 = vadd.f32 %v2309_v32, %v7054_v51 }
 0x533   :  { %v2311_v37 = vpop.f32.mrf.mxu1 }
 0x534   :  { %v2312_v38 = vadd.f32 %v2311_v37, %v7057_v52  ;;  %2700 = vmatprep.mubr.f32.mxu0 %v2455_v35  ;;  %v2456_v41 = vmax.f32 %v2310_v36, 0.0 }
 0x535   :  { %v2315_v39 = vpop.f32.mrf.mxu1  ;;  %2701 = vmatmul.mubr.f32.gmra.mxu0 %v2454_v33 }
 0x536   :  { %v2457_v40 = vmax.f32 %v2312_v38, 0.0  ;;  %v2316_v42 = vadd.f32 %v2315_v39, %v7054_v51 }
 0x537   :  { %v2317_v45 = vpop.f32.mrf.mxu1 }
 0x538   :  { %v2318_v43 = vadd.f32 %v2317_v45, %v7057_v52  ;;  %2706 = vmatprep.mubr.f32.mxu0 %v2457_v40  ;;  %v2458_v47 = vmax.f32 %v2316_v42, 0.0 }
 0x539   :  { %v2321_v46 = vpop.f32.mrf.mxu1  ;;  %2707 = vmatmul.mubr.f32.gmra.mxu0 %v2456_v41 }
 0x53a   :  { %v2459_v44 = vmax.f32 %v2318_v43, 0.0  ;;  %v2322_v48 = vadd.f32 %v2321_v46, %v7054_v51 }
 0x53b   :  { %v2323_v49 = vpop.f32.mrf.mxu1 }
 0x53c   :  { %v2324_v50 = vadd.f32 %v2323_v49, %v7057_v52  ;;  %2712 = vmatprep.mubr.f32.mxu0 %v2459_v44  ;;  %v2460_v55 = vmax.f32 %v2322_v48, 0.0 }
 0x53d   :  { %v2327_v53 = vpop.f32.mrf.mxu1  ;;  %2713 = vmatmul.mubr.f32.gmra.mxu0 %v2458_v47 }
 0x53e   :  { %v2461_v54 = vmax.f32 %v2324_v50, 0.0  ;;  %v2328_v56 = vadd.f32 %v2327_v53, %v7054_v51 }
 0x53f   :  { %v2329_v57 = vpop.f32.mrf.mxu1 }
 0x540   :  { %v2330_v58 = vadd.f32 %v2329_v57, %v7057_v52  ;;  %2718 = vmatprep.mubr.f32.mxu0 %v2461_v54  ;;  %v2462_v60 = vmax.f32 %v2328_v56, 0.0 }
 0x541   :  { %v2333_v59 = vpop.f32.mrf.mxu1  ;;  %2719 = vmatmul.mubr.f32.gmra.mxu0 %v2460_v55 }
 0x542   :  { %v2463_v62 = vmax.f32 %v2330_v58, 0.0  ;;  %v2334_v63 = vadd.f32 %v2333_v59, %v7054_v51 }
 0x543   :  { %v2335_v61 = vpop.f32.mrf.mxu1 }
 0x544   :  { %v2336_v0 = vadd.f32 %v2335_v61, %v7057_v52  ;;  %2724 = vmatprep.mubr.f32.mxu0 %v2463_v62  ;;  %v2464_v3 = vmax.f32 %v2334_v63, 0.0 }
 0x545   :  { %v2339_v1 = vpop.f32.mrf.mxu1  ;;  %2725 = vmatmul.mubr.f32.gmra.mxu0 %v2462_v60 }
 0x546   :  { %v2465_v2 = vmax.f32 %v2336_v0, 0.0  ;;  %v2340_v4 = vadd.f32 %v2339_v1, %v7054_v51 }
 0x547   :  { %v2341_v5 = vpop.f32.mrf.mxu1 }
 0x548   :  { %v2342_v6 = vadd.f32 %v2341_v5, %v7057_v52  ;;  %2730 = vmatprep.mubr.f32.mxu0 %v2465_v2  ;;  %v2466_v9 = vmax.f32 %v2340_v4, 0.0 }
 0x549   :  { %v2345_v7 = vpop.f32.mrf.mxu1  ;;  %2731 = vmatmul.mubr.f32.gmra.mxu0 %v2464_v3 }
 0x54a   :  { %v2467_v8 = vmax.f32 %v2342_v6, 0.0  ;;  %v2346_v10 = vadd.f32 %v2345_v7, %v7054_v51 }
 0x54b   :  { %v2347_v11 = vpop.f32.mrf.mxu1 }
 0x54c   :  { %v2348_v12 = vadd.f32 %v2347_v11, %v7057_v52  ;;  %2736 = vmatprep.mubr.f32.mxu0 %v2467_v8  ;;  %v2468_v16 = vmax.f32 %v2346_v10, 0.0 }
 0x54d   :  { %v2351_v15 = vpop.f32.mrf.mxu1  ;;  %2737 = vmatmul.mubr.f32.gmra.mxu0 %v2466_v9 }
 0x54e   :  { %v2469_v13 = vmax.f32 %v2348_v12, 0.0  ;;  %v2352_v14 = vadd.f32 %v2351_v15, %v7054_v51 }
 0x54f   :  { %v2353_v17 = vpop.f32.mrf.mxu1 }
 0x550   :  { %v2354_v18 = vadd.f32 %v2353_v17, %v7057_v52  ;;  %2742 = vmatprep.mubr.f32.mxu0 %v2469_v13  ;;  %v2470_v24 = vmax.f32 %v2352_v14, 0.0 }
 0x551   :  { %v2357_v20 = vpop.f32.mrf.mxu1  ;;  %2743 = vmatmul.mubr.f32.gmra.mxu0 %v2468_v16 }
 0x552   :  { %v2471_v21 = vmax.f32 %v2354_v18, 0.0  ;;  %v2358_v28 = vadd.f32 %v2357_v20, %v7054_v51 }
 0x553   :  { %v2359_v26 = vpop.f32.mrf.mxu1 }
 0x554   :  { %v2360_v27 = vadd.f32 %v2359_v26, %v7057_v52  ;;  %2748 = vmatprep.mubr.f32.mxu0 %v2471_v21  ;;  %v2472_v34 = vmax.f32 %v2358_v28, 0.0 }
 0x555   :  { %v2363_v30 = vpop.f32.mrf.mxu1  ;;  %2749 = vmatmul.mubr.f32.gmra.mxu0 %v2470_v24 }
 0x556   :  { %v2473_v31 = vmax.f32 %v2360_v27, 0.0  ;;  %v2364_v32 = vadd.f32 %v2363_v30, %v7054_v51 }
 0x557   :  { %v2365_v35 = vpop.f32.mrf.mxu1 }
 0x558   :  { %v2366_v33 = vadd.f32 %v2365_v35, %v7057_v52  ;;  %2754 = vmatprep.mubr.f32.mxu0 %v2473_v31  ;;  %v2474_v38 = vmax.f32 %v2364_v32, 0.0 }
 0x559   :  { %v2369_v36 = vpop.f32.mrf.mxu1  ;;  %2755 = vmatmul.mubr.f32.gmra.mxu0 %v2472_v34 }
 0x55a   :  { %v2475_v37 = vmax.f32 %v2366_v33, 0.0  ;;  %v2370_v39 = vadd.f32 %v2369_v36, %v7054_v51 }
 0x55b   :  { %v2371_v40 = vpop.f32.mrf.mxu1 }
 0x55c   :  { %v2372_v41 = vadd.f32 %v2371_v40, %v7057_v52  ;;  %2760 = vmatprep.mubr.f32.mxu0 %v2475_v37  ;;  %v2476_v43 = vmax.f32 %v2370_v39, 0.0 }
 0x55d   :  { %v2375_v42 = vpop.f32.mrf.mxu1  ;;  %2761 = vmatmul.mubr.f32.gmra.mxu0 %v2474_v38 }
 0x55e   :  { %v2477_v45 = vmax.f32 %v2372_v41, 0.0  ;;  %v2376_v46 = vadd.f32 %v2375_v42, %v7054_v51 }
 0x55f   :  { %v2377_v44 = vpop.f32.mrf.mxu1 }
 0x560   :  { %v2378_v47 = vadd.f32 %v2377_v44, %v7057_v52  ;;  %2766 = vmatprep.mubr.f32.mxu0 %v2477_v45  ;;  %v2478_v50 = vmax.f32 %v2376_v46, 0.0  ;;  %v3327_v46 = vld [vmem:[#allocation2 + $0x10f0] sm:$0xff]  ;;  %v3326_v44 = vld [vmem:[#allocation2 + $0x10e8] sm:$0xff] }
 0x561   :  { %v2381_v48 = vpop.f32.mrf.mxu1  ;;  %2767 = vmatmul.mubr.f32.gmra.mxu0 %v2476_v43  ;;  %v3328_v43 = vld [vmem:[#allocation2 + $0x10f8] sm:$0xff] }
 0x562   :  { %v2479_v49 = vmax.f32 %v2378_v47, 0.0  ;;  %v2382_v53 = vadd.f32 %v2381_v48, %v7054_v51  ;;  %3374 = vmatprep.subr.mxu0 %v3328_v43  ;;  %v3325_v47 = vld [vmem:[#allocation2 + $0x10e0] sm:$0xff]  ;;  %v3324_v48 = vld [vmem:[#allocation2 + $0x10d8] sm:$0xff] }
 0x563   :  { %v2383_v54 = vpop.f32.mrf.mxu1  ;;  %3375 = vmatpush1.msra.mxu0 %v3327_v46  ;;  %v3353_v46 = vld [vmem:[#allocation2 + $0x11c0] sm:$0xff] }
 0x564   :  { %v2384_v55 = vadd.f32 %v2383_v54, %v7057_v52  ;;  %2772 = vmatprep.mubr.f32.mxu0 %v2479_v49  ;;  %v2480_v58 = vmax.f32 %v2382_v53, 0.0  ;;  %3376 = vmatprep.subr.mxu0 %v3326_v44  ;;  %v3322_v49 = vld [vmem:[#allocation2 + $0x10c8] sm:$0xff]  ;;  %v3319_v53 = vld [vmem:[#allocation2 + $0x10b0] sm:$0xff] }
 0x565   :  { %v2387_v56 = vpop.f32.mrf.mxu1  ;;  %2773 = vmatmul.mubr.f32.gmra.mxu0 %v2478_v50  ;;  %v3320_v50 = vld [vmem:[#allocation2 + $0x10b8] sm:$0xff]  ;;  %v3318_v54 = vld [vmem:[#allocation2 + $0x10a8] sm:$0xff] }
 0x566   :  { %v2481_v57 = vmax.f32 %v2384_v55, 0.0  ;;  %v2388_v59 = vadd.f32 %v2387_v56, %v7054_v51  ;;  %3377 = vmatpush1.msra.mxu0 %v3325_v47  ;;  %v3317_v55 = vld [vmem:[#allocation2 + $0x10a0] sm:$0xff]  ;;  %v3316_v56 = vld [vmem:[#allocation2 + $0x1098] sm:$0xff] }
 0x567   :  { %v2389_v62 = vpop.f32.mrf.mxu1  ;;  %3378 = vmatprep.subr.mxu0 %v3324_v48  ;;  %v3352_v47 = vld [vmem:[#allocation2 + $0x11b8] sm:$0xff] }
 0x568   :  { %v2390_v60 = vadd.f32 %v2389_v62, %v7057_v52  ;;  %2778 = vmatprep.mubr.f32.mxu0 %v2481_v57  ;;  %v2482_v0 = vmax.f32 %v2388_v59, 0.0  ;;  %v3315_v57 = vld [vmem:[#allocation2 + $0x1090] sm:$0xff]  ;;  %v3313_v59 = vld [vmem:[#allocation2 + $0x1080] sm:$0xff]  ;;  %v3312_v62 = vld [vmem:[#allocation2 + $0x1078] sm:$0xff] }
 0x569   :  { %v2393_v63 = vpop.f32.mrf.mxu1  ;;  %2779 = vmatmul.mubr.f32.gmra.mxu0 %v2480_v58  ;;  %v3314_v58 = vld [vmem:[#allocation2 + $0x1088] sm:$0xff] }
 0x56a   :  { %v2483_v61 = vmax.f32 %v2390_v60, 0.0  ;;  %v2394_v1 = vadd.f32 %v2393_v63, %v7054_v51  ;;  %v3311_v60 = vld [vmem:[#allocation2 + $0x1070] sm:$0xff]  ;;  %v3310_v63 = vld [vmem:[#allocation2 + $0x1068] sm:$0xff] }
 0x56b   :  { %v2395_v2 = vpop.f32.mrf.mxu1 }
 0x56c   :  { %v2396_v3 = vadd.f32 %v2395_v2, %v7057_v52  ;;  %2784 = vmatprep.mubr.f32.mxu0 %v2483_v61  ;;  %v2484_v6 = vmax.f32 %v2394_v1, 0.0  ;;  %v3309_v61 = vld [vmem:[#allocation2 + $0x1060] sm:$0xff]  ;;  %v2564_v1 = vld [vmem:[#allocation4 + $0xc] sm:$0x3]  ;;  %v3307_v2 = vld [vmem:[#allocation2 + $0x1050] sm:$0xff] }
 0x56d   :  { %v2399_v4 = vpop.f32.mrf.mxu1  ;;  %2785 = vmatmul.mubr.f32.gmra.mxu0 %v2482_v0  ;;  %v3308_v0 = vld [vmem:[#allocation2 + $0x1058] sm:$0xff] }
 0x56e   :  { %v2485_v5 = vmax.f32 %v2396_v3, 0.0  ;;  %v2400_v7 = vadd.f32 %v2399_v4, %v7054_v51  ;;  %v3306_v3 = vld [vmem:[#allocation2 + $0x1048] sm:$0xff]  ;;  %v7124_v4 = vrot.slane %v2564_v1, %v6699_v23 }
 0x56f   :  { %v2401_v8 = vpop.f32.mrf.mxu1 }
 0x570   :  { %v2402_v9 = vadd.f32 %v2401_v8, %v7057_v52  ;;  %2790 = vmatprep.mubr.f32.mxu0 %v2485_v5  ;;  %v2486_v12 = vmax.f32 %v2400_v7, 0.0  ;;  %v7127_v5 = vrot.slane %v2564_v1, %v6701_v25  ;;  %v3304_v8 = vld [vmem:[#allocation2 + $0x1038] sm:$0xff]  ;;  %v3345_v1 = vld [vmem:[#allocation2 + $0x1180] sm:$0xff] }
 0x571   :  { %v2405_v10 = vpop.f32.mrf.mxu1  ;;  %2791 = vmatmul.mubr.f32.gmra.mxu0 %v2484_v6  ;;  %v3305_v6 = vld [vmem:[#allocation2 + $0x1040] sm:$0xff] }
 0x572   :  { %v2487_v11 = vmax.f32 %v2402_v9, 0.0  ;;  %v2406_v15 = vadd.f32 %v2405_v10, %v7054_v51  ;;  %v3303_v9 = vld [vmem:[#allocation2 + $0x1030] sm:$0xff] }
 0x573   :  { %v2407_v13 = vpop.f32.mrf.mxu1 }
 0x574   :  { %v2408_v16 = vadd.f32 %v2407_v13, %v7057_v52  ;;  %2796 = vmatprep.mubr.f32.mxu0 %v2487_v11  ;;  %v2488_v18 = vmax.f32 %v2406_v15, 0.0  ;;  %v3302_v15 = vld [vmem:[#allocation2 + $0x1028] sm:$0xff] }
 0x575   :  { %v2411_v14 = vpop.f32.mrf.mxu1  ;;  %2797 = vmatmul.mubr.f32.gmra.mxu0 %v2486_v12 }
 0x576   :  { %v2489_v17 = vmax.f32 %v2408_v16, 0.0  ;;  %v2412_v19 = vadd.f32 %v2411_v14, %v7054_v51  ;;  %v3301_v16 = vld [vmem:[#allocation2 + $0x1020] sm:$0xff]  ;;  %v3300_v14 = vld [vmem:[#allocation2 + $0x1018] sm:$0xff] }
 0x577   :  { %v2413_v20 = vpop.f32.mrf.mxu1 }
 0x578   :  { %v2414_v21 = vadd.f32 %v2413_v20, %v7057_v52  ;;  %2802 = vmatprep.mubr.f32.mxu0 %v2489_v17  ;;  %v2490_v28 = vmax.f32 %v2412_v19, 0.0  ;;  %v3299_v17 = vld [vmem:[#allocation2 + $0x1010] sm:$0xff]  ;;  %v3298_v19 = vld [vmem:[#allocation2 + $0x1008] sm:$0xff] }
 0x579   :  { %v2417_v22 = vpop.f32.mrf.mxu1  ;;  %2803 = vmatmul.mubr.f32.gmra.mxu0 %v2488_v18 }
 0x57a   :  { %v2491_v24 = vmax.f32 %v2414_v21, 0.0  ;;  %v2418_v26 = vadd.f32 %v2417_v22, %v7054_v51 }
 0x57b   :  { %v2419_v29 = vpop.f32.mrf.mxu1 }
 0x57c   :  { %v2420_v27 = vadd.f32 %v2419_v29, %v7057_v52  ;;  %2808 = vmatprep.mubr.f32.mxu0 %v2491_v24  ;;  %v2492_v34 = vmax.f32 %v2418_v26, 0.0  ;;  %v3297_v24 = vld [vmem:[#allocation2 + $0x1000] sm:$0xff]  ;;  %v3360_v26 = vld [vmem:[#allocation2 + $0x11f8] sm:$0xff] }
 0x57d   :  { %v2423_v30 = vpop.f32.mrf.mxu1  ;;  %2809 = vmatmul.mubr.f32.gmra.mxu0 %v2490_v28 }
 0x57e   :  { %v2493_v31 = vmax.f32 %v2420_v27, 0.0  ;;  %v2424_v32 = vadd.f32 %v2423_v30, %v7054_v51  ;;  %v3359_v27 = vld [vmem:[#allocation2 + $0x11f0] sm:$0xff] }
 0x57f   :  { %v2425_v35 = vpop.f32.mrf.mxu1 }
 0x580   :  { %v2426_v33 = vadd.f32 %v2425_v35, %v7057_v52  ;;  %2814 = vmatprep.mubr.f32.mxu0 %v2493_v31  ;;  %v2494_v38 = vmax.f32 %v2424_v32, 0.0  ;;  %v3358_v31 = vld [vmem:[#allocation2 + $0x11e8] sm:$0xff] }
 0x581   :  { %v2429_v36 = vpop.f32.mrf.mxu1  ;;  %2815 = vmatmul.mubr.f32.gmra.mxu0 %v2492_v34 }
 0x582   :  { %v2495_v37 = vmax.f32 %v2426_v33, 0.0  ;;  %v2430_v39 = vadd.f32 %v2429_v36, %v7054_v51  ;;  %v3323_v51 = vld [vmem:[#allocation2 + $0x10d0] sm:$0xff]  ;;  %v3357_v33 = vld [vmem:[#allocation2 + $0x11e0] sm:$0xff] }
 0x583   :  { %v2431_v40 = vpop.f32.mrf.mxu1  ;;  %3379 = vmatpush1.msra.mxu0 %v3323_v51  ;;  %v3351_v51 = vld [vmem:[#allocation2 + $0x11b0] sm:$0xff] }
 0x584   :  { %v2432_v41 = vadd.f32 %v2431_v40, %v7057_v52  ;;  %2820 = vmatprep.mubr.f32.mxu0 %v2495_v37  ;;  %v2496_v45 = vmax.f32 %v2430_v39, 0.0  ;;  %3380 = vmatprep.subr.mxu0 %v3322_v49  ;;  %v3321_v52 = vld [vmem:[#allocation2 + $0x10c0] sm:$0xff]  ;;  %v3356_v37 = vld [vmem:[#allocation2 + $0x11d8] sm:$0xff]  ;;  %v3355_v39 = vld [vmem:[#allocation2 + $0x11d0] sm:$0xff] }
 0x585   :  { %2821 = vmatmul.mubr.f32.gmra.mxu0 %v2494_v38 }
 0x586   :  { %v2497_v42 = vmax.f32 %v2432_v41, 0.0  ;;  %3381 = vmatpush1.msra.mxu0 %v3321_v52  ;;  %v3354_v41 = vld [vmem:[#allocation2 + $0x11c8] sm:$0xff] }
 0x587   :  { %3382 = vmatprep.subr.mxu0 %v3320_v50  ;;  %v3350_v52 = vld [vmem:[#allocation2 + $0x11a8] sm:$0xff] }
 0x588   :  { %2826 = vmatprep.mubr.f32.mxu0 %v2497_v42  ;;  %3383 = vmatpush1.msra.mxu0 %v3319_v53 }
 0x589   :  { %2827 = vmatmul.mubr.f32.gmra.mxu0 %v2496_v45  ;;  %3384 = vmatprep.subr.mxu0 %v3318_v54 }
 0x58a   :  { %3385 = vmatpush1.msra.mxu0 %v3317_v55  ;;  %v3349_v55 = vld [vmem:[#allocation2 + $0x11a0] sm:$0xff] }
 0x58b   :  { %3386 = vmatprep.subr.mxu0 %v3316_v56 }
 0x58c   :  { %3387 = vmatpush1.msra.mxu0 %v3315_v57  ;;  %v3348_v57 = vld [vmem:[#allocation2 + $0x1198] sm:$0xff] }
 0x58d   :  { %3388 = vmatprep.subr.mxu0 %v3314_v58 }
 0x58e   :  { %3389 = vmatpush1.msra.mxu0 %v3313_v59  ;;  %v3347_v59 = vld [vmem:[#allocation2 + $0x1190] sm:$0xff] }
 0x58f   :  { %3390 = vmatprep.subr.mxu0 %v3312_v62 }
 0x590   :  { %3391 = vmatpush1.msra.mxu0 %v3311_v60  ;;  %v3346_v60 = vld [vmem:[#allocation2 + $0x1188] sm:$0xff] }
 0x591   :  { %3392 = vmatprep.subr.mxu0 %v3310_v63 }
 0x592   :  { %3393 = vmatpush1.msra.mxu0 %v3309_v61 }
 0x593   :  { %3394 = vmatprep.subr.mxu0 %v3308_v0 }
 0x594   :  { %3395 = vmatpush1.msra.mxu0 %v3307_v2 }
 0x595   :  { %3396 = vmatprep.subr.mxu0 %v3306_v3  ;;  %v3344_v3 = vld [vmem:[#allocation2 + $0x1178] sm:$0xff] }
 0x596   :  { %3397 = vmatpush1.msra.mxu0 %v3305_v6 }
 0x597   :  { %3398 = vmatprep.subr.mxu0 %v3304_v8 }
 0x598   :  { %3399 = vmatpush1.msra.mxu0 %v3303_v9  ;;  %v3342_v9 = vld [vmem:[#allocation2 + $0x1168] sm:$0xff] }
 0x599   :  { %3400 = vmatprep.subr.mxu0 %v3302_v15  ;;  %v3341_v15 = vld [vmem:[#allocation2 + $0x1160] sm:$0xff] }
 0x59a   :  { %3401 = vmatpush1.msra.mxu0 %v3301_v16  ;;  %v3340_v16 = vld [vmem:[#allocation2 + $0x1158] sm:$0xff] }
 0x59b   :  { %3402 = vmatprep.subr.mxu0 %v3300_v14 }
 0x59c   :  { %3403 = vmatpush1.msra.mxu0 %v3299_v17  ;;  %v3339_v17 = vld [vmem:[#allocation2 + $0x1150] sm:$0xff] }
 0x59d   :  { %3404 = vmatprep.subr.mxu0 %v3298_v19  ;;  %v3338_v19 = vld [vmem:[#allocation2 + $0x1148] sm:$0xff] }
 0x59e   :  { %3405 = vmatpush1.msra.mxu0 %v3297_v24  ;;  %v3337_v24 = vld [vmem:[#allocation2 + $0x1140] sm:$0xff] }
 0x59f   :  { %3406 = vmatprep.subr.mxu0 %v3360_v26  ;;  %v3336_v26 = vld [vmem:[#allocation2 + $0x1138] sm:$0xff] }
 0x5a0   :  { %3407 = vmatpush2.msra.mxu0 %v3359_v27  ;;  %v3335_v27 = vld [vmem:[#allocation2 + $0x1130] sm:$0xff] }
 0x5a1   :  { %3408 = vmatprep.subr.mxu0 %v3358_v31  ;;  %v3334_v31 = vld [vmem:[#allocation2 + $0x1128] sm:$0xff] }
 0x5a2   :  { %3409 = vmatpush2.msra.mxu0 %v3357_v33  ;;  %v3333_v33 = vld [vmem:[#allocation2 + $0x1120] sm:$0xff] }
 0x5a3   :  { %3410 = vmatprep.subr.mxu0 %v3356_v37  ;;  %v3332_v37 = vld [vmem:[#allocation2 + $0x1118] sm:$0xff] }
 0x5a4   :  { %3411 = vmatpush2.msra.mxu0 %v3355_v39 }
 0x5a5   :  { %3412 = vmatprep.subr.mxu0 %v3354_v41 }
 0x5a6   :  { %3413 = vmatpush2.msra.mxu0 %v3353_v46 }
 0x5a7   :  { %3414 = vmatprep.subr.mxu0 %v3352_v47 }
 0x5a8   :  { %3415 = vmatpush2.msra.mxu0 %v3351_v51 }
 0x5a9   :  { %3416 = vmatprep.subr.mxu0 %v3350_v52 }
 0x5aa   :  { %3417 = vmatpush2.msra.mxu0 %v3349_v55 }
 0x5ab   :  { %3418 = vmatprep.subr.mxu0 %v3348_v57 }
 0x5ac   :  { %3419 = vmatpush2.msra.mxu0 %v3347_v59 }
 0x5ad   :  { %3420 = vmatprep.subr.mxu0 %v3346_v60 }
 0x5ae   :  { %3421 = vmatpush2.msra.mxu0 %v3345_v1 }
 0x5af   :  { %3422 = vmatprep.subr.mxu0 %v3344_v3 }
 0x5cd   :  { %v2642_v7 = vpop.f32.mrf.mxu0 }
 0x5ce   :  { %v2643_v10 = vadd.f32 %v2642_v7, %v7124_v4  ;;  %v3343_v7 = vld [vmem:[#allocation2 + $0x1170] sm:$0xff] }
 0x5cf   :  { %v2644_v11 = vpop.f32.mrf.mxu0  ;;  %3423 = vmatpush2.msra.mxu0 %v3343_v7 }
 0x5d0   :  { %v2645_v12 = vadd.f32 %v2644_v11, %v7127_v5  ;;  %v2833_v20 = vmax.f32 %v2643_v10, 0.0  ;;  %3424 = vmatprep.subr.mxu0 %v3342_v9 }
 0x5d1   :  { %v2648_v13 = vpop.f32.mrf.mxu0  ;;  %3425 = vmatpush2.msra.mxu0 %v3341_v15 }
 0x5d2   :  { %v2834_v18 = vmax.f32 %v2645_v12, 0.0  ;;  %v2649_v21 = vadd.f32 %v2648_v13, %v7124_v4  ;;  %3426 = vmatprep.subr.mxu0 %v3340_v16 }
 0x5d3   :  { %v2650_v22 = vpop.f32.mrf.mxu0  ;;  %3427 = vmatpush2.msra.mxu0 %v3339_v17 }
 0x5d4   :  { %v2651_v28 = vadd.f32 %v2650_v22, %v7127_v5  ;;  %3039 = vmatprep.mubr.f32.mxu1 %v2834_v18  ;;  %v2835_v34 = vmax.f32 %v2649_v21, 0.0  ;;  %3428 = vmatprep.subr.mxu0 %v3338_v19 }
 0x5d5   :  { %v2654_v29 = vpop.f32.mrf.mxu0  ;;  %3040 = vmatmul.mubr.f32.vlgmr.msra.gmra.mxu1 %v2833_v20  ;;  %3429 = vmatpush2.msra.mxu0 %v3337_v24 }
 0x5d6   :  { %v2836_v30 = vmax.f32 %v2651_v28, 0.0  ;;  %v2655_v32 = vadd.f32 %v2654_v29, %v7124_v4  ;;  %3430 = vmatprep.subr.mxu0 %v3336_v26 }
 0x5d7   :  { %v2656_v35 = vpop.f32.mrf.mxu0  ;;  %3431 = vmatpush2.msra.mxu0 %v3335_v27 }
 0x5d8   :  { %v2657_v36 = vadd.f32 %v2656_v35, %v7127_v5  ;;  %3045 = vmatprep.mubr.f32.mxu1 %v2836_v30  ;;  %v2837_v42 = vmax.f32 %v2655_v32, 0.0  ;;  %3432 = vmatprep.subr.mxu0 %v3334_v31 }
 0x5d9   :  { %v2660_v38 = vpop.f32.mrf.mxu0  ;;  %3046 = vmatmul.mubr.f32.gmra.mxu1 %v2835_v34  ;;  %3433 = vmatpush2.msra.mxu0 %v3333_v33 }
 0x5da   :  { %v2838_v40 = vmax.f32 %v2657_v36, 0.0  ;;  %v2661_v45 = vadd.f32 %v2660_v38, %v7124_v4  ;;  %3434 = vmatprep.subr.mxu0 %v3332_v37 }
 0x5db   :  { %v2662_v43 = vpop.f32.mrf.mxu0 }
 0x5dc   :  { %v2663_v44 = vadd.f32 %v2662_v43, %v7127_v5  ;;  %3051 = vmatprep.mubr.f32.mxu1 %v2838_v40  ;;  %v2839_v50 = vmax.f32 %v2661_v45, 0.0 }
 0x5dd   :  { %v2666_v48 = vpop.f32.mrf.mxu0  ;;  %3052 = vmatmul.mubr.f32.gmra.mxu1 %v2837_v42 }
 0x5de   :  { %v2840_v49 = vmax.f32 %v2663_v44, 0.0  ;;  %v2667_v53 = vadd.f32 %v2666_v48, %v7124_v4 }
 0x5df   :  { %v2668_v54 = vpop.f32.mrf.mxu0 }
 0x5e0   :  { %v2669_v56 = vadd.f32 %v2668_v54, %v7127_v5  ;;  %3057 = vmatprep.mubr.f32.mxu1 %v2840_v49  ;;  %v2841_v63 = vmax.f32 %v2667_v53, 0.0 }
 0x5e1   :  { %v2672_v58 = vpop.f32.mrf.mxu0  ;;  %3058 = vmatmul.mubr.f32.gmra.mxu1 %v2839_v50 }
 0x5e2   :  { %v2842_v62 = vmax.f32 %v2669_v56, 0.0  ;;  %v2673_v61 = vadd.f32 %v2672_v58, %v7124_v4 }
 0x5e3   :  { %v2674_v0 = vpop.f32.mrf.mxu0 }
 0x5e4   :  { %v2675_v2 = vadd.f32 %v2674_v0, %v7127_v5  ;;  %3063 = vmatprep.mubr.f32.mxu1 %v2842_v62  ;;  %v2843_v10 = vmax.f32 %v2673_v61, 0.0 }
 0x5e5   :  { %v2678_v6 = vpop.f32.mrf.mxu0  ;;  %3064 = vmatmul.mubr.f32.gmra.mxu1 %v2841_v63 }
 0x5e6   :  { %v2844_v8 = vmax.f32 %v2675_v2, 0.0  ;;  %v2679_v11 = vadd.f32 %v2678_v6, %v7124_v4 }
 0x5e7   :  { %v2680_v12 = vpop.f32.mrf.mxu0 }
 0x5e8   :  { %v2681_v13 = vadd.f32 %v2680_v12, %v7127_v5  ;;  %3069 = vmatprep.mubr.f32.mxu1 %v2844_v8  ;;  %v2845_v20 = vmax.f32 %v2679_v11, 0.0 }
 0x5e9   :  { %v2684_v14 = vpop.f32.mrf.mxu0  ;;  %3070 = vmatmul.mubr.f32.gmra.mxu1 %v2843_v10 }
 0x5ea   :  { %v2846_v18 = vmax.f32 %v2681_v13, 0.0  ;;  %v2685_v21 = vadd.f32 %v2684_v14, %v7124_v4 }
 0x5eb   :  { %v2686_v22 = vpop.f32.mrf.mxu0 }
 0x5ec   :  { %v2687_v28 = vadd.f32 %v2686_v22, %v7127_v5  ;;  %3075 = vmatprep.mubr.f32.mxu1 %v2846_v18  ;;  %v2847_v34 = vmax.f32 %v2685_v21, 0.0 }
 0x5ed   :  { %v2690_v29 = vpop.f32.mrf.mxu0  ;;  %3076 = vmatmul.mubr.f32.gmra.mxu1 %v2845_v20 }
 0x5ee   :  { %v2848_v30 = vmax.f32 %v2687_v28, 0.0  ;;  %v2691_v32 = vadd.f32 %v2690_v29, %v7124_v4 }
 0x5ef   :  { %v2692_v35 = vpop.f32.mrf.mxu0 }
 0x5f0   :  { %v2693_v36 = vadd.f32 %v2692_v35, %v7127_v5  ;;  %3081 = vmatprep.mubr.f32.mxu1 %v2848_v30  ;;  %v2849_v40 = vmax.f32 %v2691_v32, 0.0 }
 0x5f1   :  { %v2696_v38 = vpop.f32.mrf.mxu0  ;;  %3082 = vmatmul.mubr.f32.gmra.mxu1 %v2847_v34 }
 0x5f2   :  { %v2850_v39 = vmax.f32 %v2693_v36, 0.0  ;;  %v2697_v41 = vadd.f32 %v2696_v38, %v7124_v4  ;;  %v3331_v38 = vld [vmem:[#allocation2 + $0x1110] sm:$0xff] }
 0x5f3   :  { %v2698_v42 = vpop.f32.mrf.mxu0  ;;  %3435 = vmatpush2.msra.mxu0 %v3331_v38 }
 0x5f4   :  { %v2699_v45 = vadd.f32 %v2698_v42, %v7127_v5  ;;  %3087 = vmatprep.mubr.f32.mxu1 %v2850_v39  ;;  %v2851_v44 = vmax.f32 %v2697_v41, 0.0  ;;  %v3330_v41 = vld [vmem:[#allocation2 + $0x1108] sm:$0xff] }
 0x5f5   :  { %v2702_v43 = vpop.f32.mrf.mxu0  ;;  %3088 = vmatmul.mubr.f32.gmra.mxu1 %v2849_v40  ;;  %3436 = vmatprep.subr.mxu0 %v3330_v41 }
 0x5f6   :  { %v2852_v46 = vmax.f32 %v2699_v45, 0.0  ;;  %v2703_v47 = vadd.f32 %v2702_v43, %v7124_v4 }
 0x5f7   :  { %v2704_v48 = vpop.f32.mrf.mxu0 }
 0x5f8   :  { %v2705_v51 = vadd.f32 %v2704_v48, %v7127_v5  ;;  %3093 = vmatprep.mubr.f32.mxu1 %v2852_v46  ;;  %v2853_v50 = vmax.f32 %v2703_v47, 0.0  ;;  %v3329_v46 = vld [vmem:[#allocation2 + $0x1100] sm:$0xff] }
 0x5f9   :  { %v2708_v49 = vpop.f32.mrf.mxu0  ;;  %3094 = vmatmul.mubr.f32.gmra.mxu1 %v2851_v44  ;;  %3437 = vmatpush2.msra.mxu0 %v3329_v46 }
 0x5fa   :  { %v2854_v52 = vmax.f32 %v2705_v51, 0.0  ;;  %v2709_v53 = vadd.f32 %v2708_v49, %v7124_v4 }
 0x5fb   :  { %v2710_v54 = vpop.f32.mrf.mxu0 }
 0x5fc   :  { %v2711_v55 = vadd.f32 %v2710_v54, %v7127_v5  ;;  %3099 = vmatprep.mubr.f32.mxu1 %v2854_v52  ;;  %v2855_v58 = vmax.f32 %v2709_v53, 0.0 }
 0x5fd   :  { %v2714_v56 = vpop.f32.mrf.mxu0  ;;  %3100 = vmatmul.mubr.f32.gmra.mxu1 %v2853_v50 }
 0x5fe   :  { %v2856_v57 = vmax.f32 %v2711_v55, 0.0  ;;  %v2715_v59 = vadd.f32 %v2714_v56, %v7124_v4 }
 0x5ff   :  { %v2716_v62 = vpop.f32.mrf.mxu0 }
 0x600   :  { %v2717_v60 = vadd.f32 %v2716_v62, %v7127_v5  ;;  %3105 = vmatprep.mubr.f32.mxu1 %v2856_v57  ;;  %v2857_v0 = vmax.f32 %v2715_v59, 0.0 }
 0x601   :  { %v2720_v63 = vpop.f32.mrf.mxu0  ;;  %3106 = vmatmul.mubr.f32.gmra.mxu1 %v2855_v58 }
 0x602   :  { %v2858_v61 = vmax.f32 %v2717_v60, 0.0  ;;  %v2721_v1 = vadd.f32 %v2720_v63, %v7124_v4 }
 0x603   :  { %v2722_v2 = vpop.f32.mrf.mxu0 }
 0x604   :  { %v2723_v3 = vadd.f32 %v2722_v2, %v7127_v5  ;;  %3111 = vmatprep.mubr.f32.mxu1 %v2858_v61  ;;  %v2859_v8 = vmax.f32 %v2721_v1, 0.0 }
 0x605   :  { %v2726_v6 = vpop.f32.mrf.mxu0  ;;  %3112 = vmatmul.mubr.f32.gmra.mxu1 %v2857_v0 }
 0x606   :  { %v2860_v7 = vmax.f32 %v2723_v3, 0.0  ;;  %v2727_v9 = vadd.f32 %v2726_v6, %v7124_v4 }
 0x607   :  { %v2728_v10 = vpop.f32.mrf.mxu0 }
 0x608   :  { %v2729_v11 = vadd.f32 %v2728_v10, %v7127_v5  ;;  %3117 = vmatprep.mubr.f32.mxu1 %v2860_v7  ;;  %v2861_v13 = vmax.f32 %v2727_v9, 0.0 }
 0x609   :  { %v2732_v12 = vpop.f32.mrf.mxu0  ;;  %3118 = vmatmul.mubr.f32.gmra.mxu1 %v2859_v8 }
 0x60a   :  { %v2862_v15 = vmax.f32 %v2729_v11, 0.0  ;;  %v2733_v16 = vadd.f32 %v2732_v12, %v7124_v4 }
 0x60b   :  { %v2734_v14 = vpop.f32.mrf.mxu0 }
 0x60c   :  { %v2735_v17 = vadd.f32 %v2734_v14, %v7127_v5  ;;  %3123 = vmatprep.mubr.f32.mxu1 %v2862_v15  ;;  %v2863_v20 = vmax.f32 %v2733_v16, 0.0 }
 0x60d   :  { %v2738_v18 = vpop.f32.mrf.mxu0  ;;  %3124 = vmatmul.mubr.f32.gmra.mxu1 %v2861_v13 }
 0x60e   :  { %v2864_v19 = vmax.f32 %v2735_v17, 0.0  ;;  %v2739_v21 = vadd.f32 %v2738_v18, %v7124_v4 }
 0x60f   :  { %v2740_v22 = vpop.f32.mrf.mxu0 }
 0x610   :  { %v2741_v24 = vadd.f32 %v2740_v22, %v7127_v5  ;;  %3129 = vmatprep.mubr.f32.mxu1 %v2864_v19  ;;  %v2865_v29 = vmax.f32 %v2739_v21, 0.0 }
 0x611   :  { %v2744_v28 = vpop.f32.mrf.mxu0  ;;  %3130 = vmatmul.mubr.f32.gmra.mxu1 %v2863_v20 }
 0x612   :  { %v2866_v26 = vmax.f32 %v2741_v24, 0.0  ;;  %v2745_v27 = vadd.f32 %v2744_v28, %v7124_v4 }
 0x613   :  { %v2746_v30 = vpop.f32.mrf.mxu0 }
 0x614   :  { %v2747_v31 = vadd.f32 %v2746_v30, %v7127_v5  ;;  %3135 = vmatprep.mubr.f32.mxu1 %v2866_v26  ;;  %v2867_v35 = vmax.f32 %v2745_v27, 0.0 }
 0x615   :  { %v2750_v34 = vpop.f32.mrf.mxu0  ;;  %3136 = vmatmul.mubr.f32.gmra.mxu1 %v2865_v29 }
 0x616   :  { %v2868_v32 = vmax.f32 %v2747_v31, 0.0  ;;  %v2751_v33 = vadd.f32 %v2750_v34, %v7124_v4 }
 0x617   :  { %v2752_v36 = vpop.f32.mrf.mxu0 }
 0x618   :  { %v2753_v37 = vadd.f32 %v2752_v36, %v7127_v5  ;;  %3141 = vmatprep.mubr.f32.mxu1 %v2868_v32  ;;  %v2869_v42 = vmax.f32 %v2751_v33, 0.0 }
 0x619   :  { %v2756_v39 = vpop.f32.mrf.mxu0  ;;  %3142 = vmatmul.mubr.f32.gmra.mxu1 %v2867_v35 }
 0x61a   :  { %v2870_v40 = vmax.f32 %v2753_v37, 0.0  ;;  %v2757_v45 = vadd.f32 %v2756_v39, %v7124_v4 }
 0x61b   :  { %v2758_v43 = vpop.f32.mrf.mxu0 }
 0x61c   :  { %v2759_v44 = vadd.f32 %v2758_v43, %v7127_v5  ;;  %3147 = vmatprep.mubr.f32.mxu1 %v2870_v40  ;;  %v2871_v51 = vmax.f32 %v2757_v45, 0.0 }
 0x61d   :  { %v2762_v47 = vpop.f32.mrf.mxu0  ;;  %3148 = vmatmul.mubr.f32.gmra.mxu1 %v2869_v42 }
 0x61e   :  { %v2872_v48 = vmax.f32 %v2759_v44, 0.0  ;;  %v2763_v49 = vadd.f32 %v2762_v47, %v7124_v4 }
 0x61f   :  { %v2764_v52 = vpop.f32.mrf.mxu0 }
 0x620   :  { %v2765_v50 = vadd.f32 %v2764_v52, %v7127_v5  ;;  %3153 = vmatprep.mubr.f32.mxu1 %v2872_v48  ;;  %v2873_v55 = vmax.f32 %v2763_v49, 0.0 }
 0x621   :  { %v2768_v53 = vpop.f32.mrf.mxu0  ;;  %3154 = vmatmul.mubr.f32.gmra.mxu1 %v2871_v51 }
 0x622   :  { %v2874_v54 = vmax.f32 %v2765_v50, 0.0  ;;  %v2769_v56 = vadd.f32 %v2768_v53, %v7124_v4 }
 0x623   :  { %v2770_v57 = vpop.f32.mrf.mxu0 }
 0x624   :  { %v2771_v58 = vadd.f32 %v2770_v57, %v7127_v5  ;;  %3159 = vmatprep.mubr.f32.mxu1 %v2874_v54  ;;  %v2875_v60 = vmax.f32 %v2769_v56, 0.0 }
 0x625   :  { %v2774_v59 = vpop.f32.mrf.mxu0  ;;  %3160 = vmatmul.mubr.f32.gmra.mxu1 %v2873_v55 }
 0x626   :  { %v2876_v62 = vmax.f32 %v2771_v58, 0.0  ;;  %v2775_v63 = vadd.f32 %v2774_v59, %v7124_v4 }
 0x627   :  { %v2776_v61 = vpop.f32.mrf.mxu0 }
 0x628   :  { %v2777_v0 = vadd.f32 %v2776_v61, %v7127_v5  ;;  %3165 = vmatprep.mubr.f32.mxu1 %v2876_v62  ;;  %v2877_v3 = vmax.f32 %v2775_v63, 0.0  ;;  %v3726_v63 = vld [vmem:[#allocation2 + $0x12f0] sm:$0xff]  ;;  %v3725_v61 = vld [vmem:[#allocation2 + $0x12e8] sm:$0xff] }
 0x629   :  { %v2780_v1 = vpop.f32.mrf.mxu0  ;;  %3166 = vmatmul.mubr.f32.gmra.mxu1 %v2875_v60  ;;  %v3727_v60 = vld [vmem:[#allocation2 + $0x12f8] sm:$0xff] }
 0x62a   :  { %v2878_v2 = vmax.f32 %v2777_v0, 0.0  ;;  %v2781_v6 = vadd.f32 %v2780_v1, %v7124_v4  ;;  %3773 = vmatprep.subr.mxu1 %v3727_v60  ;;  %v3724_v0 = vld [vmem:[#allocation2 + $0x12e0] sm:$0xff]  ;;  %v3723_v1 = vld [vmem:[#allocation2 + $0x12d8] sm:$0xff] }
 0x62b   :  { %v2782_v7 = vpop.f32.mrf.mxu0  ;;  %3774 = vmatpush1.msra.mxu1 %v3726_v63  ;;  %v3752_v63 = vld [vmem:[#allocation2 + $0x13c0] sm:$0xff] }
 0x62c   :  { %v2783_v8 = vadd.f32 %v2782_v7, %v7127_v5  ;;  %3171 = vmatprep.mubr.f32.mxu1 %v2878_v2  ;;  %v2879_v11 = vmax.f32 %v2781_v6, 0.0  ;;  %3775 = vmatprep.subr.mxu1 %v3725_v61  ;;  %v3721_v2 = vld [vmem:[#allocation2 + $0x12c8] sm:$0xff]  ;;  %v3718_v6 = vld [vmem:[#allocation2 + $0x12b0] sm:$0xff] }
 0x62d   :  { %v2786_v9 = vpop.f32.mrf.mxu0  ;;  %3172 = vmatmul.mubr.f32.gmra.mxu1 %v2877_v3  ;;  %v3719_v3 = vld [vmem:[#allocation2 + $0x12b8] sm:$0xff]  ;;  %v3717_v7 = vld [vmem:[#allocation2 + $0x12a8] sm:$0xff] }
 0x62e   :  { %v2880_v10 = vmax.f32 %v2783_v8, 0.0  ;;  %v2787_v12 = vadd.f32 %v2786_v9, %v7124_v4  ;;  %3776 = vmatpush1.msra.mxu1 %v3724_v0  ;;  %v3716_v8 = vld [vmem:[#allocation2 + $0x12a0] sm:$0xff]  ;;  %v3715_v9 = vld [vmem:[#allocation2 + $0x1298] sm:$0xff] }
 0x62f   :  { %v2788_v15 = vpop.f32.mrf.mxu0  ;;  %3777 = vmatprep.subr.mxu1 %v3723_v1  ;;  %v3751_v0 = vld [vmem:[#allocation2 + $0x13b8] sm:$0xff] }
 0x630   :  { %v2789_v13 = vadd.f32 %v2788_v15, %v7127_v5  ;;  %3177 = vmatprep.mubr.f32.mxu1 %v2880_v10  ;;  %v2881_v17 = vmax.f32 %v2787_v12, 0.0  ;;  %v3714_v10 = vld [vmem:[#allocation2 + $0x1290] sm:$0xff]  ;;  %v3712_v12 = vld [vmem:[#allocation2 + $0x1280] sm:$0xff]  ;;  %v3711_v15 = vld [vmem:[#allocation2 + $0x1278] sm:$0xff] }
 0x631   :  { %v2792_v16 = vpop.f32.mrf.mxu0  ;;  %3178 = vmatmul.mubr.f32.gmra.mxu1 %v2879_v11  ;;  %v3713_v11 = vld [vmem:[#allocation2 + $0x1288] sm:$0xff] }
 0x632   :  { %v2882_v14 = vmax.f32 %v2789_v13, 0.0  ;;  %v2793_v18 = vadd.f32 %v2792_v16, %v7124_v4  ;;  %v3710_v13 = vld [vmem:[#allocation2 + $0x1270] sm:$0xff]  ;;  %v3709_v16 = vld [vmem:[#allocation2 + $0x1268] sm:$0xff] }
 0x633   :  { %v2794_v19 = vpop.f32.mrf.mxu0 }
 0x634   :  { %v2795_v20 = vadd.f32 %v2794_v19, %v7127_v5  ;;  %3183 = vmatprep.mubr.f32.mxu1 %v2882_v14  ;;  %v2883_v24 = vmax.f32 %v2793_v18, 0.0  ;;  %v3708_v14 = vld [vmem:[#allocation2 + $0x1260] sm:$0xff]  ;;  %v2963_v18 = vld [vmem:[#allocation4 + $0xe] sm:$0x3]  ;;  %v3706_v19 = vld [vmem:[#allocation2 + $0x1250] sm:$0xff] }
 0x635   :  { %v2798_v21 = vpop.f32.mrf.mxu0  ;;  %3184 = vmatmul.mubr.f32.gmra.mxu1 %v2881_v17  ;;  %v3707_v17 = vld [vmem:[#allocation2 + $0x1258] sm:$0xff] }
 0x636   :  { %v2884_v22 = vmax.f32 %v2795_v20, 0.0  ;;  %v2799_v28 = vadd.f32 %v2798_v21, %v7124_v4  ;;  %v3705_v20 = vld [vmem:[#allocation2 + $0x1248] sm:$0xff]  ;;  %v7194_v21 = vrot.slane %v2963_v18, %v6699_v23 }
 0x637   :  { %v2800_v26 = vpop.f32.mrf.mxu0 }
 0x638   :  { %v2801_v29 = vadd.f32 %v2800_v26, %v7127_v5  ;;  %3189 = vmatprep.mubr.f32.mxu1 %v2884_v22  ;;  %v2885_v31 = vmax.f32 %v2799_v28, 0.0  ;;  %v7197_v22 = vrot.slane %v2963_v18, %v6701_v25  ;;  %v3703_v26 = vld [vmem:[#allocation2 + $0x1238] sm:$0xff]  ;;  %v3744_v18 = vld [vmem:[#allocation2 + $0x1380] sm:$0xff] }
 0x639   :  { %v2804_v27 = vpop.f32.mrf.mxu0  ;;  %3190 = vmatmul.mubr.f32.gmra.mxu1 %v2883_v24  ;;  %v3704_v24 = vld [vmem:[#allocation2 + $0x1240] sm:$0xff] }
 0x63a   :  { %v2886_v30 = vmax.f32 %v2801_v29, 0.0  ;;  %v2805_v34 = vadd.f32 %v2804_v27, %v7124_v4  ;;  %v3702_v29 = vld [vmem:[#allocation2 + $0x1230] sm:$0xff] }
 0x63b   :  { %v2806_v32 = vpop.f32.mrf.mxu0 }
 0x63c   :  { %v2807_v35 = vadd.f32 %v2806_v32, %v7127_v5  ;;  %3195 = vmatprep.mubr.f32.mxu1 %v2886_v30  ;;  %v2887_v37 = vmax.f32 %v2805_v34, 0.0  ;;  %v3701_v34 = vld [vmem:[#allocation2 + $0x1228] sm:$0xff] }
 0x63d   :  { %v2810_v33 = vpop.f32.mrf.mxu0  ;;  %3196 = vmatmul.mubr.f32.gmra.mxu1 %v2885_v31 }
 0x63e   :  { %v2888_v36 = vmax.f32 %v2807_v35, 0.0  ;;  %v2811_v38 = vadd.f32 %v2810_v33, %v7124_v4  ;;  %v3700_v35 = vld [vmem:[#allocation2 + $0x1220] sm:$0xff]  ;;  %v3699_v33 = vld [vmem:[#allocation2 + $0x1218] sm:$0xff] }
 0x63f   :  { %v2812_v39 = vpop.f32.mrf.mxu0 }
 0x640   :  { %v2813_v40 = vadd.f32 %v2812_v39, %v7127_v5  ;;  %3201 = vmatprep.mubr.f32.mxu1 %v2888_v36  ;;  %v2889_v45 = vmax.f32 %v2811_v38, 0.0  ;;  %v3698_v36 = vld [vmem:[#allocation2 + $0x1210] sm:$0xff]  ;;  %v3697_v38 = vld [vmem:[#allocation2 + $0x1208] sm:$0xff] }
 0x641   :  { %v2816_v41 = vpop.f32.mrf.mxu0  ;;  %3202 = vmatmul.mubr.f32.gmra.mxu1 %v2887_v37 }
 0x642   :  { %v2890_v42 = vmax.f32 %v2813_v40, 0.0  ;;  %v2817_v43 = vadd.f32 %v2816_v41, %v7124_v4 }
 0x643   :  { %v2818_v46 = vpop.f32.mrf.mxu0 }
 0x644   :  { %v2819_v44 = vadd.f32 %v2818_v46, %v7127_v5  ;;  %3207 = vmatprep.mubr.f32.mxu1 %v2890_v42  ;;  %v2891_v51 = vmax.f32 %v2817_v43, 0.0  ;;  %v3696_v42 = vld [vmem:[#allocation2 + $0x1200] sm:$0xff]  ;;  %v3759_v43 = vld [vmem:[#allocation2 + $0x13f8] sm:$0xff] }
 0x645   :  { %v2822_v47 = vpop.f32.mrf.mxu0  ;;  %3208 = vmatmul.mubr.f32.gmra.mxu1 %v2889_v45 }
 0x646   :  { %v2892_v48 = vmax.f32 %v2819_v44, 0.0  ;;  %v2823_v49 = vadd.f32 %v2822_v47, %v7124_v4  ;;  %v3758_v44 = vld [vmem:[#allocation2 + $0x13f0] sm:$0xff] }
 0x647   :  { %v2824_v52 = vpop.f32.mrf.mxu0 }
 0x648   :  { %v2825_v50 = vadd.f32 %v2824_v52, %v7127_v5  ;;  %3213 = vmatprep.mubr.f32.mxu1 %v2892_v48  ;;  %v2893_v55 = vmax.f32 %v2823_v49, 0.0  ;;  %v3757_v48 = vld [vmem:[#allocation2 + $0x13e8] sm:$0xff] }
 0x649   :  { %v2828_v53 = vpop.f32.mrf.mxu0  ;;  %3214 = vmatmul.mubr.f32.gmra.mxu1 %v2891_v51 }
 0x64a   :  { %v2894_v54 = vmax.f32 %v2825_v50, 0.0  ;;  %v2829_v56 = vadd.f32 %v2828_v53, %v7124_v4  ;;  %v3722_v4 = vld [vmem:[#allocation2 + $0x12d0] sm:$0xff]  ;;  %v3756_v50 = vld [vmem:[#allocation2 + $0x13e0] sm:$0xff] }
 0x64b   :  { %v2830_v57 = vpop.f32.mrf.mxu0  ;;  %3778 = vmatpush1.msra.mxu1 %v3722_v4  ;;  %v3750_v4 = vld [vmem:[#allocation2 + $0x13b0] sm:$0xff] }
 0x64c   :  { %v2831_v58 = vadd.f32 %v2830_v57, %v7127_v5  ;;  %3219 = vmatprep.mubr.f32.mxu1 %v2894_v54  ;;  %v2895_v62 = vmax.f32 %v2829_v56, 0.0  ;;  %3779 = vmatprep.subr.mxu1 %v3721_v2  ;;  %v3720_v5 = vld [vmem:[#allocation2 + $0x12c0] sm:$0xff]  ;;  %v3755_v54 = vld [vmem:[#allocation2 + $0x13d8] sm:$0xff]  ;;  %v3754_v56 = vld [vmem:[#allocation2 + $0x13d0] sm:$0xff] }
 0x64d   :  { %3220 = vmatmul.mubr.f32.gmra.mxu1 %v2893_v55 }
 0x64e   :  { %v2896_v59 = vmax.f32 %v2831_v58, 0.0  ;;  %3780 = vmatpush1.msra.mxu1 %v3720_v5  ;;  %v3753_v58 = vld [vmem:[#allocation2 + $0x13c8] sm:$0xff] }
 0x64f   :  { %3781 = vmatprep.subr.mxu1 %v3719_v3  ;;  %v3749_v5 = vld [vmem:[#allocation2 + $0x13a8] sm:$0xff] }
 0x650   :  { %3225 = vmatprep.mubr.f32.mxu1 %v2896_v59  ;;  %3782 = vmatpush1.msra.mxu1 %v3718_v6 }
 0x651   :  { %3226 = vmatmul.mubr.f32.gmra.mxu1 %v2895_v62  ;;  %3783 = vmatprep.subr.mxu1 %v3717_v7 }
 0x652   :  { %3784 = vmatpush1.msra.mxu1 %v3716_v8  ;;  %v3748_v8 = vld [vmem:[#allocation2 + $0x13a0] sm:$0xff] }
 0x653   :  { %3785 = vmatprep.subr.mxu1 %v3715_v9 }
 0x654   :  { %3786 = vmatpush1.msra.mxu1 %v3714_v10  ;;  %v3747_v10 = vld [vmem:[#allocation2 + $0x1398] sm:$0xff] }
 0x655   :  { %3787 = vmatprep.subr.mxu1 %v3713_v11 }
 0x656   :  { %3788 = vmatpush1.msra.mxu1 %v3712_v12  ;;  %v3746_v12 = vld [vmem:[#allocation2 + $0x1390] sm:$0xff] }
 0x657   :  { %3789 = vmatprep.subr.mxu1 %v3711_v15 }
 0x658   :  { %3790 = vmatpush1.msra.mxu1 %v3710_v13  ;;  %v3745_v13 = vld [vmem:[#allocation2 + $0x1388] sm:$0xff] }
 0x659   :  { %3791 = vmatprep.subr.mxu1 %v3709_v16 }
 0x65a   :  { %3792 = vmatpush1.msra.mxu1 %v3708_v14 }
 0x65b   :  { %3793 = vmatprep.subr.mxu1 %v3707_v17 }
 0x65c   :  { %3794 = vmatpush1.msra.mxu1 %v3706_v19 }
 0x65d   :  { %3795 = vmatprep.subr.mxu1 %v3705_v20  ;;  %v3743_v20 = vld [vmem:[#allocation2 + $0x1378] sm:$0xff] }
 0x65e   :  { %3796 = vmatpush1.msra.mxu1 %v3704_v24 }
 0x65f   :  { %3797 = vmatprep.subr.mxu1 %v3703_v26 }
 0x660   :  { %3798 = vmatpush1.msra.mxu1 %v3702_v29  ;;  %v3741_v29 = vld [vmem:[#allocation2 + $0x1368] sm:$0xff] }
 0x661   :  { %3799 = vmatprep.subr.mxu1 %v3701_v34  ;;  %v3740_v34 = vld [vmem:[#allocation2 + $0x1360] sm:$0xff] }
 0x662   :  { %3800 = vmatpush1.msra.mxu1 %v3700_v35  ;;  %v3739_v35 = vld [vmem:[#allocation2 + $0x1358] sm:$0xff] }
 0x663   :  { %3801 = vmatprep.subr.mxu1 %v3699_v33 }
 0x664   :  { %3802 = vmatpush1.msra.mxu1 %v3698_v36  ;;  %v3738_v36 = vld [vmem:[#allocation2 + $0x1350] sm:$0xff] }
 0x665   :  { %3803 = vmatprep.subr.mxu1 %v3697_v38  ;;  %v3737_v38 = vld [vmem:[#allocation2 + $0x1348] sm:$0xff] }
 0x666   :  { %3804 = vmatpush1.msra.mxu1 %v3696_v42  ;;  %v3736_v42 = vld [vmem:[#allocation2 + $0x1340] sm:$0xff] }
 0x667   :  { %3805 = vmatprep.subr.mxu1 %v3759_v43  ;;  %v3735_v43 = vld [vmem:[#allocation2 + $0x1338] sm:$0xff] }
 0x668   :  { %3806 = vmatpush2.msra.mxu1 %v3758_v44  ;;  %v3734_v44 = vld [vmem:[#allocation2 + $0x1330] sm:$0xff] }
 0x669   :  { %3807 = vmatprep.subr.mxu1 %v3757_v48  ;;  %v3733_v48 = vld [vmem:[#allocation2 + $0x1328] sm:$0xff] }
 0x66a   :  { %3808 = vmatpush2.msra.mxu1 %v3756_v50  ;;  %v3732_v50 = vld [vmem:[#allocation2 + $0x1320] sm:$0xff] }
 0x66b   :  { %3809 = vmatprep.subr.mxu1 %v3755_v54  ;;  %v3731_v54 = vld [vmem:[#allocation2 + $0x1318] sm:$0xff] }
 0x66c   :  { %3810 = vmatpush2.msra.mxu1 %v3754_v56 }
 0x66d   :  { %3811 = vmatprep.subr.mxu1 %v3753_v58 }
 0x66e   :  { %3812 = vmatpush2.msra.mxu1 %v3752_v63 }
 0x66f   :  { %3813 = vmatprep.subr.mxu1 %v3751_v0 }
 0x670   :  { %3814 = vmatpush2.msra.mxu1 %v3750_v4 }
 0x671   :  { %3815 = vmatprep.subr.mxu1 %v3749_v5 }
 0x672   :  { %3816 = vmatpush2.msra.mxu1 %v3748_v8 }
 0x673   :  { %3817 = vmatprep.subr.mxu1 %v3747_v10 }
 0x674   :  { %3818 = vmatpush2.msra.mxu1 %v3746_v12 }
 0x675   :  { %3819 = vmatprep.subr.mxu1 %v3745_v13 }
 0x676   :  { %3820 = vmatpush2.msra.mxu1 %v3744_v18 }
 0x677   :  { %3821 = vmatprep.subr.mxu1 %v3743_v20 }
 0x695   :  { %v3041_v28 = vpop.f32.mrf.mxu1 }
 0x696   :  { %v3042_v27 = vadd.f32 %v3041_v28, %v7194_v21  ;;  %v3742_v28 = vld [vmem:[#allocation2 + $0x1370] sm:$0xff] }
 0x697   :  { %v3043_v30 = vpop.f32.mrf.mxu1  ;;  %3822 = vmatpush2.msra.mxu1 %v3742_v28 }
 0x698   :  { %v3044_v31 = vadd.f32 %v3043_v30, %v7197_v22  ;;  %v3232_v39 = vmax.f32 %v3042_v27, 0.0  ;;  %3823 = vmatprep.subr.mxu1 %v3741_v29 }
 0x699   :  { %v3047_v32 = vpop.f32.mrf.mxu1  ;;  %3824 = vmatpush2.msra.mxu1 %v3740_v34 }
 0x69a   :  { %v3233_v37 = vmax.f32 %v3044_v31, 0.0  ;;  %v3048_v40 = vadd.f32 %v3047_v32, %v7194_v21  ;;  %3825 = vmatprep.subr.mxu1 %v3739_v35 }
 0x69b   :  { %v3049_v41 = vpop.f32.mrf.mxu1  ;;  %3826 = vmatpush2.msra.mxu1 %v3738_v36 }
 0x69c   :  { %v3050_v45 = vadd.f32 %v3049_v41, %v7197_v22  ;;  %3438 = vmatprep.mubr.f32.mxu0 %v3233_v37  ;;  %v3234_v51 = vmax.f32 %v3048_v40, 0.0  ;;  %3827 = vmatprep.subr.mxu1 %v3737_v38 }
 0x69d   :  { %v3053_v46 = vpop.f32.mrf.mxu1  ;;  %3439 = vmatmul.mubr.f32.vlgmr.msra.gmra.mxu0 %v3232_v39  ;;  %3828 = vmatpush2.msra.mxu1 %v3736_v42 }
 0x69e   :  { %v3235_v47 = vmax.f32 %v3050_v45, 0.0  ;;  %v3054_v49 = vadd.f32 %v3053_v46, %v7194_v21  ;;  %3829 = vmatprep.subr.mxu1 %v3735_v43 }
 0x69f   :  { %v3055_v52 = vpop.f32.mrf.mxu1  ;;  %3830 = vmatpush2.msra.mxu1 %v3734_v44 }
 0x6a0   :  { %v3056_v53 = vadd.f32 %v3055_v52, %v7197_v22  ;;  %3444 = vmatprep.mubr.f32.mxu0 %v3235_v47  ;;  %v3236_v59 = vmax.f32 %v3054_v49, 0.0  ;;  %3831 = vmatprep.subr.mxu1 %v3733_v48 }
 0x6a1   :  { %v3059_v55 = vpop.f32.mrf.mxu1  ;;  %3445 = vmatmul.mubr.f32.gmra.mxu0 %v3234_v51  ;;  %3832 = vmatpush2.msra.mxu1 %v3732_v50 }
 0x6a2   :  { %v3237_v57 = vmax.f32 %v3056_v53, 0.0  ;;  %v3060_v62 = vadd.f32 %v3059_v55, %v7194_v21  ;;  %3833 = vmatprep.subr.mxu1 %v3731_v54 }
 0x6a3   :  { %v3061_v60 = vpop.f32.mrf.mxu1 }
 0x6a4   :  { %v3062_v61 = vadd.f32 %v3061_v60, %v7197_v22  ;;  %3450 = vmatprep.mubr.f32.mxu0 %v3237_v57  ;;  %v3238_v3 = vmax.f32 %v3060_v62, 0.0 }
 0x6a5   :  { %v3065_v1 = vpop.f32.mrf.mxu1  ;;  %3451 = vmatmul.mubr.f32.gmra.mxu0 %v3236_v59 }
 0x6a6   :  { %v3239_v2 = vmax.f32 %v3062_v61, 0.0  ;;  %v3066_v6 = vadd.f32 %v3065_v1, %v7194_v21 }
 0x6a7   :  { %v3067_v7 = vpop.f32.mrf.mxu1 }
 0x6a8   :  { %v3068_v9 = vadd.f32 %v3067_v7, %v7197_v22  ;;  %3456 = vmatprep.mubr.f32.mxu0 %v3239_v2  ;;  %v3240_v16 = vmax.f32 %v3066_v6, 0.0 }
 0x6a9   :  { %v3071_v11 = vpop.f32.mrf.mxu1  ;;  %3457 = vmatmul.mubr.f32.gmra.mxu0 %v3238_v3 }
 0x6aa   :  { %v3241_v15 = vmax.f32 %v3068_v9, 0.0  ;;  %v3072_v14 = vadd.f32 %v3071_v11, %v7194_v21 }
 0x6ab   :  { %v3073_v17 = vpop.f32.mrf.mxu1 }
 0x6ac   :  { %v3074_v19 = vadd.f32 %v3073_v17, %v7197_v22  ;;  %3462 = vmatprep.mubr.f32.mxu0 %v3241_v15  ;;  %v3242_v27 = vmax.f32 %v3072_v14, 0.0 }
 0x6ad   :  { %v3077_v24 = vpop.f32.mrf.mxu1  ;;  %3463 = vmatmul.mubr.f32.gmra.mxu0 %v3240_v16 }
 0x6ae   :  { %v3243_v26 = vmax.f32 %v3074_v19, 0.0  ;;  %v3078_v30 = vadd.f32 %v3077_v24, %v7194_v21 }
 0x6af   :  { %v3079_v31 = vpop.f32.mrf.mxu1 }
 0x6b0   :  { %v3080_v32 = vadd.f32 %v3079_v31, %v7197_v22  ;;  %3468 = vmatprep.mubr.f32.mxu0 %v3243_v26  ;;  %v3244_v39 = vmax.f32 %v3078_v30, 0.0 }
 0x6b1   :  { %v3083_v33 = vpop.f32.mrf.mxu1  ;;  %3469 = vmatmul.mubr.f32.gmra.mxu0 %v3242_v27 }
 0x6b2   :  { %v3245_v37 = vmax.f32 %v3080_v32, 0.0  ;;  %v3084_v40 = vadd.f32 %v3083_v33, %v7194_v21 }
 0x6b3   :  { %v3085_v41 = vpop.f32.mrf.mxu1 }
 0x6b4   :  { %v3086_v45 = vadd.f32 %v3085_v41, %v7197_v22  ;;  %3474 = vmatprep.mubr.f32.mxu0 %v3245_v37  ;;  %v3246_v51 = vmax.f32 %v3084_v40, 0.0 }
 0x6b5   :  { %v3089_v46 = vpop.f32.mrf.mxu1  ;;  %3475 = vmatmul.mubr.f32.gmra.mxu0 %v3244_v39 }
 0x6b6   :  { %v3247_v47 = vmax.f32 %v3086_v45, 0.0  ;;  %v3090_v49 = vadd.f32 %v3089_v46, %v7194_v21 }
 0x6b7   :  { %v3091_v52 = vpop.f32.mrf.mxu1 }
 0x6b8   :  { %v3092_v53 = vadd.f32 %v3091_v52, %v7197_v22  ;;  %3480 = vmatprep.mubr.f32.mxu0 %v3247_v47  ;;  %v3248_v57 = vmax.f32 %v3090_v49, 0.0 }
 0x6b9   :  { %v3095_v55 = vpop.f32.mrf.mxu1  ;;  %3481 = vmatmul.mubr.f32.gmra.mxu0 %v3246_v51 }
 0x6ba   :  { %v3249_v56 = vmax.f32 %v3092_v53, 0.0  ;;  %v3096_v58 = vadd.f32 %v3095_v55, %v7194_v21  ;;  %v3730_v55 = vld [vmem:[#allocation2 + $0x1310] sm:$0xff] }
 0x6bb   :  { %v3097_v59 = vpop.f32.mrf.mxu1  ;;  %3834 = vmatpush2.msra.mxu1 %v3730_v55 }
 0x6bc   :  { %v3098_v62 = vadd.f32 %v3097_v59, %v7197_v22  ;;  %3486 = vmatprep.mubr.f32.mxu0 %v3249_v56  ;;  %v3250_v61 = vmax.f32 %v3096_v58, 0.0  ;;  %v3729_v58 = vld [vmem:[#allocation2 + $0x1308] sm:$0xff] }
 0x6bd   :  { %v3101_v60 = vpop.f32.mrf.mxu1  ;;  %3487 = vmatmul.mubr.f32.gmra.mxu0 %v3248_v57  ;;  %3835 = vmatprep.subr.mxu1 %v3729_v58 }
 0x6be   :  { %v3251_v63 = vmax.f32 %v3098_v62, 0.0  ;;  %v3102_v0 = vadd.f32 %v3101_v60, %v7194_v21 }
 0x6bf   :  { %v3103_v1 = vpop.f32.mrf.mxu1 }
 0x6c0   :  { %v3104_v4 = vadd.f32 %v3103_v1, %v7197_v22  ;;  %3492 = vmatprep.mubr.f32.mxu0 %v3251_v63  ;;  %v3252_v3 = vmax.f32 %v3102_v0, 0.0  ;;  %v3728_v63 = vld [vmem:[#allocation2 + $0x1300] sm:$0xff] }
 0x6c1   :  { %v3107_v2 = vpop.f32.mrf.mxu1  ;;  %3493 = vmatmul.mubr.f32.gmra.mxu0 %v3250_v61  ;;  %3836 = vmatpush2.msra.mxu1 %v3728_v63 }
 0x6c2   :  { %v3253_v5 = vmax.f32 %v3104_v4, 0.0  ;;  %v3108_v6 = vadd.f32 %v3107_v2, %v7194_v21 }
 0x6c3   :  { %v3109_v7 = vpop.f32.mrf.mxu1 }
 0x6c4   :  { %v3110_v8 = vadd.f32 %v3109_v7, %v7197_v22  ;;  %3498 = vmatprep.mubr.f32.mxu0 %v3253_v5  ;;  %v3254_v11 = vmax.f32 %v3108_v6, 0.0 }
 0x6c5   :  { %v3113_v9 = vpop.f32.mrf.mxu1  ;;  %3499 = vmatmul.mubr.f32.gmra.mxu0 %v3252_v3 }
 0x6c6   :  { %v3255_v10 = vmax.f32 %v3110_v8, 0.0  ;;  %v3114_v12 = vadd.f32 %v3113_v9, %v7194_v21 }
 0x6c7   :  { %v3115_v15 = vpop.f32.mrf.mxu1 }
 0x6c8   :  { %v3116_v13 = vadd.f32 %v3115_v15, %v7197_v22  ;;  %3504 = vmatprep.mubr.f32.mxu0 %v3255_v10  ;;  %v3256_v17 = vmax.f32 %v3114_v12, 0.0 }
 0x6c9   :  { %v3119_v16 = vpop.f32.mrf.mxu1  ;;  %3505 = vmatmul.mubr.f32.gmra.mxu0 %v3254_v11 }
 0x6ca   :  { %v3257_v14 = vmax.f32 %v3116_v13, 0.0  ;;  %v3120_v18 = vadd.f32 %v3119_v16, %v7194_v21 }
 0x6cb   :  { %v3121_v19 = vpop.f32.mrf.mxu1 }
 0x6cc   :  { %v3122_v20 = vadd.f32 %v3121_v19, %v7197_v22  ;;  %3510 = vmatprep.mubr.f32.mxu0 %v3257_v14  ;;  %v3258_v26 = vmax.f32 %v3120_v18, 0.0 }
 0x6cd   :  { %v3125_v24 = vpop.f32.mrf.mxu1  ;;  %3511 = vmatmul.mubr.f32.gmra.mxu0 %v3256_v17 }
 0x6ce   :  { %v3259_v28 = vmax.f32 %v3122_v20, 0.0  ;;  %v3126_v29 = vadd.f32 %v3125_v24, %v7194_v21 }
 0x6cf   :  { %v3127_v27 = vpop.f32.mrf.mxu1 }
 0x6d0   :  { %v3128_v30 = vadd.f32 %v3127_v27, %v7197_v22  ;;  %3516 = vmatprep.mubr.f32.mxu0 %v3259_v28  ;;  %v3260_v32 = vmax.f32 %v3126_v29, 0.0 }
 0x6d1   :  { %v3131_v31 = vpop.f32.mrf.mxu1  ;;  %3517 = vmatmul.mubr.f32.gmra.mxu0 %v3258_v26 }
 0x6d2   :  { %v3261_v34 = vmax.f32 %v3128_v30, 0.0  ;;  %v3132_v35 = vadd.f32 %v3131_v31, %v7194_v21 }
 0x6d3   :  { %v3133_v33 = vpop.f32.mrf.mxu1 }
 0x6d4   :  { %v3134_v36 = vadd.f32 %v3133_v33, %v7197_v22  ;;  %3522 = vmatprep.mubr.f32.mxu0 %v3261_v34  ;;  %v3262_v39 = vmax.f32 %v3132_v35, 0.0 }
 0x6d5   :  { %v3137_v37 = vpop.f32.mrf.mxu1  ;;  %3523 = vmatmul.mubr.f32.gmra.mxu0 %v3260_v32 }
 0x6d6   :  { %v3263_v38 = vmax.f32 %v3134_v36, 0.0  ;;  %v3138_v40 = vadd.f32 %v3137_v37, %v7194_v21 }
 0x6d7   :  { %v3139_v41 = vpop.f32.mrf.mxu1 }
 0x6d8   :  { %v3140_v42 = vadd.f32 %v3139_v41, %v7197_v22  ;;  %3528 = vmatprep.mubr.f32.mxu0 %v3263_v38  ;;  %v3264_v46 = vmax.f32 %v3138_v40, 0.0 }
 0x6d9   :  { %v3143_v45 = vpop.f32.mrf.mxu1  ;;  %3529 = vmatmul.mubr.f32.gmra.mxu0 %v3262_v39 }
 0x6da   :  { %v3265_v43 = vmax.f32 %v3140_v42, 0.0  ;;  %v3144_v44 = vadd.f32 %v3143_v45, %v7194_v21 }
 0x6db   :  { %v3145_v47 = vpop.f32.mrf.mxu1 }
 0x6dc   :  { %v3146_v48 = vadd.f32 %v3145_v47, %v7197_v22  ;;  %3534 = vmatprep.mubr.f32.mxu0 %v3265_v43  ;;  %v3266_v52 = vmax.f32 %v3144_v44, 0.0 }
 0x6dd   :  { %v3149_v51 = vpop.f32.mrf.mxu1  ;;  %3535 = vmatmul.mubr.f32.gmra.mxu0 %v3264_v46 }
 0x6de   :  { %v3267_v49 = vmax.f32 %v3146_v48, 0.0  ;;  %v3150_v50 = vadd.f32 %v3149_v51, %v7194_v21 }
 0x6df   :  { %v3151_v53 = vpop.f32.mrf.mxu1 }
 0x6e0   :  { %v3152_v54 = vadd.f32 %v3151_v53, %v7197_v22  ;;  %3540 = vmatprep.mubr.f32.mxu0 %v3267_v49  ;;  %v3268_v59 = vmax.f32 %v3150_v50, 0.0 }
 0x6e1   :  { %v3155_v56 = vpop.f32.mrf.mxu1  ;;  %3541 = vmatmul.mubr.f32.gmra.mxu0 %v3266_v52 }
 0x6e2   :  { %v3269_v57 = vmax.f32 %v3152_v54, 0.0  ;;  %v3156_v62 = vadd.f32 %v3155_v56, %v7194_v21 }
 0x6e3   :  { %v3157_v60 = vpop.f32.mrf.mxu1 }
 0x6e4   :  { %v3158_v61 = vadd.f32 %v3157_v60, %v7197_v22  ;;  %3546 = vmatprep.mubr.f32.mxu0 %v3269_v57  ;;  %v3270_v4 = vmax.f32 %v3156_v62, 0.0 }
 0x6e5   :  { %v3161_v0 = vpop.f32.mrf.mxu1  ;;  %3547 = vmatmul.mubr.f32.gmra.mxu0 %v3268_v59 }
 0x6e6   :  { %v3271_v1 = vmax.f32 %v3158_v61, 0.0  ;;  %v3162_v2 = vadd.f32 %v3161_v0, %v7194_v21 }
 0x6e7   :  { %v3163_v5 = vpop.f32.mrf.mxu1 }
 0x6e8   :  { %v3164_v3 = vadd.f32 %v3163_v5, %v7197_v22  ;;  %3552 = vmatprep.mubr.f32.mxu0 %v3271_v1  ;;  %v3272_v8 = vmax.f32 %v3162_v2, 0.0 }
 0x6e9   :  { %v3167_v6 = vpop.f32.mrf.mxu1  ;;  %3553 = vmatmul.mubr.f32.gmra.mxu0 %v3270_v4 }
 0x6ea   :  { %v3273_v7 = vmax.f32 %v3164_v3, 0.0  ;;  %v3168_v9 = vadd.f32 %v3167_v6, %v7194_v21 }
 0x6eb   :  { %v3169_v10 = vpop.f32.mrf.mxu1 }
 0x6ec   :  { %v3170_v11 = vadd.f32 %v3169_v10, %v7197_v22  ;;  %3558 = vmatprep.mubr.f32.mxu0 %v3273_v7  ;;  %v3274_v13 = vmax.f32 %v3168_v9, 0.0 }
 0x6ed   :  { %v3173_v12 = vpop.f32.mrf.mxu1  ;;  %3559 = vmatmul.mubr.f32.gmra.mxu0 %v3272_v8 }
 0x6ee   :  { %v3275_v15 = vmax.f32 %v3170_v11, 0.0  ;;  %v3174_v16 = vadd.f32 %v3173_v12, %v7194_v21 }
 0x6ef   :  { %v3175_v14 = vpop.f32.mrf.mxu1 }
 0x6f0   :  { %v3176_v17 = vadd.f32 %v3175_v14, %v7197_v22  ;;  %3564 = vmatprep.mubr.f32.mxu0 %v3275_v15  ;;  %v3276_v20 = vmax.f32 %v3174_v16, 0.0  ;;  %v4125_v16 = vld [vmem:[#allocation2 + $0x14f0] sm:$0xff]  ;;  %v4124_v14 = vld [vmem:[#allocation2 + $0x14e8] sm:$0xff] }
 0x6f1   :  { %v3179_v18 = vpop.f32.mrf.mxu1  ;;  %3565 = vmatmul.mubr.f32.gmra.mxu0 %v3274_v13  ;;  %v4126_v13 = vld [vmem:[#allocation2 + $0x14f8] sm:$0xff] }
 0x6f2   :  { %v3277_v19 = vmax.f32 %v3176_v17, 0.0  ;;  %v3180_v24 = vadd.f32 %v3179_v18, %v7194_v21  ;;  %4172 = vmatprep.subr.mxu0 %v4126_v13  ;;  %v4123_v17 = vld [vmem:[#allocation2 + $0x14e0] sm:$0xff]  ;;  %v4122_v18 = vld [vmem:[#allocation2 + $0x14d8] sm:$0xff] }
 0x6f3   :  { %v3181_v28 = vpop.f32.mrf.mxu1  ;;  %4173 = vmatpush1.msra.mxu0 %v4125_v16  ;;  %v4151_v16 = vld [vmem:[#allocation2 + $0x15c0] sm:$0xff] }
 0x6f4   :  { %v3182_v26 = vadd.f32 %v3181_v28, %v7197_v22  ;;  %3570 = vmatprep.mubr.f32.mxu0 %v3277_v19  ;;  %v3278_v30 = vmax.f32 %v3180_v24, 0.0  ;;  %4174 = vmatprep.subr.mxu0 %v4124_v14  ;;  %v4120_v19 = vld [vmem:[#allocation2 + $0x14c8] sm:$0xff]  ;;  %v4117_v24 = vld [vmem:[#allocation2 + $0x14b0] sm:$0xff] }
 0x6f5   :  { %v3185_v29 = vpop.f32.mrf.mxu1  ;;  %3571 = vmatmul.mubr.f32.gmra.mxu0 %v3276_v20  ;;  %v4118_v20 = vld [vmem:[#allocation2 + $0x14b8] sm:$0xff]  ;;  %v4116_v28 = vld [vmem:[#allocation2 + $0x14a8] sm:$0xff] }
 0x6f6   :  { %v3279_v27 = vmax.f32 %v3182_v26, 0.0  ;;  %v3186_v31 = vadd.f32 %v3185_v29, %v7194_v21  ;;  %4175 = vmatpush1.msra.mxu0 %v4123_v17  ;;  %v4115_v26 = vld [vmem:[#allocation2 + $0x14a0] sm:$0xff]  ;;  %v4114_v29 = vld [vmem:[#allocation2 + $0x1498] sm:$0xff] }
 0x6f7   :  { %v3187_v34 = vpop.f32.mrf.mxu1  ;;  %4176 = vmatprep.subr.mxu0 %v4122_v18  ;;  %v4150_v17 = vld [vmem:[#allocation2 + $0x15b8] sm:$0xff] }
 0x6f8   :  { %v3188_v32 = vadd.f32 %v3187_v34, %v7197_v22  ;;  %3576 = vmatprep.mubr.f32.mxu0 %v3279_v27  ;;  %v3280_v36 = vmax.f32 %v3186_v31, 0.0  ;;  %v4113_v27 = vld [vmem:[#allocation2 + $0x1490] sm:$0xff]  ;;  %v4111_v31 = vld [vmem:[#allocation2 + $0x1480] sm:$0xff]  ;;  %v4110_v34 = vld [vmem:[#allocation2 + $0x1478] sm:$0xff] }
 0x6f9   :  { %v3191_v35 = vpop.f32.mrf.mxu1  ;;  %3577 = vmatmul.mubr.f32.gmra.mxu0 %v3278_v30  ;;  %v4112_v30 = vld [vmem:[#allocation2 + $0x1488] sm:$0xff] }
 0x6fa   :  { %v3281_v33 = vmax.f32 %v3188_v32, 0.0  ;;  %v3192_v37 = vadd.f32 %v3191_v35, %v7194_v21  ;;  %v4109_v32 = vld [vmem:[#allocation2 + $0x1470] sm:$0xff]  ;;  %v4108_v35 = vld [vmem:[#allocation2 + $0x1468] sm:$0xff] }
 0x6fb   :  { %v3193_v38 = vpop.f32.mrf.mxu1 }
 0x6fc   :  { %v3194_v39 = vadd.f32 %v3193_v38, %v7197_v22  ;;  %3582 = vmatprep.mubr.f32.mxu0 %v3281_v33  ;;  %v3282_v42 = vmax.f32 %v3192_v37, 0.0  ;;  %v4107_v33 = vld [vmem:[#allocation2 + $0x1460] sm:$0xff]  ;;  %v3362_v37 = vld [vmem:[#allocation4 + $0x10] sm:$0x3] }
 0x6fd   :  { %v3197_v40 = vpop.f32.mrf.mxu1  ;;  %3583 = vmatmul.mubr.f32.gmra.mxu0 %v3280_v36  ;;  %v4106_v36 = vld [vmem:[#allocation2 + $0x1458] sm:$0xff]  ;;  %v4105_v38 = vld [vmem:[#allocation2 + $0x1450] sm:$0xff] }
 0x6fe   :  { %v3283_v41 = vmax.f32 %v3194_v39, 0.0  ;;  %v3198_v45 = vadd.f32 %v3197_v40, %v7194_v21  ;;  %v4104_v39 = vld [vmem:[#allocation2 + $0x1448] sm:$0xff]  ;;  %v7264_v40 = vrot.slane %v3362_v37, %v6699_v23 }
 0x6ff   :  { %v3199_v43 = vpop.f32.mrf.mxu1 }
 0x700   :  { %v3200_v46 = vadd.f32 %v3199_v43, %v7197_v22  ;;  %3588 = vmatprep.mubr.f32.mxu0 %v3283_v41  ;;  %v3284_v48 = vmax.f32 %v3198_v45, 0.0  ;;  %v7267_v41 = vrot.slane %v3362_v37, %v6701_v25  ;;  %v4102_v43 = vld [vmem:[#allocation2 + $0x1438] sm:$0xff]  ;;  %v4143_v37 = vld [vmem:[#allocation2 + $0x1580] sm:$0xff] }
 0x701   :  { %v3203_v44 = vpop.f32.mrf.mxu1  ;;  %3589 = vmatmul.mubr.f32.gmra.mxu0 %v3282_v42  ;;  %v4103_v42 = vld [vmem:[#allocation2 + $0x1440] sm:$0xff] }
 0x702   :  { %v3285_v47 = vmax.f32 %v3200_v46, 0.0  ;;  %v3204_v51 = vadd.f32 %v3203_v44, %v7194_v21  ;;  %v4101_v46 = vld [vmem:[#allocation2 + $0x1430] sm:$0xff] }
 0x703   :  { %v3205_v49 = vpop.f32.mrf.mxu1 }
 0x704   :  { %v3206_v52 = vadd.f32 %v3205_v49, %v7197_v22  ;;  %3594 = vmatprep.mubr.f32.mxu0 %v3285_v47  ;;  %v3286_v54 = vmax.f32 %v3204_v51, 0.0  ;;  %v4100_v51 = vld [vmem:[#allocation2 + $0x1428] sm:$0xff] }
 0x705   :  { %v3209_v50 = vpop.f32.mrf.mxu1  ;;  %3595 = vmatmul.mubr.f32.gmra.mxu0 %v3284_v48 }
 0x706   :  { %v3287_v53 = vmax.f32 %v3206_v52, 0.0  ;;  %v3210_v55 = vadd.f32 %v3209_v50, %v7194_v21  ;;  %v4099_v52 = vld [vmem:[#allocation2 + $0x1420] sm:$0xff]  ;;  %v4098_v50 = vld [vmem:[#allocation2 + $0x1418] sm:$0xff] }
 0x707   :  { %v3211_v56 = vpop.f32.mrf.mxu1 }
 0x708   :  { %v3212_v57 = vadd.f32 %v3211_v56, %v7197_v22  ;;  %3600 = vmatprep.mubr.f32.mxu0 %v3287_v53  ;;  %v3288_v62 = vmax.f32 %v3210_v55, 0.0  ;;  %v4097_v53 = vld [vmem:[#allocation2 + $0x1410] sm:$0xff]  ;;  %v4096_v55 = vld [vmem:[#allocation2 + $0x1408] sm:$0xff] }
 0x709   :  { %v3215_v58 = vpop.f32.mrf.mxu1  ;;  %3601 = vmatmul.mubr.f32.gmra.mxu0 %v3286_v54 }
 0x70a   :  { %v3289_v59 = vmax.f32 %v3212_v57, 0.0  ;;  %v3216_v60 = vadd.f32 %v3215_v58, %v7194_v21 }
 0x70b   :  { %v3217_v63 = vpop.f32.mrf.mxu1 }
 0x70c   :  { %v3218_v61 = vadd.f32 %v3217_v63, %v7197_v22  ;;  %3606 = vmatprep.mubr.f32.mxu0 %v3289_v59  ;;  %v3290_v4 = vmax.f32 %v3216_v60, 0.0  ;;  %v4095_v59 = vld [vmem:[#allocation2 + $0x1400] sm:$0xff]  ;;  %v4158_v60 = vld [vmem:[#allocation2 + $0x15f8] sm:$0xff] }
 0x70d   :  { %v3221_v0 = vpop.f32.mrf.mxu1  ;;  %3607 = vmatmul.mubr.f32.gmra.mxu0 %v3288_v62 }
 0x70e   :  { %v3291_v1 = vmax.f32 %v3218_v61, 0.0  ;;  %v3222_v2 = vadd.f32 %v3221_v0, %v7194_v21  ;;  %v4157_v61 = vld [vmem:[#allocation2 + $0x15f0] sm:$0xff] }
 0x70f   :  { %v3223_v5 = vpop.f32.mrf.mxu1 }
 0x710   :  { %v3224_v3 = vadd.f32 %v3223_v5, %v7197_v22  ;;  %3612 = vmatprep.mubr.f32.mxu0 %v3291_v1  ;;  %v3292_v8 = vmax.f32 %v3222_v2, 0.0  ;;  %v4156_v1 = vld [vmem:[#allocation2 + $0x15e8] sm:$0xff] }
 0x711   :  { %v3227_v6 = vpop.f32.mrf.mxu1  ;;  %3613 = vmatmul.mubr.f32.gmra.mxu0 %v3290_v4 }
 0x712   :  { %v3293_v7 = vmax.f32 %v3224_v3, 0.0  ;;  %v3228_v9 = vadd.f32 %v3227_v6, %v7194_v21  ;;  %v4121_v21 = vld [vmem:[#allocation2 + $0x14d0] sm:$0xff]  ;;  %v4155_v3 = vld [vmem:[#allocation2 + $0x15e0] sm:$0xff] }
 0x713   :  { %v3229_v10 = vpop.f32.mrf.mxu1  ;;  %4177 = vmatpush1.msra.mxu0 %v4121_v21  ;;  %v4149_v21 = vld [vmem:[#allocation2 + $0x15b0] sm:$0xff] }
 0x714   :  { %v3230_v11 = vadd.f32 %v3229_v10, %v7197_v22  ;;  %3618 = vmatprep.mubr.f32.mxu0 %v3293_v7  ;;  %v3294_v15 = vmax.f32 %v3228_v9, 0.0  ;;  %4178 = vmatprep.subr.mxu0 %v4120_v19  ;;  %v4119_v22 = vld [vmem:[#allocation2 + $0x14c0] sm:$0xff]  ;;  %v4154_v7 = vld [vmem:[#allocation2 + $0x15d8] sm:$0xff]  ;;  %v4153_v9 = vld [vmem:[#allocation2 + $0x15d0] sm:$0xff] }
 0x715   :  { %3619 = vmatmul.mubr.f32.gmra.mxu0 %v3292_v8 }
 0x716   :  { %v3295_v12 = vmax.f32 %v3230_v11, 0.0  ;;  %4179 = vmatpush1.msra.mxu0 %v4119_v22  ;;  %v4152_v11 = vld [vmem:[#allocation2 + $0x15c8] sm:$0xff] }
 0x717   :  { %4180 = vmatprep.subr.mxu0 %v4118_v20  ;;  %v4148_v22 = vld [vmem:[#allocation2 + $0x15a8] sm:$0xff] }
 0x718   :  { %3624 = vmatprep.mubr.f32.mxu0 %v3295_v12  ;;  %4181 = vmatpush1.msra.mxu0 %v4117_v24 }
 0x719   :  { %3625 = vmatmul.mubr.f32.gmra.mxu0 %v3294_v15  ;;  %4182 = vmatprep.subr.mxu0 %v4116_v28 }
 0x71a   :  { %4183 = vmatpush1.msra.mxu0 %v4115_v26  ;;  %v4147_v26 = vld [vmem:[#allocation2 + $0x15a0] sm:$0xff] }
 0x71b   :  { %4184 = vmatprep.subr.mxu0 %v4114_v29 }
 0x71c   :  { %4185 = vmatpush1.msra.mxu0 %v4113_v27  ;;  %v4146_v27 = vld [vmem:[#allocation2 + $0x1598] sm:$0xff] }
 0x71d   :  { %4186 = vmatprep.subr.mxu0 %v4112_v30 }
 0x71e   :  { %4187 = vmatpush1.msra.mxu0 %v4111_v31  ;;  %v4145_v31 = vld [vmem:[#allocation2 + $0x1590] sm:$0xff] }
 0x71f   :  { %4188 = vmatprep.subr.mxu0 %v4110_v34 }
 0x720   :  { %4189 = vmatpush1.msra.mxu0 %v4109_v32  ;;  %v4144_v32 = vld [vmem:[#allocation2 + $0x1588] sm:$0xff] }
 0x721   :  { %4190 = vmatprep.subr.mxu0 %v4108_v35 }
 0x722   :  { %4191 = vmatpush1.msra.mxu0 %v4107_v33 }
 0x723   :  { %4192 = vmatprep.subr.mxu0 %v4106_v36 }
 0x724   :  { %4193 = vmatpush1.msra.mxu0 %v4105_v38 }
 0x725   :  { %4194 = vmatprep.subr.mxu0 %v4104_v39  ;;  %v4142_v39 = vld [vmem:[#allocation2 + $0x1578] sm:$0xff] }
 0x726   :  { %4195 = vmatpush1.msra.mxu0 %v4103_v42 }
 0x727   :  { %4196 = vmatprep.subr.mxu0 %v4102_v43 }
 0x728   :  { %4197 = vmatpush1.msra.mxu0 %v4101_v46  ;;  %v4140_v46 = vld [vmem:[#allocation2 + $0x1568] sm:$0xff] }
 0x729   :  { %4198 = vmatprep.subr.mxu0 %v4100_v51  ;;  %v4139_v51 = vld [vmem:[#allocation2 + $0x1560] sm:$0xff] }
 0x72a   :  { %4199 = vmatpush1.msra.mxu0 %v4099_v52  ;;  %v4138_v52 = vld [vmem:[#allocation2 + $0x1558] sm:$0xff] }
 0x72b   :  { %4200 = vmatprep.subr.mxu0 %v4098_v50 }
 0x72c   :  { %4201 = vmatpush1.msra.mxu0 %v4097_v53  ;;  %v4137_v53 = vld [vmem:[#allocation2 + $0x1550] sm:$0xff] }
 0x72d   :  { %4202 = vmatprep.subr.mxu0 %v4096_v55  ;;  %v4136_v55 = vld [vmem:[#allocation2 + $0x1548] sm:$0xff] }
 0x72e   :  { %4203 = vmatpush1.msra.mxu0 %v4095_v59  ;;  %v4135_v59 = vld [vmem:[#allocation2 + $0x1540] sm:$0xff] }
 0x72f   :  { %4204 = vmatprep.subr.mxu0 %v4158_v60  ;;  %v4134_v60 = vld [vmem:[#allocation2 + $0x1538] sm:$0xff] }
 0x730   :  { %4205 = vmatpush2.msra.mxu0 %v4157_v61  ;;  %v4133_v61 = vld [vmem:[#allocation2 + $0x1530] sm:$0xff] }
 0x731   :  { %4206 = vmatprep.subr.mxu0 %v4156_v1  ;;  %v4132_v1 = vld [vmem:[#allocation2 + $0x1528] sm:$0xff] }
 0x732   :  { %4207 = vmatpush2.msra.mxu0 %v4155_v3  ;;  %v4131_v3 = vld [vmem:[#allocation2 + $0x1520] sm:$0xff] }
 0x733   :  { %4208 = vmatprep.subr.mxu0 %v4154_v7  ;;  %v4130_v7 = vld [vmem:[#allocation2 + $0x1518] sm:$0xff] }
 0x734   :  { %4209 = vmatpush2.msra.mxu0 %v4153_v9 }
 0x735   :  { %4210 = vmatprep.subr.mxu0 %v4152_v11 }
 0x736   :  { %4211 = vmatpush2.msra.mxu0 %v4151_v16 }
 0x737   :  { %4212 = vmatprep.subr.mxu0 %v4150_v17 }
 0x738   :  { %4213 = vmatpush2.msra.mxu0 %v4149_v21 }
 0x739   :  { %4214 = vmatprep.subr.mxu0 %v4148_v22 }
 0x73a   :  { %4215 = vmatpush2.msra.mxu0 %v4147_v26 }
 0x73b   :  { %4216 = vmatprep.subr.mxu0 %v4146_v27 }
 0x73c   :  { %4217 = vmatpush2.msra.mxu0 %v4145_v31 }
 0x73d   :  { %4218 = vmatprep.subr.mxu0 %v4144_v32 }
 0x73e   :  { %4219 = vmatpush2.msra.mxu0 %v4143_v37 }
 0x73f   :  { %4220 = vmatprep.subr.mxu0 %v4142_v39 }
 0x75d   :  { %v3440_v45 = vpop.f32.mrf.mxu0 }
 0x75e   :  { %v3441_v44 = vadd.f32 %v3440_v45, %v7264_v40  ;;  %v4141_v45 = vld [vmem:[#allocation2 + $0x1570] sm:$0xff] }
 0x75f   :  { %v3442_v47 = vpop.f32.mrf.mxu0  ;;  %4221 = vmatpush2.msra.mxu0 %v4141_v45 }
 0x760   :  { %v3443_v48 = vadd.f32 %v3442_v47, %v7267_v41  ;;  %v3631_v56 = vmax.f32 %v3441_v44, 0.0  ;;  %4222 = vmatprep.subr.mxu0 %v4140_v46 }
 0x761   :  { %v3446_v49 = vpop.f32.mrf.mxu0  ;;  %4223 = vmatpush2.msra.mxu0 %v4139_v51 }
 0x762   :  { %v3632_v54 = vmax.f32 %v3443_v48, 0.0  ;;  %v3447_v57 = vadd.f32 %v3446_v49, %v7264_v40  ;;  %4224 = vmatprep.subr.mxu0 %v4138_v52 }
 0x763   :  { %v3448_v58 = vpop.f32.mrf.mxu0  ;;  %4225 = vmatpush2.msra.mxu0 %v4137_v53 }
 0x764   :  { %v3449_v62 = vadd.f32 %v3448_v58, %v7267_v41  ;;  %3837 = vmatprep.mubr.f32.mxu1 %v3632_v54  ;;  %v3633_v4 = vmax.f32 %v3447_v57, 0.0  ;;  %4226 = vmatprep.subr.mxu0 %v4136_v55 }
 0x765   :  { %v3452_v63 = vpop.f32.mrf.mxu0  ;;  %3838 = vmatmul.mubr.f32.vlgmr.msra.gmra.mxu1 %v3631_v56  ;;  %4227 = vmatpush2.msra.mxu0 %v4135_v59 }
 0x766   :  { %v3634_v0 = vmax.f32 %v3449_v62, 0.0  ;;  %v3453_v2 = vadd.f32 %v3452_v63, %v7264_v40  ;;  %4228 = vmatprep.subr.mxu0 %v4134_v60 }
 0x767   :  { %v3454_v5 = vpop.f32.mrf.mxu0  ;;  %4229 = vmatpush2.msra.mxu0 %v4133_v61 }
 0x768   :  { %v3455_v6 = vadd.f32 %v3454_v5, %v7267_v41  ;;  %3843 = vmatprep.mubr.f32.mxu1 %v3634_v0  ;;  %v3635_v12 = vmax.f32 %v3453_v2, 0.0  ;;  %4230 = vmatprep.subr.mxu0 %v4132_v1 }
 0x769   :  { %v3458_v8 = vpop.f32.mrf.mxu0  ;;  %3844 = vmatmul.mubr.f32.gmra.mxu1 %v3633_v4  ;;  %4231 = vmatpush2.msra.mxu0 %v4131_v3 }
 0x76a   :  { %v3636_v10 = vmax.f32 %v3455_v6, 0.0  ;;  %v3459_v15 = vadd.f32 %v3458_v8, %v7264_v40  ;;  %4232 = vmatprep.subr.mxu0 %v4130_v7 }
 0x76b   :  { %v3460_v13 = vpop.f32.mrf.mxu0 }
 0x76c   :  { %v3461_v14 = vadd.f32 %v3460_v13, %v7267_v41  ;;  %3849 = vmatprep.mubr.f32.mxu1 %v3636_v10  ;;  %v3637_v20 = vmax.f32 %v3459_v15, 0.0 }
 0x76d   :  { %v3464_v18 = vpop.f32.mrf.mxu0  ;;  %3850 = vmatmul.mubr.f32.gmra.mxu1 %v3635_v12 }
 0x76e   :  { %v3638_v19 = vmax.f32 %v3461_v14, 0.0  ;;  %v3465_v24 = vadd.f32 %v3464_v18, %v7264_v40 }
 0x76f   :  { %v3466_v28 = vpop.f32.mrf.mxu0 }
 0x770   :  { %v3467_v29 = vadd.f32 %v3466_v28, %v7267_v41  ;;  %3855 = vmatprep.mubr.f32.mxu1 %v3638_v19  ;;  %v3639_v35 = vmax.f32 %v3465_v24, 0.0 }
 0x771   :  { %v3470_v30 = vpop.f32.mrf.mxu0  ;;  %3856 = vmatmul.mubr.f32.gmra.mxu1 %v3637_v20 }
 0x772   :  { %v3640_v34 = vmax.f32 %v3467_v29, 0.0  ;;  %v3471_v33 = vadd.f32 %v3470_v30, %v7264_v40 }
 0x773   :  { %v3472_v36 = vpop.f32.mrf.mxu0 }
 0x774   :  { %v3473_v38 = vadd.f32 %v3472_v36, %v7267_v41  ;;  %3861 = vmatprep.mubr.f32.mxu1 %v3640_v34  ;;  %v3641_v44 = vmax.f32 %v3471_v33, 0.0 }
 0x775   :  { %v3476_v42 = vpop.f32.mrf.mxu0  ;;  %3862 = vmatmul.mubr.f32.gmra.mxu1 %v3639_v35 }
 0x776   :  { %v3642_v43 = vmax.f32 %v3473_v38, 0.0  ;;  %v3477_v47 = vadd.f32 %v3476_v42, %v7264_v40 }
 0x777   :  { %v3478_v48 = vpop.f32.mrf.mxu0 }
 0x778   :  { %v3479_v49 = vadd.f32 %v3478_v48, %v7267_v41  ;;  %3867 = vmatprep.mubr.f32.mxu1 %v3642_v43  ;;  %v3643_v56 = vmax.f32 %v3477_v47, 0.0 }
 0x779   :  { %v3482_v50 = vpop.f32.mrf.mxu0  ;;  %3868 = vmatmul.mubr.f32.gmra.mxu1 %v3641_v44 }
 0x77a   :  { %v3644_v54 = vmax.f32 %v3479_v49, 0.0  ;;  %v3483_v57 = vadd.f32 %v3482_v50, %v7264_v40 }
 0x77b   :  { %v3484_v58 = vpop.f32.mrf.mxu0 }
 0x77c   :  { %v3485_v62 = vadd.f32 %v3484_v58, %v7267_v41  ;;  %3873 = vmatprep.mubr.f32.mxu1 %v3644_v54  ;;  %v3645_v4 = vmax.f32 %v3483_v57, 0.0 }
 0x77d   :  { %v3488_v63 = vpop.f32.mrf.mxu0  ;;  %3874 = vmatmul.mubr.f32.gmra.mxu1 %v3643_v56 }
 0x77e   :  { %v3646_v0 = vmax.f32 %v3485_v62, 0.0  ;;  %v3489_v2 = vadd.f32 %v3488_v63, %v7264_v40 }
 0x77f   :  { %v3490_v5 = vpop.f32.mrf.mxu0 }
 0x780   :  { %v3491_v6 = vadd.f32 %v3490_v5, %v7267_v41  ;;  %3879 = vmatprep.mubr.f32.mxu1 %v3646_v0  ;;  %v3647_v10 = vmax.f32 %v3489_v2, 0.0 }
 0x781   :  { %v3494_v8 = vpop.f32.mrf.mxu0  ;;  %3880 = vmatmul.mubr.f32.gmra.mxu1 %v3645_v4 }
 0x782   :  { %v3648_v9 = vmax.f32 %v3491_v6, 0.0  ;;  %v3495_v11 = vadd.f32 %v3494_v8, %v7264_v40  ;;  %v4129_v8 = vld [vmem:[#allocation2 + $0x1510] sm:$0xff] }
 0x783   :  { %v3496_v12 = vpop.f32.mrf.mxu0  ;;  %4233 = vmatpush2.msra.mxu0 %v4129_v8 }
 0x784   :  { %v3497_v15 = vadd.f32 %v3496_v12, %v7267_v41  ;;  %3885 = vmatprep.mubr.f32.mxu1 %v3648_v9  ;;  %v3649_v14 = vmax.f32 %v3495_v11, 0.0  ;;  %v4128_v11 = vld [vmem:[#allocation2 + $0x1508] sm:$0xff] }
 0x785   :  { %v3500_v13 = vpop.f32.mrf.mxu0  ;;  %3886 = vmatmul.mubr.f32.gmra.mxu1 %v3647_v10  ;;  %4234 = vmatprep.subr.mxu0 %v4128_v11 }
 0x786   :  { %v3650_v16 = vmax.f32 %v3497_v15, 0.0  ;;  %v3501_v17 = vadd.f32 %v3500_v13, %v7264_v40 }
 0x787   :  { %v3502_v18 = vpop.f32.mrf.mxu0 }
 0x788   :  { %v3503_v21 = vadd.f32 %v3502_v18, %v7267_v41  ;;  %3891 = vmatprep.mubr.f32.mxu1 %v3650_v16  ;;  %v3651_v20 = vmax.f32 %v3501_v17, 0.0  ;;  %v4127_v16 = vld [vmem:[#allocation2 + $0x1500] sm:$0xff] }
 0x789   :  { %v3506_v19 = vpop.f32.mrf.mxu0  ;;  %3892 = vmatmul.mubr.f32.gmra.mxu1 %v3649_v14  ;;  %4235 = vmatpush2.msra.mxu0 %v4127_v16 }
 0x78a   :  { %v3652_v22 = vmax.f32 %v3503_v21, 0.0  ;;  %v3507_v24 = vadd.f32 %v3506_v19, %v7264_v40 }
 0x78b   :  { %v3508_v28 = vpop.f32.mrf.mxu0 }
 0x78c   :  { %v3509_v26 = vadd.f32 %v3508_v28, %v7267_v41  ;;  %3897 = vmatprep.mubr.f32.mxu1 %v3652_v22  ;;  %v3653_v30 = vmax.f32 %v3507_v24, 0.0 }
 0x78d   :  { %v3512_v29 = vpop.f32.mrf.mxu0  ;;  %3898 = vmatmul.mubr.f32.gmra.mxu1 %v3651_v20 }
 0x78e   :  { %v3654_v27 = vmax.f32 %v3509_v26, 0.0  ;;  %v3513_v31 = vadd.f32 %v3512_v29, %v7264_v40 }
 0x78f   :  { %v3514_v34 = vpop.f32.mrf.mxu0 }
 0x790   :  { %v3515_v32 = vadd.f32 %v3514_v34, %v7267_v41  ;;  %3903 = vmatprep.mubr.f32.mxu1 %v3654_v27  ;;  %v3655_v36 = vmax.f32 %v3513_v31, 0.0 }
 0x791   :  { %v3518_v35 = vpop.f32.mrf.mxu0  ;;  %3904 = vmatmul.mubr.f32.gmra.mxu1 %v3653_v30 }
 0x792   :  { %v3656_v33 = vmax.f32 %v3515_v32, 0.0  ;;  %v3519_v37 = vadd.f32 %v3518_v35, %v7264_v40 }
 0x793   :  { %v3520_v38 = vpop.f32.mrf.mxu0 }
 0x794   :  { %v3521_v39 = vadd.f32 %v3520_v38, %v7267_v41  ;;  %3909 = vmatprep.mubr.f32.mxu1 %v3656_v33  ;;  %v3657_v43 = vmax.f32 %v3519_v37, 0.0 }
 0x795   :  { %v3524_v42 = vpop.f32.mrf.mxu0  ;;  %3910 = vmatmul.mubr.f32.gmra.mxu1 %v3655_v36 }
 0x796   :  { %v3658_v45 = vmax.f32 %v3521_v39, 0.0  ;;  %v3525_v46 = vadd.f32 %v3524_v42, %v7264_v40 }
 0x797   :  { %v3526_v44 = vpop.f32.mrf.mxu0 }
 0x798   :  { %v3527_v47 = vadd.f32 %v3526_v44, %v7267_v41  ;;  %3915 = vmatprep.mubr.f32.mxu1 %v3658_v45  ;;  %v3659_v49 = vmax.f32 %v3525_v46, 0.0 }
 0x799   :  { %v3530_v48 = vpop.f32.mrf.mxu0  ;;  %3916 = vmatmul.mubr.f32.gmra.mxu1 %v3657_v43 }
 0x79a   :  { %v3660_v51 = vmax.f32 %v3527_v47, 0.0  ;;  %v3531_v52 = vadd.f32 %v3530_v48, %v7264_v40 }
 0x79b   :  { %v3532_v50 = vpop.f32.mrf.mxu0 }
 0x79c   :  { %v3533_v53 = vadd.f32 %v3532_v50, %v7267_v41  ;;  %3921 = vmatprep.mubr.f32.mxu1 %v3660_v51  ;;  %v3661_v56 = vmax.f32 %v3531_v52, 0.0 }
 0x79d   :  { %v3536_v54 = vpop.f32.mrf.mxu0  ;;  %3922 = vmatmul.mubr.f32.gmra.mxu1 %v3659_v49 }
 0x79e   :  { %v3662_v55 = vmax.f32 %v3533_v53, 0.0  ;;  %v3537_v57 = vadd.f32 %v3536_v54, %v7264_v40 }
 0x79f   :  { %v3538_v58 = vpop.f32.mrf.mxu0 }
 0x7a0   :  { %v3539_v59 = vadd.f32 %v3538_v58, %v7267_v41  ;;  %3927 = vmatprep.mubr.f32.mxu1 %v3662_v55  ;;  %v3663_v63 = vmax.f32 %v3537_v57, 0.0 }
 0x7a1   :  { %v3542_v62 = vpop.f32.mrf.mxu0  ;;  %3928 = vmatmul.mubr.f32.gmra.mxu1 %v3661_v56 }
 0x7a2   :  { %v3664_v60 = vmax.f32 %v3539_v59, 0.0  ;;  %v3543_v61 = vadd.f32 %v3542_v62, %v7264_v40 }
 0x7a3   :  { %v3544_v0 = vpop.f32.mrf.mxu0 }
 0x7a4   :  { %v3545_v1 = vadd.f32 %v3544_v0, %v7267_v41  ;;  %3933 = vmatprep.mubr.f32.mxu1 %v3664_v60  ;;  %v3665_v5 = vmax.f32 %v3543_v61, 0.0 }
 0x7a5   :  { %v3548_v4 = vpop.f32.mrf.mxu0  ;;  %3934 = vmatmul.mubr.f32.gmra.mxu1 %v3663_v63 }
 0x7a6   :  { %v3666_v2 = vmax.f32 %v3545_v1, 0.0  ;;  %v3549_v3 = vadd.f32 %v3548_v4, %v7264_v40 }
 0x7a7   :  { %v3550_v6 = vpop.f32.mrf.mxu0 }
 0x7a8   :  { %v3551_v7 = vadd.f32 %v3550_v6, %v7267_v41  ;;  %3939 = vmatprep.mubr.f32.mxu1 %v3666_v2  ;;  %v3667_v12 = vmax.f32 %v3549_v3, 0.0 }
 0x7a9   :  { %v3554_v9 = vpop.f32.mrf.mxu0  ;;  %3940 = vmatmul.mubr.f32.gmra.mxu1 %v3665_v5 }
 0x7aa   :  { %v3668_v10 = vmax.f32 %v3551_v7, 0.0  ;;  %v3555_v15 = vadd.f32 %v3554_v9, %v7264_v40 }
 0x7ab   :  { %v3556_v13 = vpop.f32.mrf.mxu0 }
 0x7ac   :  { %v3557_v14 = vadd.f32 %v3556_v13, %v7267_v41  ;;  %3945 = vmatprep.mubr.f32.mxu1 %v3668_v10  ;;  %v3669_v21 = vmax.f32 %v3555_v15, 0.0 }
 0x7ad   :  { %v3560_v17 = vpop.f32.mrf.mxu0  ;;  %3946 = vmatmul.mubr.f32.gmra.mxu1 %v3667_v12 }
 0x7ae   :  { %v3670_v18 = vmax.f32 %v3557_v14, 0.0  ;;  %v3561_v19 = vadd.f32 %v3560_v17, %v7264_v40 }
 0x7af   :  { %v3562_v22 = vpop.f32.mrf.mxu0 }
 0x7b0   :  { %v3563_v20 = vadd.f32 %v3562_v22, %v7267_v41  ;;  %3951 = vmatprep.mubr.f32.mxu1 %v3670_v18  ;;  %v3671_v26 = vmax.f32 %v3561_v19, 0.0 }
 0x7b1   :  { %v3566_v24 = vpop.f32.mrf.mxu0  ;;  %3952 = vmatmul.mubr.f32.gmra.mxu1 %v3669_v21 }
 0x7b2   :  { %v3672_v28 = vmax.f32 %v3563_v20, 0.0  ;;  %v3567_v29 = vadd.f32 %v3566_v24, %v7264_v40 }
 0x7b3   :  { %v3568_v27 = vpop.f32.mrf.mxu0 }
 0x7b4   :  { %v3569_v30 = vadd.f32 %v3568_v27, %v7267_v41  ;;  %3957 = vmatprep.mubr.f32.mxu1 %v3672_v28  ;;  %v3673_v32 = vmax.f32 %v3567_v29, 0.0 }
 0x7b5   :  { %v3572_v31 = vpop.f32.mrf.mxu0  ;;  %3958 = vmatmul.mubr.f32.gmra.mxu1 %v3671_v26 }
 0x7b6   :  { %v3674_v34 = vmax.f32 %v3569_v30, 0.0  ;;  %v3573_v35 = vadd.f32 %v3572_v31, %v7264_v40 }
 0x7b7   :  { %v3574_v33 = vpop.f32.mrf.mxu0 }
 0x7b8   :  { %v3575_v36 = vadd.f32 %v3574_v33, %v7267_v41  ;;  %3963 = vmatprep.mubr.f32.mxu1 %v3674_v34  ;;  %v3675_v39 = vmax.f32 %v3573_v35, 0.0  ;;  %v4524_v35 = vld [vmem:[#allocation2 + $0x16f0] sm:$0xff]  ;;  %v4523_v33 = vld [vmem:[#allocation2 + $0x16e8] sm:$0xff] }
 0x7b9   :  { %v3578_v37 = vpop.f32.mrf.mxu0  ;;  %3964 = vmatmul.mubr.f32.gmra.mxu1 %v3673_v32  ;;  %v4525_v32 = vld [vmem:[#allocation2 + $0x16f8] sm:$0xff] }
 0x7ba   :  { %v3676_v38 = vmax.f32 %v3575_v36, 0.0  ;;  %v3579_v42 = vadd.f32 %v3578_v37, %v7264_v40  ;;  %4571 = vmatprep.subr.mxu1 %v4525_v32  ;;  %v4522_v36 = vld [vmem:[#allocation2 + $0x16e0] sm:$0xff]  ;;  %v4521_v37 = vld [vmem:[#allocation2 + $0x16d8] sm:$0xff] }
 0x7bb   :  { %v3580_v45 = vpop.f32.mrf.mxu0  ;;  %4572 = vmatpush1.msra.mxu1 %v4524_v35  ;;  %v4550_v35 = vld [vmem:[#allocation2 + $0x17c0] sm:$0xff] }
 0x7bc   :  { %v3581_v43 = vadd.f32 %v3580_v45, %v7267_v41  ;;  %3969 = vmatprep.mubr.f32.mxu1 %v3676_v38  ;;  %v3677_v47 = vmax.f32 %v3579_v42, 0.0  ;;  %4573 = vmatprep.subr.mxu1 %v4523_v33  ;;  %v4519_v38 = vld [vmem:[#allocation2 + $0x16c8] sm:$0xff]  ;;  %v4516_v42 = vld [vmem:[#allocation2 + $0x16b0] sm:$0xff] }
 0x7bd   :  { %v3584_v46 = vpop.f32.mrf.mxu0  ;;  %3970 = vmatmul.mubr.f32.gmra.mxu1 %v3675_v39  ;;  %v4517_v39 = vld [vmem:[#allocation2 + $0x16b8] sm:$0xff]  ;;  %v4515_v45 = vld [vmem:[#allocation2 + $0x16a8] sm:$0xff] }
 0x7be   :  { %v3678_v44 = vmax.f32 %v3581_v43, 0.0  ;;  %v3585_v48 = vadd.f32 %v3584_v46, %v7264_v40  ;;  %4574 = vmatpush1.msra.mxu1 %v4522_v36  ;;  %v4514_v43 = vld [vmem:[#allocation2 + $0x16a0] sm:$0xff]  ;;  %v4513_v46 = vld [vmem:[#allocation2 + $0x1698] sm:$0xff] }
 0x7bf   :  { %v3586_v51 = vpop.f32.mrf.mxu0  ;;  %4575 = vmatprep.subr.mxu1 %v4521_v37  ;;  %v4549_v36 = vld [vmem:[#allocation2 + $0x17b8] sm:$0xff] }
 0x7c0   :  { %v3587_v49 = vadd.f32 %v3586_v51, %v7267_v41  ;;  %3975 = vmatprep.mubr.f32.mxu1 %v3678_v44  ;;  %v3679_v53 = vmax.f32 %v3585_v48, 0.0  ;;  %v4512_v44 = vld [vmem:[#allocation2 + $0x1690] sm:$0xff]  ;;  %v4510_v48 = vld [vmem:[#allocation2 + $0x1680] sm:$0xff]  ;;  %v4509_v51 = vld [vmem:[#allocation2 + $0x1678] sm:$0xff] }
 0x7c1   :  { %v3590_v52 = vpop.f32.mrf.mxu0  ;;  %3976 = vmatmul.mubr.f32.gmra.mxu1 %v3677_v47  ;;  %v4511_v47 = vld [vmem:[#allocation2 + $0x1688] sm:$0xff] }
 0x7c2   :  { %v3680_v50 = vmax.f32 %v3587_v49, 0.0  ;;  %v3591_v54 = vadd.f32 %v3590_v52, %v7264_v40  ;;  %v4508_v49 = vld [vmem:[#allocation2 + $0x1670] sm:$0xff]  ;;  %v4507_v52 = vld [vmem:[#allocation2 + $0x1668] sm:$0xff] }
 0x7c3   :  { %v3592_v55 = vpop.f32.mrf.mxu0 }
 0x7c4   :  { %v3593_v56 = vadd.f32 %v3592_v55, %v7267_v41  ;;  %3981 = vmatprep.mubr.f32.mxu1 %v3680_v50  ;;  %v3681_v59 = vmax.f32 %v3591_v54, 0.0  ;;  %v4506_v50 = vld [vmem:[#allocation2 + $0x1660] sm:$0xff]  ;;  %v3761_v54 = vld [vmem:[#allocation4 + $0x12] sm:$0x3] }
 0x7c5   :  { %v3596_v57 = vpop.f32.mrf.mxu0  ;;  %3982 = vmatmul.mubr.f32.gmra.mxu1 %v3679_v53  ;;  %v4505_v53 = vld [vmem:[#allocation2 + $0x1658] sm:$0xff]  ;;  %v4504_v55 = vld [vmem:[#allocation2 + $0x1650] sm:$0xff] }
 0x7c6   :  { %v3682_v58 = vmax.f32 %v3593_v56, 0.0  ;;  %v3597_v62 = vadd.f32 %v3596_v57, %v7264_v40  ;;  %v4503_v56 = vld [vmem:[#allocation2 + $0x1648] sm:$0xff]  ;;  %v7334_v57 = vrot.slane %v3761_v54, %v6699_v23 }
 0x7c7   :  { %v3598_v60 = vpop.f32.mrf.mxu0 }
 0x7c8   :  { %v3599_v63 = vadd.f32 %v3598_v60, %v7267_v41  ;;  %3987 = vmatprep.mubr.f32.mxu1 %v3682_v58  ;;  %v3683_v1 = vmax.f32 %v3597_v62, 0.0  ;;  %v7337_v58 = vrot.slane %v3761_v54, %v6701_v25  ;;  %v4501_v60 = vld [vmem:[#allocation2 + $0x1638] sm:$0xff]  ;;  %v4542_v54 = vld [vmem:[#allocation2 + $0x1780] sm:$0xff] }
 0x7c9   :  { %v3602_v61 = vpop.f32.mrf.mxu0  ;;  %3988 = vmatmul.mubr.f32.gmra.mxu1 %v3681_v59  ;;  %v4502_v59 = vld [vmem:[#allocation2 + $0x1640] sm:$0xff] }
 0x7ca   :  { %v3684_v0 = vmax.f32 %v3599_v63, 0.0  ;;  %v3603_v4 = vadd.f32 %v3602_v61, %v7264_v40  ;;  %v4500_v63 = vld [vmem:[#allocation2 + $0x1630] sm:$0xff] }
 0x7cb   :  { %v3604_v2 = vpop.f32.mrf.mxu0 }
 0x7cc   :  { %v3605_v5 = vadd.f32 %v3604_v2, %v7267_v41  ;;  %3993 = vmatprep.mubr.f32.mxu1 %v3684_v0  ;;  %v3685_v7 = vmax.f32 %v3603_v4, 0.0  ;;  %v4499_v4 = vld [vmem:[#allocation2 + $0x1628] sm:$0xff] }
 0x7cd   :  { %v3608_v3 = vpop.f32.mrf.mxu0  ;;  %3994 = vmatmul.mubr.f32.gmra.mxu1 %v3683_v1 }
 0x7ce   :  { %v3686_v6 = vmax.f32 %v3605_v5, 0.0  ;;  %v3609_v8 = vadd.f32 %v3608_v3, %v7264_v40  ;;  %v4498_v5 = vld [vmem:[#allocation2 + $0x1620] sm:$0xff]  ;;  %v4497_v3 = vld [vmem:[#allocation2 + $0x1618] sm:$0xff] }
 0x7cf   :  { %v3610_v9 = vpop.f32.mrf.mxu0 }
 0x7d0   :  { %v3611_v10 = vadd.f32 %v3610_v9, %v7267_v41  ;;  %3999 = vmatprep.mubr.f32.mxu1 %v3686_v6  ;;  %v3687_v15 = vmax.f32 %v3609_v8, 0.0  ;;  %v4496_v6 = vld [vmem:[#allocation2 + $0x1610] sm:$0xff]  ;;  %v4495_v8 = vld [vmem:[#allocation2 + $0x1608] sm:$0xff] }
 0x7d1   :  { %v3614_v11 = vpop.f32.mrf.mxu0  ;;  %4000 = vmatmul.mubr.f32.gmra.mxu1 %v3685_v7 }
 0x7d2   :  { %v3688_v12 = vmax.f32 %v3611_v10, 0.0  ;;  %v3615_v13 = vadd.f32 %v3614_v11, %v7264_v40 }
 0x7d3   :  { %v3616_v16 = vpop.f32.mrf.mxu0 }
 0x7d4   :  { %v3617_v14 = vadd.f32 %v3616_v16, %v7267_v41  ;;  %4005 = vmatprep.mubr.f32.mxu1 %v3688_v12  ;;  %v3689_v21 = vmax.f32 %v3615_v13, 0.0  ;;  %v4494_v12 = vld [vmem:[#allocation2 + $0x1600] sm:$0xff]  ;;  %v4557_v13 = vld [vmem:[#allocation2 + $0x17f8] sm:$0xff] }
 0x7d5   :  { %v3620_v17 = vpop.f32.mrf.mxu0  ;;  %4006 = vmatmul.mubr.f32.gmra.mxu1 %v3687_v15 }
 0x7d6   :  { %v3690_v18 = vmax.f32 %v3617_v14, 0.0  ;;  %v3621_v19 = vadd.f32 %v3620_v17, %v7264_v40  ;;  %v4556_v14 = vld [vmem:[#allocation2 + $0x17f0] sm:$0xff] }
 0x7d7   :  { %v3622_v22 = vpop.f32.mrf.mxu0 }
 0x7d8   :  { %v3623_v20 = vadd.f32 %v3622_v22, %v7267_v41  ;;  %4011 = vmatprep.mubr.f32.mxu1 %v3690_v18  ;;  %v3691_v26 = vmax.f32 %v3621_v19, 0.0  ;;  %v4555_v18 = vld [vmem:[#allocation2 + $0x17e8] sm:$0xff] }
 0x7d9   :  { %v3626_v24 = vpop.f32.mrf.mxu0  ;;  %4012 = vmatmul.mubr.f32.gmra.mxu1 %v3689_v21 }
 0x7da   :  { %v3692_v28 = vmax.f32 %v3623_v20, 0.0  ;;  %v3627_v29 = vadd.f32 %v3626_v24, %v7264_v40  ;;  %v4520_v40 = vld [vmem:[#allocation2 + $0x16d0] sm:$0xff]  ;;  %v4554_v20 = vld [vmem:[#allocation2 + $0x17e0] sm:$0xff] }
 0x7db   :  { %v3628_v27 = vpop.f32.mrf.mxu0  ;;  %4576 = vmatpush1.msra.mxu1 %v4520_v40  ;;  %v4548_v40 = vld [vmem:[#allocation2 + $0x17b0] sm:$0xff] }
 0x7dc   :  { %v3629_v30 = vadd.f32 %v3628_v27, %v7267_v41  ;;  %4017 = vmatprep.mubr.f32.mxu1 %v3692_v28  ;;  %v3693_v34 = vmax.f32 %v3627_v29, 0.0  ;;  %4577 = vmatprep.subr.mxu1 %v4519_v38  ;;  %v4518_v41 = vld [vmem:[#allocation2 + $0x16c0] sm:$0xff]  ;;  %v4553_v28 = vld [vmem:[#allocation2 + $0x17d8] sm:$0xff]  ;;  %v4552_v29 = vld [vmem:[#allocation2 + $0x17d0] sm:$0xff] }
 0x7dd   :  { %4018 = vmatmul.mubr.f32.gmra.mxu1 %v3691_v26 }
 0x7de   :  { %v3694_v31 = vmax.f32 %v3629_v30, 0.0  ;;  %4578 = vmatpush1.msra.mxu1 %v4518_v41  ;;  %v4551_v30 = vld [vmem:[#allocation2 + $0x17c8] sm:$0xff] }
 0x7df   :  { %4579 = vmatprep.subr.mxu1 %v4517_v39  ;;  %v4547_v41 = vld [vmem:[#allocation2 + $0x17a8] sm:$0xff] }
 0x7e0   :  { %4023 = vmatprep.mubr.f32.mxu1 %v3694_v31  ;;  %4580 = vmatpush1.msra.mxu1 %v4516_v42 }
 0x7e1   :  { %4024 = vmatmul.mubr.f32.gmra.mxu1 %v3693_v34  ;;  %4581 = vmatprep.subr.mxu1 %v4515_v45 }
 0x7e2   :  { %4582 = vmatpush1.msra.mxu1 %v4514_v43  ;;  %v4546_v43 = vld [vmem:[#allocation2 + $0x17a0] sm:$0xff] }
 0x7e3   :  { %4583 = vmatprep.subr.mxu1 %v4513_v46 }
 0x7e4   :  { %4584 = vmatpush1.msra.mxu1 %v4512_v44  ;;  %v4545_v44 = vld [vmem:[#allocation2 + $0x1798] sm:$0xff] }
 0x7e5   :  { %4585 = vmatprep.subr.mxu1 %v4511_v47 }
 0x7e6   :  { %4586 = vmatpush1.msra.mxu1 %v4510_v48  ;;  %v4544_v48 = vld [vmem:[#allocation2 + $0x1790] sm:$0xff] }
 0x7e7   :  { %4587 = vmatprep.subr.mxu1 %v4509_v51 }
 0x7e8   :  { %4588 = vmatpush1.msra.mxu1 %v4508_v49  ;;  %v4543_v49 = vld [vmem:[#allocation2 + $0x1788] sm:$0xff] }
 0x7e9   :  { %4589 = vmatprep.subr.mxu1 %v4507_v52 }
 0x7ea   :  { %4590 = vmatpush1.msra.mxu1 %v4506_v50 }
 0x7eb   :  { %4591 = vmatprep.subr.mxu1 %v4505_v53 }
 0x7ec   :  { %4592 = vmatpush1.msra.mxu1 %v4504_v55 }
 0x7ed   :  { %4593 = vmatprep.subr.mxu1 %v4503_v56  ;;  %v4541_v56 = vld [vmem:[#allocation2 + $0x1778] sm:$0xff] }
 0x7ee   :  { %4594 = vmatpush1.msra.mxu1 %v4502_v59 }
 0x7ef   :  { %4595 = vmatprep.subr.mxu1 %v4501_v60 }
 0x7f0   :  { %4596 = vmatpush1.msra.mxu1 %v4500_v63  ;;  %v4539_v63 = vld [vmem:[#allocation2 + $0x1768] sm:$0xff] }
 0x7f1   :  { %4597 = vmatprep.subr.mxu1 %v4499_v4  ;;  %v4538_v4 = vld [vmem:[#allocation2 + $0x1760] sm:$0xff] }
 0x7f2   :  { %4598 = vmatpush1.msra.mxu1 %v4498_v5  ;;  %v4537_v5 = vld [vmem:[#allocation2 + $0x1758] sm:$0xff] }
 0x7f3   :  { %4599 = vmatprep.subr.mxu1 %v4497_v3 }
 0x7f4   :  { %4600 = vmatpush1.msra.mxu1 %v4496_v6  ;;  %v4536_v6 = vld [vmem:[#allocation2 + $0x1750] sm:$0xff] }
 0x7f5   :  { %4601 = vmatprep.subr.mxu1 %v4495_v8  ;;  %v4535_v8 = vld [vmem:[#allocation2 + $0x1748] sm:$0xff] }
 0x7f6   :  { %4602 = vmatpush1.msra.mxu1 %v4494_v12  ;;  %v4534_v12 = vld [vmem:[#allocation2 + $0x1740] sm:$0xff] }
 0x7f7   :  { %4603 = vmatprep.subr.mxu1 %v4557_v13  ;;  %v4533_v13 = vld [vmem:[#allocation2 + $0x1738] sm:$0xff] }
 0x7f8   :  { %4604 = vmatpush2.msra.mxu1 %v4556_v14  ;;  %v4532_v14 = vld [vmem:[#allocation2 + $0x1730] sm:$0xff] }
 0x7f9   :  { %4605 = vmatprep.subr.mxu1 %v4555_v18  ;;  %v4531_v18 = vld [vmem:[#allocation2 + $0x1728] sm:$0xff] }
 0x7fa   :  { %4606 = vmatpush2.msra.mxu1 %v4554_v20  ;;  %v4530_v20 = vld [vmem:[#allocation2 + $0x1720] sm:$0xff] }
 0x7fb   :  { %4607 = vmatprep.subr.mxu1 %v4553_v28  ;;  %v4529_v28 = vld [vmem:[#allocation2 + $0x1718] sm:$0xff] }
 0x7fc   :  { %4608 = vmatpush2.msra.mxu1 %v4552_v29 }
 0x7fd   :  { %4609 = vmatprep.subr.mxu1 %v4551_v30 }
 0x7fe   :  { %4610 = vmatpush2.msra.mxu1 %v4550_v35 }
 0x7ff   :  { %4611 = vmatprep.subr.mxu1 %v4549_v36 }
 0x800   :  { %4612 = vmatpush2.msra.mxu1 %v4548_v40 }
 0x801   :  { %4613 = vmatprep.subr.mxu1 %v4547_v41 }
 0x802   :  { %4614 = vmatpush2.msra.mxu1 %v4546_v43 }
 0x803   :  { %4615 = vmatprep.subr.mxu1 %v4545_v44 }
 0x804   :  { %4616 = vmatpush2.msra.mxu1 %v4544_v48 }
 0x805   :  { %4617 = vmatprep.subr.mxu1 %v4543_v49 }
 0x806   :  { %4618 = vmatpush2.msra.mxu1 %v4542_v54 }
 0x807   :  { %4619 = vmatprep.subr.mxu1 %v4541_v56 }
 0x825   :  { %v3839_v62 = vpop.f32.mrf.mxu1 }
 0x826   :  { %v3840_v61 = vadd.f32 %v3839_v62, %v7334_v57  ;;  %v4540_v62 = vld [vmem:[#allocation2 + $0x1770] sm:$0xff] }
 0x827   :  { %v3841_v0 = vpop.f32.mrf.mxu1  ;;  %4620 = vmatpush2.msra.mxu1 %v4540_v62 }
 0x828   :  { %v3842_v1 = vadd.f32 %v3841_v0, %v7337_v58  ;;  %v4030_v9 = vmax.f32 %v3840_v61, 0.0  ;;  %4621 = vmatprep.subr.mxu1 %v4539_v63 }
 0x829   :  { %v3845_v2 = vpop.f32.mrf.mxu1  ;;  %4622 = vmatpush2.msra.mxu1 %v4538_v4 }
 0x82a   :  { %v4031_v7 = vmax.f32 %v3842_v1, 0.0  ;;  %v3846_v10 = vadd.f32 %v3845_v2, %v7334_v57  ;;  %4623 = vmatprep.subr.mxu1 %v4537_v5 }
 0x82b   :  { %v3847_v11 = vpop.f32.mrf.mxu1  ;;  %4624 = vmatpush2.msra.mxu1 %v4536_v6 }
 0x82c   :  { %v3848_v15 = vadd.f32 %v3847_v11, %v7337_v58  ;;  %4236 = vmatprep.mubr.f32.mxu0 %v4031_v7  ;;  %v4032_v21 = vmax.f32 %v3846_v10, 0.0  ;;  %4625 = vmatprep.subr.mxu1 %v4535_v8 }
 0x82d   :  { %v3851_v16 = vpop.f32.mrf.mxu1  ;;  %4237 = vmatmul.mubr.f32.vlgmr.msra.gmra.mxu0 %v4030_v9  ;;  %4626 = vmatpush2.msra.mxu1 %v4534_v12 }
 0x82e   :  { %v4033_v17 = vmax.f32 %v3848_v15, 0.0  ;;  %v3852_v19 = vadd.f32 %v3851_v16, %v7334_v57  ;;  %4627 = vmatprep.subr.mxu1 %v4533_v13 }
 0x82f   :  { %v3853_v22 = vpop.f32.mrf.mxu1  ;;  %4628 = vmatpush2.msra.mxu1 %v4532_v14 }
 0x830   :  { %v3854_v24 = vadd.f32 %v3853_v22, %v7337_v58  ;;  %4242 = vmatprep.mubr.f32.mxu0 %v4033_v17  ;;  %v4034_v31 = vmax.f32 %v3852_v19, 0.0  ;;  %4629 = vmatprep.subr.mxu1 %v4531_v18 }
 0x831   :  { %v3857_v26 = vpop.f32.mrf.mxu1  ;;  %4243 = vmatmul.mubr.f32.gmra.mxu0 %v4032_v21  ;;  %4630 = vmatpush2.msra.mxu1 %v4530_v20 }
 0x832   :  { %v4035_v27 = vmax.f32 %v3854_v24, 0.0  ;;  %v3858_v34 = vadd.f32 %v3857_v26, %v7334_v57  ;;  %4631 = vmatprep.subr.mxu1 %v4529_v28 }
 0x833   :  { %v3859_v32 = vpop.f32.mrf.mxu1 }
 0x834   :  { %v3860_v33 = vadd.f32 %v3859_v32, %v7337_v58  ;;  %4248 = vmatprep.mubr.f32.mxu0 %v4035_v27  ;;  %v4036_v39 = vmax.f32 %v3858_v34, 0.0 }
 0x835   :  { %v3863_v37 = vpop.f32.mrf.mxu1  ;;  %4249 = vmatmul.mubr.f32.gmra.mxu0 %v4034_v31 }
 0x836   :  { %v4037_v38 = vmax.f32 %v3860_v33, 0.0  ;;  %v3864_v42 = vadd.f32 %v3863_v37, %v7334_v57 }
 0x837   :  { %v3865_v45 = vpop.f32.mrf.mxu1 }
 0x838   :  { %v3866_v46 = vadd.f32 %v3865_v45, %v7337_v58  ;;  %4254 = vmatprep.mubr.f32.mxu0 %v4037_v38  ;;  %v4038_v52 = vmax.f32 %v3864_v42, 0.0 }
 0x839   :  { %v3869_v47 = vpop.f32.mrf.mxu1  ;;  %4255 = vmatmul.mubr.f32.gmra.mxu0 %v4036_v39 }
 0x83a   :  { %v4039_v51 = vmax.f32 %v3866_v46, 0.0  ;;  %v3870_v50 = vadd.f32 %v3869_v47, %v7334_v57 }
 0x83b   :  { %v3871_v53 = vpop.f32.mrf.mxu1 }
 0x83c   :  { %v3872_v55 = vadd.f32 %v3871_v53, %v7337_v58  ;;  %4260 = vmatprep.mubr.f32.mxu0 %v4039_v51  ;;  %v4040_v61 = vmax.f32 %v3870_v50, 0.0 }
 0x83d   :  { %v3875_v59 = vpop.f32.mrf.mxu1  ;;  %4261 = vmatmul.mubr.f32.gmra.mxu0 %v4038_v52 }
 0x83e   :  { %v4041_v60 = vmax.f32 %v3872_v55, 0.0  ;;  %v3876_v0 = vadd.f32 %v3875_v59, %v7334_v57 }
 0x83f   :  { %v3877_v1 = vpop.f32.mrf.mxu1 }
 0x840   :  { %v3878_v2 = vadd.f32 %v3877_v1, %v7337_v58  ;;  %4266 = vmatprep.mubr.f32.mxu0 %v4041_v60  ;;  %v4042_v9 = vmax.f32 %v3876_v0, 0.0 }
 0x841   :  { %v3881_v3 = vpop.f32.mrf.mxu1  ;;  %4267 = vmatmul.mubr.f32.gmra.mxu0 %v4040_v61 }
 0x842   :  { %v4043_v7 = vmax.f32 %v3878_v2, 0.0  ;;  %v3882_v10 = vadd.f32 %v3881_v3, %v7334_v57 }
 0x843   :  { %v3883_v11 = vpop.f32.mrf.mxu1 }
 0x844   :  { %v3884_v15 = vadd.f32 %v3883_v11, %v7337_v58  ;;  %4272 = vmatprep.mubr.f32.mxu0 %v4043_v7  ;;  %v4044_v21 = vmax.f32 %v3882_v10, 0.0 }
 0x845   :  { %v3887_v16 = vpop.f32.mrf.mxu1  ;;  %4273 = vmatmul.mubr.f32.gmra.mxu0 %v4042_v9 }
 0x846   :  { %v4045_v17 = vmax.f32 %v3884_v15, 0.0  ;;  %v3888_v19 = vadd.f32 %v3887_v16, %v7334_v57 }
 0x847   :  { %v3889_v22 = vpop.f32.mrf.mxu1 }
 0x848   :  { %v3890_v24 = vadd.f32 %v3889_v22, %v7337_v58  ;;  %4278 = vmatprep.mubr.f32.mxu0 %v4045_v17  ;;  %v4046_v27 = vmax.f32 %v3888_v19, 0.0 }
 0x849   :  { %v3893_v26 = vpop.f32.mrf.mxu1  ;;  %4279 = vmatmul.mubr.f32.gmra.mxu0 %v4044_v21 }
 0x84a   :  { %v4047_v29 = vmax.f32 %v3890_v24, 0.0  ;;  %v3894_v30 = vadd.f32 %v3893_v26, %v7334_v57  ;;  %v4528_v26 = vld [vmem:[#allocation2 + $0x1710] sm:$0xff] }
 0x84b   :  { %v3895_v31 = vpop.f32.mrf.mxu1  ;;  %4632 = vmatpush2.msra.mxu1 %v4528_v26 }
 0x84c   :  { %v3896_v34 = vadd.f32 %v3895_v31, %v7337_v58  ;;  %4284 = vmatprep.mubr.f32.mxu0 %v4047_v29  ;;  %v4048_v33 = vmax.f32 %v3894_v30, 0.0  ;;  %v4527_v30 = vld [vmem:[#allocation2 + $0x1708] sm:$0xff] }
 0x84d   :  { %v3899_v32 = vpop.f32.mrf.mxu1  ;;  %4285 = vmatmul.mubr.f32.gmra.mxu0 %v4046_v27  ;;  %4633 = vmatprep.subr.mxu1 %v4527_v30 }
 0x84e   :  { %v4049_v35 = vmax.f32 %v3896_v34, 0.0  ;;  %v3900_v36 = vadd.f32 %v3899_v32, %v7334_v57 }
 0x84f   :  { %v3901_v37 = vpop.f32.mrf.mxu1 }
 0x850   :  { %v3902_v40 = vadd.f32 %v3901_v37, %v7337_v58  ;;  %4290 = vmatprep.mubr.f32.mxu0 %v4049_v35  ;;  %v4050_v39 = vmax.f32 %v3900_v36, 0.0  ;;  %v4526_v35 = vld [vmem:[#allocation2 + $0x1700] sm:$0xff] }
 0x851   :  { %v3905_v38 = vpop.f32.mrf.mxu1  ;;  %4291 = vmatmul.mubr.f32.gmra.mxu0 %v4048_v33  ;;  %4634 = vmatpush2.msra.mxu1 %v4526_v35 }
 0x852   :  { %v4051_v41 = vmax.f32 %v3902_v40, 0.0  ;;  %v3906_v42 = vadd.f32 %v3905_v38, %v7334_v57 }
 0x853   :  { %v3907_v45 = vpop.f32.mrf.mxu1 }
 0x854   :  { %v3908_v43 = vadd.f32 %v3907_v45, %v7337_v58  ;;  %4296 = vmatprep.mubr.f32.mxu0 %v4051_v41  ;;  %v4052_v47 = vmax.f32 %v3906_v42, 0.0 }
 0x855   :  { %v3911_v46 = vpop.f32.mrf.mxu1  ;;  %4297 = vmatmul.mubr.f32.gmra.mxu0 %v4050_v39 }
 0x856   :  { %v4053_v44 = vmax.f32 %v3908_v43, 0.0  ;;  %v3912_v48 = vadd.f32 %v3911_v46, %v7334_v57 }
 0x857   :  { %v3913_v51 = vpop.f32.mrf.mxu1 }
 0x858   :  { %v3914_v49 = vadd.f32 %v3913_v51, %v7337_v58  ;;  %4302 = vmatprep.mubr.f32.mxu0 %v4053_v44  ;;  %v4054_v53 = vmax.f32 %v3912_v48, 0.0 }
 0x859   :  { %v3917_v52 = vpop.f32.mrf.mxu1  ;;  %4303 = vmatmul.mubr.f32.gmra.mxu0 %v4052_v47 }
 0x85a   :  { %v4055_v50 = vmax.f32 %v3914_v49, 0.0  ;;  %v3918_v54 = vadd.f32 %v3917_v52, %v7334_v57 }
 0x85b   :  { %v3919_v55 = vpop.f32.mrf.mxu1 }
 0x85c   :  { %v3920_v56 = vadd.f32 %v3919_v55, %v7337_v58  ;;  %4308 = vmatprep.mubr.f32.mxu0 %v4055_v50  ;;  %v4056_v60 = vmax.f32 %v3918_v54, 0.0 }
 0x85d   :  { %v3923_v59 = vpop.f32.mrf.mxu1  ;;  %4309 = vmatmul.mubr.f32.gmra.mxu0 %v4054_v53 }
 0x85e   :  { %v4057_v62 = vmax.f32 %v3920_v56, 0.0  ;;  %v3924_v63 = vadd.f32 %v3923_v59, %v7334_v57 }
 0x85f   :  { %v3925_v61 = vpop.f32.mrf.mxu1 }
 0x860   :  { %v3926_v0 = vadd.f32 %v3925_v61, %v7337_v58  ;;  %4314 = vmatprep.mubr.f32.mxu0 %v4057_v62  ;;  %v4058_v2 = vmax.f32 %v3924_v63, 0.0 }
 0x861   :  { %v3929_v1 = vpop.f32.mrf.mxu1  ;;  %4315 = vmatmul.mubr.f32.gmra.mxu0 %v4056_v60 }
 0x862   :  { %v4059_v4 = vmax.f32 %v3926_v0, 0.0  ;;  %v3930_v5 = vadd.f32 %v3929_v1, %v7334_v57 }
 0x863   :  { %v3931_v3 = vpop.f32.mrf.mxu1 }
 0x864   :  { %v3932_v6 = vadd.f32 %v3931_v3, %v7337_v58  ;;  %4320 = vmatprep.mubr.f32.mxu0 %v4059_v4  ;;  %v4060_v9 = vmax.f32 %v3930_v5, 0.0 }
 0x865   :  { %v3935_v7 = vpop.f32.mrf.mxu1  ;;  %4321 = vmatmul.mubr.f32.gmra.mxu0 %v4058_v2 }
 0x866   :  { %v4061_v8 = vmax.f32 %v3932_v6, 0.0  ;;  %v3936_v10 = vadd.f32 %v3935_v7, %v7334_v57 }
 0x867   :  { %v3937_v11 = vpop.f32.mrf.mxu1 }
 0x868   :  { %v3938_v12 = vadd.f32 %v3937_v11, %v7337_v58  ;;  %4326 = vmatprep.mubr.f32.mxu0 %v4061_v8  ;;  %v4062_v16 = vmax.f32 %v3936_v10, 0.0 }
 0x869   :  { %v3941_v15 = vpop.f32.mrf.mxu1  ;;  %4327 = vmatmul.mubr.f32.gmra.mxu0 %v4060_v9 }
 0x86a   :  { %v4063_v13 = vmax.f32 %v3938_v12, 0.0  ;;  %v3942_v14 = vadd.f32 %v3941_v15, %v7334_v57 }
 0x86b   :  { %v3943_v17 = vpop.f32.mrf.mxu1 }
 0x86c   :  { %v3944_v18 = vadd.f32 %v3943_v17, %v7337_v58  ;;  %4332 = vmatprep.mubr.f32.mxu0 %v4063_v13  ;;  %v4064_v22 = vmax.f32 %v3942_v14, 0.0 }
 0x86d   :  { %v3947_v21 = vpop.f32.mrf.mxu1  ;;  %4333 = vmatmul.mubr.f32.gmra.mxu0 %v4062_v16 }
 0x86e   :  { %v4065_v19 = vmax.f32 %v3944_v18, 0.0  ;;  %v3948_v20 = vadd.f32 %v3947_v21, %v7334_v57 }
 0x86f   :  { %v3949_v24 = vpop.f32.mrf.mxu1 }
 0x870   :  { %v3950_v28 = vadd.f32 %v3949_v24, %v7337_v58  ;;  %4338 = vmatprep.mubr.f32.mxu0 %v4065_v19  ;;  %v4066_v31 = vmax.f32 %v3948_v20, 0.0 }
 0x871   :  { %v3953_v29 = vpop.f32.mrf.mxu1  ;;  %4339 = vmatmul.mubr.f32.gmra.mxu0 %v4064_v22 }
 0x872   :  { %v4067_v27 = vmax.f32 %v3950_v28, 0.0  ;;  %v3954_v34 = vadd.f32 %v3953_v29, %v7334_v57 }
 0x873   :  { %v3955_v32 = vpop.f32.mrf.mxu1 }
 0x874   :  { %v3956_v33 = vadd.f32 %v3955_v32, %v7337_v58  ;;  %4344 = vmatprep.mubr.f32.mxu0 %v4067_v27  ;;  %v4068_v40 = vmax.f32 %v3954_v34, 0.0 }
 0x875   :  { %v3959_v36 = vpop.f32.mrf.mxu1  ;;  %4345 = vmatmul.mubr.f32.gmra.mxu0 %v4066_v31 }
 0x876   :  { %v4069_v37 = vmax.f32 %v3956_v33, 0.0  ;;  %v3960_v38 = vadd.f32 %v3959_v36, %v7334_v57 }
 0x877   :  { %v3961_v41 = vpop.f32.mrf.mxu1 }
 0x878   :  { %v3962_v39 = vadd.f32 %v3961_v41, %v7337_v58  ;;  %4350 = vmatprep.mubr.f32.mxu0 %v4069_v37  ;;  %v4070_v43 = vmax.f32 %v3960_v38, 0.0 }
 0x879   :  { %v3965_v42 = vpop.f32.mrf.mxu1  ;;  %4351 = vmatmul.mubr.f32.gmra.mxu0 %v4068_v40 }
 0x87a   :  { %v4071_v45 = vmax.f32 %v3962_v39, 0.0  ;;  %v3966_v46 = vadd.f32 %v3965_v42, %v7334_v57 }
 0x87b   :  { %v3967_v44 = vpop.f32.mrf.mxu1 }
 0x87c   :  { %v3968_v47 = vadd.f32 %v3967_v44, %v7337_v58  ;;  %4356 = vmatprep.mubr.f32.mxu0 %v4071_v45  ;;  %v4072_v49 = vmax.f32 %v3966_v46, 0.0 }
 0x87d   :  { %v3971_v48 = vpop.f32.mrf.mxu1  ;;  %4357 = vmatmul.mubr.f32.gmra.mxu0 %v4070_v43 }
 0x87e   :  { %v4073_v51 = vmax.f32 %v3968_v47, 0.0  ;;  %v3972_v52 = vadd.f32 %v3971_v48, %v7334_v57 }
 0x87f   :  { %v3973_v50 = vpop.f32.mrf.mxu1 }
 0x880   :  { %v3974_v53 = vadd.f32 %v3973_v50, %v7337_v58  ;;  %4362 = vmatprep.mubr.f32.mxu0 %v4073_v51  ;;  %v4074_v56 = vmax.f32 %v3972_v52, 0.0  ;;  %v4923_v52 = vld [vmem:[#allocation2 + $0x18f0] sm:$0xff]  ;;  %v4922_v50 = vld [vmem:[#allocation2 + $0x18e8] sm:$0xff] }
 0x881   :  { %v3977_v54 = vpop.f32.mrf.mxu1  ;;  %4363 = vmatmul.mubr.f32.gmra.mxu0 %v4072_v49  ;;  %v4924_v49 = vld [vmem:[#allocation2 + $0x18f8] sm:$0xff] }
 0x882   :  { %v4075_v55 = vmax.f32 %v3974_v53, 0.0  ;;  %v3978_v59 = vadd.f32 %v3977_v54, %v7334_v57  ;;  %4970 = vmatprep.subr.mxu0 %v4924_v49  ;;  %v4921_v53 = vld [vmem:[#allocation2 + $0x18e0] sm:$0xff]  ;;  %v4920_v54 = vld [vmem:[#allocation2 + $0x18d8] sm:$0xff] }
 0x883   :  { %v3979_v62 = vpop.f32.mrf.mxu1  ;;  %4971 = vmatpush1.msra.mxu0 %v4923_v52  ;;  %v4949_v52 = vld [vmem:[#allocation2 + $0x19c0] sm:$0xff] }
 0x884   :  { %v3980_v60 = vadd.f32 %v3979_v62, %v7337_v58  ;;  %4368 = vmatprep.mubr.f32.mxu0 %v4075_v55  ;;  %v4076_v0 = vmax.f32 %v3978_v59, 0.0  ;;  %4972 = vmatprep.subr.mxu0 %v4922_v50  ;;  %v4918_v55 = vld [vmem:[#allocation2 + $0x18c8] sm:$0xff]  ;;  %v4915_v59 = vld [vmem:[#allocation2 + $0x18b0] sm:$0xff] }
 0x885   :  { %v3983_v63 = vpop.f32.mrf.mxu1  ;;  %4369 = vmatmul.mubr.f32.gmra.mxu0 %v4074_v56  ;;  %v4916_v56 = vld [vmem:[#allocation2 + $0x18b8] sm:$0xff]  ;;  %v4914_v62 = vld [vmem:[#allocation2 + $0x18a8] sm:$0xff] }
 0x886   :  { %v4077_v61 = vmax.f32 %v3980_v60, 0.0  ;;  %v3984_v1 = vadd.f32 %v3983_v63, %v7334_v57  ;;  %4973 = vmatpush1.msra.mxu0 %v4921_v53  ;;  %v4913_v60 = vld [vmem:[#allocation2 + $0x18a0] sm:$0xff]  ;;  %v4912_v63 = vld [vmem:[#allocation2 + $0x1898] sm:$0xff] }
 0x887   :  { %v3985_v4 = vpop.f32.mrf.mxu1  ;;  %4974 = vmatprep.subr.mxu0 %v4920_v54  ;;  %v4948_v53 = vld [vmem:[#allocation2 + $0x19b8] sm:$0xff] }
 0x888   :  { %v3986_v2 = vadd.f32 %v3985_v4, %v7337_v58  ;;  %4374 = vmatprep.mubr.f32.mxu0 %v4077_v61  ;;  %v4078_v6 = vmax.f32 %v3984_v1, 0.0  ;;  %v4911_v61 = vld [vmem:[#allocation2 + $0x1890] sm:$0xff]  ;;  %v4909_v1 = vld [vmem:[#allocation2 + $0x1880] sm:$0xff]  ;;  %v4908_v4 = vld [vmem:[#allocation2 + $0x1878] sm:$0xff] }
 0x889   :  { %v3989_v5 = vpop.f32.mrf.mxu1  ;;  %4375 = vmatmul.mubr.f32.gmra.mxu0 %v4076_v0  ;;  %v4910_v0 = vld [vmem:[#allocation2 + $0x1888] sm:$0xff] }
 0x88a   :  { %v4079_v3 = vmax.f32 %v3986_v2, 0.0  ;;  %v3990_v7 = vadd.f32 %v3989_v5, %v7334_v57  ;;  %v4907_v2 = vld [vmem:[#allocation2 + $0x1870] sm:$0xff]  ;;  %v4906_v5 = vld [vmem:[#allocation2 + $0x1868] sm:$0xff] }
 0x88b   :  { %v3991_v8 = vpop.f32.mrf.mxu1 }
 0x88c   :  { %v3992_v9 = vadd.f32 %v3991_v8, %v7337_v58  ;;  %4380 = vmatprep.mubr.f32.mxu0 %v4079_v3  ;;  %v4080_v12 = vmax.f32 %v3990_v7, 0.0  ;;  %v4905_v3 = vld [vmem:[#allocation2 + $0x1860] sm:$0xff]  ;;  %v4160_v7 = vld [vmem:[#allocation4 + $0x14] sm:$0x3] }
 0x88d   :  { %v3995_v10 = vpop.f32.mrf.mxu1  ;;  %4381 = vmatmul.mubr.f32.gmra.mxu0 %v4078_v6  ;;  %v4904_v6 = vld [vmem:[#allocation2 + $0x1858] sm:$0xff]  ;;  %v4903_v8 = vld [vmem:[#allocation2 + $0x1850] sm:$0xff] }
 0x88e   :  { %v4081_v11 = vmax.f32 %v3992_v9, 0.0  ;;  %v3996_v15 = vadd.f32 %v3995_v10, %v7334_v57  ;;  %v4902_v9 = vld [vmem:[#allocation2 + $0x1848] sm:$0xff]  ;;  %v7404_v10 = vrot.slane %v4160_v7, %v6699_v23 }
 0x88f   :  { %v3997_v13 = vpop.f32.mrf.mxu1 }
 0x890   :  { %v3998_v16 = vadd.f32 %v3997_v13, %v7337_v58  ;;  %4386 = vmatprep.mubr.f32.mxu0 %v4081_v11  ;;  %v4082_v18 = vmax.f32 %v3996_v15, 0.0  ;;  %v7407_v11 = vrot.slane %v4160_v7, %v6701_v25  ;;  %v4900_v13 = vld [vmem:[#allocation2 + $0x1838] sm:$0xff]  ;;  %v4941_v7 = vld [vmem:[#allocation2 + $0x1980] sm:$0xff] }
 0x891   :  { %v4001_v14 = vpop.f32.mrf.mxu1  ;;  %4387 = vmatmul.mubr.f32.gmra.mxu0 %v4080_v12  ;;  %v4901_v12 = vld [vmem:[#allocation2 + $0x1840] sm:$0xff] }
 0x892   :  { %v4083_v17 = vmax.f32 %v3998_v16, 0.0  ;;  %v4002_v21 = vadd.f32 %v4001_v14, %v7334_v57  ;;  %v4899_v16 = vld [vmem:[#allocation2 + $0x1830] sm:$0xff] }
 0x893   :  { %v4003_v19 = vpop.f32.mrf.mxu1 }
 0x894   :  { %v4004_v22 = vadd.f32 %v4003_v19, %v7337_v58  ;;  %4392 = vmatprep.mubr.f32.mxu0 %v4083_v17  ;;  %v4084_v28 = vmax.f32 %v4002_v21, 0.0  ;;  %v4898_v21 = vld [vmem:[#allocation2 + $0x1828] sm:$0xff] }
 0x895   :  { %v4007_v20 = vpop.f32.mrf.mxu1  ;;  %4393 = vmatmul.mubr.f32.gmra.mxu0 %v4082_v18 }
 0x896   :  { %v4085_v24 = vmax.f32 %v4004_v22, 0.0  ;;  %v4008_v26 = vadd.f32 %v4007_v20, %v7334_v57  ;;  %v4897_v22 = vld [vmem:[#allocation2 + $0x1820] sm:$0xff]  ;;  %v4896_v20 = vld [vmem:[#allocation2 + $0x1818] sm:$0xff] }
 0x897   :  { %v4009_v29 = vpop.f32.mrf.mxu1 }
 0x898   :  { %v4010_v27 = vadd.f32 %v4009_v29, %v7337_v58  ;;  %4398 = vmatprep.mubr.f32.mxu0 %v4085_v24  ;;  %v4086_v34 = vmax.f32 %v4008_v26, 0.0  ;;  %v4895_v24 = vld [vmem:[#allocation2 + $0x1810] sm:$0xff]  ;;  %v4894_v26 = vld [vmem:[#allocation2 + $0x1808] sm:$0xff] }
 0x899   :  { %v4013_v30 = vpop.f32.mrf.mxu1  ;;  %4399 = vmatmul.mubr.f32.gmra.mxu0 %v4084_v28 }
 0x89a   :  { %v4087_v31 = vmax.f32 %v4010_v27, 0.0  ;;  %v4014_v32 = vadd.f32 %v4013_v30, %v7334_v57 }
 0x89b   :  { %v4015_v35 = vpop.f32.mrf.mxu1 }
 0x89c   :  { %v4016_v33 = vadd.f32 %v4015_v35, %v7337_v58  ;;  %4404 = vmatprep.mubr.f32.mxu0 %v4087_v31  ;;  %v4088_v40 = vmax.f32 %v4014_v32, 0.0  ;;  %v4893_v31 = vld [vmem:[#allocation2 + $0x1800] sm:$0xff]  ;;  %v4956_v32 = vld [vmem:[#allocation2 + $0x19f8] sm:$0xff] }
 0x89d   :  { %v4019_v36 = vpop.f32.mrf.mxu1  ;;  %4405 = vmatmul.mubr.f32.gmra.mxu0 %v4086_v34 }
 0x89e   :  { %v4089_v37 = vmax.f32 %v4016_v33, 0.0  ;;  %v4020_v38 = vadd.f32 %v4019_v36, %v7334_v57  ;;  %v4955_v33 = vld [vmem:[#allocation2 + $0x19f0] sm:$0xff] }
 0x89f   :  { %v4021_v41 = vpop.f32.mrf.mxu1 }
 0x8a0   :  { %v4022_v39 = vadd.f32 %v4021_v41, %v7337_v58  ;;  %4410 = vmatprep.mubr.f32.mxu0 %v4089_v37  ;;  %v4090_v43 = vmax.f32 %v4020_v38, 0.0  ;;  %v4954_v37 = vld [vmem:[#allocation2 + $0x19e8] sm:$0xff] }
 0x8a1   :  { %v4025_v42 = vpop.f32.mrf.mxu1  ;;  %4411 = vmatmul.mubr.f32.gmra.mxu0 %v4088_v40 }
 0x8a2   :  { %v4091_v45 = vmax.f32 %v4022_v39, 0.0  ;;  %v4026_v46 = vadd.f32 %v4025_v42, %v7334_v57  ;;  %v4919_v57 = vld [vmem:[#allocation2 + $0x18d0] sm:$0xff]  ;;  %v4953_v39 = vld [vmem:[#allocation2 + $0x19e0] sm:$0xff] }
 0x8a3   :  { %v4027_v44 = vpop.f32.mrf.mxu1  ;;  %4975 = vmatpush1.msra.mxu0 %v4919_v57  ;;  %v4947_v57 = vld [vmem:[#allocation2 + $0x19b0] sm:$0xff] }
 0x8a4   :  { %v4028_v47 = vadd.f32 %v4027_v44, %v7337_v58  ;;  %4416 = vmatprep.mubr.f32.mxu0 %v4091_v45  ;;  %v4092_v51 = vmax.f32 %v4026_v46, 0.0  ;;  %4976 = vmatprep.subr.mxu0 %v4918_v55  ;;  %v4917_v58 = vld [vmem:[#allocation2 + $0x18c0] sm:$0xff]  ;;  %v4952_v45 = vld [vmem:[#allocation2 + $0x19d8] sm:$0xff]  ;;  %v4951_v46 = vld [vmem:[#allocation2 + $0x19d0] sm:$0xff] }
 0x8a5   :  { %4417 = vmatmul.mubr.f32.gmra.mxu0 %v4090_v43 }
 0x8a6   :  { %v4093_v48 = vmax.f32 %v4028_v47, 0.0  ;;  %4977 = vmatpush1.msra.mxu0 %v4917_v58  ;;  %v4950_v47 = vld [vmem:[#allocation2 + $0x19c8] sm:$0xff] }
 0x8a7   :  { %4978 = vmatprep.subr.mxu0 %v4916_v56  ;;  %v4946_v58 = vld [vmem:[#allocation2 + $0x19a8] sm:$0xff] }
 0x8a8   :  { %4422 = vmatprep.mubr.f32.mxu0 %v4093_v48  ;;  %4979 = vmatpush1.msra.mxu0 %v4915_v59 }
 0x8a9   :  { %4423 = vmatmul.mubr.f32.gmra.mxu0 %v4092_v51  ;;  %4980 = vmatprep.subr.mxu0 %v4914_v62 }
 0x8aa   :  { %4981 = vmatpush1.msra.mxu0 %v4913_v60  ;;  %v4945_v60 = vld [vmem:[#allocation2 + $0x19a0] sm:$0xff] }
 0x8ab   :  { %4982 = vmatprep.subr.mxu0 %v4912_v63 }
 0x8ac   :  { %4983 = vmatpush1.msra.mxu0 %v4911_v61  ;;  %v4944_v61 = vld [vmem:[#allocation2 + $0x1998] sm:$0xff] }
 0x8ad   :  { %4984 = vmatprep.subr.mxu0 %v4910_v0 }
 0x8ae   :  { %4985 = vmatpush1.msra.mxu0 %v4909_v1  ;;  %v4943_v1 = vld [vmem:[#allocation2 + $0x1990] sm:$0xff] }
 0x8af   :  { %4986 = vmatprep.subr.mxu0 %v4908_v4 }
 0x8b0   :  { %4987 = vmatpush1.msra.mxu0 %v4907_v2  ;;  %v4942_v2 = vld [vmem:[#allocation2 + $0x1988] sm:$0xff] }
 0x8b1   :  { %4988 = vmatprep.subr.mxu0 %v4906_v5 }
 0x8b2   :  { %4989 = vmatpush1.msra.mxu0 %v4905_v3 }
 0x8b3   :  { %4990 = vmatprep.subr.mxu0 %v4904_v6 }
 0x8b4   :  { %4991 = vmatpush1.msra.mxu0 %v4903_v8 }
 0x8b5   :  { %4992 = vmatprep.subr.mxu0 %v4902_v9  ;;  %v4940_v9 = vld [vmem:[#allocation2 + $0x1978] sm:$0xff] }
 0x8b6   :  { %4993 = vmatpush1.msra.mxu0 %v4901_v12 }
 0x8b7   :  { %4994 = vmatprep.subr.mxu0 %v4900_v13 }
 0x8b8   :  { %4995 = vmatpush1.msra.mxu0 %v4899_v16  ;;  %v4938_v16 = vld [vmem:[#allocation2 + $0x1968] sm:$0xff] }
 0x8b9   :  { %4996 = vmatprep.subr.mxu0 %v4898_v21  ;;  %v4937_v21 = vld [vmem:[#allocation2 + $0x1960] sm:$0xff] }
 0x8ba   :  { %4997 = vmatpush1.msra.mxu0 %v4897_v22  ;;  %v4936_v22 = vld [vmem:[#allocation2 + $0x1958] sm:$0xff] }
 0x8bb   :  { %4998 = vmatprep.subr.mxu0 %v4896_v20 }
 0x8bc   :  { %4999 = vmatpush1.msra.mxu0 %v4895_v24  ;;  %v4935_v24 = vld [vmem:[#allocation2 + $0x1950] sm:$0xff] }
 0x8bd   :  { %5000 = vmatprep.subr.mxu0 %v4894_v26  ;;  %v4934_v26 = vld [vmem:[#allocation2 + $0x1948] sm:$0xff] }
 0x8be   :  { %5001 = vmatpush1.msra.mxu0 %v4893_v31  ;;  %v4933_v31 = vld [vmem:[#allocation2 + $0x1940] sm:$0xff] }
 0x8bf   :  { %5002 = vmatprep.subr.mxu0 %v4956_v32  ;;  %v4932_v32 = vld [vmem:[#allocation2 + $0x1938] sm:$0xff] }
 0x8c0   :  { %5003 = vmatpush2.msra.mxu0 %v4955_v33  ;;  %v4931_v33 = vld [vmem:[#allocation2 + $0x1930] sm:$0xff] }
 0x8c1   :  { %5004 = vmatprep.subr.mxu0 %v4954_v37  ;;  %v4930_v37 = vld [vmem:[#allocation2 + $0x1928] sm:$0xff] }
 0x8c2   :  { %5005 = vmatpush2.msra.mxu0 %v4953_v39  ;;  %v4929_v39 = vld [vmem:[#allocation2 + $0x1920] sm:$0xff] }
 0x8c3   :  { %5006 = vmatprep.subr.mxu0 %v4952_v45  ;;  %v4928_v45 = vld [vmem:[#allocation2 + $0x1918] sm:$0xff] }
 0x8c4   :  { %5007 = vmatpush2.msra.mxu0 %v4951_v46 }
 0x8c5   :  { %5008 = vmatprep.subr.mxu0 %v4950_v47 }
 0x8c6   :  { %5009 = vmatpush2.msra.mxu0 %v4949_v52 }
 0x8c7   :  { %5010 = vmatprep.subr.mxu0 %v4948_v53 }
 0x8c8   :  { %5011 = vmatpush2.msra.mxu0 %v4947_v57 }
 0x8c9   :  { %5012 = vmatprep.subr.mxu0 %v4946_v58 }
 0x8ca   :  { %5013 = vmatpush2.msra.mxu0 %v4945_v60 }
 0x8cb   :  { %5014 = vmatprep.subr.mxu0 %v4944_v61 }
 0x8cc   :  { %5015 = vmatpush2.msra.mxu0 %v4943_v1 }
 0x8cd   :  { %5016 = vmatprep.subr.mxu0 %v4942_v2 }
 0x8ce   :  { %5017 = vmatpush2.msra.mxu0 %v4941_v7 }
 0x8cf   :  { %5018 = vmatprep.subr.mxu0 %v4940_v9 }
 0x8ed   :  { %v4238_v15 = vpop.f32.mrf.mxu0 }
 0x8ee   :  { %v4239_v14 = vadd.f32 %v4238_v15, %v7404_v10  ;;  %v4939_v15 = vld [vmem:[#allocation2 + $0x1970] sm:$0xff] }
 0x8ef   :  { %v4240_v17 = vpop.f32.mrf.mxu0  ;;  %5019 = vmatpush2.msra.mxu0 %v4939_v15 }
 0x8f0   :  { %v4241_v18 = vadd.f32 %v4240_v17, %v7407_v11  ;;  %v4429_v29 = vmax.f32 %v4239_v14, 0.0  ;;  %5020 = vmatprep.subr.mxu0 %v4938_v16 }
 0x8f1   :  { %v4244_v19 = vpop.f32.mrf.mxu0  ;;  %5021 = vmatpush2.msra.mxu0 %v4937_v21 }
 0x8f2   :  { %v4430_v28 = vmax.f32 %v4241_v18, 0.0  ;;  %v4245_v27 = vadd.f32 %v4244_v19, %v7404_v10  ;;  %5022 = vmatprep.subr.mxu0 %v4936_v22 }
 0x8f3   :  { %v4246_v30 = vpop.f32.mrf.mxu0  ;;  %5023 = vmatpush2.msra.mxu0 %v4935_v24 }
 0x8f4   :  { %v4247_v34 = vadd.f32 %v4246_v30, %v7407_v11  ;;  %4635 = vmatprep.mubr.f32.mxu1 %v4430_v28  ;;  %v4431_v40 = vmax.f32 %v4245_v27, 0.0  ;;  %5024 = vmatprep.subr.mxu0 %v4934_v26 }
 0x8f5   :  { %v4250_v35 = vpop.f32.mrf.mxu0  ;;  %4636 = vmatmul.mubr.f32.vlgmr.msra.gmra.mxu1 %v4429_v29  ;;  %5025 = vmatpush2.msra.mxu0 %v4933_v31 }
 0x8f6   :  { %v4432_v36 = vmax.f32 %v4247_v34, 0.0  ;;  %v4251_v38 = vadd.f32 %v4250_v35, %v7404_v10  ;;  %5026 = vmatprep.subr.mxu0 %v4932_v32 }
 0x8f7   :  { %v4252_v41 = vpop.f32.mrf.mxu0  ;;  %5027 = vmatpush2.msra.mxu0 %v4931_v33 }
 0x8f8   :  { %v4253_v42 = vadd.f32 %v4252_v41, %v7407_v11  ;;  %4641 = vmatprep.mubr.f32.mxu1 %v4432_v36  ;;  %v4433_v48 = vmax.f32 %v4251_v38, 0.0  ;;  %5028 = vmatprep.subr.mxu0 %v4930_v37 }
 0x8f9   :  { %v4256_v43 = vpop.f32.mrf.mxu0  ;;  %4642 = vmatmul.mubr.f32.gmra.mxu1 %v4431_v40  ;;  %5029 = vmatpush2.msra.mxu0 %v4929_v39 }
 0x8fa   :  { %v4434_v44 = vmax.f32 %v4253_v42, 0.0  ;;  %v4257_v51 = vadd.f32 %v4256_v43, %v7404_v10  ;;  %5030 = vmatprep.subr.mxu0 %v4928_v45 }
 0x8fb   :  { %v4258_v49 = vpop.f32.mrf.mxu0 }
 0x8fc   :  { %v4259_v50 = vadd.f32 %v4258_v49, %v7407_v11  ;;  %4647 = vmatprep.mubr.f32.mxu1 %v4434_v44  ;;  %v4435_v56 = vmax.f32 %v4257_v51, 0.0 }
 0x8fd   :  { %v4262_v54 = vpop.f32.mrf.mxu0  ;;  %4648 = vmatmul.mubr.f32.gmra.mxu1 %v4433_v48 }
 0x8fe   :  { %v4436_v55 = vmax.f32 %v4259_v50, 0.0  ;;  %v4263_v59 = vadd.f32 %v4262_v54, %v7404_v10 }
 0x8ff   :  { %v4264_v62 = vpop.f32.mrf.mxu0 }
 0x900   :  { %v4265_v63 = vadd.f32 %v4264_v62, %v7407_v11  ;;  %4653 = vmatprep.mubr.f32.mxu1 %v4436_v55  ;;  %v4437_v5 = vmax.f32 %v4263_v59, 0.0 }
 0x901   :  { %v4268_v0 = vpop.f32.mrf.mxu0  ;;  %4654 = vmatmul.mubr.f32.gmra.mxu1 %v4435_v56 }
 0x902   :  { %v4438_v4 = vmax.f32 %v4265_v63, 0.0  ;;  %v4269_v3 = vadd.f32 %v4268_v0, %v7404_v10 }
 0x903   :  { %v4270_v6 = vpop.f32.mrf.mxu0 }
 0x904   :  { %v4271_v8 = vadd.f32 %v4270_v6, %v7407_v11  ;;  %4659 = vmatprep.mubr.f32.mxu1 %v4438_v4  ;;  %v4439_v14 = vmax.f32 %v4269_v3, 0.0 }
 0x905   :  { %v4274_v12 = vpop.f32.mrf.mxu0  ;;  %4660 = vmatmul.mubr.f32.gmra.mxu1 %v4437_v5 }
 0x906   :  { %v4440_v13 = vmax.f32 %v4271_v8, 0.0  ;;  %v4275_v17 = vadd.f32 %v4274_v12, %v7404_v10 }
 0x907   :  { %v4276_v18 = vpop.f32.mrf.mxu0 }
 0x908   :  { %v4277_v19 = vadd.f32 %v4276_v18, %v7407_v11  ;;  %4665 = vmatprep.mubr.f32.mxu1 %v4440_v13  ;;  %v4441_v29 = vmax.f32 %v4275_v17, 0.0 }
 0x909   :  { %v4280_v20 = vpop.f32.mrf.mxu0  ;;  %4666 = vmatmul.mubr.f32.gmra.mxu1 %v4439_v14 }
 0x90a   :  { %v4442_v28 = vmax.f32 %v4277_v19, 0.0  ;;  %v4281_v27 = vadd.f32 %v4280_v20, %v7404_v10 }
 0x90b   :  { %v4282_v30 = vpop.f32.mrf.mxu0 }
 0x90c   :  { %v4283_v34 = vadd.f32 %v4282_v30, %v7407_v11  ;;  %4671 = vmatprep.mubr.f32.mxu1 %v4442_v28  ;;  %v4443_v40 = vmax.f32 %v4281_v27, 0.0 }
 0x90d   :  { %v4286_v35 = vpop.f32.mrf.mxu0  ;;  %4672 = vmatmul.mubr.f32.gmra.mxu1 %v4441_v29 }
 0x90e   :  { %v4444_v36 = vmax.f32 %v4283_v34, 0.0  ;;  %v4287_v38 = vadd.f32 %v4286_v35, %v7404_v10 }
 0x90f   :  { %v4288_v41 = vpop.f32.mrf.mxu0 }
 0x910   :  { %v4289_v42 = vadd.f32 %v4288_v41, %v7407_v11  ;;  %4677 = vmatprep.mubr.f32.mxu1 %v4444_v36  ;;  %v4445_v44 = vmax.f32 %v4287_v38, 0.0 }
 0x911   :  { %v4292_v43 = vpop.f32.mrf.mxu0  ;;  %4678 = vmatmul.mubr.f32.gmra.mxu1 %v4443_v40 }
 0x912   :  { %v4446_v46 = vmax.f32 %v4289_v42, 0.0  ;;  %v4293_v47 = vadd.f32 %v4292_v43, %v7404_v10  ;;  %v4927_v43 = vld [vmem:[#allocation2 + $0x1910] sm:$0xff] }
 0x913   :  { %v4294_v48 = vpop.f32.mrf.mxu0  ;;  %5031 = vmatpush2.msra.mxu0 %v4927_v43 }
 0x914   :  { %v4295_v51 = vadd.f32 %v4294_v48, %v7407_v11  ;;  %4683 = vmatprep.mubr.f32.mxu1 %v4446_v46  ;;  %v4447_v50 = vmax.f32 %v4293_v47, 0.0  ;;  %v4926_v47 = vld [vmem:[#allocation2 + $0x1908] sm:$0xff] }
 0x915   :  { %v4298_v49 = vpop.f32.mrf.mxu0  ;;  %4684 = vmatmul.mubr.f32.gmra.mxu1 %v4445_v44  ;;  %5032 = vmatprep.subr.mxu0 %v4926_v47 }
 0x916   :  { %v4448_v52 = vmax.f32 %v4295_v51, 0.0  ;;  %v4299_v53 = vadd.f32 %v4298_v49, %v7404_v10 }
 0x917   :  { %v4300_v54 = vpop.f32.mrf.mxu0 }
 0x918   :  { %v4301_v57 = vadd.f32 %v4300_v54, %v7407_v11  ;;  %4689 = vmatprep.mubr.f32.mxu1 %v4448_v52  ;;  %v4449_v56 = vmax.f32 %v4299_v53, 0.0  ;;  %v4925_v52 = vld [vmem:[#allocation2 + $0x1900] sm:$0xff] }
 0x919   :  { %v4304_v55 = vpop.f32.mrf.mxu0  ;;  %4690 = vmatmul.mubr.f32.gmra.mxu1 %v4447_v50  ;;  %5033 = vmatpush2.msra.mxu0 %v4925_v52 }
 0x91a   :  { %v4450_v58 = vmax.f32 %v4301_v57, 0.0  ;;  %v4305_v59 = vadd.f32 %v4304_v55, %v7404_v10 }
 0x91b   :  { %v4306_v62 = vpop.f32.mrf.mxu0 }
 0x91c   :  { %v4307_v60 = vadd.f32 %v4306_v62, %v7407_v11  ;;  %4695 = vmatprep.mubr.f32.mxu1 %v4450_v58  ;;  %v4451_v0 = vmax.f32 %v4305_v59, 0.0 }
 0x91d   :  { %v4310_v63 = vpop.f32.mrf.mxu0  ;;  %4696 = vmatmul.mubr.f32.gmra.mxu1 %v4449_v56 }
 0x91e   :  { %v4452_v61 = vmax.f32 %v4307_v60, 0.0  ;;  %v4311_v1 = vadd.f32 %v4310_v63, %v7404_v10 }
 0x91f   :  { %v4312_v4 = vpop.f32.mrf.mxu0 }
 0x920   :  { %v4313_v2 = vadd.f32 %v4312_v4, %v7407_v11  ;;  %4701 = vmatprep.mubr.f32.mxu1 %v4452_v61  ;;  %v4453_v6 = vmax.f32 %v4311_v1, 0.0 }
 0x921   :  { %v4316_v5 = vpop.f32.mrf.mxu0  ;;  %4702 = vmatmul.mubr.f32.gmra.mxu1 %v4451_v0 }
 0x922   :  { %v4454_v3 = vmax.f32 %v4313_v2, 0.0  ;;  %v4317_v7 = vadd.f32 %v4316_v5, %v7404_v10 }
 0x923   :  { %v4318_v8 = vpop.f32.mrf.mxu0 }
 0x924   :  { %v4319_v9 = vadd.f32 %v4318_v8, %v7407_v11  ;;  %4707 = vmatprep.mubr.f32.mxu1 %v4454_v3  ;;  %v4455_v13 = vmax.f32 %v4317_v7, 0.0 }
 0x925   :  { %v4322_v12 = vpop.f32.mrf.mxu0  ;;  %4708 = vmatmul.mubr.f32.gmra.mxu1 %v4453_v6 }
 0x926   :  { %v4456_v15 = vmax.f32 %v4319_v9, 0.0  ;;  %v4323_v16 = vadd.f32 %v4322_v12, %v7404_v10 }
 0x927   :  { %v4324_v14 = vpop.f32.mrf.mxu0 }
 0x928   :  { %v4325_v17 = vadd.f32 %v4324_v14, %v7407_v11  ;;  %4713 = vmatprep.mubr.f32.mxu1 %v4456_v15  ;;  %v4457_v19 = vmax.f32 %v4323_v16, 0.0 }
 0x929   :  { %v4328_v18 = vpop.f32.mrf.mxu0  ;;  %4714 = vmatmul.mubr.f32.gmra.mxu1 %v4455_v13 }
 0x92a   :  { %v4458_v21 = vmax.f32 %v4325_v17, 0.0  ;;  %v4329_v22 = vadd.f32 %v4328_v18, %v7404_v10 }
 0x92b   :  { %v4330_v20 = vpop.f32.mrf.mxu0 }
 0x92c   :  { %v4331_v24 = vadd.f32 %v4330_v20, %v7407_v11  ;;  %4719 = vmatprep.mubr.f32.mxu1 %v4458_v21  ;;  %v4459_v29 = vmax.f32 %v4329_v22, 0.0 }
 0x92d   :  { %v4334_v28 = vpop.f32.mrf.mxu0  ;;  %4720 = vmatmul.mubr.f32.gmra.mxu1 %v4457_v19 }
 0x92e   :  { %v4460_v26 = vmax.f32 %v4331_v24, 0.0  ;;  %v4335_v27 = vadd.f32 %v4334_v28, %v7404_v10 }
 0x92f   :  { %v4336_v30 = vpop.f32.mrf.mxu0 }
 0x930   :  { %v4337_v31 = vadd.f32 %v4336_v30, %v7407_v11  ;;  %4725 = vmatprep.mubr.f32.mxu1 %v4460_v26  ;;  %v4461_v35 = vmax.f32 %v4335_v27, 0.0 }
 0x931   :  { %v4340_v34 = vpop.f32.mrf.mxu0  ;;  %4726 = vmatmul.mubr.f32.gmra.mxu1 %v4459_v29 }
 0x932   :  { %v4462_v32 = vmax.f32 %v4337_v31, 0.0  ;;  %v4341_v33 = vadd.f32 %v4340_v34, %v7404_v10 }
 0x933   :  { %v4342_v36 = vpop.f32.mrf.mxu0 }
 0x934   :  { %v4343_v37 = vadd.f32 %v4342_v36, %v7407_v11  ;;  %4731 = vmatprep.mubr.f32.mxu1 %v4462_v32  ;;  %v4463_v41 = vmax.f32 %v4341_v33, 0.0 }
 0x935   :  { %v4346_v40 = vpop.f32.mrf.mxu0  ;;  %4732 = vmatmul.mubr.f32.gmra.mxu1 %v4461_v35 }
 0x936   :  { %v4464_v38 = vmax.f32 %v4343_v37, 0.0  ;;  %v4347_v39 = vadd.f32 %v4346_v40, %v7404_v10 }
 0x937   :  { %v4348_v42 = vpop.f32.mrf.mxu0 }
 0x938   :  { %v4349_v45 = vadd.f32 %v4348_v42, %v7407_v11  ;;  %4737 = vmatprep.mubr.f32.mxu1 %v4464_v38  ;;  %v4465_v48 = vmax.f32 %v4347_v39, 0.0 }
 0x939   :  { %v4352_v46 = vpop.f32.mrf.mxu0  ;;  %4738 = vmatmul.mubr.f32.gmra.mxu1 %v4463_v41 }
 0x93a   :  { %v4466_v44 = vmax.f32 %v4349_v45, 0.0  ;;  %v4353_v51 = vadd.f32 %v4352_v46, %v7404_v10 }
 0x93b   :  { %v4354_v49 = vpop.f32.mrf.mxu0 }
 0x93c   :  { %v4355_v50 = vadd.f32 %v4354_v49, %v7407_v11  ;;  %4743 = vmatprep.mubr.f32.mxu1 %v4466_v44  ;;  %v4467_v57 = vmax.f32 %v4353_v51, 0.0 }
 0x93d   :  { %v4358_v53 = vpop.f32.mrf.mxu0  ;;  %4744 = vmatmul.mubr.f32.gmra.mxu1 %v4465_v48 }
 0x93e   :  { %v4468_v54 = vmax.f32 %v4355_v50, 0.0  ;;  %v4359_v55 = vadd.f32 %v4358_v53, %v7404_v10 }
 0x93f   :  { %v4360_v58 = vpop.f32.mrf.mxu0 }
 0x940   :  { %v4361_v56 = vadd.f32 %v4360_v58, %v7407_v11  ;;  %4749 = vmatprep.mubr.f32.mxu1 %v4468_v54  ;;  %v4469_v60 = vmax.f32 %v4359_v55, 0.0 }
 0x941   :  { %v4364_v59 = vpop.f32.mrf.mxu0  ;;  %4750 = vmatmul.mubr.f32.gmra.mxu1 %v4467_v57 }
 0x942   :  { %v4470_v62 = vmax.f32 %v4361_v56, 0.0  ;;  %v4365_v63 = vadd.f32 %v4364_v59, %v7404_v10 }
 0x943   :  { %v4366_v61 = vpop.f32.mrf.mxu0 }
 0x944   :  { %v4367_v0 = vadd.f32 %v4366_v61, %v7407_v11  ;;  %4755 = vmatprep.mubr.f32.mxu1 %v4470_v62  ;;  %v4471_v2 = vmax.f32 %v4365_v63, 0.0 }
 0x945   :  { %v4370_v1 = vpop.f32.mrf.mxu0  ;;  %4756 = vmatmul.mubr.f32.gmra.mxu1 %v4469_v60 }
 0x946   :  { %v4472_v4 = vmax.f32 %v4367_v0, 0.0  ;;  %v4371_v5 = vadd.f32 %v4370_v1, %v7404_v10 }
 0x947   :  { %v4372_v3 = vpop.f32.mrf.mxu0 }
 0x948   :  { %v4373_v6 = vadd.f32 %v4372_v3, %v7407_v11  ;;  %4761 = vmatprep.mubr.f32.mxu1 %v4472_v4  ;;  %v4473_v9 = vmax.f32 %v4371_v5, 0.0  ;;  %v5322_v5 = vld [vmem:[#allocation2 + $0x1af0] sm:$0xff]  ;;  %v5321_v3 = vld [vmem:[#allocation2 + $0x1ae8] sm:$0xff] }
 0x949   :  { %v4376_v7 = vpop.f32.mrf.mxu0  ;;  %4762 = vmatmul.mubr.f32.gmra.mxu1 %v4471_v2  ;;  %v5323_v2 = vld [vmem:[#allocation2 + $0x1af8] sm:$0xff] }
 0x94a   :  { %v4474_v8 = vmax.f32 %v4373_v6, 0.0  ;;  %v4377_v12 = vadd.f32 %v4376_v7, %v7404_v10  ;;  %5369 = vmatprep.subr.mxu1 %v5323_v2  ;;  %v5320_v6 = vld [vmem:[#allocation2 + $0x1ae0] sm:$0xff]  ;;  %v5319_v7 = vld [vmem:[#allocation2 + $0x1ad8] sm:$0xff] }
 0x94b   :  { %v4378_v15 = vpop.f32.mrf.mxu0  ;;  %5370 = vmatpush1.msra.mxu1 %v5322_v5  ;;  %v5348_v5 = vld [vmem:[#allocation2 + $0x1bc0] sm:$0xff] }
 0x94c   :  { %v4379_v13 = vadd.f32 %v4378_v15, %v7407_v11  ;;  %4767 = vmatprep.mubr.f32.mxu1 %v4474_v8  ;;  %v4475_v17 = vmax.f32 %v4377_v12, 0.0  ;;  %5371 = vmatprep.subr.mxu1 %v5321_v3  ;;  %v5317_v8 = vld [vmem:[#allocation2 + $0x1ac8] sm:$0xff]  ;;  %v5314_v12 = vld [vmem:[#allocation2 + $0x1ab0] sm:$0xff] }
 0x94d   :  { %v4382_v16 = vpop.f32.mrf.mxu0  ;;  %4768 = vmatmul.mubr.f32.gmra.mxu1 %v4473_v9  ;;  %v5315_v9 = vld [vmem:[#allocation2 + $0x1ab8] sm:$0xff]  ;;  %v5313_v15 = vld [vmem:[#allocation2 + $0x1aa8] sm:$0xff] }
 0x94e   :  { %v4476_v14 = vmax.f32 %v4379_v13, 0.0  ;;  %v4383_v18 = vadd.f32 %v4382_v16, %v7404_v10  ;;  %5372 = vmatpush1.msra.mxu1 %v5320_v6  ;;  %v5312_v13 = vld [vmem:[#allocation2 + $0x1aa0] sm:$0xff]  ;;  %v5311_v16 = vld [vmem:[#allocation2 + $0x1a98] sm:$0xff] }
 0x94f   :  { %v4384_v21 = vpop.f32.mrf.mxu0  ;;  %5373 = vmatprep.subr.mxu1 %v5319_v7  ;;  %v5347_v6 = vld [vmem:[#allocation2 + $0x1bb8] sm:$0xff] }
 0x950   :  { %v4385_v19 = vadd.f32 %v4384_v21, %v7407_v11  ;;  %4773 = vmatprep.mubr.f32.mxu1 %v4476_v14  ;;  %v4477_v24 = vmax.f32 %v4383_v18, 0.0  ;;  %v5310_v14 = vld [vmem:[#allocation2 + $0x1a90] sm:$0xff]  ;;  %v5308_v18 = vld [vmem:[#allocation2 + $0x1a80] sm:$0xff]  ;;  %v5307_v21 = vld [vmem:[#allocation2 + $0x1a78] sm:$0xff] }
 0x951   :  { %v4388_v22 = vpop.f32.mrf.mxu0  ;;  %4774 = vmatmul.mubr.f32.gmra.mxu1 %v4475_v17  ;;  %v5309_v17 = vld [vmem:[#allocation2 + $0x1a88] sm:$0xff] }
 0x952   :  { %v4478_v20 = vmax.f32 %v4385_v19, 0.0  ;;  %v4389_v28 = vadd.f32 %v4388_v22, %v7404_v10  ;;  %v5306_v19 = vld [vmem:[#allocation2 + $0x1a70] sm:$0xff]  ;;  %v5305_v22 = vld [vmem:[#allocation2 + $0x1a68] sm:$0xff] }
 0x953   :  { %v4390_v26 = vpop.f32.mrf.mxu0 }
 0x954   :  { %v4391_v29 = vadd.f32 %v4390_v26, %v7407_v11  ;;  %4779 = vmatprep.mubr.f32.mxu1 %v4478_v20  ;;  %v4479_v31 = vmax.f32 %v4389_v28, 0.0  ;;  %v5304_v20 = vld [vmem:[#allocation2 + $0x1a60] sm:$0xff]  ;;  %v4559_v28 = vld [vmem:[#allocation4 + $0x16] sm:$0x3] }
 0x955   :  { %v4394_v27 = vpop.f32.mrf.mxu0  ;;  %4780 = vmatmul.mubr.f32.gmra.mxu1 %v4477_v24  ;;  %v5303_v24 = vld [vmem:[#allocation2 + $0x1a58] sm:$0xff]  ;;  %v5302_v26 = vld [vmem:[#allocation2 + $0x1a50] sm:$0xff] }
 0x956   :  { %v4480_v30 = vmax.f32 %v4391_v29, 0.0  ;;  %v4395_v34 = vadd.f32 %v4394_v27, %v7404_v10  ;;  %v5301_v29 = vld [vmem:[#allocation2 + $0x1a48] sm:$0xff]  ;;  %v7474_v27 = vrot.slane %v4559_v28, %v6699_v23 }
 0x957   :  { %v4396_v32 = vpop.f32.mrf.mxu0 }
 0x958   :  { %v4397_v35 = vadd.f32 %v4396_v32, %v7407_v11  ;;  %4785 = vmatprep.mubr.f32.mxu1 %v4480_v30  ;;  %v4481_v37 = vmax.f32 %v4395_v34, 0.0  ;;  %v7477_v30 = vrot.slane %v4559_v28, %v6701_v25  ;;  %v5299_v32 = vld [vmem:[#allocation2 + $0x1a38] sm:$0xff]  ;;  %v5340_v28 = vld [vmem:[#allocation2 + $0x1b80] sm:$0xff] }
 0x959   :  { %v4400_v33 = vpop.f32.mrf.mxu0  ;;  %4786 = vmatmul.mubr.f32.gmra.mxu1 %v4479_v31  ;;  %v5300_v31 = vld [vmem:[#allocation2 + $0x1a40] sm:$0xff] }
 0x95a   :  { %v4482_v36 = vmax.f32 %v4397_v35, 0.0  ;;  %v4401_v40 = vadd.f32 %v4400_v33, %v7404_v10  ;;  %v5298_v35 = vld [vmem:[#allocation2 + $0x1a30] sm:$0xff] }
 0x95b   :  { %v4402_v38 = vpop.f32.mrf.mxu0 }
 0x95c   :  { %v4403_v41 = vadd.f32 %v4402_v38, %v7407_v11  ;;  %4791 = vmatprep.mubr.f32.mxu1 %v4482_v36  ;;  %v4483_v45 = vmax.f32 %v4401_v40, 0.0  ;;  %v5297_v40 = vld [vmem:[#allocation2 + $0x1a28] sm:$0xff] }
 0x95d   :  { %v4406_v39 = vpop.f32.mrf.mxu0  ;;  %4792 = vmatmul.mubr.f32.gmra.mxu1 %v4481_v37 }
 0x95e   :  { %v4484_v42 = vmax.f32 %v4403_v41, 0.0  ;;  %v4407_v43 = vadd.f32 %v4406_v39, %v7404_v10  ;;  %v5296_v41 = vld [vmem:[#allocation2 + $0x1a20] sm:$0xff]  ;;  %v5295_v39 = vld [vmem:[#allocation2 + $0x1a18] sm:$0xff] }
 0x95f   :  { %v4408_v46 = vpop.f32.mrf.mxu0 }
 0x960   :  { %v4409_v44 = vadd.f32 %v4408_v46, %v7407_v11  ;;  %4797 = vmatprep.mubr.f32.mxu1 %v4484_v42  ;;  %v4485_v51 = vmax.f32 %v4407_v43, 0.0  ;;  %v5294_v42 = vld [vmem:[#allocation2 + $0x1a10] sm:$0xff]  ;;  %v5293_v43 = vld [vmem:[#allocation2 + $0x1a08] sm:$0xff] }
 0x961   :  { %v4412_v47 = vpop.f32.mrf.mxu0  ;;  %4798 = vmatmul.mubr.f32.gmra.mxu1 %v4483_v45 }
 0x962   :  { %v4486_v48 = vmax.f32 %v4409_v44, 0.0  ;;  %v4413_v49 = vadd.f32 %v4412_v47, %v7404_v10 }
 0x963   :  { %v4414_v52 = vpop.f32.mrf.mxu0 }
 0x964   :  { %v4415_v50 = vadd.f32 %v4414_v52, %v7407_v11  ;;  %4803 = vmatprep.mubr.f32.mxu1 %v4486_v48  ;;  %v4487_v57 = vmax.f32 %v4413_v49, 0.0  ;;  %v5292_v48 = vld [vmem:[#allocation2 + $0x1a00] sm:$0xff]  ;;  %v5355_v49 = vld [vmem:[#allocation2 + $0x1bf8] sm:$0xff] }
 0x965   :  { %v4418_v53 = vpop.f32.mrf.mxu0  ;;  %4804 = vmatmul.mubr.f32.gmra.mxu1 %v4485_v51 }
 0x966   :  { %v4488_v54 = vmax.f32 %v4415_v50, 0.0  ;;  %v4419_v55 = vadd.f32 %v4418_v53, %v7404_v10  ;;  %v5354_v50 = vld [vmem:[#allocation2 + $0x1bf0] sm:$0xff] }
 0x967   :  { %v4420_v58 = vpop.f32.mrf.mxu0 }
 0x968   :  { %v4421_v56 = vadd.f32 %v4420_v58, %v7407_v11  ;;  %4809 = vmatprep.mubr.f32.mxu1 %v4488_v54  ;;  %v4489_v60 = vmax.f32 %v4419_v55, 0.0  ;;  %v5353_v54 = vld [vmem:[#allocation2 + $0x1be8] sm:$0xff] }
 0x969   :  { %v4424_v59 = vpop.f32.mrf.mxu0  ;;  %4810 = vmatmul.mubr.f32.gmra.mxu1 %v4487_v57 }
 0x96a   :  { %v4490_v62 = vmax.f32 %v4421_v56, 0.0  ;;  %v4425_v63 = vadd.f32 %v4424_v59, %v7404_v10  ;;  %v5318_v10 = vld [vmem:[#allocation2 + $0x1ad0] sm:$0xff]  ;;  %v5352_v56 = vld [vmem:[#allocation2 + $0x1be0] sm:$0xff] }
 0x96b   :  { %v4426_v61 = vpop.f32.mrf.mxu0  ;;  %5374 = vmatpush1.msra.mxu1 %v5318_v10  ;;  %v5346_v10 = vld [vmem:[#allocation2 + $0x1bb0] sm:$0xff] }
 0x96c   :  { %v4427_v0 = vadd.f32 %v4426_v61, %v7407_v11  ;;  %4815 = vmatprep.mubr.f32.mxu1 %v4490_v62  ;;  %v4491_v4 = vmax.f32 %v4425_v63, 0.0  ;;  %5375 = vmatprep.subr.mxu1 %v5317_v8  ;;  %v5316_v11 = vld [vmem:[#allocation2 + $0x1ac0] sm:$0xff]  ;;  %v5351_v62 = vld [vmem:[#allocation2 + $0x1bd8] sm:$0xff]  ;;  %v5350_v63 = vld [vmem:[#allocation2 + $0x1bd0] sm:$0xff] }
 0x96d   :  { %4816 = vmatmul.mubr.f32.gmra.mxu1 %v4489_v60 }
 0x96e   :  { %v4492_v1 = vmax.f32 %v4427_v0, 0.0  ;;  %5376 = vmatpush1.msra.mxu1 %v5316_v11  ;;  %v5349_v0 = vld [vmem:[#allocation2 + $0x1bc8] sm:$0xff] }
 0x96f   :  { %5377 = vmatprep.subr.mxu1 %v5315_v9  ;;  %v5345_v11 = vld [vmem:[#allocation2 + $0x1ba8] sm:$0xff] }
 0x970   :  { %4821 = vmatprep.mubr.f32.mxu1 %v4492_v1  ;;  %5378 = vmatpush1.msra.mxu1 %v5314_v12 }
 0x971   :  { %4822 = vmatmul.mubr.f32.gmra.mxu1 %v4491_v4  ;;  %5379 = vmatprep.subr.mxu1 %v5313_v15 }
 0x972   :  { %5380 = vmatpush1.msra.mxu1 %v5312_v13  ;;  %v5344_v13 = vld [vmem:[#allocation2 + $0x1ba0] sm:$0xff] }
 0x973   :  { %5381 = vmatprep.subr.mxu1 %v5311_v16 }
 0x974   :  { %5382 = vmatpush1.msra.mxu1 %v5310_v14  ;;  %v5343_v14 = vld [vmem:[#allocation2 + $0x1b98] sm:$0xff] }
 0x975   :  { %5383 = vmatprep.subr.mxu1 %v5309_v17 }
 0x976   :  { %5384 = vmatpush1.msra.mxu1 %v5308_v18  ;;  %v5342_v18 = vld [vmem:[#allocation2 + $0x1b90] sm:$0xff] }
 0x977   :  { %5385 = vmatprep.subr.mxu1 %v5307_v21 }
 0x978   :  { %5386 = vmatpush1.msra.mxu1 %v5306_v19  ;;  %v5341_v19 = vld [vmem:[#allocation2 + $0x1b88] sm:$0xff] }
 0x979   :  { %5387 = vmatprep.subr.mxu1 %v5305_v22 }
 0x97a   :  { %5388 = vmatpush1.msra.mxu1 %v5304_v20 }
 0x97b   :  { %5389 = vmatprep.subr.mxu1 %v5303_v24 }
 0x97c   :  { %5390 = vmatpush1.msra.mxu1 %v5302_v26 }
 0x97d   :  { %5391 = vmatprep.subr.mxu1 %v5301_v29  ;;  %v5339_v29 = vld [vmem:[#allocation2 + $0x1b78] sm:$0xff] }
 0x97e   :  { %5392 = vmatpush1.msra.mxu1 %v5300_v31 }
 0x97f   :  { %5393 = vmatprep.subr.mxu1 %v5299_v32 }
 0x980   :  { %5394 = vmatpush1.msra.mxu1 %v5298_v35  ;;  %v5337_v35 = vld [vmem:[#allocation2 + $0x1b68] sm:$0xff] }
 0x981   :  { %5395 = vmatprep.subr.mxu1 %v5297_v40  ;;  %v5336_v40 = vld [vmem:[#allocation2 + $0x1b60] sm:$0xff] }
 0x982   :  { %5396 = vmatpush1.msra.mxu1 %v5296_v41  ;;  %v5335_v41 = vld [vmem:[#allocation2 + $0x1b58] sm:$0xff] }
 0x983   :  { %5397 = vmatprep.subr.mxu1 %v5295_v39 }
 0x984   :  { %5398 = vmatpush1.msra.mxu1 %v5294_v42  ;;  %v5334_v42 = vld [vmem:[#allocation2 + $0x1b50] sm:$0xff] }
 0x985   :  { %5399 = vmatprep.subr.mxu1 %v5293_v43  ;;  %v5333_v43 = vld [vmem:[#allocation2 + $0x1b48] sm:$0xff] }
 0x986   :  { %5400 = vmatpush1.msra.mxu1 %v5292_v48  ;;  %v5332_v48 = vld [vmem:[#allocation2 + $0x1b40] sm:$0xff] }
 0x987   :  { %5401 = vmatprep.subr.mxu1 %v5355_v49  ;;  %v5331_v49 = vld [vmem:[#allocation2 + $0x1b38] sm:$0xff] }
 0x988   :  { %5402 = vmatpush2.msra.mxu1 %v5354_v50  ;;  %v5330_v50 = vld [vmem:[#allocation2 + $0x1b30] sm:$0xff] }
 0x989   :  { %5403 = vmatprep.subr.mxu1 %v5353_v54  ;;  %v5329_v54 = vld [vmem:[#allocation2 + $0x1b28] sm:$0xff] }
 0x98a   :  { %5404 = vmatpush2.msra.mxu1 %v5352_v56  ;;  %v5328_v56 = vld [vmem:[#allocation2 + $0x1b20] sm:$0xff] }
 0x98b   :  { %5405 = vmatprep.subr.mxu1 %v5351_v62  ;;  %v5327_v62 = vld [vmem:[#allocation2 + $0x1b18] sm:$0xff] }
 0x98c   :  { %5406 = vmatpush2.msra.mxu1 %v5350_v63 }
 0x98d   :  { %5407 = vmatprep.subr.mxu1 %v5349_v0 }
 0x98e   :  { %5408 = vmatpush2.msra.mxu1 %v5348_v5 }
 0x98f   :  { %5409 = vmatprep.subr.mxu1 %v5347_v6 }
 0x990   :  { %5410 = vmatpush2.msra.mxu1 %v5346_v10 }
 0x991   :  { %5411 = vmatprep.subr.mxu1 %v5345_v11 }
 0x992   :  { %5412 = vmatpush2.msra.mxu1 %v5344_v13 }
 0x993   :  { %5413 = vmatprep.subr.mxu1 %v5343_v14 }
 0x994   :  { %5414 = vmatpush2.msra.mxu1 %v5342_v18 }
 0x995   :  { %5415 = vmatprep.subr.mxu1 %v5341_v19 }
 0x996   :  { %5416 = vmatpush2.msra.mxu1 %v5340_v28 }
 0x997   :  { %5417 = vmatprep.subr.mxu1 %v5339_v29 }
 0x9b5   :  { %v4637_v34 = vpop.f32.mrf.mxu1 }
 0x9b6   :  { %v4638_v33 = vadd.f32 %v4637_v34, %v7474_v27  ;;  %v5338_v34 = vld [vmem:[#allocation2 + $0x1b70] sm:$0xff] }
 0x9b7   :  { %v4639_v36 = vpop.f32.mrf.mxu1  ;;  %5418 = vmatpush2.msra.mxu1 %v5338_v34 }
 0x9b8   :  { %v4640_v37 = vadd.f32 %v4639_v36, %v7477_v30  ;;  %v4828_v46 = vmax.f32 %v4638_v33, 0.0  ;;  %5419 = vmatprep.subr.mxu1 %v5337_v35 }
 0x9b9   :  { %v4643_v38 = vpop.f32.mrf.mxu1  ;;  %5420 = vmatpush2.msra.mxu1 %v5336_v40 }
 0x9ba   :  { %v4829_v45 = vmax.f32 %v4640_v37, 0.0  ;;  %v4644_v44 = vadd.f32 %v4643_v38, %v7474_v27  ;;  %5421 = vmatprep.subr.mxu1 %v5335_v41 }
 0x9bb   :  { %v4645_v47 = vpop.f32.mrf.mxu1  ;;  %5422 = vmatpush2.msra.mxu1 %v5334_v42 }
 0x9bc   :  { %v4646_v51 = vadd.f32 %v4645_v47, %v7477_v30  ;;  %5034 = vmatprep.mubr.f32.mxu0 %v4829_v45  ;;  %v4830_v57 = vmax.f32 %v4644_v44, 0.0  ;;  %5423 = vmatprep.subr.mxu1 %v5333_v43 }
 0x9bd   :  { %v4649_v52 = vpop.f32.mrf.mxu1  ;;  %5035 = vmatmul.mubr.f32.vlgmr.msra.gmra.mxu0 %v4828_v46  ;;  %5424 = vmatpush2.msra.mxu1 %v5332_v48 }
 0x9be   :  { %v4831_v53 = vmax.f32 %v4646_v51, 0.0  ;;  %v4650_v55 = vadd.f32 %v4649_v52, %v7474_v27  ;;  %5425 = vmatprep.subr.mxu1 %v5331_v49 }
 0x9bf   :  { %v4651_v58 = vpop.f32.mrf.mxu1  ;;  %5426 = vmatpush2.msra.mxu1 %v5330_v50 }
 0x9c0   :  { %v4652_v59 = vadd.f32 %v4651_v58, %v7477_v30  ;;  %5040 = vmatprep.mubr.f32.mxu0 %v4831_v53  ;;  %v4832_v1 = vmax.f32 %v4650_v55, 0.0  ;;  %5427 = vmatprep.subr.mxu1 %v5329_v54 }
 0x9c1   :  { %v4655_v60 = vpop.f32.mrf.mxu1  ;;  %5041 = vmatmul.mubr.f32.gmra.mxu0 %v4830_v57  ;;  %5428 = vmatpush2.msra.mxu1 %v5328_v56 }
 0x9c2   :  { %v4833_v61 = vmax.f32 %v4652_v59, 0.0  ;;  %v4656_v4 = vadd.f32 %v4655_v60, %v7474_v27  ;;  %5429 = vmatprep.subr.mxu1 %v5327_v62 }
 0x9c3   :  { %v4657_v2 = vpop.f32.mrf.mxu1 }
 0x9c4   :  { %v4658_v3 = vadd.f32 %v4657_v2, %v7477_v30  ;;  %5046 = vmatprep.mubr.f32.mxu0 %v4833_v61  ;;  %v4834_v9 = vmax.f32 %v4656_v4, 0.0 }
 0x9c5   :  { %v4661_v7 = vpop.f32.mrf.mxu1  ;;  %5047 = vmatmul.mubr.f32.gmra.mxu0 %v4832_v1 }
 0x9c6   :  { %v4835_v8 = vmax.f32 %v4658_v3, 0.0  ;;  %v4662_v12 = vadd.f32 %v4661_v7, %v7474_v27 }
 0x9c7   :  { %v4663_v15 = vpop.f32.mrf.mxu1 }
 0x9c8   :  { %v4664_v16 = vadd.f32 %v4663_v15, %v7477_v30  ;;  %5052 = vmatprep.mubr.f32.mxu0 %v4835_v8  ;;  %v4836_v22 = vmax.f32 %v4662_v12, 0.0 }
 0x9c9   :  { %v4667_v17 = vpop.f32.mrf.mxu1  ;;  %5053 = vmatmul.mubr.f32.gmra.mxu0 %v4834_v9 }
 0x9ca   :  { %v4837_v21 = vmax.f32 %v4664_v16, 0.0  ;;  %v4668_v20 = vadd.f32 %v4667_v17, %v7474_v27 }
 0x9cb   :  { %v4669_v24 = vpop.f32.mrf.mxu1 }
 0x9cc   :  { %v4670_v26 = vadd.f32 %v4669_v24, %v7477_v30  ;;  %5058 = vmatprep.mubr.f32.mxu0 %v4837_v21  ;;  %v4838_v33 = vmax.f32 %v4668_v20, 0.0 }
 0x9cd   :  { %v4673_v31 = vpop.f32.mrf.mxu1  ;;  %5059 = vmatmul.mubr.f32.gmra.mxu0 %v4836_v22 }
 0x9ce   :  { %v4839_v32 = vmax.f32 %v4670_v26, 0.0  ;;  %v4674_v36 = vadd.f32 %v4673_v31, %v7474_v27 }
 0x9cf   :  { %v4675_v37 = vpop.f32.mrf.mxu1 }
 0x9d0   :  { %v4676_v38 = vadd.f32 %v4675_v37, %v7477_v30  ;;  %5064 = vmatprep.mubr.f32.mxu0 %v4839_v32  ;;  %v4840_v46 = vmax.f32 %v4674_v36, 0.0 }
 0x9d1   :  { %v4679_v39 = vpop.f32.mrf.mxu1  ;;  %5065 = vmatmul.mubr.f32.gmra.mxu0 %v4838_v33 }
 0x9d2   :  { %v4841_v45 = vmax.f32 %v4676_v38, 0.0  ;;  %v4680_v44 = vadd.f32 %v4679_v39, %v7474_v27 }
 0x9d3   :  { %v4681_v47 = vpop.f32.mrf.mxu1 }
 0x9d4   :  { %v4682_v51 = vadd.f32 %v4681_v47, %v7477_v30  ;;  %5070 = vmatprep.mubr.f32.mxu0 %v4841_v45  ;;  %v4842_v57 = vmax.f32 %v4680_v44, 0.0 }
 0x9d5   :  { %v4685_v52 = vpop.f32.mrf.mxu1  ;;  %5071 = vmatmul.mubr.f32.gmra.mxu0 %v4840_v46 }
 0x9d6   :  { %v4843_v53 = vmax.f32 %v4682_v51, 0.0  ;;  %v4686_v55 = vadd.f32 %v4685_v52, %v7474_v27 }
 0x9d7   :  { %v4687_v58 = vpop.f32.mrf.mxu1 }
 0x9d8   :  { %v4688_v59 = vadd.f32 %v4687_v58, %v7477_v30  ;;  %5076 = vmatprep.mubr.f32.mxu0 %v4843_v53  ;;  %v4844_v61 = vmax.f32 %v4686_v55, 0.0 }
 0x9d9   :  { %v4691_v60 = vpop.f32.mrf.mxu1  ;;  %5077 = vmatmul.mubr.f32.gmra.mxu0 %v4842_v57 }
 0x9da   :  { %v4845_v63 = vmax.f32 %v4688_v59, 0.0  ;;  %v4692_v0 = vadd.f32 %v4691_v60, %v7474_v27  ;;  %v5326_v60 = vld [vmem:[#allocation2 + $0x1b10] sm:$0xff] }
 0x9db   :  { %v4693_v1 = vpop.f32.mrf.mxu1  ;;  %5430 = vmatpush2.msra.mxu1 %v5326_v60 }
 0x9dc   :  { %v4694_v4 = vadd.f32 %v4693_v1, %v7477_v30  ;;  %5082 = vmatprep.mubr.f32.mxu0 %v4845_v63  ;;  %v4846_v3 = vmax.f32 %v4692_v0, 0.0  ;;  %v5325_v0 = vld [vmem:[#allocation2 + $0x1b08] sm:$0xff] }
 0x9dd   :  { %v4697_v2 = vpop.f32.mrf.mxu1  ;;  %5083 = vmatmul.mubr.f32.gmra.mxu0 %v4844_v61  ;;  %5431 = vmatprep.subr.mxu1 %v5325_v0 }
 0x9de   :  { %v4847_v5 = vmax.f32 %v4694_v4, 0.0  ;;  %v4698_v6 = vadd.f32 %v4697_v2, %v7474_v27 }
 0x9df   :  { %v4699_v7 = vpop.f32.mrf.mxu1 }
 0x9e0   :  { %v4700_v10 = vadd.f32 %v4699_v7, %v7477_v30  ;;  %5088 = vmatprep.mubr.f32.mxu0 %v4847_v5  ;;  %v4848_v9 = vmax.f32 %v4698_v6, 0.0  ;;  %v5324_v5 = vld [vmem:[#allocation2 + $0x1b00] sm:$0xff] }
 0x9e1   :  { %v4703_v8 = vpop.f32.mrf.mxu1  ;;  %5089 = vmatmul.mubr.f32.gmra.mxu0 %v4846_v3  ;;  %5432 = vmatpush2.msra.mxu1 %v5324_v5 }
 0x9e2   :  { %v4849_v11 = vmax.f32 %v4700_v10, 0.0  ;;  %v4704_v12 = vadd.f32 %v4703_v8, %v7474_v27 }
 0x9e3   :  { %v4705_v15 = vpop.f32.mrf.mxu1 }
 0x9e4   :  { %v4706_v13 = vadd.f32 %v4705_v15, %v7477_v30  ;;  %5094 = vmatprep.mubr.f32.mxu0 %v4849_v11  ;;  %v4850_v17 = vmax.f32 %v4704_v12, 0.0 }
 0x9e5   :  { %v4709_v16 = vpop.f32.mrf.mxu1  ;;  %5095 = vmatmul.mubr.f32.gmra.mxu0 %v4848_v9 }
 0x9e6   :  { %v4851_v14 = vmax.f32 %v4706_v13, 0.0  ;;  %v4710_v18 = vadd.f32 %v4709_v16, %v7474_v27 }
 0x9e7   :  { %v4711_v21 = vpop.f32.mrf.mxu1 }
 0x9e8   :  { %v4712_v19 = vadd.f32 %v4711_v21, %v7477_v30  ;;  %5100 = vmatprep.mubr.f32.mxu0 %v4851_v14  ;;  %v4852_v24 = vmax.f32 %v4710_v18, 0.0 }
 0x9e9   :  { %v4715_v22 = vpop.f32.mrf.mxu1  ;;  %5101 = vmatmul.mubr.f32.gmra.mxu0 %v4850_v17 }
 0x9ea   :  { %v4853_v20 = vmax.f32 %v4712_v19, 0.0  ;;  %v4716_v28 = vadd.f32 %v4715_v22, %v7474_v27 }
 0x9eb   :  { %v4717_v26 = vpop.f32.mrf.mxu1 }
 0x9ec   :  { %v4718_v29 = vadd.f32 %v4717_v26, %v7477_v30  ;;  %5106 = vmatprep.mubr.f32.mxu0 %v4853_v20  ;;  %v4854_v32 = vmax.f32 %v4716_v28, 0.0 }
 0x9ed   :  { %v4721_v31 = vpop.f32.mrf.mxu1  ;;  %5107 = vmatmul.mubr.f32.gmra.mxu0 %v4852_v24 }
 0x9ee   :  { %v4855_v34 = vmax.f32 %v4718_v29, 0.0  ;;  %v4722_v35 = vadd.f32 %v4721_v31, %v7474_v27 }
 0x9ef   :  { %v4723_v33 = vpop.f32.mrf.mxu1 }
 0x9f0   :  { %v4724_v36 = vadd.f32 %v4723_v33, %v7477_v30  ;;  %5112 = vmatprep.mubr.f32.mxu0 %v4855_v34  ;;  %v4856_v38 = vmax.f32 %v4722_v35, 0.0 }
 0x9f1   :  { %v4727_v37 = vpop.f32.mrf.mxu1  ;;  %5113 = vmatmul.mubr.f32.gmra.mxu0 %v4854_v32 }
 0x9f2   :  { %v4857_v40 = vmax.f32 %v4724_v36, 0.0  ;;  %v4728_v41 = vadd.f32 %v4727_v37, %v7474_v27 }
 0x9f3   :  { %v4729_v39 = vpop.f32.mrf.mxu1 }
 0x9f4   :  { %v4730_v42 = vadd.f32 %v4729_v39, %v7477_v30  ;;  %5118 = vmatprep.mubr.f32.mxu0 %v4857_v40  ;;  %v4858_v46 = vmax.f32 %v4728_v41, 0.0 }
 0x9f5   :  { %v4733_v45 = vpop.f32.mrf.mxu1  ;;  %5119 = vmatmul.mubr.f32.gmra.mxu0 %v4856_v38 }
 0x9f6   :  { %v4859_v43 = vmax.f32 %v4730_v42, 0.0  ;;  %v4734_v44 = vadd.f32 %v4733_v45, %v7474_v27 }
 0x9f7   :  { %v4735_v47 = vpop.f32.mrf.mxu1 }
 0x9f8   :  { %v4736_v48 = vadd.f32 %v4735_v47, %v7477_v30  ;;  %5124 = vmatprep.mubr.f32.mxu0 %v4859_v43  ;;  %v4860_v52 = vmax.f32 %v4734_v44, 0.0 }
 0x9f9   :  { %v4739_v51 = vpop.f32.mrf.mxu1  ;;  %5125 = vmatmul.mubr.f32.gmra.mxu0 %v4858_v46 }
 0x9fa   :  { %v4861_v49 = vmax.f32 %v4736_v48, 0.0  ;;  %v4740_v50 = vadd.f32 %v4739_v51, %v7474_v27 }
 0x9fb   :  { %v4741_v53 = vpop.f32.mrf.mxu1 }
 0x9fc   :  { %v4742_v54 = vadd.f32 %v4741_v53, %v7477_v30  ;;  %5130 = vmatprep.mubr.f32.mxu0 %v4861_v49  ;;  %v4862_v58 = vmax.f32 %v4740_v50, 0.0 }
 0x9fd   :  { %v4745_v57 = vpop.f32.mrf.mxu1  ;;  %5131 = vmatmul.mubr.f32.gmra.mxu0 %v4860_v52 }
 0x9fe   :  { %v4863_v55 = vmax.f32 %v4742_v54, 0.0  ;;  %v4746_v56 = vadd.f32 %v4745_v57, %v7474_v27 }
 0x9ff   :  { %v4747_v59 = vpop.f32.mrf.mxu1 }
 0xa00   :  { %v4748_v62 = vadd.f32 %v4747_v59, %v7477_v30  ;;  %5136 = vmatprep.mubr.f32.mxu0 %v4863_v55  ;;  %v4864_v1 = vmax.f32 %v4746_v56, 0.0 }
 0xa01   :  { %v4751_v63 = vpop.f32.mrf.mxu1  ;;  %5137 = vmatmul.mubr.f32.gmra.mxu0 %v4862_v58 }
 0xa02   :  { %v4865_v61 = vmax.f32 %v4748_v62, 0.0  ;;  %v4752_v4 = vadd.f32 %v4751_v63, %v7474_v27 }
 0xa03   :  { %v4753_v2 = vpop.f32.mrf.mxu1 }
 0xa04   :  { %v4754_v3 = vadd.f32 %v4753_v2, %v7477_v30  ;;  %5142 = vmatprep.mubr.f32.mxu0 %v4865_v61  ;;  %v4866_v10 = vmax.f32 %v4752_v4, 0.0 }
 0xa05   :  { %v4757_v6 = vpop.f32.mrf.mxu1  ;;  %5143 = vmatmul.mubr.f32.gmra.mxu0 %v4864_v1 }
 0xa06   :  { %v4867_v7 = vmax.f32 %v4754_v3, 0.0  ;;  %v4758_v8 = vadd.f32 %v4757_v6, %v7474_v27 }
 0xa07   :  { %v4759_v11 = vpop.f32.mrf.mxu1 }
 0xa08   :  { %v4760_v9 = vadd.f32 %v4759_v11, %v7477_v30  ;;  %5148 = vmatprep.mubr.f32.mxu0 %v4867_v7  ;;  %v4868_v13 = vmax.f32 %v4758_v8, 0.0 }
 0xa09   :  { %v4763_v12 = vpop.f32.mrf.mxu1  ;;  %5149 = vmatmul.mubr.f32.gmra.mxu0 %v4866_v10 }
 0xa0a   :  { %v4869_v15 = vmax.f32 %v4760_v9, 0.0  ;;  %v4764_v16 = vadd.f32 %v4763_v12, %v7474_v27 }
 0xa0b   :  { %v4765_v14 = vpop.f32.mrf.mxu1 }
 0xa0c   :  { %v4766_v17 = vadd.f32 %v4765_v14, %v7477_v30  ;;  %5154 = vmatprep.mubr.f32.mxu0 %v4869_v15  ;;  %v4870_v19 = vmax.f32 %v4764_v16, 0.0 }
 0xa0d   :  { %v4769_v18 = vpop.f32.mrf.mxu1  ;;  %5155 = vmatmul.mubr.f32.gmra.mxu0 %v4868_v13 }
 0xa0e   :  { %v4871_v21 = vmax.f32 %v4766_v17, 0.0  ;;  %v4770_v22 = vadd.f32 %v4769_v18, %v7474_v27 }
 0xa0f   :  { %v4771_v20 = vpop.f32.mrf.mxu1 }
 0xa10   :  { %v4772_v24 = vadd.f32 %v4771_v20, %v7477_v30  ;;  %5160 = vmatprep.mubr.f32.mxu0 %v4871_v21  ;;  %v4872_v29 = vmax.f32 %v4770_v22, 0.0  ;;  %v5721_v22 = vld [vmem:[#allocation2 + $0x1cf0] sm:$0xff]  ;;  %v5720_v20 = vld [vmem:[#allocation2 + $0x1ce8] sm:$0xff] }
 0xa11   :  { %v4775_v28 = vpop.f32.mrf.mxu1  ;;  %5161 = vmatmul.mubr.f32.gmra.mxu0 %v4870_v19  ;;  %v5722_v19 = vld [vmem:[#allocation2 + $0x1cf8] sm:$0xff] }
 0xa12   :  { %v4873_v26 = vmax.f32 %v4772_v24, 0.0  ;;  %v4776_v31 = vadd.f32 %v4775_v28, %v7474_v27  ;;  %5768 = vmatprep.subr.mxu0 %v5722_v19  ;;  %v5719_v24 = vld [vmem:[#allocation2 + $0x1ce0] sm:$0xff]  ;;  %v5718_v28 = vld [vmem:[#allocation2 + $0x1cd8] sm:$0xff] }
 0xa13   :  { %v4777_v34 = vpop.f32.mrf.mxu1  ;;  %5769 = vmatpush1.msra.mxu0 %v5721_v22  ;;  %v5747_v22 = vld [vmem:[#allocation2 + $0x1dc0] sm:$0xff] }
 0xa14   :  { %v4778_v32 = vadd.f32 %v4777_v34, %v7477_v30  ;;  %5166 = vmatprep.mubr.f32.mxu0 %v4873_v26  ;;  %v4874_v36 = vmax.f32 %v4776_v31, 0.0  ;;  %5770 = vmatprep.subr.mxu0 %v5720_v20  ;;  %v5716_v26 = vld [vmem:[#allocation2 + $0x1cc8] sm:$0xff]  ;;  %v5713_v31 = vld [vmem:[#allocation2 + $0x1cb0] sm:$0xff] }
 0xa15   :  { %v4781_v35 = vpop.f32.mrf.mxu1  ;;  %5167 = vmatmul.mubr.f32.gmra.mxu0 %v4872_v29  ;;  %v5714_v29 = vld [vmem:[#allocation2 + $0x1cb8] sm:$0xff]  ;;  %v5712_v34 = vld [vmem:[#allocation2 + $0x1ca8] sm:$0xff] }
 0xa16   :  { %v4875_v33 = vmax.f32 %v4778_v32, 0.0  ;;  %v4782_v37 = vadd.f32 %v4781_v35, %v7474_v27  ;;  %5771 = vmatpush1.msra.mxu0 %v5719_v24  ;;  %v5711_v32 = vld [vmem:[#allocation2 + $0x1ca0] sm:$0xff]  ;;  %v5710_v35 = vld [vmem:[#allocation2 + $0x1c98] sm:$0xff] }
 0xa17   :  { %v4783_v40 = vpop.f32.mrf.mxu1  ;;  %5772 = vmatprep.subr.mxu0 %v5718_v28  ;;  %v5746_v24 = vld [vmem:[#allocation2 + $0x1db8] sm:$0xff] }
 0xa18   :  { %v4784_v38 = vadd.f32 %v4783_v40, %v7477_v30  ;;  %5172 = vmatprep.mubr.f32.mxu0 %v4875_v33  ;;  %v4876_v42 = vmax.f32 %v4782_v37, 0.0  ;;  %v5709_v33 = vld [vmem:[#allocation2 + $0x1c90] sm:$0xff]  ;;  %v5707_v37 = vld [vmem:[#allocation2 + $0x1c80] sm:$0xff]  ;;  %v5706_v40 = vld [vmem:[#allocation2 + $0x1c78] sm:$0xff] }
 0xa19   :  { %v4787_v41 = vpop.f32.mrf.mxu1  ;;  %5173 = vmatmul.mubr.f32.gmra.mxu0 %v4874_v36  ;;  %v5708_v36 = vld [vmem:[#allocation2 + $0x1c88] sm:$0xff] }
 0xa1a   :  { %v4877_v39 = vmax.f32 %v4784_v38, 0.0  ;;  %v4788_v45 = vadd.f32 %v4787_v41, %v7474_v27  ;;  %v5705_v38 = vld [vmem:[#allocation2 + $0x1c70] sm:$0xff]  ;;  %v5704_v41 = vld [vmem:[#allocation2 + $0x1c68] sm:$0xff] }
 0xa1b   :  { %v4789_v43 = vpop.f32.mrf.mxu1 }
 0xa1c   :  { %v4790_v46 = vadd.f32 %v4789_v43, %v7477_v30  ;;  %5178 = vmatprep.mubr.f32.mxu0 %v4877_v39  ;;  %v4878_v48 = vmax.f32 %v4788_v45, 0.0  ;;  %v5703_v39 = vld [vmem:[#allocation2 + $0x1c60] sm:$0xff]  ;;  %v4958_v45 = vld [vmem:[#allocation4 + $0x18] sm:$0x3]  ;;  %v5701_v43 = vld [vmem:[#allocation2 + $0x1c50] sm:$0xff] }
 0xa1d   :  { %v4793_v44 = vpop.f32.mrf.mxu1  ;;  %5179 = vmatmul.mubr.f32.gmra.mxu0 %v4876_v42  ;;  %v5702_v42 = vld [vmem:[#allocation2 + $0x1c58] sm:$0xff] }
 0xa1e   :  { %v4879_v47 = vmax.f32 %v4790_v46, 0.0  ;;  %v4794_v51 = vadd.f32 %v4793_v44, %v7474_v27  ;;  %v5700_v46 = vld [vmem:[#allocation2 + $0x1c48] sm:$0xff]  ;;  %v7544_v44 = vrot.slane %v4958_v45, %v6699_v23 }
 0xa1f   :  { %v4795_v49 = vpop.f32.mrf.mxu1 }
 0xa20   :  { %v4796_v52 = vadd.f32 %v4795_v49, %v7477_v30  ;;  %5184 = vmatprep.mubr.f32.mxu0 %v4879_v47  ;;  %v4880_v54 = vmax.f32 %v4794_v51, 0.0  ;;  %v7547_v47 = vrot.slane %v4958_v45, %v6701_v25  ;;  %v5698_v49 = vld [vmem:[#allocation2 + $0x1c38] sm:$0xff]  ;;  %v5739_v45 = vld [vmem:[#allocation2 + $0x1d80] sm:$0xff] }
 0xa21   :  { %v4799_v50 = vpop.f32.mrf.mxu1  ;;  %5185 = vmatmul.mubr.f32.gmra.mxu0 %v4878_v48  ;;  %v5699_v48 = vld [vmem:[#allocation2 + $0x1c40] sm:$0xff] }
 0xa22   :  { %v4881_v53 = vmax.f32 %v4796_v52, 0.0  ;;  %v4800_v57 = vadd.f32 %v4799_v50, %v7474_v27  ;;  %v5697_v52 = vld [vmem:[#allocation2 + $0x1c30] sm:$0xff] }
 0xa23   :  { %v4801_v55 = vpop.f32.mrf.mxu1 }
 0xa24   :  { %v4802_v58 = vadd.f32 %v4801_v55, %v7477_v30  ;;  %5190 = vmatprep.mubr.f32.mxu0 %v4881_v53  ;;  %v4882_v62 = vmax.f32 %v4800_v57, 0.0  ;;  %v5696_v57 = vld [vmem:[#allocation2 + $0x1c28] sm:$0xff] }
 0xa25   :  { %v4805_v56 = vpop.f32.mrf.mxu1  ;;  %5191 = vmatmul.mubr.f32.gmra.mxu0 %v4880_v54 }
 0xa26   :  { %v4883_v59 = vmax.f32 %v4802_v58, 0.0  ;;  %v4806_v60 = vadd.f32 %v4805_v56, %v7474_v27  ;;  %v5695_v58 = vld [vmem:[#allocation2 + $0x1c20] sm:$0xff]  ;;  %v5694_v56 = vld [vmem:[#allocation2 + $0x1c18] sm:$0xff] }
 0xa27   :  { %v4807_v63 = vpop.f32.mrf.mxu1 }
 0xa28   :  { %v4808_v61 = vadd.f32 %v4807_v63, %v7477_v30  ;;  %5196 = vmatprep.mubr.f32.mxu0 %v4883_v59  ;;  %v4884_v4 = vmax.f32 %v4806_v60, 0.0  ;;  %v5693_v59 = vld [vmem:[#allocation2 + $0x1c10] sm:$0xff]  ;;  %v5692_v60 = vld [vmem:[#allocation2 + $0x1c08] sm:$0xff] }
 0xa29   :  { %v4811_v0 = vpop.f32.mrf.mxu1  ;;  %5197 = vmatmul.mubr.f32.gmra.mxu0 %v4882_v62 }
 0xa2a   :  { %v4885_v1 = vmax.f32 %v4808_v61, 0.0  ;;  %v4812_v2 = vadd.f32 %v4811_v0, %v7474_v27 }
 0xa2b   :  { %v4813_v5 = vpop.f32.mrf.mxu1 }
 0xa2c   :  { %v4814_v3 = vadd.f32 %v4813_v5, %v7477_v30  ;;  %5202 = vmatprep.mubr.f32.mxu0 %v4885_v1  ;;  %v4886_v10 = vmax.f32 %v4812_v2, 0.0  ;;  %v5691_v1 = vld [vmem:[#allocation2 + $0x1c00] sm:$0xff]  ;;  %v5754_v2 = vld [vmem:[#allocation2 + $0x1df8] sm:$0xff] }
 0xa2d   :  { %v4817_v6 = vpop.f32.mrf.mxu1  ;;  %5203 = vmatmul.mubr.f32.gmra.mxu0 %v4884_v4 }
 0xa2e   :  { %v4887_v7 = vmax.f32 %v4814_v3, 0.0  ;;  %v4818_v8 = vadd.f32 %v4817_v6, %v7474_v27  ;;  %v5753_v3 = vld [vmem:[#allocation2 + $0x1df0] sm:$0xff] }
 0xa2f   :  { %v4819_v11 = vpop.f32.mrf.mxu1 }
 0xa30   :  { %v4820_v9 = vadd.f32 %v4819_v11, %v7477_v30  ;;  %5208 = vmatprep.mubr.f32.mxu0 %v4887_v7  ;;  %v4888_v13 = vmax.f32 %v4818_v8, 0.0  ;;  %v5752_v7 = vld [vmem:[#allocation2 + $0x1de8] sm:$0xff] }
 0xa31   :  { %v4823_v12 = vpop.f32.mrf.mxu1  ;;  %5209 = vmatmul.mubr.f32.gmra.mxu0 %v4886_v10 }
 0xa32   :  { %v4889_v15 = vmax.f32 %v4820_v9, 0.0  ;;  %v4824_v16 = vadd.f32 %v4823_v12, %v7474_v27  ;;  %v5717_v27 = vld [vmem:[#allocation2 + $0x1cd0] sm:$0xff]  ;;  %v5751_v9 = vld [vmem:[#allocation2 + $0x1de0] sm:$0xff] }
 0xa33   :  { %v4825_v14 = vpop.f32.mrf.mxu1  ;;  %5773 = vmatpush1.msra.mxu0 %v5717_v27  ;;  %v5745_v27 = vld [vmem:[#allocation2 + $0x1db0] sm:$0xff] }
 0xa34   :  { %v4826_v17 = vadd.f32 %v4825_v14, %v7477_v30  ;;  %5214 = vmatprep.mubr.f32.mxu0 %v4889_v15  ;;  %v4890_v21 = vmax.f32 %v4824_v16, 0.0  ;;  %5774 = vmatprep.subr.mxu0 %v5716_v26  ;;  %v5715_v30 = vld [vmem:[#allocation2 + $0x1cc0] sm:$0xff]  ;;  %v5750_v15 = vld [vmem:[#allocation2 + $0x1dd8] sm:$0xff]  ;;  %v5749_v16 = vld [vmem:[#allocation2 + $0x1dd0] sm:$0xff] }
 0xa35   :  { %5215 = vmatmul.mubr.f32.gmra.mxu0 %v4888_v13 }
 0xa36   :  { %v4891_v18 = vmax.f32 %v4826_v17, 0.0  ;;  %5775 = vmatpush1.msra.mxu0 %v5715_v30  ;;  %v5748_v17 = vld [vmem:[#allocation2 + $0x1dc8] sm:$0xff] }
 0xa37   :  { %5776 = vmatprep.subr.mxu0 %v5714_v29  ;;  %v5744_v30 = vld [vmem:[#allocation2 + $0x1da8] sm:$0xff] }
 0xa38   :  { %5220 = vmatprep.mubr.f32.mxu0 %v4891_v18  ;;  %5777 = vmatpush1.msra.mxu0 %v5713_v31 }
 0xa39   :  { %5221 = vmatmul.mubr.f32.gmra.mxu0 %v4890_v21  ;;  %5778 = vmatprep.subr.mxu0 %v5712_v34 }
 0xa3a   :  { %5779 = vmatpush1.msra.mxu0 %v5711_v32  ;;  %v5743_v32 = vld [vmem:[#allocation2 + $0x1da0] sm:$0xff] }
 0xa3b   :  { %5780 = vmatprep.subr.mxu0 %v5710_v35 }
 0xa3c   :  { %5781 = vmatpush1.msra.mxu0 %v5709_v33  ;;  %v5742_v33 = vld [vmem:[#allocation2 + $0x1d98] sm:$0xff] }
 0xa3d   :  { %5782 = vmatprep.subr.mxu0 %v5708_v36 }
 0xa3e   :  { %5783 = vmatpush1.msra.mxu0 %v5707_v37  ;;  %v5741_v37 = vld [vmem:[#allocation2 + $0x1d90] sm:$0xff] }
 0xa3f   :  { %5784 = vmatprep.subr.mxu0 %v5706_v40 }
 0xa40   :  { %5785 = vmatpush1.msra.mxu0 %v5705_v38  ;;  %v5740_v38 = vld [vmem:[#allocation2 + $0x1d88] sm:$0xff] }
 0xa41   :  { %5786 = vmatprep.subr.mxu0 %v5704_v41 }
 0xa42   :  { %5787 = vmatpush1.msra.mxu0 %v5703_v39 }
 0xa43   :  { %5788 = vmatprep.subr.mxu0 %v5702_v42 }
 0xa44   :  { %5789 = vmatpush1.msra.mxu0 %v5701_v43 }
 0xa45   :  { %5790 = vmatprep.subr.mxu0 %v5700_v46  ;;  %v5738_v46 = vld [vmem:[#allocation2 + $0x1d78] sm:$0xff] }
 0xa46   :  { %5791 = vmatpush1.msra.mxu0 %v5699_v48 }
 0xa47   :  { %5792 = vmatprep.subr.mxu0 %v5698_v49 }
 0xa48   :  { %5793 = vmatpush1.msra.mxu0 %v5697_v52  ;;  %v5736_v52 = vld [vmem:[#allocation2 + $0x1d68] sm:$0xff] }
 0xa49   :  { %5794 = vmatprep.subr.mxu0 %v5696_v57  ;;  %v5735_v57 = vld [vmem:[#allocation2 + $0x1d60] sm:$0xff] }
 0xa4a   :  { %5795 = vmatpush1.msra.mxu0 %v5695_v58  ;;  %v5734_v58 = vld [vmem:[#allocation2 + $0x1d58] sm:$0xff] }
 0xa4b   :  { %5796 = vmatprep.subr.mxu0 %v5694_v56 }
 0xa4c   :  { %5797 = vmatpush1.msra.mxu0 %v5693_v59  ;;  %v5733_v59 = vld [vmem:[#allocation2 + $0x1d50] sm:$0xff] }
 0xa4d   :  { %5798 = vmatprep.subr.mxu0 %v5692_v60  ;;  %v5732_v60 = vld [vmem:[#allocation2 + $0x1d48] sm:$0xff] }
 0xa4e   :  { %5799 = vmatpush1.msra.mxu0 %v5691_v1  ;;  %v5731_v1 = vld [vmem:[#allocation2 + $0x1d40] sm:$0xff] }
 0xa4f   :  { %5800 = vmatprep.subr.mxu0 %v5754_v2  ;;  %v5730_v2 = vld [vmem:[#allocation2 + $0x1d38] sm:$0xff] }
 0xa50   :  { %5801 = vmatpush2.msra.mxu0 %v5753_v3  ;;  %v5729_v3 = vld [vmem:[#allocation2 + $0x1d30] sm:$0xff] }
 0xa51   :  { %5802 = vmatprep.subr.mxu0 %v5752_v7  ;;  %v5728_v7 = vld [vmem:[#allocation2 + $0x1d28] sm:$0xff] }
 0xa52   :  { %5803 = vmatpush2.msra.mxu0 %v5751_v9  ;;  %v5727_v9 = vld [vmem:[#allocation2 + $0x1d20] sm:$0xff] }
 0xa53   :  { %5804 = vmatprep.subr.mxu0 %v5750_v15  ;;  %v5726_v15 = vld [vmem:[#allocation2 + $0x1d18] sm:$0xff] }
 0xa54   :  { %5805 = vmatpush2.msra.mxu0 %v5749_v16 }
 0xa55   :  { %5806 = vmatprep.subr.mxu0 %v5748_v17 }
 0xa56   :  { %5807 = vmatpush2.msra.mxu0 %v5747_v22 }
 0xa57   :  { %5808 = vmatprep.subr.mxu0 %v5746_v24 }
 0xa58   :  { %5809 = vmatpush2.msra.mxu0 %v5745_v27 }
 0xa59   :  { %5810 = vmatprep.subr.mxu0 %v5744_v30 }
 0xa5a   :  { %5811 = vmatpush2.msra.mxu0 %v5743_v32 }
 0xa5b   :  { %5812 = vmatprep.subr.mxu0 %v5742_v33 }
 0xa5c   :  { %5813 = vmatpush2.msra.mxu0 %v5741_v37 }
 0xa5d   :  { %5814 = vmatprep.subr.mxu0 %v5740_v38 }
 0xa5e   :  { %5815 = vmatpush2.msra.mxu0 %v5739_v45 }
 0xa5f   :  { %5816 = vmatprep.subr.mxu0 %v5738_v46 }
 0xa7d   :  { %v5036_v51 = vpop.f32.mrf.mxu0 }
 0xa7e   :  { %v5037_v50 = vadd.f32 %v5036_v51, %v7544_v44  ;;  %v5737_v51 = vld [vmem:[#allocation2 + $0x1d70] sm:$0xff] }
 0xa7f   :  { %v5038_v53 = vpop.f32.mrf.mxu0  ;;  %5817 = vmatpush2.msra.mxu0 %v5737_v51 }
 0xa80   :  { %v5039_v54 = vadd.f32 %v5038_v53, %v7547_v47  ;;  %v5227_v63 = vmax.f32 %v5037_v50, 0.0  ;;  %5818 = vmatprep.subr.mxu0 %v5736_v52 }
 0xa81   :  { %v5042_v55 = vpop.f32.mrf.mxu0  ;;  %5819 = vmatpush2.msra.mxu0 %v5735_v57 }
 0xa82   :  { %v5228_v62 = vmax.f32 %v5039_v54, 0.0  ;;  %v5043_v61 = vadd.f32 %v5042_v55, %v7544_v44  ;;  %5820 = vmatprep.subr.mxu0 %v5734_v58 }
 0xa83   :  { %v5044_v0 = vpop.f32.mrf.mxu0  ;;  %5821 = vmatpush2.msra.mxu0 %v5733_v59 }
 0xa84   :  { %v5045_v4 = vadd.f32 %v5044_v0, %v7547_v47  ;;  %5433 = vmatprep.mubr.f32.mxu1 %v5228_v62  ;;  %v5229_v10 = vmax.f32 %v5043_v61, 0.0  ;;  %5822 = vmatprep.subr.mxu0 %v5732_v60 }
 0xa85   :  { %v5048_v5 = vpop.f32.mrf.mxu0  ;;  %5434 = vmatmul.mubr.f32.vlgmr.msra.gmra.mxu1 %v5227_v63  ;;  %5823 = vmatpush2.msra.mxu0 %v5731_v1 }
 0xa86   :  { %v5230_v6 = vmax.f32 %v5045_v4, 0.0  ;;  %v5049_v8 = vadd.f32 %v5048_v5, %v7544_v44  ;;  %5824 = vmatprep.subr.mxu0 %v5730_v2 }
 0xa87   :  { %v5050_v11 = vpop.f32.mrf.mxu0  ;;  %5825 = vmatpush2.msra.mxu0 %v5729_v3 }
 0xa88   :  { %v5051_v12 = vadd.f32 %v5050_v11, %v7547_v47  ;;  %5439 = vmatprep.mubr.f32.mxu1 %v5230_v6  ;;  %v5231_v18 = vmax.f32 %v5049_v8, 0.0  ;;  %5826 = vmatprep.subr.mxu0 %v5728_v7 }
 0xa89   :  { %v5054_v13 = vpop.f32.mrf.mxu0  ;;  %5440 = vmatmul.mubr.f32.gmra.mxu1 %v5229_v10  ;;  %5827 = vmatpush2.msra.mxu0 %v5727_v9 }
 0xa8a   :  { %v5232_v14 = vmax.f32 %v5051_v12, 0.0  ;;  %v5055_v21 = vadd.f32 %v5054_v13, %v7544_v44  ;;  %5828 = vmatprep.subr.mxu0 %v5726_v15 }
 0xa8b   :  { %v5056_v19 = vpop.f32.mrf.mxu0 }
 0xa8c   :  { %v5057_v20 = vadd.f32 %v5056_v19, %v7547_v47  ;;  %5445 = vmatprep.mubr.f32.mxu1 %v5232_v14  ;;  %v5233_v29 = vmax.f32 %v5055_v21, 0.0 }
 0xa8d   :  { %v5060_v28 = vpop.f32.mrf.mxu0  ;;  %5446 = vmatmul.mubr.f32.gmra.mxu1 %v5231_v18 }
 0xa8e   :  { %v5234_v26 = vmax.f32 %v5057_v20, 0.0  ;;  %v5061_v31 = vadd.f32 %v5060_v28, %v7544_v44 }
 0xa8f   :  { %v5062_v34 = vpop.f32.mrf.mxu0 }
 0xa90   :  { %v5063_v35 = vadd.f32 %v5062_v34, %v7547_v47  ;;  %5451 = vmatprep.mubr.f32.mxu1 %v5234_v26  ;;  %v5235_v41 = vmax.f32 %v5061_v31, 0.0 }
 0xa91   :  { %v5066_v36 = vpop.f32.mrf.mxu0  ;;  %5452 = vmatmul.mubr.f32.gmra.mxu1 %v5233_v29 }
 0xa92   :  { %v5236_v40 = vmax.f32 %v5063_v35, 0.0  ;;  %v5067_v39 = vadd.f32 %v5066_v36, %v7544_v44 }
 0xa93   :  { %v5068_v42 = vpop.f32.mrf.mxu0 }
 0xa94   :  { %v5069_v43 = vadd.f32 %v5068_v42, %v7547_v47  ;;  %5457 = vmatprep.mubr.f32.mxu1 %v5236_v40  ;;  %v5237_v50 = vmax.f32 %v5067_v39, 0.0 }
 0xa95   :  { %v5072_v48 = vpop.f32.mrf.mxu0  ;;  %5458 = vmatmul.mubr.f32.gmra.mxu1 %v5235_v41 }
 0xa96   :  { %v5238_v49 = vmax.f32 %v5069_v43, 0.0  ;;  %v5073_v53 = vadd.f32 %v5072_v48, %v7544_v44 }
 0xa97   :  { %v5074_v54 = vpop.f32.mrf.mxu0 }
 0xa98   :  { %v5075_v55 = vadd.f32 %v5074_v54, %v7547_v47  ;;  %5463 = vmatprep.mubr.f32.mxu1 %v5238_v49  ;;  %v5239_v63 = vmax.f32 %v5073_v53, 0.0 }
 0xa99   :  { %v5078_v56 = vpop.f32.mrf.mxu0  ;;  %5464 = vmatmul.mubr.f32.gmra.mxu1 %v5237_v50 }
 0xa9a   :  { %v5240_v62 = vmax.f32 %v5075_v55, 0.0  ;;  %v5079_v61 = vadd.f32 %v5078_v56, %v7544_v44 }
 0xa9b   :  { %v5080_v0 = vpop.f32.mrf.mxu0 }
 0xa9c   :  { %v5081_v4 = vadd.f32 %v5080_v0, %v7547_v47  ;;  %5469 = vmatprep.mubr.f32.mxu1 %v5240_v62  ;;  %v5241_v10 = vmax.f32 %v5079_v61, 0.0 }
 0xa9d   :  { %v5084_v5 = vpop.f32.mrf.mxu0  ;;  %5470 = vmatmul.mubr.f32.gmra.mxu1 %v5239_v63 }
 0xa9e   :  { %v5242_v6 = vmax.f32 %v5081_v4, 0.0  ;;  %v5085_v8 = vadd.f32 %v5084_v5, %v7544_v44 }
 0xa9f   :  { %v5086_v11 = vpop.f32.mrf.mxu0 }
 0xaa0   :  { %v5087_v12 = vadd.f32 %v5086_v11, %v7547_v47  ;;  %5475 = vmatprep.mubr.f32.mxu1 %v5242_v6  ;;  %v5243_v14 = vmax.f32 %v5085_v8, 0.0 }
 0xaa1   :  { %v5090_v13 = vpop.f32.mrf.mxu0  ;;  %5476 = vmatmul.mubr.f32.gmra.mxu1 %v5241_v10 }
 0xaa2   :  { %v5244_v16 = vmax.f32 %v5087_v12, 0.0  ;;  %v5091_v17 = vadd.f32 %v5090_v13, %v7544_v44  ;;  %v5725_v13 = vld [vmem:[#allocation2 + $0x1d10] sm:$0xff] }
 0xaa3   :  { %v5092_v18 = vpop.f32.mrf.mxu0  ;;  %5829 = vmatpush2.msra.mxu0 %v5725_v13 }
 0xaa4   :  { %v5093_v21 = vadd.f32 %v5092_v18, %v7547_v47  ;;  %5481 = vmatprep.mubr.f32.mxu1 %v5244_v16  ;;  %v5245_v20 = vmax.f32 %v5091_v17, 0.0  ;;  %v5724_v17 = vld [vmem:[#allocation2 + $0x1d08] sm:$0xff] }
 0xaa5   :  { %v5096_v19 = vpop.f32.mrf.mxu0  ;;  %5482 = vmatmul.mubr.f32.gmra.mxu1 %v5243_v14  ;;  %5830 = vmatprep.subr.mxu0 %v5724_v17 }
 0xaa6   :  { %v5246_v22 = vmax.f32 %v5093_v21, 0.0  ;;  %v5097_v24 = vadd.f32 %v5096_v19, %v7544_v44 }
 0xaa7   :  { %v5098_v28 = vpop.f32.mrf.mxu0 }
 0xaa8   :  { %v5099_v27 = vadd.f32 %v5098_v28, %v7547_v47  ;;  %5487 = vmatprep.mubr.f32.mxu1 %v5246_v22  ;;  %v5247_v29 = vmax.f32 %v5097_v24, 0.0  ;;  %v5723_v22 = vld [vmem:[#allocation2 + $0x1d00] sm:$0xff] }
 0xaa9   :  { %v5102_v26 = vpop.f32.mrf.mxu0  ;;  %5488 = vmatmul.mubr.f32.gmra.mxu1 %v5245_v20  ;;  %5831 = vmatpush2.msra.mxu0 %v5723_v22 }
 0xaaa   :  { %v5248_v30 = vmax.f32 %v5099_v27, 0.0  ;;  %v5103_v31 = vadd.f32 %v5102_v26, %v7544_v44 }
 0xaab   :  { %v5104_v34 = vpop.f32.mrf.mxu0 }
 0xaac   :  { %v5105_v32 = vadd.f32 %v5104_v34, %v7547_v47  ;;  %5493 = vmatprep.mubr.f32.mxu1 %v5248_v30  ;;  %v5249_v36 = vmax.f32 %v5103_v31, 0.0 }
 0xaad   :  { %v5108_v35 = vpop.f32.mrf.mxu0  ;;  %5494 = vmatmul.mubr.f32.gmra.mxu1 %v5247_v29 }
 0xaae   :  { %v5250_v33 = vmax.f32 %v5105_v32, 0.0  ;;  %v5109_v37 = vadd.f32 %v5108_v35, %v7544_v44 }
 0xaaf   :  { %v5110_v40 = vpop.f32.mrf.mxu0 }
 0xab0   :  { %v5111_v38 = vadd.f32 %v5110_v40, %v7547_v47  ;;  %5499 = vmatprep.mubr.f32.mxu1 %v5250_v33  ;;  %v5251_v42 = vmax.f32 %v5109_v37, 0.0 }
 0xab1   :  { %v5114_v41 = vpop.f32.mrf.mxu0  ;;  %5500 = vmatmul.mubr.f32.gmra.mxu1 %v5249_v36 }
 0xab2   :  { %v5252_v39 = vmax.f32 %v5111_v38, 0.0  ;;  %v5115_v45 = vadd.f32 %v5114_v41, %v7544_v44 }
 0xab3   :  { %v5116_v43 = vpop.f32.mrf.mxu0 }
 0xab4   :  { %v5117_v46 = vadd.f32 %v5116_v43, %v7547_v47  ;;  %5505 = vmatprep.mubr.f32.mxu1 %v5252_v39  ;;  %v5253_v49 = vmax.f32 %v5115_v45, 0.0 }
 0xab5   :  { %v5120_v48 = vpop.f32.mrf.mxu0  ;;  %5506 = vmatmul.mubr.f32.gmra.mxu1 %v5251_v42 }
 0xab6   :  { %v5254_v51 = vmax.f32 %v5117_v46, 0.0  ;;  %v5121_v52 = vadd.f32 %v5120_v48, %v7544_v44 }
 0xab7   :  { %v5122_v50 = vpop.f32.mrf.mxu0 }
 0xab8   :  { %v5123_v53 = vadd.f32 %v5122_v50, %v7547_v47  ;;  %5511 = vmatprep.mubr.f32.mxu1 %v5254_v51  ;;  %v5255_v55 = vmax.f32 %v5121_v52, 0.0 }
 0xab9   :  { %v5126_v54 = vpop.f32.mrf.mxu0  ;;  %5512 = vmatmul.mubr.f32.gmra.mxu1 %v5253_v49 }
 0xaba   :  { %v5256_v57 = vmax.f32 %v5123_v53, 0.0  ;;  %v5127_v58 = vadd.f32 %v5126_v54, %v7544_v44 }
 0xabb   :  { %v5128_v56 = vpop.f32.mrf.mxu0 }
 0xabc   :  { %v5129_v59 = vadd.f32 %v5128_v56, %v7547_v47  ;;  %5517 = vmatprep.mubr.f32.mxu1 %v5256_v57  ;;  %v5257_v63 = vmax.f32 %v5127_v58, 0.0 }
 0xabd   :  { %v5132_v62 = vpop.f32.mrf.mxu0  ;;  %5518 = vmatmul.mubr.f32.gmra.mxu1 %v5255_v55 }
 0xabe   :  { %v5258_v60 = vmax.f32 %v5129_v59, 0.0  ;;  %v5133_v61 = vadd.f32 %v5132_v62, %v7544_v44 }
 0xabf   :  { %v5134_v0 = vpop.f32.mrf.mxu0 }
 0xac0   :  { %v5135_v1 = vadd.f32 %v5134_v0, %v7547_v47  ;;  %5523 = vmatprep.mubr.f32.mxu1 %v5258_v60  ;;  %v5259_v5 = vmax.f32 %v5133_v61, 0.0 }
 0xac1   :  { %v5138_v4 = vpop.f32.mrf.mxu0  ;;  %5524 = vmatmul.mubr.f32.gmra.mxu1 %v5257_v63 }
 0xac2   :  { %v5260_v2 = vmax.f32 %v5135_v1, 0.0  ;;  %v5139_v3 = vadd.f32 %v5138_v4, %v7544_v44 }
 0xac3   :  { %v5140_v6 = vpop.f32.mrf.mxu0 }
 0xac4   :  { %v5141_v7 = vadd.f32 %v5140_v6, %v7547_v47  ;;  %5529 = vmatprep.mubr.f32.mxu1 %v5260_v2  ;;  %v5261_v11 = vmax.f32 %v5139_v3, 0.0 }
 0xac5   :  { %v5144_v10 = vpop.f32.mrf.mxu0  ;;  %5530 = vmatmul.mubr.f32.gmra.mxu1 %v5259_v5 }
 0xac6   :  { %v5262_v8 = vmax.f32 %v5141_v7, 0.0  ;;  %v5145_v9 = vadd.f32 %v5144_v10, %v7544_v44 }
 0xac7   :  { %v5146_v12 = vpop.f32.mrf.mxu0 }
 0xac8   :  { %v5147_v15 = vadd.f32 %v5146_v12, %v7547_v47  ;;  %5535 = vmatprep.mubr.f32.mxu1 %v5262_v8  ;;  %v5263_v18 = vmax.f32 %v5145_v9, 0.0 }
 0xac9   :  { %v5150_v16 = vpop.f32.mrf.mxu0  ;;  %5536 = vmatmul.mubr.f32.gmra.mxu1 %v5261_v11 }
 0xaca   :  { %v5264_v14 = vmax.f32 %v5147_v15, 0.0  ;;  %v5151_v21 = vadd.f32 %v5150_v16, %v7544_v44 }
 0xacb   :  { %v5152_v19 = vpop.f32.mrf.mxu0 }
 0xacc   :  { %v5153_v20 = vadd.f32 %v5152_v19, %v7547_v47  ;;  %5541 = vmatprep.mubr.f32.mxu1 %v5264_v14  ;;  %v5265_v27 = vmax.f32 %v5151_v21, 0.0 }
 0xacd   :  { %v5156_v24 = vpop.f32.mrf.mxu0  ;;  %5542 = vmatmul.mubr.f32.gmra.mxu1 %v5263_v18 }
 0xace   :  { %v5266_v28 = vmax.f32 %v5153_v20, 0.0  ;;  %v5157_v26 = vadd.f32 %v5156_v24, %v7544_v44 }
 0xacf   :  { %v5158_v30 = vpop.f32.mrf.mxu0 }
 0xad0   :  { %v5159_v29 = vadd.f32 %v5158_v30, %v7547_v47  ;;  %5547 = vmatprep.mubr.f32.mxu1 %v5266_v28  ;;  %v5267_v32 = vmax.f32 %v5157_v26, 0.0 }
 0xad1   :  { %v5162_v31 = vpop.f32.mrf.mxu0  ;;  %5548 = vmatmul.mubr.f32.gmra.mxu1 %v5265_v27 }
 0xad2   :  { %v5268_v34 = vmax.f32 %v5159_v29, 0.0  ;;  %v5163_v35 = vadd.f32 %v5162_v31, %v7544_v44 }
 0xad3   :  { %v5164_v33 = vpop.f32.mrf.mxu0 }
 0xad4   :  { %v5165_v36 = vadd.f32 %v5164_v33, %v7547_v47  ;;  %5553 = vmatprep.mubr.f32.mxu1 %v5268_v34  ;;  %v5269_v38 = vmax.f32 %v5163_v35, 0.0 }
 0xad5   :  { %v5168_v37 = vpop.f32.mrf.mxu0  ;;  %5554 = vmatmul.mubr.f32.gmra.mxu1 %v5267_v32 }
 0xad6   :  { %v5270_v40 = vmax.f32 %v5165_v36, 0.0  ;;  %v5169_v41 = vadd.f32 %v5168_v37, %v7544_v44 }
 0xad7   :  { %v5170_v39 = vpop.f32.mrf.mxu0 }
 0xad8   :  { %v5171_v42 = vadd.f32 %v5170_v39, %v7547_v47  ;;  %5559 = vmatprep.mubr.f32.mxu1 %v5270_v40  ;;  %v5271_v46 = vmax.f32 %v5169_v41, 0.0  ;;  %v6120_v41 = vld [vmem:[#allocation2 + $0x1ef0] sm:$0xff]  ;;  %v6119_v39 = vld [vmem:[#allocation2 + $0x1ee8] sm:$0xff] }
 0xad9   :  { %v5174_v45 = vpop.f32.mrf.mxu0  ;;  %5560 = vmatmul.mubr.f32.gmra.mxu1 %v5269_v38  ;;  %v6121_v38 = vld [vmem:[#allocation2 + $0x1ef8] sm:$0xff] }
 0xada   :  { %v5272_v43 = vmax.f32 %v5171_v42, 0.0  ;;  %v5175_v48 = vadd.f32 %v5174_v45, %v7544_v44  ;;  %6162 = vmatprep.subr.mxu1 %v6121_v38  ;;  %v6118_v42 = vld [vmem:[#allocation2 + $0x1ee0] sm:$0xff]  ;;  %v6117_v45 = vld [vmem:[#allocation2 + $0x1ed8] sm:$0xff] }
 0xadb   :  { %v5176_v51 = vpop.f32.mrf.mxu0  ;;  %6163 = vmatpush1.msra.mxu1 %v6120_v41  ;;  %v6146_v41 = vld [vmem:[#allocation2 + $0x1fc0] sm:$0xff] }
 0xadc   :  { %v5177_v49 = vadd.f32 %v5176_v51, %v7547_v47  ;;  %5565 = vmatprep.mubr.f32.mxu1 %v5272_v43  ;;  %v5273_v53 = vmax.f32 %v5175_v48, 0.0  ;;  %6164 = vmatprep.subr.mxu1 %v6119_v39  ;;  %v6115_v43 = vld [vmem:[#allocation2 + $0x1ec8] sm:$0xff]  ;;  %v6112_v48 = vld [vmem:[#allocation2 + $0x1eb0] sm:$0xff] }
 0xadd   :  { %v5180_v52 = vpop.f32.mrf.mxu0  ;;  %5566 = vmatmul.mubr.f32.gmra.mxu1 %v5271_v46  ;;  %v6113_v46 = vld [vmem:[#allocation2 + $0x1eb8] sm:$0xff]  ;;  %v6111_v51 = vld [vmem:[#allocation2 + $0x1ea8] sm:$0xff] }
 0xade   :  { %v5274_v50 = vmax.f32 %v5177_v49, 0.0  ;;  %v5181_v54 = vadd.f32 %v5180_v52, %v7544_v44  ;;  %6165 = vmatpush1.msra.mxu1 %v6118_v42  ;;  %v6110_v49 = vld [vmem:[#allocation2 + $0x1ea0] sm:$0xff]  ;;  %v6109_v52 = vld [vmem:[#allocation2 + $0x1e98] sm:$0xff] }
 0xadf   :  { %v5182_v57 = vpop.f32.mrf.mxu0  ;;  %6166 = vmatprep.subr.mxu1 %v6117_v45  ;;  %v6145_v42 = vld [vmem:[#allocation2 + $0x1fb8] sm:$0xff] }
 0xae0   :  { %v5183_v55 = vadd.f32 %v5182_v57, %v7547_v47  ;;  %5571 = vmatprep.mubr.f32.mxu1 %v5274_v50  ;;  %v5275_v59 = vmax.f32 %v5181_v54, 0.0  ;;  %v6108_v50 = vld [vmem:[#allocation2 + $0x1e90] sm:$0xff]  ;;  %v6106_v54 = vld [vmem:[#allocation2 + $0x1e80] sm:$0xff]  ;;  %v6105_v57 = vld [vmem:[#allocation2 + $0x1e78] sm:$0xff] }
 0xae1   :  { %v5186_v58 = vpop.f32.mrf.mxu0  ;;  %5572 = vmatmul.mubr.f32.gmra.mxu1 %v5273_v53  ;;  %v6107_v53 = vld [vmem:[#allocation2 + $0x1e88] sm:$0xff] }
 0xae2   :  { %v5276_v56 = vmax.f32 %v5183_v55, 0.0  ;;  %v5187_v62 = vadd.f32 %v5186_v58, %v7544_v44  ;;  %v6104_v55 = vld [vmem:[#allocation2 + $0x1e70] sm:$0xff]  ;;  %v6103_v58 = vld [vmem:[#allocation2 + $0x1e68] sm:$0xff] }
 0xae3   :  { %v5188_v60 = vpop.f32.mrf.mxu0 }
 0xae4   :  { %v5189_v63 = vadd.f32 %v5188_v60, %v7547_v47  ;;  %5577 = vmatprep.mubr.f32.mxu1 %v5276_v56  ;;  %v5277_v1 = vmax.f32 %v5187_v62, 0.0  ;;  %v6102_v56 = vld [vmem:[#allocation2 + $0x1e60] sm:$0xff]  ;;  %v5357_v62 = vld [vmem:[#allocation4 + $0x1a] sm:$0x3]  ;;  %v6100_v60 = vld [vmem:[#allocation2 + $0x1e50] sm:$0xff] }
 0xae5   :  { %v5192_v61 = vpop.f32.mrf.mxu0  ;;  %5578 = vmatmul.mubr.f32.gmra.mxu1 %v5275_v59  ;;  %v6101_v59 = vld [vmem:[#allocation2 + $0x1e58] sm:$0xff] }
 0xae6   :  { %v5278_v0 = vmax.f32 %v5189_v63, 0.0  ;;  %v5193_v4 = vadd.f32 %v5192_v61, %v7544_v44  ;;  %v6099_v63 = vld [vmem:[#allocation2 + $0x1e48] sm:$0xff]  ;;  %v7614_v61 = vrot.slane %v5357_v62, %v6699_v23 }
 0xae7   :  { %v5194_v2 = vpop.f32.mrf.mxu0 }
 0xae8   :  { %v5195_v5 = vadd.f32 %v5194_v2, %v7547_v47  ;;  %5583 = vmatprep.mubr.f32.mxu1 %v5278_v0  ;;  %v5279_v7 = vmax.f32 %v5193_v4, 0.0  ;;  %v7617_v0 = vrot.slane %v5357_v62, %v6701_v25  ;;  %v6097_v2 = vld [vmem:[#allocation2 + $0x1e38] sm:$0xff]  ;;  %v6138_v62 = vld [vmem:[#allocation2 + $0x1f80] sm:$0xff] }
 0xae9   :  { %v5198_v3 = vpop.f32.mrf.mxu0  ;;  %5584 = vmatmul.mubr.f32.gmra.mxu1 %v5277_v1  ;;  %v6098_v1 = vld [vmem:[#allocation2 + $0x1e40] sm:$0xff] }
 0xaea   :  { %v5280_v6 = vmax.f32 %v5195_v5, 0.0  ;;  %v5199_v10 = vadd.f32 %v5198_v3, %v7544_v44  ;;  %v6096_v5 = vld [vmem:[#allocation2 + $0x1e30] sm:$0xff] }
 0xaeb   :  { %v5200_v8 = vpop.f32.mrf.mxu0 }
 0xaec   :  { %v5201_v11 = vadd.f32 %v5200_v8, %v7547_v47  ;;  %5589 = vmatprep.mubr.f32.mxu1 %v5280_v6  ;;  %v5281_v15 = vmax.f32 %v5199_v10, 0.0  ;;  %v6095_v10 = vld [vmem:[#allocation2 + $0x1e28] sm:$0xff] }
 0xaed   :  { %v5204_v9 = vpop.f32.mrf.mxu0  ;;  %5590 = vmatmul.mubr.f32.gmra.mxu1 %v5279_v7 }
 0xaee   :  { %v5282_v12 = vmax.f32 %v5201_v11, 0.0  ;;  %v5205_v13 = vadd.f32 %v5204_v9, %v7544_v44  ;;  %v6094_v11 = vld [vmem:[#allocation2 + $0x1e20] sm:$0xff]  ;;  %v6093_v9 = vld [vmem:[#allocation2 + $0x1e18] sm:$0xff] }
 0xaef   :  { %v5206_v16 = vpop.f32.mrf.mxu0 }
 0xaf0   :  { %v5207_v14 = vadd.f32 %v5206_v16, %v7547_v47  ;;  %5595 = vmatprep.mubr.f32.mxu1 %v5282_v12  ;;  %v5283_v21 = vmax.f32 %v5205_v13, 0.0  ;;  %v6092_v12 = vld [vmem:[#allocation2 + $0x1e10] sm:$0xff]  ;;  %v6091_v13 = vld [vmem:[#allocation2 + $0x1e08] sm:$0xff] }
 0xaf1   :  { %v5210_v17 = vpop.f32.mrf.mxu0  ;;  %5596 = vmatmul.mubr.f32.gmra.mxu1 %v5281_v15 }
 0xaf2   :  { %v5284_v18 = vmax.f32 %v5207_v14, 0.0  ;;  %v5211_v19 = vadd.f32 %v5210_v17, %v7544_v44 }
 0xaf3   :  { %v5212_v22 = vpop.f32.mrf.mxu0 }
 0xaf4   :  { %v5213_v20 = vadd.f32 %v5212_v22, %v7547_v47  ;;  %5601 = vmatprep.mubr.f32.mxu1 %v5284_v18  ;;  %v5285_v27 = vmax.f32 %v5211_v19, 0.0  ;;  %v6090_v18 = vld [vmem:[#allocation2 + $0x1e00] sm:$0xff]  ;;  %v6153_v19 = vld [vmem:[#allocation2 + $0x1ff8] sm:$0xff] }
 0xaf5   :  { %v5216_v24 = vpop.f32.mrf.mxu0  ;;  %5602 = vmatmul.mubr.f32.gmra.mxu1 %v5283_v21 }
 0xaf6   :  { %v5286_v28 = vmax.f32 %v5213_v20, 0.0  ;;  %v5217_v26 = vadd.f32 %v5216_v24, %v7544_v44  ;;  %v6152_v20 = vld [vmem:[#allocation2 + $0x1ff0] sm:$0xff] }
 0xaf7   :  { %v5218_v30 = vpop.f32.mrf.mxu0 }
 0xaf8   :  { %v5219_v29 = vadd.f32 %v5218_v30, %v7547_v47  ;;  %5607 = vmatprep.mubr.f32.mxu1 %v5286_v28  ;;  %v5287_v32 = vmax.f32 %v5217_v26, 0.0  ;;  %v6151_v28 = vld [vmem:[#allocation2 + $0x1fe8] sm:$0xff] }
 0xaf9   :  { %v5222_v31 = vpop.f32.mrf.mxu0  ;;  %5608 = vmatmul.mubr.f32.gmra.mxu1 %v5285_v27 }
 0xafa   :  { %v5288_v34 = vmax.f32 %v5219_v29, 0.0  ;;  %v5223_v35 = vadd.f32 %v5222_v31, %v7544_v44  ;;  %v6116_v44 = vld [vmem:[#allocation2 + $0x1ed0] sm:$0xff]  ;;  %v6150_v29 = vld [vmem:[#allocation2 + $0x1fe0] sm:$0xff] }
 0xafb   :  { %v5224_v33 = vpop.f32.mrf.mxu0  ;;  %6167 = vmatpush1.msra.mxu1 %v6116_v44  ;;  %v6144_v44 = vld [vmem:[#allocation2 + $0x1fb0] sm:$0xff] }
 0xafc   :  { %v5225_v36 = vadd.f32 %v5224_v33, %v7547_v47  ;;  %5613 = vmatprep.mubr.f32.mxu1 %v5288_v34  ;;  %v5289_v40 = vmax.f32 %v5223_v35, 0.0  ;;  %6168 = vmatprep.subr.mxu1 %v6115_v43  ;;  %v6114_v47 = vld [vmem:[#allocation2 + $0x1ec0] sm:$0xff]  ;;  %v6149_v34 = vld [vmem:[#allocation2 + $0x1fd8] sm:$0xff]  ;;  %v6148_v35 = vld [vmem:[#allocation2 + $0x1fd0] sm:$0xff] }
 0xafd   :  { %5614 = vmatmul.mubr.f32.gmra.mxu1 %v5287_v32 }
 0xafe   :  { %v5290_v37 = vmax.f32 %v5225_v36, 0.0  ;;  %6169 = vmatpush1.msra.mxu1 %v6114_v47  ;;  %v6147_v36 = vld [vmem:[#allocation2 + $0x1fc8] sm:$0xff] }
 0xaff   :  { %6170 = vmatprep.subr.mxu1 %v6113_v46  ;;  %v6143_v47 = vld [vmem:[#allocation2 + $0x1fa8] sm:$0xff] }
 0xb00   :  { %5619 = vmatprep.mubr.f32.mxu1 %v5290_v37  ;;  %6171 = vmatpush1.msra.mxu1 %v6112_v48 }
 0xb01   :  { %5620 = vmatmul.mubr.f32.gmra.mxu1 %v5289_v40  ;;  %6172 = vmatprep.subr.mxu1 %v6111_v51 }
 0xb02   :  { %6173 = vmatpush1.msra.mxu1 %v6110_v49  ;;  %v6142_v49 = vld [vmem:[#allocation2 + $0x1fa0] sm:$0xff] }
 0xb03   :  { %6174 = vmatprep.subr.mxu1 %v6109_v52 }
 0xb04   :  { %6175 = vmatpush1.msra.mxu1 %v6108_v50  ;;  %v6141_v50 = vld [vmem:[#allocation2 + $0x1f98] sm:$0xff] }
 0xb05   :  { %6176 = vmatprep.subr.mxu1 %v6107_v53 }
 0xb06   :  { %6177 = vmatpush1.msra.mxu1 %v6106_v54  ;;  %v6140_v54 = vld [vmem:[#allocation2 + $0x1f90] sm:$0xff] }
 0xb07   :  { %6178 = vmatprep.subr.mxu1 %v6105_v57 }
 0xb08   :  { %6179 = vmatpush1.msra.mxu1 %v6104_v55  ;;  %v6139_v55 = vld [vmem:[#allocation2 + $0x1f88] sm:$0xff] }
 0xb09   :  { %6180 = vmatprep.subr.mxu1 %v6103_v58 }
 0xb0a   :  { %6181 = vmatpush1.msra.mxu1 %v6102_v56 }
 0xb0b   :  { %6182 = vmatprep.subr.mxu1 %v6101_v59 }
 0xb0c   :  { %6183 = vmatpush1.msra.mxu1 %v6100_v60 }
 0xb0d   :  { %6184 = vmatprep.subr.mxu1 %v6099_v63  ;;  %v6137_v63 = vld [vmem:[#allocation2 + $0x1f78] sm:$0xff] }
 0xb0e   :  { %6185 = vmatpush1.msra.mxu1 %v6098_v1 }
 0xb0f   :  { %6186 = vmatprep.subr.mxu1 %v6097_v2 }
 0xb10   :  { %6187 = vmatpush1.msra.mxu1 %v6096_v5  ;;  %v6135_v5 = vld [vmem:[#allocation2 + $0x1f68] sm:$0xff] }
 0xb11   :  { %6188 = vmatprep.subr.mxu1 %v6095_v10  ;;  %v6134_v10 = vld [vmem:[#allocation2 + $0x1f60] sm:$0xff] }
 0xb12   :  { %6189 = vmatpush1.msra.mxu1 %v6094_v11  ;;  %v6133_v11 = vld [vmem:[#allocation2 + $0x1f58] sm:$0xff] }
 0xb13   :  { %6190 = vmatprep.subr.mxu1 %v6093_v9 }
 0xb14   :  { %6191 = vmatpush1.msra.mxu1 %v6092_v12  ;;  %v6132_v12 = vld [vmem:[#allocation2 + $0x1f50] sm:$0xff] }
 0xb15   :  { %6192 = vmatprep.subr.mxu1 %v6091_v13  ;;  %v6131_v13 = vld [vmem:[#allocation2 + $0x1f48] sm:$0xff] }
 0xb16   :  { %6193 = vmatpush1.msra.mxu1 %v6090_v18  ;;  %v6130_v18 = vld [vmem:[#allocation2 + $0x1f40] sm:$0xff] }
 0xb17   :  { %6194 = vmatprep.subr.mxu1 %v6153_v19  ;;  %v6129_v19 = vld [vmem:[#allocation2 + $0x1f38] sm:$0xff] }
 0xb18   :  { %6195 = vmatpush2.msra.mxu1 %v6152_v20  ;;  %v6128_v20 = vld [vmem:[#allocation2 + $0x1f30] sm:$0xff] }
 0xb19   :  { %6196 = vmatprep.subr.mxu1 %v6151_v28  ;;  %v6127_v28 = vld [vmem:[#allocation2 + $0x1f28] sm:$0xff] }
 0xb1a   :  { %6197 = vmatpush2.msra.mxu1 %v6150_v29  ;;  %v6126_v29 = vld [vmem:[#allocation2 + $0x1f20] sm:$0xff] }
 0xb1b   :  { %6198 = vmatprep.subr.mxu1 %v6149_v34  ;;  %v6125_v34 = vld [vmem:[#allocation2 + $0x1f18] sm:$0xff] }
 0xb1c   :  { %6199 = vmatpush2.msra.mxu1 %v6148_v35 }
 0xb1d   :  { %6200 = vmatprep.subr.mxu1 %v6147_v36 }
 0xb1e   :  { %6201 = vmatpush2.msra.mxu1 %v6146_v41 }
 0xb1f   :  { %6202 = vmatprep.subr.mxu1 %v6145_v42 }
 0xb20   :  { %6203 = vmatpush2.msra.mxu1 %v6144_v44 }
 0xb21   :  { %6204 = vmatprep.subr.mxu1 %v6143_v47 }
 0xb22   :  { %6205 = vmatpush2.msra.mxu1 %v6142_v49 }
 0xb23   :  { %6206 = vmatprep.subr.mxu1 %v6141_v50 }
 0xb24   :  { %6207 = vmatpush2.msra.mxu1 %v6140_v54 }
 0xb25   :  { %6208 = vmatprep.subr.mxu1 %v6139_v55 }
 0xb26   :  { %6209 = vmatpush2.msra.mxu1 %v6138_v62 }
 0xb27   :  { %6210 = vmatprep.subr.mxu1 %v6137_v63 }
 0xb45   :  { %v5435_v4 = vpop.f32.mrf.mxu1 }
 0xb46   :  { %v5436_v3 = vadd.f32 %v5435_v4, %v7614_v61  ;;  %v6136_v4 = vld [vmem:[#allocation2 + $0x1f70] sm:$0xff] }
 0xb47   :  { %v5437_v6 = vpop.f32.mrf.mxu1  ;;  %6211 = vmatpush2.msra.mxu1 %v6136_v4 }
 0xb48   :  { %v5438_v7 = vadd.f32 %v5437_v6, %v7617_v0  ;;  %v5626_v16 = vmax.f32 %v5436_v3, 0.0  ;;  %6212 = vmatprep.subr.mxu1 %v6135_v5 }
 0xb49   :  { %v5441_v8 = vpop.f32.mrf.mxu1  ;;  %6213 = vmatpush2.msra.mxu1 %v6134_v10 }
 0xb4a   :  { %v5627_v15 = vmax.f32 %v5438_v7, 0.0  ;;  %v5442_v14 = vadd.f32 %v5441_v8, %v7614_v61  ;;  %6214 = vmatprep.subr.mxu1 %v6133_v11 }
 0xb4b   :  { %v5443_v17 = vpop.f32.mrf.mxu1  ;;  %6215 = vmatpush2.msra.mxu1 %v6132_v12 }
 0xb4c   :  { %v5444_v21 = vadd.f32 %v5443_v17, %v7617_v0  ;;  %5832 = vmatprep.mubr.f32.mxu0 %v5627_v15  ;;  %v5628_v27 = vmax.f32 %v5442_v14, 0.0  ;;  %6216 = vmatprep.subr.mxu1 %v6131_v13 }
 0xb4d   :  { %v5447_v22 = vpop.f32.mrf.mxu1  ;;  %5833 = vmatmul.mubr.f32.vlgmr.msra.gmra.mxu0 %v5626_v16  ;;  %6217 = vmatpush2.msra.mxu1 %v6130_v18 }
 0xb4e   :  { %v5629_v24 = vmax.f32 %v5444_v21, 0.0  ;;  %v5448_v26 = vadd.f32 %v5447_v22, %v7614_v61  ;;  %6218 = vmatprep.subr.mxu1 %v6129_v19 }
 0xb4f   :  { %v5449_v30 = vpop.f32.mrf.mxu1  ;;  %6219 = vmatpush2.msra.mxu1 %v6128_v20 }
 0xb50   :  { %v5450_v31 = vadd.f32 %v5449_v30, %v7617_v0  ;;  %5838 = vmatprep.mubr.f32.mxu0 %v5629_v24  ;;  %v5630_v37 = vmax.f32 %v5448_v26, 0.0  ;;  %6220 = vmatprep.subr.mxu1 %v6127_v28 }
 0xb51   :  { %v5453_v32 = vpop.f32.mrf.mxu1  ;;  %5839 = vmatmul.mubr.f32.gmra.mxu0 %v5628_v27  ;;  %6221 = vmatpush2.msra.mxu1 %v6126_v29 }
 0xb52   :  { %v5631_v33 = vmax.f32 %v5450_v31, 0.0  ;;  %v5454_v40 = vadd.f32 %v5453_v32, %v7614_v61  ;;  %6222 = vmatprep.subr.mxu1 %v6125_v34 }
 0xb53   :  { %v5455_v38 = vpop.f32.mrf.mxu1 }
 0xb54   :  { %v5456_v39 = vadd.f32 %v5455_v38, %v7617_v0  ;;  %5844 = vmatprep.mubr.f32.mxu0 %v5631_v33  ;;  %v5632_v46 = vmax.f32 %v5454_v40, 0.0 }
 0xb55   :  { %v5459_v45 = vpop.f32.mrf.mxu1  ;;  %5845 = vmatmul.mubr.f32.gmra.mxu0 %v5630_v37 }
 0xb56   :  { %v5633_v43 = vmax.f32 %v5456_v39, 0.0  ;;  %v5460_v48 = vadd.f32 %v5459_v45, %v7614_v61 }
 0xb57   :  { %v5461_v51 = vpop.f32.mrf.mxu1 }
 0xb58   :  { %v5462_v52 = vadd.f32 %v5461_v51, %v7617_v0  ;;  %5850 = vmatprep.mubr.f32.mxu0 %v5633_v43  ;;  %v5634_v58 = vmax.f32 %v5460_v48, 0.0 }
 0xb59   :  { %v5465_v53 = vpop.f32.mrf.mxu1  ;;  %5851 = vmatmul.mubr.f32.gmra.mxu0 %v5632_v46 }
 0xb5a   :  { %v5635_v57 = vmax.f32 %v5462_v52, 0.0  ;;  %v5466_v56 = vadd.f32 %v5465_v53, %v7614_v61 }
 0xb5b   :  { %v5467_v59 = vpop.f32.mrf.mxu1 }
 0xb5c   :  { %v5468_v60 = vadd.f32 %v5467_v59, %v7617_v0  ;;  %5856 = vmatprep.mubr.f32.mxu0 %v5635_v57  ;;  %v5636_v3 = vmax.f32 %v5466_v56, 0.0 }
 0xb5d   :  { %v5471_v1 = vpop.f32.mrf.mxu1  ;;  %5857 = vmatmul.mubr.f32.gmra.mxu0 %v5634_v58 }
 0xb5e   :  { %v5637_v2 = vmax.f32 %v5468_v60, 0.0  ;;  %v5472_v6 = vadd.f32 %v5471_v1, %v7614_v61 }
 0xb5f   :  { %v5473_v7 = vpop.f32.mrf.mxu1 }
 0xb60   :  { %v5474_v8 = vadd.f32 %v5473_v7, %v7617_v0  ;;  %5862 = vmatprep.mubr.f32.mxu0 %v5637_v2  ;;  %v5638_v16 = vmax.f32 %v5472_v6, 0.0 }
 0xb61   :  { %v5477_v9 = vpop.f32.mrf.mxu1  ;;  %5863 = vmatmul.mubr.f32.gmra.mxu0 %v5636_v3 }
 0xb62   :  { %v5639_v15 = vmax.f32 %v5474_v8, 0.0  ;;  %v5478_v14 = vadd.f32 %v5477_v9, %v7614_v61 }
 0xb63   :  { %v5479_v17 = vpop.f32.mrf.mxu1 }
 0xb64   :  { %v5480_v21 = vadd.f32 %v5479_v17, %v7617_v0  ;;  %5868 = vmatprep.mubr.f32.mxu0 %v5639_v15  ;;  %v5640_v27 = vmax.f32 %v5478_v14, 0.0 }
 0xb65   :  { %v5483_v22 = vpop.f32.mrf.mxu1  ;;  %5869 = vmatmul.mubr.f32.gmra.mxu0 %v5638_v16 }
 0xb66   :  { %v5641_v24 = vmax.f32 %v5480_v21, 0.0  ;;  %v5484_v26 = vadd.f32 %v5483_v22, %v7614_v61 }
 0xb67   :  { %v5485_v30 = vpop.f32.mrf.mxu1 }
 0xb68   :  { %v5486_v31 = vadd.f32 %v5485_v30, %v7617_v0  ;;  %5874 = vmatprep.mubr.f32.mxu0 %v5641_v24  ;;  %v5642_v33 = vmax.f32 %v5484_v26, 0.0 }
 0xb69   :  { %v5489_v32 = vpop.f32.mrf.mxu1  ;;  %5875 = vmatmul.mubr.f32.gmra.mxu0 %v5640_v27 }
 0xb6a   :  { %v5643_v35 = vmax.f32 %v5486_v31, 0.0  ;;  %v5490_v36 = vadd.f32 %v5489_v32, %v7614_v61  ;;  %v6124_v32 = vld [vmem:[#allocation2 + $0x1f10] sm:$0xff] }
 0xb6b   :  { %v5491_v37 = vpop.f32.mrf.mxu1  ;;  %6223 = vmatpush2.msra.mxu1 %v6124_v32 }
 0xb6c   :  { %v5492_v40 = vadd.f32 %v5491_v37, %v7617_v0  ;;  %5880 = vmatprep.mubr.f32.mxu0 %v5643_v35  ;;  %v5644_v39 = vmax.f32 %v5490_v36, 0.0  ;;  %v6123_v36 = vld [vmem:[#allocation2 + $0x1f08] sm:$0xff] }
 0xb6d   :  { %v5495_v38 = vpop.f32.mrf.mxu1  ;;  %5881 = vmatmul.mubr.f32.gmra.mxu0 %v5642_v33  ;;  %6224 = vmatprep.subr.mxu1 %v6123_v36 }
 0xb6e   :  { %v5645_v41 = vmax.f32 %v5492_v40, 0.0  ;;  %v5496_v42 = vadd.f32 %v5495_v38, %v7614_v61 }
 0xb6f   :  { %v5497_v45 = vpop.f32.mrf.mxu1 }
 0xb70   :  { %v5498_v44 = vadd.f32 %v5497_v45, %v7617_v0  ;;  %5886 = vmatprep.mubr.f32.mxu0 %v5645_v41  ;;  %v5646_v46 = vmax.f32 %v5496_v42, 0.0  ;;  %v6122_v41 = vld [vmem:[#allocation2 + $0x1f00] sm:$0xff] }
 0xb71   :  { %v5501_v43 = vpop.f32.mrf.mxu1  ;;  %5887 = vmatmul.mubr.f32.gmra.mxu0 %v5644_v39  ;;  %6225 = vmatpush2.msra.mxu1 %v6122_v41 }
 0xb72   :  { %v5647_v47 = vmax.f32 %v5498_v44, 0.0  ;;  %v5502_v48 = vadd.f32 %v5501_v43, %v7614_v61 }
 0xb73   :  { %v5503_v51 = vpop.f32.mrf.mxu1 }
 0xb74   :  { %v5504_v49 = vadd.f32 %v5503_v51, %v7617_v0  ;;  %5892 = vmatprep.mubr.f32.mxu0 %v5647_v47  ;;  %v5648_v53 = vmax.f32 %v5502_v48, 0.0 }
 0xb75   :  { %v5507_v52 = vpop.f32.mrf.mxu1  ;;  %5893 = vmatmul.mubr.f32.gmra.mxu0 %v5646_v46 }
 0xb76   :  { %v5649_v50 = vmax.f32 %v5504_v49, 0.0  ;;  %v5508_v54 = vadd.f32 %v5507_v52, %v7614_v61 }
 0xb77   :  { %v5509_v57 = vpop.f32.mrf.mxu1 }
 0xb78   :  { %v5510_v55 = vadd.f32 %v5509_v57, %v7617_v0  ;;  %5898 = vmatprep.mubr.f32.mxu0 %v5649_v50  ;;  %v5650_v59 = vmax.f32 %v5508_v54, 0.0 }
 0xb79   :  { %v5513_v58 = vpop.f32.mrf.mxu1  ;;  %5899 = vmatmul.mubr.f32.gmra.mxu0 %v5648_v53 }
 0xb7a   :  { %v5651_v56 = vmax.f32 %v5510_v55, 0.0  ;;  %v5514_v62 = vadd.f32 %v5513_v58, %v7614_v61 }
 0xb7b   :  { %v5515_v60 = vpop.f32.mrf.mxu1 }
 0xb7c   :  { %v5516_v63 = vadd.f32 %v5515_v60, %v7617_v0  ;;  %5904 = vmatprep.mubr.f32.mxu0 %v5651_v56  ;;  %v5652_v2 = vmax.f32 %v5514_v62, 0.0 }
 0xb7d   :  { %v5519_v1 = vpop.f32.mrf.mxu1  ;;  %5905 = vmatmul.mubr.f32.gmra.mxu0 %v5650_v59 }
 0xb7e   :  { %v5653_v4 = vmax.f32 %v5516_v63, 0.0  ;;  %v5520_v5 = vadd.f32 %v5519_v1, %v7614_v61 }
 0xb7f   :  { %v5521_v3 = vpop.f32.mrf.mxu1 }
 0xb80   :  { %v5522_v6 = vadd.f32 %v5521_v3, %v7617_v0  ;;  %5910 = vmatprep.mubr.f32.mxu0 %v5653_v4  ;;  %v5654_v8 = vmax.f32 %v5520_v5, 0.0 }
 0xb81   :  { %v5525_v7 = vpop.f32.mrf.mxu1  ;;  %5911 = vmatmul.mubr.f32.gmra.mxu0 %v5652_v2 }
 0xb82   :  { %v5655_v10 = vmax.f32 %v5522_v6, 0.0  ;;  %v5526_v11 = vadd.f32 %v5525_v7, %v7614_v61 }
 0xb83   :  { %v5527_v9 = vpop.f32.mrf.mxu1 }
 0xb84   :  { %v5528_v12 = vadd.f32 %v5527_v9, %v7617_v0  ;;  %5916 = vmatprep.mubr.f32.mxu0 %v5655_v10  ;;  %v5656_v16 = vmax.f32 %v5526_v11, 0.0 }
 0xb85   :  { %v5531_v15 = vpop.f32.mrf.mxu1  ;;  %5917 = vmatmul.mubr.f32.gmra.mxu0 %v5654_v8 }
 0xb86   :  { %v5657_v13 = vmax.f32 %v5528_v12, 0.0  ;;  %v5532_v14 = vadd.f32 %v5531_v15, %v7614_v61 }
 0xb87   :  { %v5533_v17 = vpop.f32.mrf.mxu1 }
 0xb88   :  { %v5534_v18 = vadd.f32 %v5533_v17, %v7617_v0  ;;  %5922 = vmatprep.mubr.f32.mxu0 %v5657_v13  ;;  %v5658_v22 = vmax.f32 %v5532_v14, 0.0 }
 0xb89   :  { %v5537_v21 = vpop.f32.mrf.mxu1  ;;  %5923 = vmatmul.mubr.f32.gmra.mxu0 %v5656_v16 }
 0xb8a   :  { %v5659_v19 = vmax.f32 %v5534_v18, 0.0  ;;  %v5538_v20 = vadd.f32 %v5537_v21, %v7614_v61 }
 0xb8b   :  { %v5539_v24 = vpop.f32.mrf.mxu1 }
 0xb8c   :  { %v5540_v28 = vadd.f32 %v5539_v24, %v7617_v0  ;;  %5928 = vmatprep.mubr.f32.mxu0 %v5659_v19  ;;  %v5660_v30 = vmax.f32 %v5538_v20, 0.0 }
 0xb8d   :  { %v5543_v27 = vpop.f32.mrf.mxu1  ;;  %5929 = vmatmul.mubr.f32.gmra.mxu0 %v5658_v22 }
 0xb8e   :  { %v5661_v26 = vmax.f32 %v5540_v28, 0.0  ;;  %v5544_v29 = vadd.f32 %v5543_v27, %v7614_v61 }
 0xb8f   :  { %v5545_v31 = vpop.f32.mrf.mxu1 }
 0xb90   :  { %v5546_v34 = vadd.f32 %v5545_v31, %v7617_v0  ;;  %5934 = vmatprep.mubr.f32.mxu0 %v5661_v26  ;;  %v5662_v37 = vmax.f32 %v5544_v29, 0.0 }
 0xb91   :  { %v5549_v35 = vpop.f32.mrf.mxu1  ;;  %5935 = vmatmul.mubr.f32.gmra.mxu0 %v5660_v30 }
 0xb92   :  { %v5663_v33 = vmax.f32 %v5546_v34, 0.0  ;;  %v5550_v40 = vadd.f32 %v5549_v35, %v7614_v61 }
 0xb93   :  { %v5551_v38 = vpop.f32.mrf.mxu1 }
 0xb94   :  { %v5552_v39 = vadd.f32 %v5551_v38, %v7617_v0  ;;  %5940 = vmatprep.mubr.f32.mxu0 %v5663_v33  ;;  %v5664_v44 = vmax.f32 %v5550_v40, 0.0 }
 0xb95   :  { %v5555_v42 = vpop.f32.mrf.mxu1  ;;  %5941 = vmatmul.mubr.f32.gmra.mxu0 %v5662_v37 }
 0xb96   :  { %v5665_v45 = vmax.f32 %v5552_v39, 0.0  ;;  %v5556_v43 = vadd.f32 %v5555_v42, %v7614_v61 }
 0xb97   :  { %v5557_v47 = vpop.f32.mrf.mxu1 }
 0xb98   :  { %v5558_v46 = vadd.f32 %v5557_v47, %v7617_v0  ;;  %5946 = vmatprep.mubr.f32.mxu0 %v5665_v45  ;;  %v5666_v49 = vmax.f32 %v5556_v43, 0.0 }
 0xb99   :  { %v5561_v48 = vpop.f32.mrf.mxu1  ;;  %5947 = vmatmul.mubr.f32.gmra.mxu0 %v5664_v44 }
 0xb9a   :  { %v5667_v51 = vmax.f32 %v5558_v46, 0.0  ;;  %v5562_v52 = vadd.f32 %v5561_v48, %v7614_v61 }
 0xb9b   :  { %v5563_v50 = vpop.f32.mrf.mxu1 }
 0xb9c   :  { %v5564_v53 = vadd.f32 %v5563_v50, %v7617_v0  ;;  %5952 = vmatprep.mubr.f32.mxu0 %v5667_v51  ;;  %v5668_v55 = vmax.f32 %v5562_v52, 0.0 }
 0xb9d   :  { %v5567_v54 = vpop.f32.mrf.mxu1  ;;  %5953 = vmatmul.mubr.f32.gmra.mxu0 %v5666_v49 }
 0xb9e   :  { %v5669_v57 = vmax.f32 %v5564_v53, 0.0  ;;  %v5568_v58 = vadd.f32 %v5567_v54, %v7614_v61 }
 0xb9f   :  { %v5569_v56 = vpop.f32.mrf.mxu1 }
 0xba0   :  { %v5570_v59 = vadd.f32 %v5569_v56, %v7617_v0  ;;  %5958 = vmatprep.mubr.f32.mxu0 %v5669_v57  ;;  %v5670_v63 = vmax.f32 %v5568_v58, 0.0 }
 0xba1   :  { %v5573_v62 = vpop.f32.mrf.mxu1  ;;  %5959 = vmatmul.mubr.f32.gmra.mxu0 %v5668_v55  ;;  %v5756_v55 = vld [vmem:[#allocation4 + $0x1c] sm:$0x3] }
 0xba2   :  { %v5671_v60 = vmax.f32 %v5570_v59, 0.0  ;;  %v5574_v1 = vadd.f32 %v5573_v62, %v7614_v61  ;;  %v7684_v58 = vrot.slane %v5756_v55, %v6699_v23  ;;  %v7687_v56 = vrot.slane %v5756_v55, %v6701_v25 }
 0xba3   :  { %v5575_v4 = vpop.f32.mrf.mxu1 }
 0xba4   :  { %v5576_v2 = vadd.f32 %v5575_v4, %v7617_v0  ;;  %5964 = vmatprep.mubr.f32.mxu0 %v5671_v60  ;;  %v5672_v6 = vmax.f32 %v5574_v1, 0.0 }
 0xba5   :  { %v5579_v5 = vpop.f32.mrf.mxu1  ;;  %5965 = vmatmul.mubr.f32.gmra.mxu0 %v5670_v63 }
 0xba6   :  { %v5673_v3 = vmax.f32 %v5576_v2, 0.0  ;;  %v5580_v7 = vadd.f32 %v5579_v5, %v7614_v61 }
 0xba7   :  { %v5581_v10 = vpop.f32.mrf.mxu1 }
 0xba8   :  { %v5582_v8 = vadd.f32 %v5581_v10, %v7617_v0  ;;  %5970 = vmatprep.mubr.f32.mxu0 %v5673_v3  ;;  %v5674_v12 = vmax.f32 %v5580_v7, 0.0 }
 0xba9   :  { %v5585_v11 = vpop.f32.mrf.mxu1  ;;  %5971 = vmatmul.mubr.f32.gmra.mxu0 %v5672_v6 }
 0xbaa   :  { %v5675_v9 = vmax.f32 %v5582_v8, 0.0  ;;  %v5586_v15 = vadd.f32 %v5585_v11, %v7614_v61 }
 0xbab   :  { %v5587_v13 = vpop.f32.mrf.mxu1 }
 0xbac   :  { %v5588_v16 = vadd.f32 %v5587_v13, %v7617_v0  ;;  %5976 = vmatprep.mubr.f32.mxu0 %v5675_v9  ;;  %v5676_v18 = vmax.f32 %v5586_v15, 0.0 }
 0xbad   :  { %v5591_v14 = vpop.f32.mrf.mxu1  ;;  %5977 = vmatmul.mubr.f32.gmra.mxu0 %v5674_v12 }
 0xbae   :  { %v5677_v17 = vmax.f32 %v5588_v16, 0.0  ;;  %v5592_v21 = vadd.f32 %v5591_v14, %v7614_v61 }
 0xbaf   :  { %v5593_v19 = vpop.f32.mrf.mxu1 }
 0xbb0   :  { %v5594_v22 = vadd.f32 %v5593_v19, %v7617_v0  ;;  %5982 = vmatprep.mubr.f32.mxu0 %v5677_v17  ;;  %v5678_v28 = vmax.f32 %v5592_v21, 0.0 }
 0xbb1   :  { %v5597_v20 = vpop.f32.mrf.mxu1  ;;  %5983 = vmatmul.mubr.f32.gmra.mxu0 %v5676_v18 }
 0xbb2   :  { %v5679_v24 = vmax.f32 %v5594_v22, 0.0  ;;  %v5598_v27 = vadd.f32 %v5597_v20, %v7614_v61 }
 0xbb3   :  { %v5599_v26 = vpop.f32.mrf.mxu1 }
 0xbb4   :  { %v5600_v30 = vadd.f32 %v5599_v26, %v7617_v0  ;;  %5988 = vmatprep.mubr.f32.mxu0 %v5679_v24  ;;  %v5680_v34 = vmax.f32 %v5598_v27, 0.0 }
 0xbb5   :  { %v5603_v29 = vpop.f32.mrf.mxu1  ;;  %5989 = vmatmul.mubr.f32.gmra.mxu0 %v5678_v28 }
 0xbb6   :  { %v5681_v31 = vmax.f32 %v5600_v30, 0.0  ;;  %v5604_v32 = vadd.f32 %v5603_v29, %v7614_v61 }
 0xbb7   :  { %v5605_v35 = vpop.f32.mrf.mxu1 }
 0xbb8   :  { %v5606_v33 = vadd.f32 %v5605_v35, %v7617_v0  ;;  %5994 = vmatprep.mubr.f32.mxu0 %v5681_v31  ;;  %v5682_v40 = vmax.f32 %v5604_v32, 0.0 }
 0xbb9   :  { %v5609_v36 = vpop.f32.mrf.mxu1  ;;  %5995 = vmatmul.mubr.f32.gmra.mxu0 %v5680_v34 }
 0xbba   :  { %v5683_v37 = vmax.f32 %v5606_v33, 0.0  ;;  %v5610_v38 = vadd.f32 %v5609_v36, %v7614_v61 }
 0xbbb   :  { %v5611_v41 = vpop.f32.mrf.mxu1 }
 0xbbc   :  { %v5612_v39 = vadd.f32 %v5611_v41, %v7617_v0  ;;  %6000 = vmatprep.mubr.f32.mxu0 %v5683_v37  ;;  %v5684_v44 = vmax.f32 %v5610_v38, 0.0 }
 0xbbd   :  { %v5615_v42 = vpop.f32.mrf.mxu1  ;;  %6001 = vmatmul.mubr.f32.gmra.mxu0 %v5682_v40 }
 0xbbe   :  { %v5685_v45 = vmax.f32 %v5612_v39, 0.0  ;;  %v5616_v43 = vadd.f32 %v5615_v42, %v7614_v61 }
 0xbbf   :  { %v5617_v47 = vpop.f32.mrf.mxu1 }
 0xbc0   :  { %v5618_v46 = vadd.f32 %v5617_v47, %v7617_v0  ;;  %6006 = vmatprep.mubr.f32.mxu0 %v5685_v45  ;;  %v5686_v49 = vmax.f32 %v5616_v43, 0.0 }
 0xbc1   :  { %v5621_v48 = vpop.f32.mrf.mxu1  ;;  %6007 = vmatmul.mubr.f32.gmra.mxu0 %v5684_v44 }
 0xbc2   :  { %v5687_v51 = vmax.f32 %v5618_v46, 0.0  ;;  %v5622_v52 = vadd.f32 %v5621_v48, %v7614_v61 }
 0xbc3   :  { %v5623_v50 = vpop.f32.mrf.mxu1 }
 0xbc4   :  { %v5624_v53 = vadd.f32 %v5623_v50, %v7617_v0  ;;  %6012 = vmatprep.mubr.f32.mxu0 %v5687_v51  ;;  %v5688_v57 = vmax.f32 %v5622_v52, 0.0 }
 0xbc5   :  { %6013 = vmatmul.mubr.f32.gmra.mxu0 %v5686_v49 }
 0xbc6   :  { %v5689_v54 = vmax.f32 %v5624_v53, 0.0 }
 0xbc8   :  { %6018 = vmatprep.mubr.f32.mxu0 %v5689_v54 }
 0xbc9   :  { %6019 = vmatmul.mubr.f32.gmra.mxu0 %v5688_v57 }
 0xc0d   :  { %v5834_v59 = vpop.f32.mrf.mxu0 }
 0xc0e   :  { %v5835_v62 = vadd.f32 %v5834_v59, %v7684_v58 }
 0xc0f   :  { %v5836_v61 = vpop.f32.mrf.mxu0 }
 0xc10   :  { %v5837_v60 = vadd.f32 %v5836_v61, %v7687_v56  ;;  %v6025_v1 = vmax.f32 %v5835_v62, 0.0 }
 0xc11   :  { %v5840_v0 = vpop.f32.mrf.mxu0 }
 0xc12   :  { %v6026_v63 = vmax.f32 %v5837_v60, 0.0  ;;  %v5841_v4 = vadd.f32 %v5840_v0, %v7684_v58 }
 0xc13   :  { %v5842_v2 = vpop.f32.mrf.mxu0 }
 0xc14   :  { %v5843_v5 = vadd.f32 %v5842_v2, %v7687_v56  ;;  %6226 = vmatprep.mubr.f32.mxu1 %v6026_v63  ;;  %v6027_v25 = vmax.f32 %v5841_v4, 0.0 }
 0xc15   :  { %v5846_v3 = vpop.f32.mrf.mxu0  ;;  %6227 = vmatmul.mubr.f32.vlgmr.msra.gmra.mxu1 %v6025_v1 }
 0xc16   :  { %v6028_v6 = vmax.f32 %v5843_v5, 0.0  ;;  %v5847_v7 = vadd.f32 %v5846_v3, %v7684_v58 }
 0xc17   :  { %v5848_v10 = vpop.f32.mrf.mxu0 }
 0xc18   :  { %v5849_v8 = vadd.f32 %v5848_v10, %v7687_v56  ;;  %6231 = vmatprep.mubr.f32.mxu1 %v6028_v6  ;;  %v6029_v12 = vmax.f32 %v5847_v7, 0.0 }
 0xc19   :  { %v5852_v11 = vpop.f32.mrf.mxu0  ;;  %6232 = vmatmul.mubr.f32.gmra.mxu1 %v6027_v25 }
 0xc1a   :  { %v6030_v9 = vmax.f32 %v5849_v8, 0.0  ;;  %v5853_v15 = vadd.f32 %v5852_v11, %v7684_v58 }
 0xc1b   :  { %v5854_v13 = vpop.f32.mrf.mxu0 }
 0xc1c   :  { %v5855_v16 = vadd.f32 %v5854_v13, %v7687_v56  ;;  %6236 = vmatprep.mubr.f32.mxu1 %v6030_v9  ;;  %v6031_v18 = vmax.f32 %v5853_v15, 0.0 }
 0xc1d   :  { %v5858_v14 = vpop.f32.mrf.mxu0  ;;  %6237 = vmatmul.mubr.f32.gmra.mxu1 %v6029_v12 }
 0xc1e   :  { %v6032_v17 = vmax.f32 %v5855_v16, 0.0  ;;  %v5859_v21 = vadd.f32 %v5858_v14, %v7684_v58 }
 0xc1f   :  { %v5860_v19 = vpop.f32.mrf.mxu0 }
 0xc20   :  { %v5861_v22 = vadd.f32 %v5860_v19, %v7687_v56  ;;  %6241 = vmatprep.mubr.f32.mxu1 %v6032_v17  ;;  %v6033_v28 = vmax.f32 %v5859_v21, 0.0 }
 0xc21   :  { %v5864_v20 = vpop.f32.mrf.mxu0  ;;  %6242 = vmatmul.mubr.f32.gmra.mxu1 %v6031_v18 }
 0xc22   :  { %v6034_v24 = vmax.f32 %v5861_v22, 0.0  ;;  %v5865_v27 = vadd.f32 %v5864_v20, %v7684_v58 }
 0xc23   :  { %v5866_v26 = vpop.f32.mrf.mxu0 }
 0xc24   :  { %v5867_v30 = vadd.f32 %v5866_v26, %v7687_v56  ;;  %6246 = vmatprep.mubr.f32.mxu1 %v6034_v24  ;;  %v6035_v34 = vmax.f32 %v5865_v27, 0.0 }
 0xc25   :  { %v5870_v29 = vpop.f32.mrf.mxu0  ;;  %6247 = vmatmul.mubr.f32.gmra.mxu1 %v6033_v28 }
 0xc26   :  { %v6036_v31 = vmax.f32 %v5867_v30, 0.0  ;;  %v5871_v32 = vadd.f32 %v5870_v29, %v7684_v58 }
 0xc27   :  { %v5872_v35 = vpop.f32.mrf.mxu0 }
 0xc28   :  { %v5873_v33 = vadd.f32 %v5872_v35, %v7687_v56  ;;  %6251 = vmatprep.mubr.f32.mxu1 %v6036_v31  ;;  %v6037_v40 = vmax.f32 %v5871_v32, 0.0 }
 0xc29   :  { %v5876_v36 = vpop.f32.mrf.mxu0  ;;  %6252 = vmatmul.mubr.f32.gmra.mxu1 %v6035_v34 }
 0xc2a   :  { %v6038_v37 = vmax.f32 %v5873_v33, 0.0  ;;  %v5877_v38 = vadd.f32 %v5876_v36, %v7684_v58 }
 0xc2b   :  { %v5878_v41 = vpop.f32.mrf.mxu0 }
 0xc2c   :  { %v5879_v39 = vadd.f32 %v5878_v41, %v7687_v56  ;;  %6256 = vmatprep.mubr.f32.mxu1 %v6038_v37  ;;  %v6039_v44 = vmax.f32 %v5877_v38, 0.0 }
 0xc2d   :  { %v5882_v42 = vpop.f32.mrf.mxu0  ;;  %6257 = vmatmul.mubr.f32.gmra.mxu1 %v6037_v40 }
 0xc2e   :  { %v6040_v45 = vmax.f32 %v5879_v39, 0.0  ;;  %v5883_v43 = vadd.f32 %v5882_v42, %v7684_v58 }
 0xc2f   :  { %v5884_v47 = vpop.f32.mrf.mxu0 }
 0xc30   :  { %v5885_v46 = vadd.f32 %v5884_v47, %v7687_v56  ;;  %6261 = vmatprep.mubr.f32.mxu1 %v6040_v45  ;;  %v6041_v49 = vmax.f32 %v5883_v43, 0.0 }
 0xc31   :  { %v5888_v48 = vpop.f32.mrf.mxu0  ;;  %6262 = vmatmul.mubr.f32.gmra.mxu1 %v6039_v44 }
 0xc32   :  { %v6042_v51 = vmax.f32 %v5885_v46, 0.0  ;;  %v5889_v52 = vadd.f32 %v5888_v48, %v7684_v58 }
 0xc33   :  { %v5890_v50 = vpop.f32.mrf.mxu0 }
 0xc34   :  { %v5891_v53 = vadd.f32 %v5890_v50, %v7687_v56  ;;  %6266 = vmatprep.mubr.f32.mxu1 %v6042_v51  ;;  %v6043_v55 = vmax.f32 %v5889_v52, 0.0 }
 0xc35   :  { %v5894_v54 = vpop.f32.mrf.mxu0  ;;  %6267 = vmatmul.mubr.f32.gmra.mxu1 %v6041_v49 }
 0xc36   :  { %v6044_v57 = vmax.f32 %v5891_v53, 0.0  ;;  %v5895_v59 = vadd.f32 %v5894_v54, %v7684_v58 }
 0xc37   :  { %v5896_v62 = vpop.f32.mrf.mxu0 }
 0xc38   :  { %v5897_v61 = vadd.f32 %v5896_v62, %v7687_v56  ;;  %6271 = vmatprep.mubr.f32.mxu1 %v6044_v57  ;;  %v6045_v63 = vmax.f32 %v5895_v59, 0.0 }
 0xc39   :  { %v5900_v60 = vpop.f32.mrf.mxu0  ;;  %6272 = vmatmul.mubr.f32.gmra.mxu1 %v6043_v55 }
 0xc3a   :  { %v6046_v0 = vmax.f32 %v5897_v61, 0.0  ;;  %v5901_v1 = vadd.f32 %v5900_v60, %v7684_v58 }
 0xc3b   :  { %v5902_v4 = vpop.f32.mrf.mxu0 }
 0xc3c   :  { %v5903_v2 = vadd.f32 %v5902_v4, %v7687_v56  ;;  %6276 = vmatprep.mubr.f32.mxu1 %v6046_v0  ;;  %v6047_v6 = vmax.f32 %v5901_v1, 0.0 }
 0xc3d   :  { %v5906_v5 = vpop.f32.mrf.mxu0  ;;  %6277 = vmatmul.mubr.f32.gmra.mxu1 %v6045_v63 }
 0xc3e   :  { %v6048_v3 = vmax.f32 %v5903_v2, 0.0  ;;  %v5907_v25 = vadd.f32 %v5906_v5, %v7684_v58 }
 0xc3f   :  { %v5908_v7 = vpop.f32.mrf.mxu0 }
 0xc40   :  { %v5909_v10 = vadd.f32 %v5908_v7, %v7687_v56  ;;  %6281 = vmatprep.mubr.f32.mxu1 %v6048_v3  ;;  %v6049_v9 = vmax.f32 %v5907_v25, 0.0 }
 0xc41   :  { %v5912_v8 = vpop.f32.mrf.mxu0  ;;  %6282 = vmatmul.mubr.f32.gmra.mxu1 %v6047_v6 }
 0xc42   :  { %v6050_v11 = vmax.f32 %v5909_v10, 0.0  ;;  %v5913_v12 = vadd.f32 %v5912_v8, %v7684_v58 }
 0xc43   :  { %v5914_v15 = vpop.f32.mrf.mxu0 }
 0xc44   :  { %v5915_v13 = vadd.f32 %v5914_v15, %v7687_v56  ;;  %6286 = vmatprep.mubr.f32.mxu1 %v6050_v11  ;;  %v6051_v17 = vmax.f32 %v5913_v12, 0.0 }
 0xc45   :  { %v5918_v16 = vpop.f32.mrf.mxu0  ;;  %6287 = vmatmul.mubr.f32.gmra.mxu1 %v6049_v9 }
 0xc46   :  { %v6052_v14 = vmax.f32 %v5915_v13, 0.0  ;;  %v5919_v18 = vadd.f32 %v5918_v16, %v7684_v58 }
 0xc47   :  { %v5920_v21 = vpop.f32.mrf.mxu0 }
 0xc48   :  { %v5921_v19 = vadd.f32 %v5920_v21, %v7687_v56  ;;  %6291 = vmatprep.mubr.f32.mxu1 %v6052_v14  ;;  %v6053_v24 = vmax.f32 %v5919_v18, 0.0 }
 0xc49   :  { %v5924_v22 = vpop.f32.mrf.mxu0  ;;  %6292 = vmatmul.mubr.f32.gmra.mxu1 %v6051_v17 }
 0xc4a   :  { %v6054_v20 = vmax.f32 %v5921_v19, 0.0  ;;  %v5925_v28 = vadd.f32 %v5924_v22, %v7684_v58 }
 0xc4b   :  { %v5926_v27 = vpop.f32.mrf.mxu0 }
 0xc4c   :  { %v5927_v26 = vadd.f32 %v5926_v27, %v7687_v56  ;;  %6296 = vmatprep.mubr.f32.mxu1 %v6054_v20  ;;  %v6055_v31 = vmax.f32 %v5925_v28, 0.0 }
 0xc4d   :  { %v5930_v30 = vpop.f32.mrf.mxu0  ;;  %6297 = vmatmul.mubr.f32.gmra.mxu1 %v6053_v24 }
 0xc4e   :  { %v6056_v29 = vmax.f32 %v5927_v26, 0.0  ;;  %v5931_v34 = vadd.f32 %v5930_v30, %v7684_v58 }
 0xc4f   :  { %v5932_v32 = vpop.f32.mrf.mxu0 }
 0xc50   :  { %v5933_v35 = vadd.f32 %v5932_v32, %v7687_v56  ;;  %6301 = vmatprep.mubr.f32.mxu1 %v6056_v29  ;;  %v6057_v37 = vmax.f32 %v5931_v34, 0.0 }
 0xc51   :  { %v5936_v33 = vpop.f32.mrf.mxu0  ;;  %6302 = vmatmul.mubr.f32.gmra.mxu1 %v6055_v31 }
 0xc52   :  { %v6058_v36 = vmax.f32 %v5933_v35, 0.0  ;;  %v5937_v40 = vadd.f32 %v5936_v33, %v7684_v58 }
 0xc53   :  { %v5938_v38 = vpop.f32.mrf.mxu0 }
 0xc54   :  { %v5939_v41 = vadd.f32 %v5938_v38, %v7687_v56  ;;  %6306 = vmatprep.mubr.f32.mxu1 %v6058_v36  ;;  %v6059_v45 = vmax.f32 %v5937_v40, 0.0 }
 0xc55   :  { %v5942_v39 = vpop.f32.mrf.mxu0  ;;  %6307 = vmatmul.mubr.f32.gmra.mxu1 %v6057_v37 }
 0xc56   :  { %v6060_v42 = vmax.f32 %v5939_v41, 0.0  ;;  %v5943_v44 = vadd.f32 %v5942_v39, %v7684_v58 }
 0xc57   :  { %v5944_v43 = vpop.f32.mrf.mxu0 }
 0xc58   :  { %v5945_v47 = vadd.f32 %v5944_v43, %v7687_v56  ;;  %6311 = vmatprep.mubr.f32.mxu1 %v6060_v42  ;;  %v6061_v51 = vmax.f32 %v5943_v44, 0.0 }
 0xc59   :  { %v5948_v46 = vpop.f32.mrf.mxu0  ;;  %6312 = vmatmul.mubr.f32.gmra.mxu1 %v6059_v45 }
 0xc5a   :  { %v6062_v48 = vmax.f32 %v5945_v47, 0.0  ;;  %v5949_v49 = vadd.f32 %v5948_v46, %v7684_v58 }
 0xc5b   :  { %v5950_v52 = vpop.f32.mrf.mxu0 }
 0xc5c   :  { %v5951_v50 = vadd.f32 %v5950_v52, %v7687_v56  ;;  %6316 = vmatprep.mubr.f32.mxu1 %v6062_v48  ;;  %v6063_v57 = vmax.f32 %v5949_v49, 0.0 }
 0xc5d   :  { %v5954_v53 = vpop.f32.mrf.mxu0  ;;  %6317 = vmatmul.mubr.f32.gmra.mxu1 %v6061_v51 }
 0xc5e   :  { %v6064_v54 = vmax.f32 %v5951_v50, 0.0  ;;  %v5955_v55 = vadd.f32 %v5954_v53, %v7684_v58 }
 0xc5f   :  { %v5956_v59 = vpop.f32.mrf.mxu0 }
 0xc60   :  { %v5957_v62 = vadd.f32 %v5956_v59, %v7687_v56  ;;  %6321 = vmatprep.mubr.f32.mxu1 %v6064_v54  ;;  %v6065_v0 = vmax.f32 %v5955_v55, 0.0 }
 0xc61   :  { %v5960_v61 = vpop.f32.mrf.mxu0  ;;  %6322 = vmatmul.mubr.f32.gmra.mxu1 %v6063_v57 }
 0xc62   :  { %v6066_v60 = vmax.f32 %v5957_v62, 0.0  ;;  %v5961_v63 = vadd.f32 %v5960_v61, %v7684_v58 }
 0xc63   :  { %v5962_v1 = vpop.f32.mrf.mxu0 }
 0xc64   :  { %v5963_v4 = vadd.f32 %v5962_v1, %v7687_v56  ;;  %6326 = vmatprep.mubr.f32.mxu1 %v6066_v60  ;;  %v6067_v3 = vmax.f32 %v5961_v63, 0.0 }
 0xc65   :  { %v5966_v2 = vpop.f32.mrf.mxu0  ;;  %6327 = vmatmul.mubr.f32.gmra.mxu1 %v6065_v0 }
 0xc66   :  { %v6068_v5 = vmax.f32 %v5963_v4, 0.0  ;;  %v5967_v6 = vadd.f32 %v5966_v2, %v7684_v58 }
 0xc67   :  { %v5968_v25 = vpop.f32.mrf.mxu0 }
 0xc68   :  { %v5969_v7 = vadd.f32 %v5968_v25, %v7687_v56  ;;  %6331 = vmatprep.mubr.f32.mxu1 %v6068_v5  ;;  %v6069_v11 = vmax.f32 %v5967_v6, 0.0  ;;  %v6155_v5 = vld [vmem:[#allocation4 + $0x1e] sm:$0x3] }
 0xc69   :  { %v5972_v10 = vpop.f32.mrf.mxu0  ;;  %6332 = vmatmul.mubr.f32.gmra.mxu1 %v6067_v3  ;;  %v7754_v3 = vrot.slane %v6155_v5, %v6699_v23 }
 0xc6a   :  { %v6070_v8 = vmax.f32 %v5969_v7, 0.0  ;;  %v5973_v9 = vadd.f32 %v5972_v10, %v7684_v58 }
 0xc6b   :  { %v5974_v12 = vpop.f32.mrf.mxu0 }
 0xc6c   :  { %v5975_v15 = vadd.f32 %v5974_v12, %v7687_v56  ;;  %6336 = vmatprep.mubr.f32.mxu1 %v6070_v8  ;;  %v6071_v14 = vmax.f32 %v5973_v9, 0.0 }
 0xc6d   :  { %v5978_v13 = vpop.f32.mrf.mxu0  ;;  %6337 = vmatmul.mubr.f32.gmra.mxu1 %v6069_v11 }
 0xc6e   :  { %v6072_v16 = vmax.f32 %v5975_v15, 0.0  ;;  %v5979_v17 = vadd.f32 %v5978_v13, %v7684_v58 }
 0xc6f   :  { %v5980_v18 = vpop.f32.mrf.mxu0 }
 0xc70   :  { %v5981_v21 = vadd.f32 %v5980_v18, %v7687_v56  ;;  %6341 = vmatprep.mubr.f32.mxu1 %v6072_v16  ;;  %v6073_v20 = vmax.f32 %v5979_v17, 0.0 }
 0xc71   :  { %v5984_v19 = vpop.f32.mrf.mxu0  ;;  %6342 = vmatmul.mubr.f32.gmra.mxu1 %v6071_v14 }
 0xc72   :  { %v6074_v22 = vmax.f32 %v5981_v21, 0.0  ;;  %v5985_v24 = vadd.f32 %v5984_v19, %v7684_v58 }
 0xc73   :  { %v5986_v28 = vpop.f32.mrf.mxu0 }
 0xc74   :  { %v5987_v27 = vadd.f32 %v5986_v28, %v7687_v56  ;;  %6346 = vmatprep.mubr.f32.mxu1 %v6074_v22  ;;  %v6075_v29 = vmax.f32 %v5985_v24, 0.0 }
 0xc75   :  { %v5990_v26 = vpop.f32.mrf.mxu0  ;;  %6347 = vmatmul.mubr.f32.gmra.mxu1 %v6073_v20 }
 0xc76   :  { %v6076_v30 = vmax.f32 %v5987_v27, 0.0  ;;  %v5991_v31 = vadd.f32 %v5990_v26, %v7684_v58 }
 0xc77   :  { %v5992_v34 = vpop.f32.mrf.mxu0 }
 0xc78   :  { %v5993_v32 = vadd.f32 %v5992_v34, %v7687_v56  ;;  %6351 = vmatprep.mubr.f32.mxu1 %v6076_v30  ;;  %v6077_v36 = vmax.f32 %v5991_v31, 0.0 }
 0xc79   :  { %v5996_v35 = vpop.f32.mrf.mxu0  ;;  %6352 = vmatmul.mubr.f32.gmra.mxu1 %v6075_v29 }
 0xc7a   :  { %v6078_v33 = vmax.f32 %v5993_v32, 0.0  ;;  %v5997_v37 = vadd.f32 %v5996_v35, %v7684_v58 }
 0xc7b   :  { %v5998_v40 = vpop.f32.mrf.mxu0 }
 0xc7c   :  { %v5999_v38 = vadd.f32 %v5998_v40, %v7687_v56  ;;  %6356 = vmatprep.mubr.f32.mxu1 %v6078_v33  ;;  %v6079_v42 = vmax.f32 %v5997_v37, 0.0 }
 0xc7d   :  { %v6002_v41 = vpop.f32.mrf.mxu0  ;;  %6357 = vmatmul.mubr.f32.gmra.mxu1 %v6077_v36 }
 0xc7e   :  { %v6080_v39 = vmax.f32 %v5999_v38, 0.0  ;;  %v6003_v45 = vadd.f32 %v6002_v41, %v7684_v58 }
 0xc7f   :  { %v6004_v44 = vpop.f32.mrf.mxu0 }
 0xc80   :  { %v6005_v43 = vadd.f32 %v6004_v44, %v7687_v56  ;;  %6361 = vmatprep.mubr.f32.mxu1 %v6080_v39  ;;  %v6081_v48 = vmax.f32 %v6003_v45, 0.0 }
 0xc81   :  { %v6008_v47 = vpop.f32.mrf.mxu0  ;;  %6362 = vmatmul.mubr.f32.gmra.mxu1 %v6079_v42 }
 0xc82   :  { %v6082_v46 = vmax.f32 %v6005_v43, 0.0  ;;  %v6009_v51 = vadd.f32 %v6008_v47, %v7684_v58 }
 0xc83   :  { %v6010_v49 = vpop.f32.mrf.mxu0 }
 0xc84   :  { %v6011_v52 = vadd.f32 %v6010_v49, %v7687_v56  ;;  %6366 = vmatprep.mubr.f32.mxu1 %v6082_v46  ;;  %v6083_v54 = vmax.f32 %v6009_v51, 0.0 }
 0xc85   :  { %v6014_v50 = vpop.f32.mrf.mxu0  ;;  %6367 = vmatmul.mubr.f32.gmra.mxu1 %v6081_v48 }
 0xc86   :  { %v6084_v53 = vmax.f32 %v6011_v52, 0.0  ;;  %v6015_v57 = vadd.f32 %v6014_v50, %v7684_v58 }
 0xc87   :  { %v6016_v55 = vpop.f32.mrf.mxu0 }
 0xc88   :  { %v6017_v59 = vadd.f32 %v6016_v55, %v7687_v56  ;;  %6371 = vmatprep.mubr.f32.mxu1 %v6084_v53  ;;  %v6085_v60 = vmax.f32 %v6015_v57, 0.0 }
 0xc89   :  { %v6020_v62 = vpop.f32.mrf.mxu0  ;;  %6372 = vmatmul.mubr.f32.gmra.mxu1 %v6083_v54 }
 0xc8a   :  { %v6086_v61 = vmax.f32 %v6017_v59, 0.0  ;;  %v6021_v0 = vadd.f32 %v6020_v62, %v7684_v58 }
 0xc8b   :  { %v6022_v63 = vpop.f32.mrf.mxu0 }
 0xc8c   :  { %v6023_v1 = vadd.f32 %v6022_v63, %v7687_v56  ;;  %6376 = vmatprep.mubr.f32.mxu1 %v6086_v61  ;;  %v6087_v2 = vmax.f32 %v6021_v0, 0.0 }
 0xc8d   :  { %6377 = vmatmul.mubr.f32.gmra.mxu1 %v6085_v60 }
 0xc8e   :  { %v6088_v4 = vmax.f32 %v6023_v1, 0.0 }
 0xc90   :  { %6381 = vmatprep.mubr.f32.mxu1 %v6088_v4 }
 0xc91   :  { %6382 = vmatmul.mubr.f32.gmra.mxu1 %v6087_v2 }
 0xcd5   :  { %v6228_v6 = vpop.f32.mrf.mxu1 }
 0xcd6   :  { %v6229_v25 = vadd.f32 %v6228_v6, %v7754_v3 }
 0xcd7   :  { %v6230_v7 = vpop.f32.mrf.mxu1 }
 0xcd8   :  { %6387 = vst [vmem:[%s7887_s3] sm:$0xff] %v6229_v25 }
 0xcd9   :  { %v6233_v58 = vpop.f32.mrf.mxu1 }
 0xcda   :  { %v6234_v56 = vadd.f32 %v6233_v58, %v7754_v3 }
 0xcdb   :  { %v6235_v10 = vpop.f32.mrf.mxu1 }
 0xcdc   :  { %6388 = vst [vmem:[%s7887_s3 + $0x8] sm:$0xff] %v6234_v56 }
 0xcdd   :  { %v6238_v8 = vpop.f32.mrf.mxu1 }
 0xcde   :  { %v6239_v23 = vadd.f32 %v6238_v8, %v7754_v3 }
 0xcdf   :  { %v6240_v11 = vpop.f32.mrf.mxu1 }
 0xce0   :  { %6389 = vst [vmem:[%s7887_s3 + $0x10] sm:$0xff] %v6239_v23 }
 0xce1   :  { %v6243_v9 = vpop.f32.mrf.mxu1 }
 0xce2   :  { %v6244_v12 = vadd.f32 %v6243_v9, %v7754_v3 }
 0xce3   :  { %v6245_v15 = vpop.f32.mrf.mxu1 }
 0xce4   :  { %6390 = vst [vmem:[%s7887_s3 + $0x18] sm:$0xff] %v6244_v12 }
 0xce5   :  { %v6248_v13 = vpop.f32.mrf.mxu1 }
 0xce6   :  { %v6249_v16 = vadd.f32 %v6248_v13, %v7754_v3 }
 0xce7   :  { %v6250_v14 = vpop.f32.mrf.mxu1 }
 0xce8   :  { %6391 = vst [vmem:[%s7887_s3 + $0x20] sm:$0xff] %v6249_v16 }
 0xce9   :  { %v6253_v17 = vpop.f32.mrf.mxu1 }
 0xcea   :  { %v6254_v18 = vadd.f32 %v6253_v17, %v7754_v3 }
 0xceb   :  { %v6255_v21 = vpop.f32.mrf.mxu1 }
 0xcec   :  { %6392 = vst [vmem:[%s7887_s3 + $0x28] sm:$0xff] %v6254_v18 }
 0xced   :  { %v6258_v19 = vpop.f32.mrf.mxu1 }
 0xcee   :  { %v6259_v22 = vadd.f32 %v6258_v19, %v7754_v3 }
 0xcef   :  { %v6260_v20 = vpop.f32.mrf.mxu1 }
 0xcf0   :  { %6393 = vst [vmem:[%s7887_s3 + $0x30] sm:$0xff] %v6259_v22 }
 0xcf1   :  { %v6263_v24 = vpop.f32.mrf.mxu1 }
 0xcf2   :  { %v6264_v28 = vadd.f32 %v6263_v24, %v7754_v3 }
 0xcf3   :  { %v6265_v27 = vpop.f32.mrf.mxu1 }
 0xcf4   :  { %6394 = vst [vmem:[%s7887_s3 + $0x38] sm:$0xff] %v6264_v28 }
 0xcf5   :  { %v6268_v26 = vpop.f32.mrf.mxu1 }
 0xcf6   :  { %v6269_v30 = vadd.f32 %v6268_v26, %v7754_v3 }
 0xcf7   :  { %v6270_v29 = vpop.f32.mrf.mxu1 }
 0xcf8   :  { %6395 = vst [vmem:[%s7887_s3 + $0x40] sm:$0xff] %v6269_v30 }
 0xcf9   :  { %v6273_v31 = vpop.f32.mrf.mxu1 }
 0xcfa   :  { %v6274_v34 = vadd.f32 %v6273_v31, %v7754_v3 }
 0xcfb   :  { %v6275_v32 = vpop.f32.mrf.mxu1 }
 0xcfc   :  { %6396 = vst [vmem:[%s7887_s3 + $0x48] sm:$0xff] %v6274_v34 }
 0xcfd   :  { %v6278_v35 = vpop.f32.mrf.mxu1 }
 0xcfe   :  { %v6279_v33 = vadd.f32 %v6278_v35, %v7754_v3 }
 0xcff   :  { %v6280_v36 = vpop.f32.mrf.mxu1 }
 0xd00   :  { %6397 = vst [vmem:[%s7887_s3 + $0x50] sm:$0xff] %v6279_v33 }
 0xd01   :  { %v6283_v37 = vpop.f32.mrf.mxu1 }
 0xd02   :  { %v6284_v40 = vadd.f32 %v6283_v37, %v7754_v3 }
 0xd03   :  { %v6285_v38 = vpop.f32.mrf.mxu1 }
 0xd04   :  { %6398 = vst [vmem:[%s7887_s3 + $0x58] sm:$0xff] %v6284_v40 }
 0xd05   :  { %v6288_v41 = vpop.f32.mrf.mxu1 }
 0xd06   :  { %v6289_v39 = vadd.f32 %v6288_v41, %v7754_v3 }
 0xd07   :  { %v6290_v42 = vpop.f32.mrf.mxu1 }
 0xd08   :  { %6399 = vst [vmem:[%s7887_s3 + $0x60] sm:$0xff] %v6289_v39 }
 0xd09   :  { %v6293_v45 = vpop.f32.mrf.mxu1 }
 0xd0a   :  { %v6294_v44 = vadd.f32 %v6293_v45, %v7754_v3 }
 0xd0b   :  { %v6295_v43 = vpop.f32.mrf.mxu1 }
 0xd0c   :  { %6400 = vst [vmem:[%s7887_s3 + $0x68] sm:$0xff] %v6294_v44 }
 0xd0d   :  { %v6298_v47 = vpop.f32.mrf.mxu1 }
 0xd0e   :  { %v6299_v46 = vadd.f32 %v6298_v47, %v7754_v3 }
 0xd0f   :  { %v6300_v48 = vpop.f32.mrf.mxu1 }
 0xd10   :  { %6401 = vst [vmem:[%s7887_s3 + $0x70] sm:$0xff] %v6299_v46 }
 0xd11   :  { %v6303_v51 = vpop.f32.mrf.mxu1 }
 0xd12   :  { %v6304_v49 = vadd.f32 %v6303_v51, %v7754_v3 }
 0xd13   :  { %v6305_v52 = vpop.f32.mrf.mxu1 }
 0xd14   :  { %6402 = vst [vmem:[%s7887_s3 + $0x78] sm:$0xff] %v6304_v49 }
 0xd15   :  { %v6308_v50 = vpop.f32.mrf.mxu1 }
 0xd16   :  { %v6309_v53 = vadd.f32 %v6308_v50, %v7754_v3 }
 0xd17   :  { %v6310_v54 = vpop.f32.mrf.mxu1 }
 0xd18   :  { %6403 = vst [vmem:[%s7887_s3 + $0x80] sm:$0xff] %v6309_v53 }
 0xd19   :  { %v6313_v57 = vpop.f32.mrf.mxu1 }
 0xd1a   :  { %v6314_v55 = vadd.f32 %v6313_v57, %v7754_v3 }
 0xd1b   :  { %v6315_v59 = vpop.f32.mrf.mxu1 }
 0xd1c   :  { %6404 = vst [vmem:[%s7887_s3 + $0x88] sm:$0xff] %v6314_v55 }
 0xd1d   :  { %v6318_v62 = vpop.f32.mrf.mxu1 }
 0xd1e   :  { %v6319_v61 = vadd.f32 %v6318_v62, %v7754_v3 }
 0xd1f   :  { %v6320_v60 = vpop.f32.mrf.mxu1 }
 0xd20   :  { %6405 = vst [vmem:[%s7887_s3 + $0x90] sm:$0xff] %v6319_v61 }
 0xd21   :  { %v6323_v0 = vpop.f32.mrf.mxu1 }
 0xd22   :  { %v6324_v63 = vadd.f32 %v6323_v0, %v7754_v3 }
 0xd23   :  { %v6325_v1 = vpop.f32.mrf.mxu1 }
 0xd24   :  { %6406 = vst [vmem:[%s7887_s3 + $0x98] sm:$0xff] %v6324_v63 }
 0xd25   :  { %v6328_v4 = vpop.f32.mrf.mxu1 }
 0xd26   :  { %v6329_v2 = vadd.f32 %v6328_v4, %v7754_v3 }
 0xd27   :  { %v6330_v5 = vpop.f32.mrf.mxu1 }
 0xd28   :  { %6407 = vst [vmem:[%s7887_s3 + $0xa0] sm:$0xff] %v6329_v2 }
 0xd29   :  { %v6333_v6 = vpop.f32.mrf.mxu1 }
 0xd2a   :  { %v6334_v25 = vadd.f32 %v6333_v6, %v7754_v3 }
 0xd2b   :  { %v6335_v7 = vpop.f32.mrf.mxu1 }
 0xd2c   :  { %6408 = vst [vmem:[%s7887_s3 + $0xa8] sm:$0xff] %v6334_v25 }
 0xd2d   :  { %v6338_v58 = vpop.f32.mrf.mxu1 }
 0xd2e   :  { %v6339_v56 = vadd.f32 %v6338_v58, %v7754_v3 }
 0xd2f   :  { %v6340_v10 = vpop.f32.mrf.mxu1 }
 0xd30   :  { %6409 = vst [vmem:[%s7887_s3 + $0xb0] sm:$0xff] %v6339_v56 }
 0xd31   :  { %v6343_v8 = vpop.f32.mrf.mxu1 }
 0xd32   :  { %v6344_v23 = vadd.f32 %v6343_v8, %v7754_v3 }
 0xd33   :  { %v6345_v11 = vpop.f32.mrf.mxu1 }
 0xd34   :  { %6410 = vst [vmem:[%s7887_s3 + $0xb8] sm:$0xff] %v6344_v23 }
 0xd35   :  { %v6348_v9 = vpop.f32.mrf.mxu1 }
 0xd36   :  { %v6349_v12 = vadd.f32 %v6348_v9, %v7754_v3 }
 0xd37   :  { %v6350_v15 = vpop.f32.mrf.mxu1 }
 0xd38   :  { %6411 = vst [vmem:[%s7887_s3 + $0xc0] sm:$0xff] %v6349_v12 }
 0xd39   :  { %v6353_v13 = vpop.f32.mrf.mxu1 }
 0xd3a   :  { %v6354_v16 = vadd.f32 %v6353_v13, %v7754_v3 }
 0xd3b   :  { %v6355_v14 = vpop.f32.mrf.mxu1 }
 0xd3c   :  { %6412 = vst [vmem:[%s7887_s3 + $0xc8] sm:$0xff] %v6354_v16 }
 0xd3d   :  { %v6358_v17 = vpop.f32.mrf.mxu1 }
 0xd3e   :  { %v6359_v18 = vadd.f32 %v6358_v17, %v7754_v3 }
 0xd3f   :  { %v6360_v21 = vpop.f32.mrf.mxu1 }
 0xd40   :  { %6413 = vst [vmem:[%s7887_s3 + $0xd0] sm:$0xff] %v6359_v18 }
 0xd41   :  { %v6363_v19 = vpop.f32.mrf.mxu1 }
 0xd42   :  { %v6364_v22 = vadd.f32 %v6363_v19, %v7754_v3 }
 0xd43   :  { %v6365_v20 = vpop.f32.mrf.mxu1 }
 0xd44   :  { %6414 = vst [vmem:[%s7887_s3 + $0xd8] sm:$0xff] %v6364_v22 }
 0xd45   :  { %v6368_v24 = vpop.f32.mrf.mxu1 }
 0xd46   :  { %v6369_v28 = vadd.f32 %v6368_v24, %v7754_v3 }
 0xd47   :  { %v6370_v27 = vpop.f32.mrf.mxu1 }
 0xd48   :  { %6415 = vst [vmem:[%s7887_s3 + $0xe0] sm:$0xff] %v6369_v28 }
 0xd49   :  { %v6373_v26 = vpop.f32.mrf.mxu1 }
 0xd4a   :  { %v6374_v30 = vadd.f32 %v6373_v26, %v7754_v3 }
 0xd4b   :  { %v6375_v29 = vpop.f32.mrf.mxu1 }
 0xd4c   :  { %6416 = vst [vmem:[%s7887_s3 + $0xe8] sm:$0xff] %v6374_v30 }
 0xd4d   :  { %v6378_v31 = vpop.f32.mrf.mxu1 }
 0xd4e   :  { %v6379_v34 = vadd.f32 %v6378_v31, %v7754_v3 }
 0xd4f   :  { %v6380_v32 = vpop.f32.mrf.mxu1 }
 0xd50   :  { %6417 = vst [vmem:[%s7887_s3 + $0xf0] sm:$0xff] %v6379_v34 }
 0xd51   :  { %v6383_v35 = vpop.f32.mrf.mxu1 }
 0xd52   :  { %v6384_v33 = vadd.f32 %v6383_v35, %v7754_v3 }
 0xd53   :  { %v6385_v36 = vpop.f32.mrf.mxu1 }
 0xd54   :  { %6418 = vst [vmem:[%s7887_s3 + $0xf8] sm:$0xff] %v6384_v33 }
 0xd55   :  { %6423 = vsyncpa [#allocation3], 1 }
 0xd56   :  { %6424 = vsyncpa [#allocation5], 1 }

</bundles_post_ra>
